<compile_context>
chip_gen: v7x
topology: tpu7x:2x2x1
jax: 0.10.0
libtpu: 0.0.40
codegen_flags: <defaults>
</compile_context>

<pallas_src>
import functools

import jax
import jax.numpy as jnp
from jax.experimental import pallas as pl
from jax.experimental.pallas import tpu as pltpu

BN_EPS = 1e-5
VMEM_LIMIT = 48 * 1024 * 1024   # explicit scoped-VMEM cap (safe on v5e/v6e/v7x)


def _round_up(x, m):
    return (x + m - 1) // m * m


# ---------------------------------------------------------------------------
# Pallas kernels
# ---------------------------------------------------------------------------
def _conv3x3_stats_kernel(x_ref, w_ref, mask_ref, y_ref, s_ref,
                          *, wp, hp, halo, dot_dtype):
    """conv1: per-chunk 3-matmul (K=3*Cin) 3x3 conv + masked partial BN stats."""
    c_out = w_ref.shape[2]
    tile = 8 * wp                     # flat rows per chunk (8 grid rows)
    text = tile + 2 * wp              # rows of the shifted/concat window
    n_chunks = hp // 8

    s1 = jnp.zeros((1, c_out), jnp.float32)
    s2 = jnp.zeros((1, c_out), jnp.float32)

    for c in range(n_chunks):
        r0 = c * tile                 # first core (flat) output row of chunk
        b = halo + r0 - wp            # slab row of the topmost vertical tap
        # one extended read, three shifted views, lane-concat -> K = 3*Cin
        ext = x_ref[0, b - 1:b + text + 1, :]                 # (text+2, Cin)
        xa = jnp.concatenate(
            [ext[0:text], ext[1:text + 1], ext[2:text + 2]],
            axis=-1).astype(dot_dtype)                        # (text, 3*Cin)

        acc = jnp.zeros((tile, c_out), jnp.float32)
        for d in range(3):            # row-aligned vertical taps (d*wp slices)
            acc = acc + jnp.dot(xa[d * wp:d * wp + tile, :], w_ref[d],
                                preferred_element_type=jnp.float32)

        m = mask_ref[halo + r0:halo + r0 + tile, :]           # (tile, 1)
        am = acc * m                  # mask applied once; reused for both sums
        s1 = s1 + jnp.sum(am, axis=0, keepdims=True)
        s2 = s2 + jnp.sum(am * acc, axis=0, keepdims=True)

        y_ref[0, halo + r0:halo + r0 + tile, :] = acc.astype(y_ref.dtype)

    s_ref[0, 0:1, :] = s1
    s_ref[0, 1:2, :] = s2


def _bn_relu_conv3x3_stats_kernel(y1_ref, sc_ref, sh_ref, w_ref, mask_ref,
                                  y2_ref, s_ref, *, wp, hp, halo, dot_dtype):
    """BN1 scale/shift + ReLU (per chunk) fused into conv2 + partial BN2 stats."""
    c_out = w_ref.shape[2]
    tile = 8 * wp
    text = tile + 2 * wp
    n_chunks = hp // 8

    sc = sc_ref[...]                  # (1, Cmid) f32
    sh = sh_ref[...]

    s1 = jnp.zeros((1, c_out), jnp.float32)
    s2 = jnp.zeros((1, c_out), jnp.float32)

    for c in range(n_chunks):
        r0 = c * tile
        b = halo + r0 - wp
        ext = y1_ref[0, b - 1:b + text + 1, :].astype(jnp.float32)  # per-chunk
        mcol = mask_ref[b - 1:b + text + 1, :]                      # (text+2, 1)
        # select (not multiply): un-written halo rows of y1pre may hold any bit
        # pattern (even NaN/Inf); the select also realises conv2's zero padding.
        yb = jnp.where(mcol > 0.0,
                       jnp.maximum(ext * sc + sh, 0.0),
                       0.0).astype(dot_dtype)                       # (text+2, Cmid)
        ya = jnp.concatenate(
            [yb[0:text], yb[1:text + 1], yb[2:text + 2]],
            axis=-1)                                                # (text, 3*Cmid)

        acc = jnp.zeros((tile, c_out), jnp.float32)
        for d in range(3):
            acc = acc + jnp.dot(ya[d * wp:d * wp + tile, :], w_ref[d],
                                preferred_element_type=jnp.float32)

        m = mask_ref[halo + r0:halo + r0 + tile, :]
        am = acc * m
        s1 = s1 + jnp.sum(am, axis=0, keepdims=True)
        s2 = s2 + jnp.sum(am * acc, axis=0, keepdims=True)

        y2_ref[0, r0:r0 + tile, :] = acc.astype(y2_ref.dtype)

    s_ref[0, 0:1, :] = s1
    s_ref[0, 1:2, :] = s2


def _bn_relu_upconv_kernel(y2_ref, sc_ref, sh_ref, w_ref, b_ref, z_ref,
                           *, dot_dtype):
    """BN2 + ReLU + ConvTranspose2d(k=2,s=2) as one (Cmid -> 4*Cout) matmul."""
    y = jnp.maximum(y2_ref[0].astype(jnp.float32) * sc_ref[...] + sh_ref[...],
                    0.0)
    z = jnp.dot(y.astype(dot_dtype), w_ref[...],
                preferred_element_type=jnp.float32)
    z_ref[0] = z + b_ref[...]


# ---------------------------------------------------------------------------
# pallas_call wrappers
# ---------------------------------------------------------------------------
def _conv3x3_stats(xf, w, mask_full, *, wp, hp, halo, out_dtype, dot_dtype):
    n, lh, c_in = xf.shape
    c_out = w.shape[2]
    kernel = functools.partial(_conv3x3_stats_kernel, wp=wp, hp=hp, halo=halo,
                               dot_dtype=dot_dtype)
    return pl.pallas_call(
        kernel,
        grid=(n,),
        in_specs=[
            pl.BlockSpec((1, lh, c_in), lambda i: (i, 0, 0)),
            pl.BlockSpec(w.shape, lambda i: (0, 0, 0)),
            pl.BlockSpec(mask_full.shape, lambda i: (0, 0)),
        ],
        out_specs=[
            pl.BlockSpec((1, lh, c_out), lambda i: (i, 0, 0)),
            pl.BlockSpec((1, 2, c_out), lambda i: (i, 0, 0)),
        ],
        out_shape=[
            jax.ShapeDtypeStruct((n, lh, c_out), out_dtype),
            jax.ShapeDtypeStruct((n, 2, c_out), jnp.float32),
        ],
        compiler_params=pltpu.CompilerParams(
            dimension_semantics=("parallel",),
            vmem_limit_bytes=VMEM_LIMIT),
    )(xf, w, mask_full)


def _bn_relu_conv3x3_stats(y1pre, scale, shift, w, mask_full,
                           *, wp, hp, halo, out_dtype, dot_dtype):
    n, lh, c_in = y1pre.shape
    c_out = w.shape[2]
    hpwp = hp * wp
    kernel = functools.partial(_bn_relu_conv3x3_stats_kernel, wp=wp, hp=hp,
                               halo=halo, dot_dtype=dot_dtype)
    return pl.pallas_call(
        kernel,
        grid=(n,),
        in_specs=[
            pl.BlockSpec((1, lh, c_in), lambda i: (i, 0, 0)),
            pl.BlockSpec(scale.shape, lambda i: (0, 0)),
            pl.BlockSpec(shift.shape, lambda i: (0, 0)),
            pl.BlockSpec(w.shape, lambda i: (0, 0, 0)),
            pl.BlockSpec(mask_full.shape, lambda i: (0, 0)),
        ],
        out_specs=[
            pl.BlockSpec((1, hpwp, c_out), lambda i: (i, 0, 0)),
            pl.BlockSpec((1, 2, c_out), lambda i: (i, 0, 0)),
        ],
        out_shape=[
            jax.ShapeDtypeStruct((n, hpwp, c_out), out_dtype),
            jax.ShapeDtypeStruct((n, 2, c_out), jnp.float32),
        ],
        compiler_params=pltpu.CompilerParams(
            dimension_semantics=("parallel",),
            vmem_limit_bytes=VMEM_LIMIT),
    )(y1pre, scale, shift, w, mask_full)


def _bn_relu_upconv(y2pre, scale, shift, wup, bup, *, wp, hp, dot_dtype):
    n, hpwp, c_mid = y2pre.shape
    c4 = wup.shape[1]
    tile = 8 * wp
    n_chunks = hp // 8
    kernel = functools.partial(_bn_relu_upconv_kernel, dot_dtype=dot_dtype)
    return pl.pallas_call(
        kernel,
        grid=(n, n_chunks),
        in_specs=[
            pl.BlockSpec((1, tile, c_mid), lambda i, c: (i, c, 0)),
            pl.BlockSpec(scale.shape, lambda i, c: (0, 0)),
            pl.BlockSpec(shift.shape, lambda i, c: (0, 0)),
            pl.BlockSpec(wup.shape, lambda i, c: (0, 0)),
            pl.BlockSpec(bup.shape, lambda i, c: (0, 0)),
        ],
        out_specs=pl.BlockSpec((1, tile, c4), lambda i, c: (i, c, 0)),
        out_shape=jax.ShapeDtypeStruct((n, hpwp, c4), jnp.float32),
        compiler_params=pltpu.CompilerParams(
            dimension_semantics=("parallel", "parallel"),
            vmem_limit_bytes=VMEM_LIMIT),
    )(y2pre, scale, shift, wup, bup)


# ---------------------------------------------------------------------------
# Glue
# ---------------------------------------------------------------------------
def _fold_bn(stats, gamma, beta, count):
    """Fold global batch stats + gamma/beta into per-channel scale/shift."""
    tot = jnp.sum(stats, axis=0)                       # (2, C)
    mean = tot[0] / count
    var = jnp.maximum(tot[1] / count - mean * mean, 0.0)   # biased variance
    scale = gamma * jax.lax.rsqrt(var + BN_EPS)
    shift = beta - mean * scale
    c = gamma.shape[0]
    return (scale.reshape(1, c).astype(jnp.float32),
            shift.reshape(1, c).astype(jnp.float32))


def decoder_block_forward(x_nchw, params, compute_dtype=jnp.float32,
                          intermediate_dtype=None):
    """Matches decoder_block.forward (training-mode BN, last_block_channels==0)."""
    w1, b1, w2, b2, gamma, beta, w_up, b_up = params
    del b1, b2    # conv biases are exactly cancelled by the BN mean subtraction
    if intermediate_dtype is None:
        intermediate_dtype = compute_dtype
    n, c_in, h, w = x_nchw.shape
    c_mid = w1.shape[-1]
    c_out = w_up.shape[-1]

    # flat padded layout geometry (sublane-friendly)
    wp = _round_up(w + 2, 8)            # padded grid width
    hp = _round_up(h + 2, 8)            # padded grid height
    halo = wp + 8                       # >= wp+1, multiple of 8
    hpwp = hp * wp
    lh = hpwp + 2 * halo

    # --- layout prep: NCHW -> NHWC -> zero-padded grid -> flat rows + halo ---
    x = jnp.transpose(x_nchw, (0, 2, 3, 1)).astype(jnp.float32)
    xg = jnp.pad(x, ((0, 0), (1, hp - h - 1), (1, wp - w - 1), (0, 0)))
    xf = jnp.pad(xg.reshape(n, hpwp, c_in), ((0, 0), (halo, halo), (0, 0)))
    xf = xf.astype(compute_dtype)                                   # (N, lh, Cin)

    # validity mask (valid pixels occupy grid rows 1..h, cols 1..w)
    f = jnp.arange(hpwp)
    gy, gx = f // wp, f % wp
    mask_core = (((gy >= 1) & (gy <= h) & (gx >= 1) & (gx <= w))
                 .astype(jnp.float32)[:, None])                     # (hpwp, 1)
    mask_full = jnp.pad(mask_core, ((halo, halo), (0, 0)))          # (lh, 1)

    # weights: HWIO -> (3, 3*Cin, Cout) for K-concat; ConvT taps -> (Cmid, 4*Cout)
    w1k = w1.reshape(3, 3 * c_in, c_mid).astype(compute_dtype)
    w2k = w2.reshape(3, 3 * c_mid, c_mid).astype(compute_dtype)
    wupm = w_up.reshape(c_mid, 4 * c_out).astype(compute_dtype)
    bup4 = jnp.tile(b_up, 4).reshape(1, 4 * c_out).astype(jnp.float32)

    count = n * h * w

    # conv1 (+ BN1 partial stats)
    y1pre, st1 = _conv3x3_stats(
        xf, w1k, mask_full, wp=wp, hp=hp, halo=halo,
        out_dtype=intermediate_dtype, dot_dtype=compute_dtype)
    scale1, shift1 = _fold_bn(st1, gamma, beta, count)

    # BN1 + ReLU + conv2 (+ BN2 partial stats), fused
    y2pre, st2 = _bn_relu_conv3x3_stats(
        y1pre, scale1, shift1, w2k, mask_full,
        wp=wp, hp=hp, halo=halo,
        out_dtype=intermediate_dtype, dot_dtype=compute_dtype)
    scale2, shift2 = _fold_bn(st2, gamma, beta, count)

    # BN2 + ReLU + ConvTranspose2d(k=2, s=2) matmul (row-tiled grid)
    z = _bn_relu_upconv(y2pre, scale2, shift2, wupm, bup4,
                        wp=wp, hp=hp, dot_dtype=compute_dtype)

    # crop padding ring + scatter the 2x2 taps onto the upsampled grid
    z = z.reshape(n, hp, wp, 2, 2, c_out)[:, 1:h + 1, 1:w + 1]
    z = z.transpose(0, 1, 3, 2, 4, 5).reshape(n, 2 * h, 2 * w, c_out)
    return jnp.transpose(z, (0, 3, 1, 2))                           # NCHW


# ---------------------------------------------------------------------------
# Pure-JAX reference (for correctness check)
# ---------------------------------------------------------------------------
def reference_forward(x_nchw, params):
    w1, b1, w2, b2, gamma, beta, w_up, b_up = params
    x = jnp.transpose(x_nchw, (0, 2, 3, 1)).astype(jnp.float32)

    def conv3(x, w_hwio, b):
        y = jax.lax.conv_general_dilated(
            x, w_hwio, (1, 1), "SAME",
            dimension_numbers=("NHWC", "HWIO", "NHWC"))
        return y + b

    def bn_relu(x):
        m = jnp.mean(x, axis=(0, 1, 2), keepdims=True)
        v = jnp.mean(jnp.square(x - m), axis=(0, 1, 2), keepdims=True)
        return jnp.maximum((x - m) * jax.lax.rsqrt(v + BN_EPS) * gamma + beta, 0.0)

    y = bn_relu(conv3(x, w1, b1))
    y = bn_relu(conv3(y, w2, b2))

    n, h, w, _ = y.shape
    c_out = w_up.shape[-1]
    z = jnp.einsum("nhwc,cijo->nhwijo", y, w_up)            # (N,H,W,2,2,Cout)
    z = z.transpose(0, 1, 3, 2, 4, 5).reshape(n, 2 * h, 2 * w, c_out) + b_up
    return jnp.transpose(z, (0, 3, 1, 2))


# ---------------------------------------------------------------------------
if __name__ == "__main__":
    N, Cin, Cmid, Cout, H, W = 2, 4, 8, 4, 16, 16

    key = jax.random.PRNGKey(0)
    ks = jax.random.split(key, 9)
    x = jax.random.normal(ks[0], (N, Cin, H, W), jnp.float32)

    w1 = 0.1 * jax.random.normal(ks[1], (3, 3, Cin, Cmid), jnp.float32)   # HWIO
    b1 = 0.1 * jax.random.normal(ks[2], (Cmid,), jnp.float32)
    w2 = 0.1 * jax.random.normal(ks[3], (3, 3, Cmid, Cmid), jnp.float32)  # HWIO
    b2 = 0.1 * jax.random.normal(ks[4], (Cmid,), jnp.float32)
    gamma = 1.0 + 0.1 * jax.random.normal(ks[5], (Cmid,), jnp.float32)
    beta = 0.1 * jax.random.normal(ks[6], (Cmid,), jnp.float32)
    w_up = 0.1 * jax.random.normal(ks[7], (Cmid, 2, 2, Cout), jnp.float32)
    b_up = 0.1 * jax.random.normal(ks[8], (Cout,), jnp.float32)

    params = (w1, b1, w2, b2, gamma, beta, w_up, b_up)

    ref = jax.block_until_ready(reference_forward(x, params))

    # f32 path: semantics check against the pure-JAX reference.
    fwd_f32 = jax.jit(functools.partial(decoder_block_forward,
                                        compute_dtype=jnp.float32))
    out = jax.block_until_ready(fwd_f32(x, params))
    assert out.shape == (N, Cout, 2 * H, 2 * W), out.shape
    assert jnp.allclose(out, ref, atol=2e-4, rtol=2e-4), float(
        jnp.max(jnp.abs(out - ref)))

    # bf16 fast path (bf16 MXU operands + bf16 intermediates, halved HBM bytes).
    fwd_bf16 = jax.jit(functools.partial(decoder_block_forward,
                                         compute_dtype=jnp.bfloat16))
    out_bf = jax.block_until_ready(fwd_bf16(x, params))
    assert out_bf.shape == (N, Cout, 2 * H, 2 * W), out_bf.shape
    assert jnp.allclose(out_bf, ref, atol=1e-1, rtol=1e-1), float(
        jnp.max(jnp.abs(out_bf - ref)))

    print("KERNEL_OK")
</pallas_src>

<mosaic_0001>
module attributes {stable_mosaic.version = 11 : i64} {
  func.func @_conv3x3_stats_kernel(%arg0: i32, %arg1: memref<1x640x4xf32, #tpu.memory_space<vmem>>, %arg2: memref<3x12x8xf32, #tpu.memory_space<vmem>>, %arg3: memref<640x1xf32, #tpu.memory_space<vmem>>, %arg4: memref<1x640x8xf32, #tpu.memory_space<vmem>>, %arg5: memref<1x2x8xf32, #tpu.memory_space<vmem>>) attributes {dimension_semantics = [#tpu.dimension_semantics<parallel>], iteration_bounds = array<i64: 2>, scalar_prefetch = 0 : i64, scratch_operands = 0 : i64, tpu.core_type = #tpu.core_type<tc>, window_params = [{transform_indices = @transform_0, window_bounds = array<i64: 1, 640, 4>}, {pipeline_mode = #tpu.pipeline_mode<synchronous>, transform_indices = @transform_1, window_bounds = array<i64: 3, 12, 8>}, {pipeline_mode = #tpu.pipeline_mode<synchronous>, transform_indices = @transform_2, window_bounds = array<i64: 640, 1>}, {transform_indices = @transform_3, window_bounds = array<i64: 1, 640, 8>}, {transform_indices = @transform_4, window_bounds = array<i64: 1, 2, 8>}]} {
    %cst = arith.constant 0.000000e+00 : f32
    %0 = vector.broadcast %cst : f32 to vector<1x8xf32>
    %cst_0 = arith.constant 0.000000e+00 : f32
    %1 = vector.broadcast %cst_0 : f32 to vector<1x8xf32>
    %c0 = arith.constant 0 : index
    %c7 = arith.constant 7 : index
    %c0_1 = arith.constant 0 : index
    %2 = vector.load %arg1[%c0, %c7, %c0_1] : memref<1x640x4xf32, #tpu.memory_space<vmem>>, vector<1x242x4xf32>
    %3 = vector.shape_cast %2 : vector<1x242x4xf32> to vector<242x4xf32>
    %4 = vector.extract_strided_slice %3 {offsets = [0, 0], sizes = [240, 4], strides = [1, 1]} : vector<242x4xf32> to vector<240x4xf32>
    %5 = vector.extract_strided_slice %3 {offsets = [1, 0], sizes = [240, 4], strides = [1, 1]} : vector<242x4xf32> to vector<240x4xf32>
    %6 = vector.extract_strided_slice %3 {offsets = [2, 0], sizes = [240, 4], strides = [1, 1]} : vector<242x4xf32> to vector<240x4xf32>
    %7 = tpu.concatenate %4, %5, %6 in 1 : vector<240x4xf32>, vector<240x4xf32>, vector<240x4xf32> -> vector<240x12xf32>
    %cst_2 = arith.constant 0.000000e+00 : f32
    %8 = vector.broadcast %cst_2 : f32 to vector<192x8xf32>
    %9 = vector.extract_strided_slice %7 {offsets = [0, 0], sizes = [192, 12], strides = [1, 1]} : vector<240x12xf32> to vector<192x12xf32>
    %c0_3 = arith.constant 0 : index
    %c0_4 = arith.constant 0 : index
    %c0_5 = arith.constant 0 : index
    %10 = vector.load %arg2[%c0_3, %c0_4, %c0_5] : memref<3x12x8xf32, #tpu.memory_space<vmem>>, vector<1x12x8xf32>
    %11 = vector.shape_cast %10 : vector<1x12x8xf32> to vector<12x8xf32>
    %cst_6 = arith.constant dense<0.000000e+00> : vector<192x8xf32>
    %12 = tpu.matmul %9, %11, %cst_6 {dimension_numbers = #tpu.dot_dimension_numbers<[1], [0], [0], [1], [0, 0, 1, 1], [], []>} : vector<192x12xf32>, vector<12x8xf32>, vector<192x8xf32> -> vector<192x8xf32>
    %13 = arith.addf %8, %12 : vector<192x8xf32>
    %14 = vector.extract_strided_slice %7 {offsets = [24, 0], sizes = [192, 12], strides = [1, 1]} : vector<240x12xf32> to vector<192x12xf32>
    %c1 = arith.constant 1 : index
    %c0_7 = arith.constant 0 : index
    %c0_8 = arith.constant 0 : index
    %15 = vector.load %arg2[%c1, %c0_7, %c0_8] : memref<3x12x8xf32, #tpu.memory_space<vmem>>, vector<1x12x8xf32>
    %16 = vector.shape_cast %15 : vector<1x12x8xf32> to vector<12x8xf32>
    %cst_9 = arith.constant dense<0.000000e+00> : vector<192x8xf32>
    %17 = tpu.matmul %14, %16, %cst_9 {dimension_numbers = #tpu.dot_dimension_numbers<[1], [0], [0], [1], [0, 0, 1, 1], [], []>} : vector<192x12xf32>, vector<12x8xf32>, vector<192x8xf32> -> vector<192x8xf32>
    %18 = arith.addf %13, %17 : vector<192x8xf32>
    %19 = vector.extract_strided_slice %7 {offsets = [48, 0], sizes = [192, 12], strides = [1, 1]} : vector<240x12xf32> to vector<192x12xf32>
    %c2 = arith.constant 2 : index
    %c0_10 = arith.constant 0 : index
    %c0_11 = arith.constant 0 : index
    %20 = vector.load %arg2[%c2, %c0_10, %c0_11] : memref<3x12x8xf32, #tpu.memory_space<vmem>>, vector<1x12x8xf32>
    %21 = vector.shape_cast %20 : vector<1x12x8xf32> to vector<12x8xf32>
    %cst_12 = arith.constant dense<0.000000e+00> : vector<192x8xf32>
    %22 = tpu.matmul %19, %21, %cst_12 {dimension_numbers = #tpu.dot_dimension_numbers<[1], [0], [0], [1], [0, 0, 1, 1], [], []>} : vector<192x12xf32>, vector<12x8xf32>, vector<192x8xf32> -> vector<192x8xf32>
    %23 = arith.addf %18, %22 : vector<192x8xf32>
    %c32 = arith.constant 32 : index
    %c0_13 = arith.constant 0 : index
    %24 = vector.load %arg3[%c32, %c0_13] : memref<640x1xf32, #tpu.memory_space<vmem>>, vector<192x1xf32>
    %25 = vector.broadcast %24 : vector<192x1xf32> to vector<192x8xf32>
    %26 = arith.mulf %23, %25 : vector<192x8xf32>
    %cst_14 = arith.constant dense<0.000000e+00> : vector<8xf32>
    %27 = vector.multi_reduction <add>, %26, %cst_14 [0] : vector<192x8xf32> to vector<8xf32>
    %28 = vector.shape_cast %27 : vector<8xf32> to vector<1x8xf32>
    %29 = arith.addf %0, %28 : vector<1x8xf32>
    %30 = arith.mulf %26, %23 : vector<192x8xf32>
    %cst_15 = arith.constant dense<0.000000e+00> : vector<8xf32>
    %31 = vector.multi_reduction <add>, %30, %cst_15 [0] : vector<192x8xf32> to vector<8xf32>
    %32 = vector.shape_cast %31 : vector<8xf32> to vector<1x8xf32>
    %33 = arith.addf %1, %32 : vector<1x8xf32>
    %c0_16 = arith.constant 0 : index
    %c32_17 = arith.constant 32 : index
    %c0_18 = arith.constant 0 : index
    %34 = vector.load %arg4[%c0_16, %c32_17, %c0_18] : memref<1x640x8xf32, #tpu.memory_space<vmem>>, vector<1x192x8xf32>
    %35 = vector.shape_cast %34 : vector<1x192x8xf32> to vector<192x8xf32>
    %36 = vector.shape_cast %23 : vector<192x8xf32> to vector<1x192x8xf32>
    tpu.vector_store %arg4[%c0_16, %c32_17, %c0_18], %36 {strides = array<i32>} : memref<1x640x8xf32, #tpu.memory_space<vmem>>, vector<1x192x8xf32>,
    %c0_19 = arith.constant 0 : index
    %c199 = arith.constant 199 : index
    %c0_20 = arith.constant 0 : index
    %37 = vector.load %arg1[%c0_19, %c199, %c0_20] : memref<1x640x4xf32, #tpu.memory_space<vmem>>, vector<1x242x4xf32>
    %38 = vector.shape_cast %37 : vector<1x242x4xf32> to vector<242x4xf32>
    %39 = vector.extract_strided_slice %38 {offsets = [0, 0], sizes = [240, 4], strides = [1, 1]} : vector<242x4xf32> to vector<240x4xf32>
    %40 = vector.extract_strided_slice %38 {offsets = [1, 0], sizes = [240, 4], strides = [1, 1]} : vector<242x4xf32> to vector<240x4xf32>
    %41 = vector.extract_strided_slice %38 {offsets = [2, 0], sizes = [240, 4], strides = [1, 1]} : vector<242x4xf32> to vector<240x4xf32>
    %42 = tpu.concatenate %39, %40, %41 in 1 : vector<240x4xf32>, vector<240x4xf32>, vector<240x4xf32> -> vector<240x12xf32>
    %cst_21 = arith.constant 0.000000e+00 : f32
    %43 = vector.broadcast %cst_21 : f32 to vector<192x8xf32>
    %44 = vector.extract_strided_slice %42 {offsets = [0, 0], sizes = [192, 12], strides = [1, 1]} : vector<240x12xf32> to vector<192x12xf32>
    %c0_22 = arith.constant 0 : index
    %c0_23 = arith.constant 0 : index
    %c0_24 = arith.constant 0 : index
    %45 = vector.load %arg2[%c0_22, %c0_23, %c0_24] : memref<3x12x8xf32, #tpu.memory_space<vmem>>, vector<1x12x8xf32>
    %46 = vector.shape_cast %45 : vector<1x12x8xf32> to vector<12x8xf32>
    %cst_25 = arith.constant dense<0.000000e+00> : vector<192x8xf32>
    %47 = tpu.matmul %44, %46, %cst_25 {dimension_numbers = #tpu.dot_dimension_numbers<[1], [0], [0], [1], [0, 0, 1, 1], [], []>} : vector<192x12xf32>, vector<12x8xf32>, vector<192x8xf32> -> vector<192x8xf32>
    %48 = arith.addf %43, %47 : vector<192x8xf32>
    %49 = vector.extract_strided_slice %42 {offsets = [24, 0], sizes = [192, 12], strides = [1, 1]} : vector<240x12xf32> to vector<192x12xf32>
    %c1_26 = arith.constant 1 : index
    %c0_27 = arith.constant 0 : index
    %c0_28 = arith.constant 0 : index
    %50 = vector.load %arg2[%c1_26, %c0_27, %c0_28] : memref<3x12x8xf32, #tpu.memory_space<vmem>>, vector<1x12x8xf32>
    %51 = vector.shape_cast %50 : vector<1x12x8xf32> to vector<12x8xf32>
    %cst_29 = arith.constant dense<0.000000e+00> : vector<192x8xf32>
    %52 = tpu.matmul %49, %51, %cst_29 {dimension_numbers = #tpu.dot_dimension_numbers<[1], [0], [0], [1], [0, 0, 1, 1], [], []>} : vector<192x12xf32>, vector<12x8xf32>, vector<192x8xf32> -> vector<192x8xf32>
    %53 = arith.addf %48, %52 : vector<192x8xf32>
    %54 = vector.extract_strided_slice %42 {offsets = [48, 0], sizes = [192, 12], strides = [1, 1]} : vector<240x12xf32> to vector<192x12xf32>
    %c2_30 = arith.constant 2 : index
    %c0_31 = arith.constant 0 : index
    %c0_32 = arith.constant 0 : index
    %55 = vector.load %arg2[%c2_30, %c0_31, %c0_32] : memref<3x12x8xf32, #tpu.memory_space<vmem>>, vector<1x12x8xf32>
    %56 = vector.shape_cast %55 : vector<1x12x8xf32> to vector<12x8xf32>
    %cst_33 = arith.constant dense<0.000000e+00> : vector<192x8xf32>
    %57 = tpu.matmul %54, %56, %cst_33 {dimension_numbers = #tpu.dot_dimension_numbers<[1], [0], [0], [1], [0, 0, 1, 1], [], []>} : vector<192x12xf32>, vector<12x8xf32>, vector<192x8xf32> -> vector<192x8xf32>
    %58 = arith.addf %53, %57 : vector<192x8xf32>
    %c224 = arith.constant 224 : index
    %c0_34 = arith.constant 0 : index
    %59 = vector.load %arg3[%c224, %c0_34] : memref<640x1xf32, #tpu.memory_space<vmem>>, vector<192x1xf32>
    %60 = vector.broadcast %59 : vector<192x1xf32> to vector<192x8xf32>
    %61 = arith.mulf %58, %60 : vector<192x8xf32>
    %cst_35 = arith.constant dense<0.000000e+00> : vector<8xf32>
    %62 = vector.multi_reduction <add>, %61, %cst_35 [0] : vector<192x8xf32> to vector<8xf32>
    %63 = vector.shape_cast %62 : vector<8xf32> to vector<1x8xf32>
    %64 = arith.addf %29, %63 : vector<1x8xf32>
    %65 = arith.mulf %61, %58 : vector<192x8xf32>
    %cst_36 = arith.constant dense<0.000000e+00> : vector<8xf32>
    %66 = vector.multi_reduction <add>, %65, %cst_36 [0] : vector<192x8xf32> to vector<8xf32>
    %67 = vector.shape_cast %66 : vector<8xf32> to vector<1x8xf32>
    %68 = arith.addf %33, %67 : vector<1x8xf32>
    %c0_37 = arith.constant 0 : index
    %c224_38 = arith.constant 224 : index
    %c0_39 = arith.constant 0 : index
    %69 = vector.load %arg4[%c0_37, %c224_38, %c0_39] : memref<1x640x8xf32, #tpu.memory_space<vmem>>, vector<1x192x8xf32>
    %70 = vector.shape_cast %69 : vector<1x192x8xf32> to vector<192x8xf32>
    %71 = vector.shape_cast %58 : vector<192x8xf32> to vector<1x192x8xf32>
    tpu.vector_store %arg4[%c0_37, %c224_38, %c0_39], %71 {strides = array<i32>} : memref<1x640x8xf32, #tpu.memory_space<vmem>>, vector<1x192x8xf32>,
    %c0_40 = arith.constant 0 : index
    %c391 = arith.constant 391 : index
    %c0_41 = arith.constant 0 : index
    %72 = vector.load %arg1[%c0_40, %c391, %c0_41] : memref<1x640x4xf32, #tpu.memory_space<vmem>>, vector<1x242x4xf32>
    %73 = vector.shape_cast %72 : vector<1x242x4xf32> to vector<242x4xf32>
    %74 = vector.extract_strided_slice %73 {offsets = [0, 0], sizes = [240, 4], strides = [1, 1]} : vector<242x4xf32> to vector<240x4xf32>
    %75 = vector.extract_strided_slice %73 {offsets = [1, 0], sizes = [240, 4], strides = [1, 1]} : vector<242x4xf32> to vector<240x4xf32>
    %76 = vector.extract_strided_slice %73 {offsets = [2, 0], sizes = [240, 4], strides = [1, 1]} : vector<242x4xf32> to vector<240x4xf32>
    %77 = tpu.concatenate %74, %75, %76 in 1 : vector<240x4xf32>, vector<240x4xf32>, vector<240x4xf32> -> vector<240x12xf32>
    %cst_42 = arith.constant 0.000000e+00 : f32
    %78 = vector.broadcast %cst_42 : f32 to vector<192x8xf32>
    %79 = vector.extract_strided_slice %77 {offsets = [0, 0], sizes = [192, 12], strides = [1, 1]} : vector<240x12xf32> to vector<192x12xf32>
    %c0_43 = arith.constant 0 : index
    %c0_44 = arith.constant 0 : index
    %c0_45 = arith.constant 0 : index
    %80 = vector.load %arg2[%c0_43, %c0_44, %c0_45] : memref<3x12x8xf32, #tpu.memory_space<vmem>>, vector<1x12x8xf32>
    %81 = vector.shape_cast %80 : vector<1x12x8xf32> to vector<12x8xf32>
    %cst_46 = arith.constant dense<0.000000e+00> : vector<192x8xf32>
    %82 = tpu.matmul %79, %81, %cst_46 {dimension_numbers = #tpu.dot_dimension_numbers<[1], [0], [0], [1], [0, 0, 1, 1], [], []>} : vector<192x12xf32>, vector<12x8xf32>, vector<192x8xf32> -> vector<192x8xf32>
    %83 = arith.addf %78, %82 : vector<192x8xf32>
    %84 = vector.extract_strided_slice %77 {offsets = [24, 0], sizes = [192, 12], strides = [1, 1]} : vector<240x12xf32> to vector<192x12xf32>
    %c1_47 = arith.constant 1 : index
    %c0_48 = arith.constant 0 : index
    %c0_49 = arith.constant 0 : index
    %85 = vector.load %arg2[%c1_47, %c0_48, %c0_49] : memref<3x12x8xf32, #tpu.memory_space<vmem>>, vector<1x12x8xf32>
    %86 = vector.shape_cast %85 : vector<1x12x8xf32> to vector<12x8xf32>
    %cst_50 = arith.constant dense<0.000000e+00> : vector<192x8xf32>
    %87 = tpu.matmul %84, %86, %cst_50 {dimension_numbers = #tpu.dot_dimension_numbers<[1], [0], [0], [1], [0, 0, 1, 1], [], []>} : vector<192x12xf32>, vector<12x8xf32>, vector<192x8xf32> -> vector<192x8xf32>
    %88 = arith.addf %83, %87 : vector<192x8xf32>
    %89 = vector.extract_strided_slice %77 {offsets = [48, 0], sizes = [192, 12], strides = [1, 1]} : vector<240x12xf32> to vector<192x12xf32>
    %c2_51 = arith.constant 2 : index
    %c0_52 = arith.constant 0 : index
    %c0_53 = arith.constant 0 : index
    %90 = vector.load %arg2[%c2_51, %c0_52, %c0_53] : memref<3x12x8xf32, #tpu.memory_space<vmem>>, vector<1x12x8xf32>
    %91 = vector.shape_cast %90 : vector<1x12x8xf32> to vector<12x8xf32>
    %cst_54 = arith.constant dense<0.000000e+00> : vector<192x8xf32>
    %92 = tpu.matmul %89, %91, %cst_54 {dimension_numbers = #tpu.dot_dimension_numbers<[1], [0], [0], [1], [0, 0, 1, 1], [], []>} : vector<192x12xf32>, vector<12x8xf32>, vector<192x8xf32> -> vector<192x8xf32>
    %93 = arith.addf %88, %92 : vector<192x8xf32>
    %c416 = arith.constant 416 : index
    %c0_55 = arith.constant 0 : index
    %94 = vector.load %arg3[%c416, %c0_55] : memref<640x1xf32, #tpu.memory_space<vmem>>, vector<192x1xf32>
    %95 = vector.broadcast %94 : vector<192x1xf32> to vector<192x8xf32>
    %96 = arith.mulf %93, %95 : vector<192x8xf32>
    %cst_56 = arith.constant dense<0.000000e+00> : vector<8xf32>
    %97 = vector.multi_reduction <add>, %96, %cst_56 [0] : vector<192x8xf32> to vector<8xf32>
    %98 = vector.shape_cast %97 : vector<8xf32> to vector<1x8xf32>
    %99 = arith.addf %64, %98 : vector<1x8xf32>
    %100 = arith.mulf %96, %93 : vector<192x8xf32>
    %cst_57 = arith.constant dense<0.000000e+00> : vector<8xf32>
    %101 = vector.multi_reduction <add>, %100, %cst_57 [0] : vector<192x8xf32> to vector<8xf32>
    %102 = vector.shape_cast %101 : vector<8xf32> to vector<1x8xf32>
    %103 = arith.addf %68, %102 : vector<1x8xf32>
    %c0_58 = arith.constant 0 : index
    %c416_59 = arith.constant 416 : index
    %c0_60 = arith.constant 0 : index
    %104 = vector.load %arg4[%c0_58, %c416_59, %c0_60] : memref<1x640x8xf32, #tpu.memory_space<vmem>>, vector<1x192x8xf32>
    %105 = vector.shape_cast %104 : vector<1x192x8xf32> to vector<192x8xf32>
    %106 = vector.shape_cast %93 : vector<192x8xf32> to vector<1x192x8xf32>
    tpu.vector_store %arg4[%c0_58, %c416_59, %c0_60], %106 {strides = array<i32>} : memref<1x640x8xf32, #tpu.memory_space<vmem>>, vector<1x192x8xf32>,
    %c0_61 = arith.constant 0 : index
    %c0_62 = arith.constant 0 : index
    %c0_63 = arith.constant 0 : index
    %107 = vector.load %arg5[%c0_61, %c0_62, %c0_63] : memref<1x2x8xf32, #tpu.memory_space<vmem>>, vector<1x1x8xf32>
    %108 = vector.shape_cast %107 : vector<1x1x8xf32> to vector<1x8xf32>
    %109 = vector.shape_cast %99 : vector<1x8xf32> to vector<1x1x8xf32>
    tpu.vector_store %arg5[%c0_61, %c0_62, %c0_63], %109 {strides = array<i32>} : memref<1x2x8xf32, #tpu.memory_space<vmem>>, vector<1x1x8xf32>,
    %c0_64 = arith.constant 0 : index
    %c1_65 = arith.constant 1 : index
    %c0_66 = arith.constant 0 : index
    %110 = vector.load %arg5[%c0_64, %c1_65, %c0_66] : memref<1x2x8xf32, #tpu.memory_space<vmem>>, vector<1x1x8xf32>
    %111 = vector.shape_cast %110 : vector<1x1x8xf32> to vector<1x8xf32>
    %112 = vector.shape_cast %103 : vector<1x8xf32> to vector<1x1x8xf32>
    tpu.vector_store %arg5[%c0_64, %c1_65, %c0_66], %112 {strides = array<i32>} : memref<1x2x8xf32, #tpu.memory_space<vmem>>, vector<1x1x8xf32>,
    return
  }
  func.func @transform_0(%arg0: i32) -> (i32, i32, i32) {
    %c0_i32 = arith.constant 0 : i32
    %c0_i32_0 = arith.constant 0 : i32
    %c0_i32_1 = arith.constant 0 : i32
    return %arg0, %c0_i32, %c0_i32_0 : i32, i32, i32
  }
  func.func @transform_1(%arg0: i32) -> (i32, i32, i32) {
    %c0_i32 = arith.constant 0 : i32
    %c0_i32_0 = arith.constant 0 : i32
    %c0_i32_1 = arith.constant 0 : i32
    %c0_i32_2 = arith.constant 0 : i32
    return %c0_i32, %c0_i32_0, %c0_i32_1 : i32, i32, i32
  }
  func.func @transform_2(%arg0: i32) -> (i32, i32) {
    %c0_i32 = arith.constant 0 : i32
    %c0_i32_0 = arith.constant 0 : i32
    %c0_i32_1 = arith.constant 0 : i32
    return %c0_i32, %c0_i32_0 : i32, i32
  }
  func.func @transform_3(%arg0: i32) -> (i32, i32, i32) {
    %c0_i32 = arith.constant 0 : i32
    %c0_i32_0 = arith.constant 0 : i32
    %c0_i32_1 = arith.constant 0 : i32
    return %arg0, %c0_i32, %c0_i32_0 : i32, i32, i32
  }
  func.func @transform_4(%arg0: i32) -> (i32, i32, i32) {
    %c0_i32 = arith.constant 0 : i32
    %c0_i32_0 = arith.constant 0 : i32
    %c0_i32_1 = arith.constant 0 : i32
    return %arg0, %c0_i32, %c0_i32_0 : i32, i32, i32
  }
}

module attributes {stable_mosaic.version = 11 : i64} {
  func.func @_bn_relu_conv3x3_stats_kernel(%arg0: i32, %arg1: memref<1x640x8xf32, #tpu.memory_space<vmem>>, %arg2: memref<1x8xf32, #tpu.memory_space<vmem>>, %arg3: memref<1x8xf32, #tpu.memory_space<vmem>>, %arg4: memref<3x24x8xf32, #tpu.memory_space<vmem>>, %arg5: memref<640x1xf32, #tpu.memory_space<vmem>>, %arg6: memref<1x576x8xf32, #tpu.memory_space<vmem>>, %arg7: memref<1x2x8xf32, #tpu.memory_space<vmem>>) attributes {dimension_semantics = [#tpu.dimension_semantics<parallel>], iteration_bounds = array<i64: 2>, scalar_prefetch = 0 : i64, scratch_operands = 0 : i64, tpu.core_type = #tpu.core_type<tc>, window_params = [{transform_indices = @transform_0, window_bounds = array<i64: 1, 640, 8>}, {pipeline_mode = #tpu.pipeline_mode<synchronous>, transform_indices = @transform_1, window_bounds = array<i64: 1, 8>}, {pipeline_mode = #tpu.pipeline_mode<synchronous>, transform_indices = @transform_2, window_bounds = array<i64: 1, 8>}, {pipeline_mode = #tpu.pipeline_mode<synchronous>, transform_indices = @transform_3, window_bounds = array<i64: 3, 24, 8>}, {pipeline_mode = #tpu.pipeline_mode<synchronous>, transform_indices = @transform_4, window_bounds = array<i64: 640, 1>}, {transform_indices = @transform_5, window_bounds = array<i64: 1, 576, 8>}, {transform_indices = @transform_6, window_bounds = array<i64: 1, 2, 8>}]} {
    %c0 = arith.constant 0 : index
    %c0_0 = arith.constant 0 : index
    %0 = vector.load %arg2[%c0, %c0_0] : memref<1x8xf32, #tpu.memory_space<vmem>>, vector<1x8xf32>
    %c0_1 = arith.constant 0 : index
    %c0_2 = arith.constant 0 : index
    %1 = vector.load %arg3[%c0_1, %c0_2] : memref<1x8xf32, #tpu.memory_space<vmem>>, vector<1x8xf32>
    %cst = arith.constant 0.000000e+00 : f32
    %2 = vector.broadcast %cst : f32 to vector<1x8xf32>
    %cst_3 = arith.constant 0.000000e+00 : f32
    %3 = vector.broadcast %cst_3 : f32 to vector<1x8xf32>
    %c0_4 = arith.constant 0 : index
    %c7 = arith.constant 7 : index
    %c0_5 = arith.constant 0 : index
    %4 = vector.load %arg1[%c0_4, %c7, %c0_5] : memref<1x640x8xf32, #tpu.memory_space<vmem>>, vector<1x242x8xf32>
    %5 = vector.shape_cast %4 : vector<1x242x8xf32> to vector<242x8xf32>
    %c7_6 = arith.constant 7 : index
    %c0_7 = arith.constant 0 : index
    %6 = vector.load %arg5[%c7_6, %c0_7] : memref<640x1xf32, #tpu.memory_space<vmem>>, vector<242x1xf32>
    %cst_8 = arith.constant 0.000000e+00 : f32
    %7 = vector.broadcast %cst_8 : f32 to vector<242x1xf32>
    %8 = arith.cmpf ogt, %6, %7 : vector<242x1xf32>
    %9 = vector.broadcast %0 : vector<1x8xf32> to vector<242x8xf32>
    %10 = arith.mulf %5, %9 : vector<242x8xf32>
    %11 = vector.broadcast %1 : vector<1x8xf32> to vector<242x8xf32>
    %12 = arith.addf %10, %11 : vector<242x8xf32>
    %cst_9 = arith.constant 0.000000e+00 : f32
    %13 = vector.broadcast %cst_9 : f32 to vector<242x8xf32>
    %14 = arith.maximumf %12, %13 : vector<242x8xf32>
    %cst_10 = arith.constant 0.000000e+00 : f32
    %15 = vector.shape_cast %8 : vector<242x1xi1> to vector<242x1xi1>
    %16 = vector.broadcast %15 : vector<242x1xi1> to vector<242x8xi1>
    %17 = vector.broadcast %cst_10 : f32 to vector<242x8xf32>
    %18 = arith.select %16, %14, %17 : vector<242x8xi1>, vector<242x8xf32>
    %19 = vector.extract_strided_slice %18 {offsets = [0, 0], sizes = [240, 8], strides = [1, 1]} : vector<242x8xf32> to vector<240x8xf32>
    %20 = vector.extract_strided_slice %18 {offsets = [1, 0], sizes = [240, 8], strides = [1, 1]} : vector<242x8xf32> to vector<240x8xf32>
    %21 = vector.extract_strided_slice %18 {offsets = [2, 0], sizes = [240, 8], strides = [1, 1]} : vector<242x8xf32> to vector<240x8xf32>
    %22 = tpu.concatenate %19, %20, %21 in 1 : vector<240x8xf32>, vector<240x8xf32>, vector<240x8xf32> -> vector<240x24xf32>
    %cst_11 = arith.constant 0.000000e+00 : f32
    %23 = vector.broadcast %cst_11 : f32 to vector<192x8xf32>
    %24 = vector.extract_strided_slice %22 {offsets = [0, 0], sizes = [192, 24], strides = [1, 1]} : vector<240x24xf32> to vector<192x24xf32>
    %c0_12 = arith.constant 0 : index
    %c0_13 = arith.constant 0 : index
    %c0_14 = arith.constant 0 : index
    %25 = vector.load %arg4[%c0_12, %c0_13, %c0_14] : memref<3x24x8xf32, #tpu.memory_space<vmem>>, vector<1x24x8xf32>
    %26 = vector.shape_cast %25 : vector<1x24x8xf32> to vector<24x8xf32>
    %cst_15 = arith.constant dense<0.000000e+00> : vector<192x8xf32>
    %27 = tpu.matmul %24, %26, %cst_15 {dimension_numbers = #tpu.dot_dimension_numbers<[1], [0], [0], [1], [0, 0, 1, 1], [], []>} : vector<192x24xf32>, vector<24x8xf32>, vector<192x8xf32> -> vector<192x8xf32>
    %28 = arith.addf %23, %27 : vector<192x8xf32>
    %29 = vector.extract_strided_slice %22 {offsets = [24, 0], sizes = [192, 24], strides = [1, 1]} : vector<240x24xf32> to vector<192x24xf32>
    %c1 = arith.constant 1 : index
    %c0_16 = arith.constant 0 : index
    %c0_17 = arith.constant 0 : index
    %30 = vector.load %arg4[%c1, %c0_16, %c0_17] : memref<3x24x8xf32, #tpu.memory_space<vmem>>, vector<1x24x8xf32>
    %31 = vector.shape_cast %30 : vector<1x24x8xf32> to vector<24x8xf32>
    %cst_18 = arith.constant dense<0.000000e+00> : vector<192x8xf32>
    %32 = tpu.matmul %29, %31, %cst_18 {dimension_numbers = #tpu.dot_dimension_numbers<[1], [0], [0], [1], [0, 0, 1, 1], [], []>} : vector<192x24xf32>, vector<24x8xf32>, vector<192x8xf32> -> vector<192x8xf32>
    %33 = arith.addf %28, %32 : vector<192x8xf32>
    %34 = vector.extract_strided_slice %22 {offsets = [48, 0], sizes = [192, 24], strides = [1, 1]} : vector<240x24xf32> to vector<192x24xf32>
    %c2 = arith.constant 2 : index
    %c0_19 = arith.constant 0 : index
    %c0_20 = arith.constant 0 : index
    %35 = vector.load %arg4[%c2, %c0_19, %c0_20] : memref<3x24x8xf32, #tpu.memory_space<vmem>>, vector<1x24x8xf32>
    %36 = vector.shape_cast %35 : vector<1x24x8xf32> to vector<24x8xf32>
    %cst_21 = arith.constant dense<0.000000e+00> : vector<192x8xf32>
    %37 = tpu.matmul %34, %36, %cst_21 {dimension_numbers = #tpu.dot_dimension_numbers<[1], [0], [0], [1], [0, 0, 1, 1], [], []>} : vector<192x24xf32>, vector<24x8xf32>, vector<192x8xf32> -> vector<192x8xf32>
    %38 = arith.addf %33, %37 : vector<192x8xf32>
    %c32 = arith.constant 32 : index
    %c0_22 = arith.constant 0 : index
    %39 = vector.load %arg5[%c32, %c0_22] : memref<640x1xf32, #tpu.memory_space<vmem>>, vector<192x1xf32>
    %40 = vector.broadcast %39 : vector<192x1xf32> to vector<192x8xf32>
    %41 = arith.mulf %38, %40 : vector<192x8xf32>
    %cst_23 = arith.constant dense<0.000000e+00> : vector<8xf32>
    %42 = vector.multi_reduction <add>, %41, %cst_23 [0] : vector<192x8xf32> to vector<8xf32>
    %43 = vector.shape_cast %42 : vector<8xf32> to vector<1x8xf32>
    %44 = arith.addf %2, %43 : vector<1x8xf32>
    %45 = arith.mulf %41, %38 : vector<192x8xf32>
    %cst_24 = arith.constant dense<0.000000e+00> : vector<8xf32>
    %46 = vector.multi_reduction <add>, %45, %cst_24 [0] : vector<192x8xf32> to vector<8xf32>
    %47 = vector.shape_cast %46 : vector<8xf32> to vector<1x8xf32>
    %48 = arith.addf %3, %47 : vector<1x8xf32>
    %c0_25 = arith.constant 0 : index
    %c0_26 = arith.constant 0 : index
    %c0_27 = arith.constant 0 : index
    %49 = vector.load %arg6[%c0_25, %c0_26, %c0_27] : memref<1x576x8xf32, #tpu.memory_space<vmem>>, vector<1x192x8xf32>
    %50 = vector.shape_cast %49 : vector<1x192x8xf32> to vector<192x8xf32>
    %51 = vector.shape_cast %38 : vector<192x8xf32> to vector<1x192x8xf32>
    tpu.vector_store %arg6[%c0_25, %c0_26, %c0_27], %51 {strides = array<i32>} : memref<1x576x8xf32, #tpu.memory_space<vmem>>, vector<1x192x8xf32>,
    %c0_28 = arith.constant 0 : index
    %c199 = arith.constant 199 : index
    %c0_29 = arith.constant 0 : index
    %52 = vector.load %arg1[%c0_28, %c199, %c0_29] : memref<1x640x8xf32, #tpu.memory_space<vmem>>, vector<1x242x8xf32>
    %53 = vector.shape_cast %52 : vector<1x242x8xf32> to vector<242x8xf32>
    %c199_30 = arith.constant 199 : index
    %c0_31 = arith.constant 0 : index
    %54 = vector.load %arg5[%c199_30, %c0_31] : memref<640x1xf32, #tpu.memory_space<vmem>>, vector<242x1xf32>
    %cst_32 = arith.constant 0.000000e+00 : f32
    %55 = vector.broadcast %cst_32 : f32 to vector<242x1xf32>
    %56 = arith.cmpf ogt, %54, %55 : vector<242x1xf32>
    %57 = vector.broadcast %0 : vector<1x8xf32> to vector<242x8xf32>
    %58 = arith.mulf %53, %57 : vector<242x8xf32>
    %59 = vector.broadcast %1 : vector<1x8xf32> to vector<242x8xf32>
    %60 = arith.addf %58, %59 : vector<242x8xf32>
    %cst_33 = arith.constant 0.000000e+00 : f32
    %61 = vector.broadcast %cst_33 : f32 to vector<242x8xf32>
    %62 = arith.maximumf %60, %61 : vector<242x8xf32>
    %cst_34 = arith.constant 0.000000e+00 : f32
    %63 = vector.shape_cast %56 : vector<242x1xi1> to vector<242x1xi1>
    %64 = vector.broadcast %63 : vector<242x1xi1> to vector<242x8xi1>
    %65 = vector.broadcast %cst_34 : f32 to vector<242x8xf32>
    %66 = arith.select %64, %62, %65 : vector<242x8xi1>, vector<242x8xf32>
    %67 = vector.extract_strided_slice %66 {offsets = [0, 0], sizes = [240, 8], strides = [1, 1]} : vector<242x8xf32> to vector<240x8xf32>
    %68 = vector.extract_strided_slice %66 {offsets = [1, 0], sizes = [240, 8], strides = [1, 1]} : vector<242x8xf32> to vector<240x8xf32>
    %69 = vector.extract_strided_slice %66 {offsets = [2, 0], sizes = [240, 8], strides = [1, 1]} : vector<242x8xf32> to vector<240x8xf32>
    %70 = tpu.concatenate %67, %68, %69 in 1 : vector<240x8xf32>, vector<240x8xf32>, vector<240x8xf32> -> vector<240x24xf32>
    %cst_35 = arith.constant 0.000000e+00 : f32
    %71 = vector.broadcast %cst_35 : f32 to vector<192x8xf32>
    %72 = vector.extract_strided_slice %70 {offsets = [0, 0], sizes = [192, 24], strides = [1, 1]} : vector<240x24xf32> to vector<192x24xf32>
    %c0_36 = arith.constant 0 : index
    %c0_37 = arith.constant 0 : index
    %c0_38 = arith.constant 0 : index
    %73 = vector.load %arg4[%c0_36, %c0_37, %c0_38] : memref<3x24x8xf32, #tpu.memory_space<vmem>>, vector<1x24x8xf32>
    %74 = vector.shape_cast %73 : vector<1x24x8xf32> to vector<24x8xf32>
    %cst_39 = arith.constant dense<0.000000e+00> : vector<192x8xf32>
    %75 = tpu.matmul %72, %74, %cst_39 {dimension_numbers = #tpu.dot_dimension_numbers<[1], [0], [0], [1], [0, 0, 1, 1], [], []>} : vector<192x24xf32>, vector<24x8xf32>, vector<192x8xf32> -> vector<192x8xf32>
    %76 = arith.addf %71, %75 : vector<192x8xf32>
    %77 = vector.extract_strided_slice %70 {offsets = [24, 0], sizes = [192, 24], strides = [1, 1]} : vector<240x24xf32> to vector<192x24xf32>
    %c1_40 = arith.constant 1 : index
    %c0_41 = arith.constant 0 : index
    %c0_42 = arith.constant 0 : index
    %78 = vector.load %arg4[%c1_40, %c0_41, %c0_42] : memref<3x24x8xf32, #tpu.memory_space<vmem>>, vector<1x24x8xf32>
    %79 = vector.shape_cast %78 : vector<1x24x8xf32> to vector<24x8xf32>
    %cst_43 = arith.constant dense<0.000000e+00> : vector<192x8xf32>
    %80 = tpu.matmul %77, %79, %cst_43 {dimension_numbers = #tpu.dot_dimension_numbers<[1], [0], [0], [1], [0, 0, 1, 1], [], []>} : vector<192x24xf32>, vector<24x8xf32>, vector<192x8xf32> -> vector<192x8xf32>
    %81 = arith.addf %76, %80 : vector<192x8xf32>
    %82 = vector.extract_strided_slice %70 {offsets = [48, 0], sizes = [192, 24], strides = [1, 1]} : vector<240x24xf32> to vector<192x24xf32>
    %c2_44 = arith.constant 2 : index
    %c0_45 = arith.constant 0 : index
    %c0_46 = arith.constant 0 : index
    %83 = vector.load %arg4[%c2_44, %c0_45, %c0_46] : memref<3x24x8xf32, #tpu.memory_space<vmem>>, vector<1x24x8xf32>
    %84 = vector.shape_cast %83 : vector<1x24x8xf32> to vector<24x8xf32>
    %cst_47 = arith.constant dense<0.000000e+00> : vector<192x8xf32>
    %85 = tpu.matmul %82, %84, %cst_47 {dimension_numbers = #tpu.dot_dimension_numbers<[1], [0], [0], [1], [0, 0, 1, 1], [], []>} : vector<192x24xf32>, vector<24x8xf32>, vector<192x8xf32> -> vector<192x8xf32>
    %86 = arith.addf %81, %85 : vector<192x8xf32>
    %c224 = arith.constant 224 : index
    %c0_48 = arith.constant 0 : index
    %87 = vector.load %arg5[%c224, %c0_48] : memref<640x1xf32, #tpu.memory_space<vmem>>, vector<192x1xf32>
    %88 = vector.broadcast %87 : vector<192x1xf32> to vector<192x8xf32>
    %89 = arith.mulf %86, %88 : vector<192x8xf32>
    %cst_49 = arith.constant dense<0.000000e+00> : vector<8xf32>
    %90 = vector.multi_reduction <add>, %89, %cst_49 [0] : vector<192x8xf32> to vector<8xf32>
    %91 = vector.shape_cast %90 : vector<8xf32> to vector<1x8xf32>
    %92 = arith.addf %44, %91 : vector<1x8xf32>
    %93 = arith.mulf %89, %86 : vector<192x8xf32>
    %cst_50 = arith.constant dense<0.000000e+00> : vector<8xf32>
    %94 = vector.multi_reduction <add>, %93, %cst_50 [0] : vector<192x8xf32> to vector<8xf32>
    %95 = vector.shape_cast %94 : vector<8xf32> to vector<1x8xf32>
    %96 = arith.addf %48, %95 : vector<1x8xf32>
    %c0_51 = arith.constant 0 : index
    %c192 = arith.constant 192 : index
    %c0_52 = arith.constant 0 : index
    %97 = vector.load %arg6[%c0_51, %c192, %c0_52] : memref<1x576x8xf32, #tpu.memory_space<vmem>>, vector<1x192x8xf32>
    %98 = vector.shape_cast %97 : vector<1x192x8xf32> to vector<192x8xf32>
    %99 = vector.shape_cast %86 : vector<192x8xf32> to vector<1x192x8xf32>
    tpu.vector_store %arg6[%c0_51, %c192, %c0_52], %99 {strides = array<i32>} : memref<1x576x8xf32, #tpu.memory_space<vmem>>, vector<1x192x8xf32>,
    %c0_53 = arith.constant 0 : index
    %c391 = arith.constant 391 : index
    %c0_54 = arith.constant 0 : index
    %100 = vector.load %arg1[%c0_53, %c391, %c0_54] : memref<1x640x8xf32, #tpu.memory_space<vmem>>, vector<1x242x8xf32>
    %101 = vector.shape_cast %100 : vector<1x242x8xf32> to vector<242x8xf32>
    %c391_55 = arith.constant 391 : index
    %c0_56 = arith.constant 0 : index
    %102 = vector.load %arg5[%c391_55, %c0_56] : memref<640x1xf32, #tpu.memory_space<vmem>>, vector<242x1xf32>
    %cst_57 = arith.constant 0.000000e+00 : f32
    %103 = vector.broadcast %cst_57 : f32 to vector<242x1xf32>
    %104 = arith.cmpf ogt, %102, %103 : vector<242x1xf32>
    %105 = vector.broadcast %0 : vector<1x8xf32> to vector<242x8xf32>
    %106 = arith.mulf %101, %105 : vector<242x8xf32>
    %107 = vector.broadcast %1 : vector<1x8xf32> to vector<242x8xf32>
    %108 = arith.addf %106, %107 : vector<242x8xf32>
    %cst_58 = arith.constant 0.000000e+00 : f32
    %109 = vector.broadcast %cst_58 : f32 to vector<242x8xf32>
    %110 = arith.maximumf %108, %109 : vector<242x8xf32>
    %cst_59 = arith.constant 0.000000e+00 : f32
    %111 = vector.shape_cast %104 : vector<242x1xi1> to vector<242x1xi1>
    %112 = vector.broadcast %111 : vector<242x1xi1> to vector<242x8xi1>
    %113 = vector.broadcast %cst_59 : f32 to vector<242x8xf32>
    %114 = arith.select %112, %110, %113 : vector<242x8xi1>, vector<242x8xf32>
    %115 = vector.extract_strided_slice %114 {offsets = [0, 0], sizes = [240, 8], strides = [1, 1]} : vector<242x8xf32> to vector<240x8xf32>
    %116 = vector.extract_strided_slice %114 {offsets = [1, 0], sizes = [240, 8], strides = [1, 1]} : vector<242x8xf32> to vector<240x8xf32>
    %117 = vector.extract_strided_slice %114 {offsets = [2, 0], sizes = [240, 8], strides = [1, 1]} : vector<242x8xf32> to vector<240x8xf32>
    %118 = tpu.concatenate %115, %116, %117 in 1 : vector<240x8xf32>, vector<240x8xf32>, vector<240x8xf32> -> vector<240x24xf32>
    %cst_60 = arith.constant 0.000000e+00 : f32
    %119 = vector.broadcast %cst_60 : f32 to vector<192x8xf32>
    %120 = vector.extract_strided_slice %118 {offsets = [0, 0], sizes = [192, 24], strides = [1, 1]} : vector<240x24xf32> to vector<192x24xf32>
    %c0_61 = arith.constant 0 : index
    %c0_62 = arith.constant 0 : index
    %c0_63 = arith.constant 0 : index
    %121 = vector.load %arg4[%c0_61, %c0_62, %c0_63] : memref<3x24x8xf32, #tpu.memory_space<vmem>>, vector<1x24x8xf32>
    %122 = vector.shape_cast %121 : vector<1x24x8xf32> to vector<24x8xf32>
    %cst_64 = arith.constant dense<0.000000e+00> : vector<192x8xf32>
    %123 = tpu.matmul %120, %122, %cst_64 {dimension_numbers = #tpu.dot_dimension_numbers<[1], [0], [0], [1], [0, 0, 1, 1], [], []>} : vector<192x24xf32>, vector<24x8xf32>, vector<192x8xf32> -> vector<192x8xf32>
    %124 = arith.addf %119, %123 : vector<192x8xf32>
    %125 = vector.extract_strided_slice %118 {offsets = [24, 0], sizes = [192, 24], strides = [1, 1]} : vector<240x24xf32> to vector<192x24xf32>
    %c1_65 = arith.constant 1 : index
    %c0_66 = arith.constant 0 : index
    %c0_67 = arith.constant 0 : index
    %126 = vector.load %arg4[%c1_65, %c0_66, %c0_67] : memref<3x24x8xf32, #tpu.memory_space<vmem>>, vector<1x24x8xf32>
    %127 = vector.shape_cast %126 : vector<1x24x8xf32> to vector<24x8xf32>
    %cst_68 = arith.constant dense<0.000000e+00> : vector<192x8xf32>
    %128 = tpu.matmul %125, %127, %cst_68 {dimension_numbers = #tpu.dot_dimension_numbers<[1], [0], [0], [1], [0, 0, 1, 1], [], []>} : vector<192x24xf32>, vector<24x8xf32>, vector<192x8xf32> -> vector<192x8xf32>
    %129 = arith.addf %124, %128 : vector<192x8xf32>
    %130 = vector.extract_strided_slice %118 {offsets = [48, 0], sizes = [192, 24], strides = [1, 1]} : vector<240x24xf32> to vector<192x24xf32>
    %c2_69 = arith.constant 2 : index
    %c0_70 = arith.constant 0 : index
    %c0_71 = arith.constant 0 : index
    %131 = vector.load %arg4[%c2_69, %c0_70, %c0_71] : memref<3x24x8xf32, #tpu.memory_space<vmem>>, vector<1x24x8xf32>
    %132 = vector.shape_cast %131 : vector<1x24x8xf32> to vector<24x8xf32>
    %cst_72 = arith.constant dense<0.000000e+00> : vector<192x8xf32>
    %133 = tpu.matmul %130, %132, %cst_72 {dimension_numbers = #tpu.dot_dimension_numbers<[1], [0], [0], [1], [0, 0, 1, 1], [], []>} : vector<192x24xf32>, vector<24x8xf32>, vector<192x8xf32> -> vector<192x8xf32>
    %134 = arith.addf %129, %133 : vector<192x8xf32>
    %c416 = arith.constant 416 : index
    %c0_73 = arith.constant 0 : index
    %135 = vector.load %arg5[%c416, %c0_73] : memref<640x1xf32, #tpu.memory_space<vmem>>, vector<192x1xf32>
    %136 = vector.broadcast %135 : vector<192x1xf32> to vector<192x8xf32>
    %137 = arith.mulf %134, %136 : vector<192x8xf32>
    %cst_74 = arith.constant dense<0.000000e+00> : vector<8xf32>
    %138 = vector.multi_reduction <add>, %137, %cst_74 [0] : vector<192x8xf32> to vector<8xf32>
    %139 = vector.shape_cast %138 : vector<8xf32> to vector<1x8xf32>
    %140 = arith.addf %92, %139 : vector<1x8xf32>
    %141 = arith.mulf %137, %134 : vector<192x8xf32>
    %cst_75 = arith.constant dense<0.000000e+00> : vector<8xf32>
    %142 = vector.multi_reduction <add>, %141, %cst_75 [0] : vector<192x8xf32> to vector<8xf32>
    %143 = vector.shape_cast %142 : vector<8xf32> to vector<1x8xf32>
    %144 = arith.addf %96, %143 : vector<1x8xf32>
    %c0_76 = arith.constant 0 : index
    %c384 = arith.constant 384 : index
    %c0_77 = arith.constant 0 : index
    %145 = vector.load %arg6[%c0_76, %c384, %c0_77] : memref<1x576x8xf32, #tpu.memory_space<vmem>>, vector<1x192x8xf32>
    %146 = vector.shape_cast %145 : vector<1x192x8xf32> to vector<192x8xf32>
    %147 = vector.shape_cast %134 : vector<192x8xf32> to vector<1x192x8xf32>
    tpu.vector_store %arg6[%c0_76, %c384, %c0_77], %147 {strides = array<i32>} : memref<1x576x8xf32, #tpu.memory_space<vmem>>, vector<1x192x8xf32>,
    %c0_78 = arith.constant 0 : index
    %c0_79 = arith.constant 0 : index
    %c0_80 = arith.constant 0 : index
    %148 = vector.load %arg7[%c0_78, %c0_79, %c0_80] : memref<1x2x8xf32, #tpu.memory_space<vmem>>, vector<1x1x8xf32>
    %149 = vector.shape_cast %148 : vector<1x1x8xf32> to vector<1x8xf32>
    %150 = vector.shape_cast %140 : vector<1x8xf32> to vector<1x1x8xf32>
    tpu.vector_store %arg7[%c0_78, %c0_79, %c0_80], %150 {strides = array<i32>} : memref<1x2x8xf32, #tpu.memory_space<vmem>>, vector<1x1x8xf32>,
    %c0_81 = arith.constant 0 : index
    %c1_82 = arith.constant 1 : index
    %c0_83 = arith.constant 0 : index
    %151 = vector.load %arg7[%c0_81, %c1_82, %c0_83] : memref<1x2x8xf32, #tpu.memory_space<vmem>>, vector<1x1x8xf32>
    %152 = vector.shape_cast %151 : vector<1x1x8xf32> to vector<1x8xf32>
    %153 = vector.shape_cast %144 : vector<1x8xf32> to vector<1x1x8xf32>
    tpu.vector_store %arg7[%c0_81, %c1_82, %c0_83], %153 {strides = array<i32>} : memref<1x2x8xf32, #tpu.memory_space<vmem>>, vector<1x1x8xf32>,
    return
  }
  func.func @transform_0(%arg0: i32) -> (i32, i32, i32) {
    %c0_i32 = arith.constant 0 : i32
    %c0_i32_0 = arith.constant 0 : i32
    %c0_i32_1 = arith.constant 0 : i32
    return %arg0, %c0_i32, %c0_i32_0 : i32, i32, i32
  }
  func.func @transform_1(%arg0: i32) -> (i32, i32) {
    %c0_i32 = arith.constant 0 : i32
    %c0_i32_0 = arith.constant 0 : i32
    %c0_i32_1 = arith.constant 0 : i32
    return %c0_i32, %c0_i32_0 : i32, i32
  }
  func.func @transform_2(%arg0: i32) -> (i32, i32) {
    %c0_i32 = arith.constant 0 : i32
    %c0_i32_0 = arith.constant 0 : i32
    %c0_i32_1 = arith.constant 0 : i32
    return %c0_i32, %c0_i32_0 : i32, i32
  }
  func.func @transform_3(%arg0: i32) -> (i32, i32, i32) {
    %c0_i32 = arith.constant 0 : i32
    %c0_i32_0 = arith.constant 0 : i32
    %c0_i32_1 = arith.constant 0 : i32
    %c0_i32_2 = arith.constant 0 : i32
    return %c0_i32, %c0_i32_0, %c0_i32_1 : i32, i32, i32
  }
  func.func @transform_4(%arg0: i32) -> (i32, i32) {
    %c0_i32 = arith.constant 0 : i32
    %c0_i32_0 = arith.constant 0 : i32
    %c0_i32_1 = arith.constant 0 : i32
    return %c0_i32, %c0_i32_0 : i32, i32
  }
  func.func @transform_5(%arg0: i32) -> (i32, i32, i32) {
    %c0_i32 = arith.constant 0 : i32
    %c0_i32_0 = arith.constant 0 : i32
    %c0_i32_1 = arith.constant 0 : i32
    return %arg0, %c0_i32, %c0_i32_0 : i32, i32, i32
  }
  func.func @transform_6(%arg0: i32) -> (i32, i32, i32) {
    %c0_i32 = arith.constant 0 : i32
    %c0_i32_0 = arith.constant 0 : i32
    %c0_i32_1 = arith.constant 0 : i32
    return %arg0, %c0_i32, %c0_i32_0 : i32, i32, i32
  }
}

module attributes {stable_mosaic.version = 11 : i64} {
  func.func @_bn_relu_upconv_kernel(%arg0: i32, %arg1: i32, %arg2: memref<1x192x8xf32, #tpu.memory_space<vmem>>, %arg3: memref<1x8xf32, #tpu.memory_space<vmem>>, %arg4: memref<1x8xf32, #tpu.memory_space<vmem>>, %arg5: memref<8x16xf32, #tpu.memory_space<vmem>>, %arg6: memref<1x16xf32, #tpu.memory_space<vmem>>, %arg7: memref<1x192x16xf32, #tpu.memory_space<vmem>>) attributes {dimension_semantics = [#tpu.dimension_semantics<parallel>, #tpu.dimension_semantics<parallel>], iteration_bounds = array<i64: 2, 3>, scalar_prefetch = 0 : i64, scratch_operands = 0 : i64, tpu.core_type = #tpu.core_type<tc>, window_params = [{transform_indices = @transform_0, window_bounds = array<i64: 1, 192, 8>}, {pipeline_mode = #tpu.pipeline_mode<synchronous>, transform_indices = @transform_1, window_bounds = array<i64: 1, 8>}, {pipeline_mode = #tpu.pipeline_mode<synchronous>, transform_indices = @transform_2, window_bounds = array<i64: 1, 8>}, {pipeline_mode = #tpu.pipeline_mode<synchronous>, transform_indices = @transform_3, window_bounds = array<i64: 8, 16>}, {pipeline_mode = #tpu.pipeline_mode<synchronous>, transform_indices = @transform_4, window_bounds = array<i64: 1, 16>}, {transform_indices = @transform_5, window_bounds = array<i64: 1, 192, 16>}]} {
    %c0 = arith.constant 0 : index
    %c0_0 = arith.constant 0 : index
    %c0_1 = arith.constant 0 : index
    %0 = vector.load %arg2[%c0, %c0_0, %c0_1] : memref<1x192x8xf32, #tpu.memory_space<vmem>>, vector<1x192x8xf32>
    %1 = vector.shape_cast %0 : vector<1x192x8xf32> to vector<192x8xf32>
    %c0_2 = arith.constant 0 : index
    %c0_3 = arith.constant 0 : index
    %2 = vector.load %arg3[%c0_2, %c0_3] : memref<1x8xf32, #tpu.memory_space<vmem>>, vector<1x8xf32>
    %3 = vector.broadcast %2 : vector<1x8xf32> to vector<192x8xf32>
    %4 = arith.mulf %1, %3 : vector<192x8xf32>
    %c0_4 = arith.constant 0 : index
    %c0_5 = arith.constant 0 : index
    %5 = vector.load %arg4[%c0_4, %c0_5] : memref<1x8xf32, #tpu.memory_space<vmem>>, vector<1x8xf32>
    %6 = vector.broadcast %5 : vector<1x8xf32> to vector<192x8xf32>
    %7 = arith.addf %4, %6 : vector<192x8xf32>
    %cst = arith.constant 0.000000e+00 : f32
    %8 = vector.broadcast %cst : f32 to vector<192x8xf32>
    %9 = arith.maximumf %7, %8 : vector<192x8xf32>
    %c0_6 = arith.constant 0 : index
    %c0_7 = arith.constant 0 : index
    %10 = vector.load %arg5[%c0_6, %c0_7] : memref<8x16xf32, #tpu.memory_space<vmem>>, vector<8x16xf32>
    %cst_8 = arith.constant dense<0.000000e+00> : vector<192x16xf32>
    %11 = tpu.matmul %9, %10, %cst_8 {dimension_numbers = #tpu.dot_dimension_numbers<[1], [0], [0], [1], [0, 0, 1, 1], [], []>} : vector<192x8xf32>, vector<8x16xf32>, vector<192x16xf32> -> vector<192x16xf32>
    %c0_9 = arith.constant 0 : index
    %c0_10 = arith.constant 0 : index
    %12 = vector.load %arg6[%c0_9, %c0_10] : memref<1x16xf32, #tpu.memory_space<vmem>>, vector<1x16xf32>
    %13 = vector.broadcast %12 : vector<1x16xf32> to vector<192x16xf32>
    %14 = arith.addf %11, %13 : vector<192x16xf32>
    %c0_11 = arith.constant 0 : index
    %c0_12 = arith.constant 0 : index
    %c0_13 = arith.constant 0 : index
    %15 = vector.load %arg7[%c0_11, %c0_12, %c0_13] : memref<1x192x16xf32, #tpu.memory_space<vmem>>, vector<1x192x16xf32>
    %16 = vector.shape_cast %15 : vector<1x192x16xf32> to vector<192x16xf32>
    %17 = vector.shape_cast %14 : vector<192x16xf32> to vector<1x192x16xf32>
    tpu.vector_store %arg7[%c0_11, %c0_12, %c0_13], %17 {strides = array<i32>} : memref<1x192x16xf32, #tpu.memory_space<vmem>>, vector<1x192x16xf32>,
    return
  }
  func.func @transform_0(%arg0: i32, %arg1: i32) -> (i32, i32, i32) {
    %c0_i32 = arith.constant 0 : i32
    %c0_i32_0 = arith.constant 0 : i32
    return %arg0, %arg1, %c0_i32 : i32, i32, i32
  }
  func.func @transform_1(%arg0: i32, %arg1: i32) -> (i32, i32) {
    %c0_i32 = arith.constant 0 : i32
    %c0_i32_0 = arith.constant 0 : i32
    %c0_i32_1 = arith.constant 0 : i32
    return %c0_i32, %c0_i32_0 : i32, i32
  }
  func.func @transform_2(%arg0: i32, %arg1: i32) -> (i32, i32) {
    %c0_i32 = arith.constant 0 : i32
    %c0_i32_0 = arith.constant 0 : i32
    %c0_i32_1 = arith.constant 0 : i32
    return %c0_i32, %c0_i32_0 : i32, i32
  }
  func.func @transform_3(%arg0: i32, %arg1: i32) -> (i32, i32) {
    %c0_i32 = arith.constant 0 : i32
    %c0_i32_0 = arith.constant 0 : i32
    %c0_i32_1 = arith.constant 0 : i32
    return %c0_i32, %c0_i32_0 : i32, i32
  }
  func.func @transform_4(%arg0: i32, %arg1: i32) -> (i32, i32) {
    %c0_i32 = arith.constant 0 : i32
    %c0_i32_0 = arith.constant 0 : i32
    %c0_i32_1 = arith.constant 0 : i32
    return %c0_i32, %c0_i32_0 : i32, i32
  }
  func.func @transform_5(%arg0: i32, %arg1: i32) -> (i32, i32, i32) {
    %c0_i32 = arith.constant 0 : i32
    %c0_i32_0 = arith.constant 0 : i32
    return %arg0, %arg1, %c0_i32 : i32, i32, i32
  }
}

</mosaic_0001>

<bundles_post_ra>
// kernel: tile.8
= control target key start
LH: loop header
LB: loop body
LE: loop exit
PB: predicated region body
PF: predicated region fallthrough
CT: control target
= control target key end

     0   :  { %s22_s0 = inlined_call_operand.vmem [shape: f32[4], index: 0, kind: input, shape index: {}]   ;;  %s23_s1 = inlined_call_operand.vmem [shape: f32[4,4], index: 1, kind: output, shape index: {}]  }
   0x1   :  { %v4_v0 = vld [vmem:[%s22_s0] ss:$0 sm:$0xff] }
   0x2   :  { %5 = vst [vmem:[%s23_s1] sm:$0xf] %v4_v0 }

// kernel: tile.9
= control target key start
LH: loop header
LB: loop body
LE: loop exit
PB: predicated region body
PF: predicated region fallthrough
CT: control target
= control target key end

     0   :  { %vm7_vm0 = vcmask 31744   ;;  %s37_s8 = smov 4   ;;  %s38_s9 = smov 8   ;;  %vm13_vm1 = vcmask 130144   ;;  %vm19_vm2 = vcmask 97344   ;;  %vm25_vm3 = vcmask 64544   ;;  %s55_s0 = inlined_call_operand.vmem [shape: f32[4,4], index: 0, kind: input, shape index: {}]   ;;  %s56_s1 = inlined_call_operand.vmem [shape: f32[1,16], index: 1, kind: output, shape index: {}]  }
   0x1   :  { %v4_v0 = vld [vmem:[%s55_s0] sm:$0xf]  ;;  %s36_s0 = smov 12  }
   0x2   :  { %5 = vst [vmem:[#allocation1] sm:$0xf] %v4_v0 }
   0x9   :  { %v10_v1 = vld [vmem:[#allocation1 + $0x3] sm:$0x1]   ;;  %v22_v2 = vld [vmem:[#allocation1 + $0x1] sm:$0x1]   ;;  %v6_v3 = vld [vmem:[#allocation1] sm:$0x1]  }
   0xa   :  { %11 = vrot.lane.b32.xlu0 %v10_v1, %s36_s0  ;;  %23 = vrot.lane.b32.xlu1 %v22_v2, %s37_s8  ;;  %v16_v4 = vld [vmem:[#allocation1 + $0x2] sm:$0x1]   ;;  %8 = vst.msk [vmem:[#allocation0] sm:$0x1] %vm7_vm0, %v6_v3  }
   0xe   :  { %17 = vrot.lane.b32.xlu0 %v16_v4, %s38_s9 }
  0x7c   :  { %v12_v5 = vpop.permute.xlu0 %11   ;;  %v24_v6 = vpop.permute.xlu1 %23  }
  0x7d   :  { %14 = vst.msk [vmem:[#allocation0] sm:$0x1] %vm13_vm1, %v12_v5  }
  0x80   :  { %v18_v7 = vpop.permute.xlu0 %17  }
  0x81   :  { %20 = vst.msk [vmem:[#allocation0] sm:$0x1] %vm19_vm2, %v18_v7  }
  0x82   :  { %26 = vst.msk [vmem:[#allocation0] sm:$0x1] %vm25_vm3, %v24_v6  }
  0x89   :  { %v30_v8 = vld [vmem:[#allocation0] sm:$0x1] }
  0x8a   :  { %32 = vst [vmem:[%s56_s1] sm:$0x1] %v30_v8 }

// kernel: decoder_block_forward.5
= control target key start
LH: loop header
LB: loop body
LE: loop exit
PB: predicated region body
PF: predicated region fallthrough
CT: control target
= control target key end

     0   :  { %s967_s18 = smov 0   ;;  %s969_s19 = smov 0   ;;  %s1215_s0 = inlined_call_operand.vmem [shape: f32[2,576,8], index: 0, kind: input, shape index: {}]   ;;  %s1216_s1 = inlined_call_operand.vmem [shape: f32[1,8], index: 1, kind: input, shape index: {}]   ;;  %s1217_s2 = inlined_call_operand.vmem [shape: f32[1,8], index: 2, kind: input, shape index: {}]   ;;  %s1218_s3 = inlined_call_operand.vmem [shape: f32[8,16], index: 3, kind: input, shape index: {}]   ;;  %s1219_s4 = inlined_call_operand.vmem [shape: f32[1,16], index: 4, kind: input, shape index: {}]   ;;  %s1220_s5 = inlined_call_operand.vmem [shape: f32[2,576,16], index: 5, kind: output, shape index: {}]  }
   0x1   :  { %s971_s20 = smov 0   ;;  %s973_s21 = smov 0  }
   0x2   :  { %s975_s22 = smov 0  }
   0x3 LB: > { %s24_s23 = sadd.s32 1, %s927_s20  ;;  %s27_s24 = sadd.s32 1, %s931_s21  ;;  %s935_s22 = sphi %s975_s22, %s15_s22   ;;  %s931_s21 = sphi %s973_s21, %s1224_s21   ;;  %s927_s20 = sphi %s971_s20, %s1223_s20   ;;  %s923_s19 = sphi %s969_s19, %s1222_s19   ;;  %s919_s18 = sphi %s967_s18, %s1221_s18  }
   0x4   : > { %p25_p0 = scmp.ge.s32.totalorder %s24_s23, 3  ;;  %p759_p1 = scmp.ge.s32.totalorder %s935_s22, 1 }
   0x5   : > { %p208_p2 = scmp.lt.s32.totalorder %s935_s22, 7 }
   0x6   : > { %s1226_s23 = smov (%p25_p0, %s24_s23), 0  ;;  %s1228_s24 = smov (!%p25_p0, %s27_s24), %s931_s21 }
   0x7   : > { %p209_p3 = pnand %p759_p1, %p208_p2  ;;  %p29_p4 = scmp.ge.s32.totalorder %s1228_s24, 2 }
   0x8   : > { %v374_v0 = vld [vmem:[%s1218_s3] sm:$0xff] (!%p209_p3)  ;;  %s244_s27 = smul.u32 (!%p209_p3), 24, %s919_s18  ;;  %p245_p5 = scmp.lt.s32.totalorder (!%p209_p3), %s923_s19, 1  ;;  %vm382_vm0 = vcmask (!%p209_p3), 64512   ;;  %vm640_vm1 = vcmask (!%p209_p3), 130048  }
   0x9   : > { %s1230_s24 = smov (%p29_p4, %s1228_s24), 0  ;;  %212 = sbr.rel (%p209_p3) target bundleno = 267 (0x10b), region = 40 }
   0xa   : > { %816 = vmatprep.subr.mxu0 (!%p209_p3), %v374_v0  ;;  %854 = vmatprep.subr.mxu1 (!%p209_p3), %v374_v0  ;;  %p247_p6 = scmp.lt.s32.totalorder (!%p209_p3), %s244_s27, 71  ;;  %v1006_v1 = vld [vmem:[%s1216_s1] ss:$0 sm:$0xff] (!%p209_p3) }
   0xb   : > { %817 = vmatpush3.msra.mxu0 (!%p209_p3), %v374_v0  ;;  %855 = vmatpush3.msra.mxu1 (!%p209_p3), %v374_v0  ;;  %v1018_v2 = vld [vmem:[%s1217_s2] ss:$0 sm:$0xff] (!%p209_p3) }
  0x10   : > { %s1232_s19 = smov (!%p245_p5, %s923_s19), 1  ;;  %s1234_s27 = smov (!%p247_p6, %s244_s27), 71 }
  0x11   : > { %s856_s28 = smul.u32 72, %s1232_s19 }
  0x13   : > { %s1000_s29 = sadd.s32 %s856_s28, %s1234_s27 }
  0x14   : > { %s760_s30 = sshll.u32 %s1000_s29, 3 }
  0x15   : > { %s1013_s10 = scalar_lea.vmem %s1215_s0, %s760_s30  ;;  %s1126_s17 = scalar_lea.vmem %s1220_s5, %s760_s30 }
  0x16   : > { %v264_v3 = vld [vmem:[%s1013_s10] sm:$0xff]  ;;  %v265_v5 = vld [vmem:[%s1013_s10 + $0x8] sm:$0xff]  ;;  %v266_v10 = vld [vmem:[%s1013_s10 + $0x10] sm:$0xff] }
  0x17   : > { %v276_v4 = vld [vmem:[%s1013_s10 + $0x60] sm:$0xff]  ;;  %v295_v6 = vmul.f32 %v1006_v1, %v264_v3  ;;  %v296_v8 = vmul.f32 %v1006_v1, %v265_v5  ;;  %v277_v9 = vld [vmem:[%s1013_s10 + $0x68] sm:$0xff]  ;;  %v278_v11 = vld [vmem:[%s1013_s10 + $0x70] sm:$0xff]  ;;  %v297_v13 = vmul.f32 %v1006_v1, %v266_v10 }
  0x18   : > { %v307_v7 = vmul.f32 %v1006_v1, %v276_v4  ;;  %v308_v12 = vmul.f32 %v1006_v1, %v277_v9  ;;  %v309_v14 = vmul.f32 %v1006_v1, %v278_v11  ;;  %v267_v15 = vld [vmem:[%s1013_s10 + $0x18] sm:$0xff]  ;;  %v268_v25 = vld [vmem:[%s1013_s10 + $0x20] sm:$0xff]  ;;  %v269_v27 = vld [vmem:[%s1013_s10 + $0x28] sm:$0xff] }
  0x19   : > { %v279_v16 = vld [vmem:[%s1013_s10 + $0x78] sm:$0xff]  ;;  %v326_v17 = vadd.f32 %v1018_v2, %v295_v6  ;;  %v327_v19 = vadd.f32 %v1018_v2, %v296_v8  ;;  %v298_v20 = vmul.f32 %v1006_v1, %v267_v15  ;;  %v328_v22 = vadd.f32 %v1018_v2, %v297_v13  ;;  %v280_v26 = vld [vmem:[%s1013_s10 + $0x80] sm:$0xff]  ;;  %v281_v32 = vld [vmem:[%s1013_s10 + $0x88] sm:$0xff] }
  0x1a   : > { %v338_v18 = vadd.f32 %v1018_v2, %v307_v7  ;;  %v339_v21 = vadd.f32 %v1018_v2, %v308_v12  ;;  %v340_v23 = vadd.f32 %v1018_v2, %v309_v14  ;;  %v310_v24 = vmul.f32 %v1006_v1, %v279_v16  ;;  %v270_v33 = vld [vmem:[%s1013_s10 + $0x30] sm:$0xff]  ;;  %v271_v43 = vld [vmem:[%s1013_s10 + $0x38] sm:$0xff]  ;;  %v272_v56 = vld [vmem:[%s1013_s10 + $0x40] sm:$0xff] }
  0x1b   : > { %v350_v28 = vmax.f32 %v326_v17, 0.0  ;;  %v351_v30 = vmax.f32 %v327_v19, 0.0  ;;  %v329_v31 = vadd.f32 %v1018_v2, %v298_v20  ;;  %v282_v34 = vld [vmem:[%s1013_s10 + $0x90] sm:$0xff]  ;;  %v352_v36 = vmax.f32 %v328_v22, 0.0  ;;  %v283_v48 = vld [vmem:[%s1013_s10 + $0x98] sm:$0xff]  ;;  %v284_v57 = vld [vmem:[%s1013_s10 + $0xa0] sm:$0xff] }
  0x1c   : > { %v362_v29 = vmax.f32 %v338_v18, 0.0  ;;  %v363_v35 = vmax.f32 %v339_v21, 0.0  ;;  %v364_v37 = vmax.f32 %v340_v23, 0.0  ;;  %v341_v38 = vadd.f32 %v1018_v2, %v310_v24  ;;  %v273_v61 = vld [vmem:[%s1013_s10 + $0x48] sm:$0xff]  ;;  %v274_v63 = vld [vmem:[%s1013_s10 + $0x50] sm:$0xff]  ;;  %v275_v14 = vld [vmem:[%s1013_s10 + $0x58] sm:$0xff] }
  0x1d   : > { %818 = vmatprep.mubr.msk.f32.mxu0 %vm382_vm0, %v350_v28  ;;  %v353_v39 = vmax.f32 %v329_v31, 0.0  ;;  %v299_v40 = vmul.f32 %v1006_v1, %v268_v25  ;;  %v311_v41 = vmul.f32 %v1006_v1, %v280_v26  ;;  %v300_v42 = vmul.f32 %v1006_v1, %v269_v27  ;;  %v285_v62 = vld [vmem:[%s1013_s10 + $0xa8] sm:$0xff]  ;;  %v286_v6 = vld [vmem:[%s1013_s10 + $0xb0] sm:$0xff]  ;;  %v287_v19 = vld [vmem:[%s1013_s10 + $0xb8] sm:$0xff] }
  0x1e   : > { %836 = vmatprep.mubr.msk.f32.mxu1 %vm382_vm0, %v362_v29  ;;  %819 = vmatmul.mubr.msk.f32.vlgmr.msra.gmra.mrb[0].mxu0 %vm382_vm0, %v351_v30  ;;  %v365_v44 = vmax.f32 %v341_v38, 0.0  ;;  %v312_v45 = vmul.f32 %v1006_v1, %v281_v32  ;;  %v301_v46 = vmul.f32 %v1006_v1, %v270_v33  ;;  %v313_v47 = vmul.f32 %v1006_v1, %v282_v34 }
  0x1f   : > { %837 = vmatmul.mubr.msk.f32.vlgmr.msra.gmra.mrb[0].mxu1 %vm382_vm0, %v363_v35  ;;  %821 = vmatprep.mubr.msk.f32.mxu0 %vm382_vm0, %v352_v36  ;;  %v330_v49 = vadd.f32 %v1018_v2, %v299_v40  ;;  %v342_v50 = vadd.f32 %v1018_v2, %v311_v41  ;;  %v331_v51 = vadd.f32 %v1018_v2, %v300_v42 }
  0x20   : > { %839 = vmatprep.mubr.msk.f32.mxu1 %vm382_vm0, %v364_v37  ;;  %v343_v52 = vadd.f32 %v1018_v2, %v312_v45  ;;  %v332_v53 = vadd.f32 %v1018_v2, %v301_v46  ;;  %v344_v54 = vadd.f32 %v1018_v2, %v313_v47  ;;  %v302_v55 = vmul.f32 %v1006_v1, %v271_v43 }
  0x21   : > { %v354_v58 = vmax.f32 %v330_v49, 0.0  ;;  %v366_v59 = vmax.f32 %v342_v50, 0.0  ;;  %v314_v60 = vmul.f32 %v1006_v1, %v283_v48  ;;  %v355_v0 = vmax.f32 %v331_v51, 0.0 }
  0x22   : > { %822 = vmatmul.mubr.msk.f32.gmra.mrb[2].mxu0 %vm382_vm0, %v353_v39  ;;  %v367_v3 = vmax.f32 %v343_v52, 0.0  ;;  %v356_v4 = vmax.f32 %v332_v53, 0.0  ;;  %v333_v5 = vadd.f32 %v1018_v2, %v302_v55  ;;  %v368_v7 = vmax.f32 %v344_v54, 0.0 }
  0x23   : > { %840 = vmatmul.mubr.msk.f32.gmra.mrb[2].mxu1 %vm382_vm0, %v365_v44  ;;  %824 = vmatprep.mubr.msk.f32.mxu0 %vm382_vm0, %v354_v58  ;;  %v345_v8 = vadd.f32 %v1018_v2, %v314_v60  ;;  %v303_v9 = vmul.f32 %v1006_v1, %v272_v56  ;;  %v315_v10 = vmul.f32 %v1006_v1, %v284_v57 }
  0x24   : > { %842 = vmatprep.mubr.msk.f32.mxu1 %vm382_vm0, %v366_v59  ;;  %v304_v11 = vmul.f32 %v1006_v1, %v273_v61  ;;  %v316_v12 = vmul.f32 %v1006_v1, %v285_v62  ;;  %v305_v13 = vmul.f32 %v1006_v1, %v274_v63  ;;  %v357_v15 = vmax.f32 %v333_v5, 0.0 }
  0x25   : > { %v334_v16 = vadd.f32 %v1018_v2, %v303_v9  ;;  %v346_v17 = vadd.f32 %v1018_v2, %v315_v10  ;;  %v317_v18 = vmul.f32 %v1006_v1, %v286_v6  ;;  %v369_v20 = vmax.f32 %v345_v8, 0.0 }
  0x26   : > { %825 = vmatmul.mubr.msk.f32.gmra.mrb[4].mxu0 %vm382_vm0, %v355_v0  ;;  %v335_v21 = vadd.f32 %v1018_v2, %v304_v11  ;;  %v347_v22 = vadd.f32 %v1018_v2, %v316_v12  ;;  %v336_v23 = vadd.f32 %v1018_v2, %v305_v13  ;;  %v306_v27 = vmul.f32 %v1006_v1, %v275_v14 }
  0x27   : > { %843 = vmatmul.mubr.msk.f32.gmra.mrb[4].mxu1 %vm382_vm0, %v367_v3  ;;  %827 = vmatprep.mubr.msk.f32.mxu0 %vm382_vm0, %v356_v4  ;;  %v358_v24 = vmax.f32 %v334_v16, 0.0  ;;  %v370_v25 = vmax.f32 %v346_v17, 0.0  ;;  %v348_v26 = vadd.f32 %v1018_v2, %v317_v18  ;;  %v318_v28 = vmul.f32 %v1006_v1, %v287_v19 }
  0x28   : > { %845 = vmatprep.mubr.msk.f32.mxu1 %vm382_vm0, %v368_v7  ;;  %v359_v29 = vmax.f32 %v335_v21, 0.0  ;;  %v371_v30 = vmax.f32 %v347_v22, 0.0  ;;  %v337_v31 = vadd.f32 %v1018_v2, %v306_v27  ;;  %v360_v33 = vmax.f32 %v336_v23, 0.0 }
  0x29   : > { %v349_v32 = vadd.f32 %v1018_v2, %v318_v28  ;;  %v372_v34 = vmax.f32 %v348_v26, 0.0  ;;  %v1119_v2 = vld [vmem:[%s1219_s4] ss:$0 sm:$0xff] }
  0x2a   : > { %828 = vmatmul.mubr.msk.f32.gmra.mrb[6].mxu0 %vm382_vm0, %v357_v15  ;;  %v361_v1 = vmax.f32 %v337_v31, 0.0 }
  0x2b   : > { %846 = vmatmul.mubr.msk.f32.gmra.mrb[6].mxu1 %vm382_vm0, %v369_v20  ;;  %830 = vmatprep.mubr.msk.f32.mxu0 %vm382_vm0, %v358_v24  ;;  %v373_v35 = vmax.f32 %v349_v32, 0.0 }
  0x2c   : > { %848 = vmatprep.mubr.msk.f32.mxu1 %vm382_vm0, %v370_v25 }
  0x2e   : > { %831 = vmatmul.mubr.msk.f32.gmra.mrb[8].mxu0 %vm382_vm0, %v359_v29 }
  0x2f   : > { %849 = vmatmul.mubr.msk.f32.gmra.mrb[8].mxu1 %vm382_vm0, %v371_v30  ;;  %833 = vmatprep.mubr.msk.f32.mxu0 %vm382_vm0, %v360_v33 }
  0x30   : > { %851 = vmatprep.mubr.msk.f32.mxu1 %vm382_vm0, %v372_v34 }
  0x32   : > { %834 = vmatmul.mubr.msk.f32.gmra.mrb[10].mxu0 %vm382_vm0, %v361_v1 }
  0x33   : > { %852 = vmatmul.mubr.msk.f32.gmra.mrb[10].mxu1 %vm382_vm0, %v373_v35 }
  0xf1   : > { %v820_v36 = vpop.f32.mrb[0].mxu0 }
  0xf2   : > { %v838_v37 = vpop.f32.mrb[0].mxu1  ;;  %v527_v38 = vadd.f32 %v820_v36, %v1119_v2  ;;  %v521_v40 = vpop.f32.mrb[1].mxu0 }
  0xf3   : > { %v587_v39 = vadd.f32 %v838_v37, %v1119_v2  ;;  %v581_v41 = vpop.f32.mrb[1].mxu1  ;;  %v522_v42 = vadd.f32 %v1119_v2, %v521_v40 }
  0xf4   : > { %v582_v43 = vadd.f32 %v1119_v2, %v581_v41  ;;  %642 = vst.msk [vmem:[%s1126_s17 + $0x8] sm:$0xff] %vm640_vm1, %v527_v38 }
  0xf5   : > { %654 = vst.msk [vmem:[%s1126_s17 + $0x68] sm:$0xff] %vm640_vm1, %v587_v39  ;;  %641 = vst.msk [vmem:[%s1126_s17] sm:$0xff] %vm640_vm1, %v522_v42  ;;  %v823_v44 = vpop.f32.mrb[2].mxu0 }
  0xf6   : > { %653 = vst.msk [vmem:[%s1126_s17 + $0x60] sm:$0xff] %vm640_vm1, %v582_v43  ;;  %v841_v45 = vpop.f32.mrb[2].mxu1  ;;  %v537_v46 = vadd.f32 %v823_v44, %v1119_v2  ;;  %v531_v48 = vpop.f32.mrb[3].mxu0 }
  0xf7   : > { %v597_v47 = vadd.f32 %v841_v45, %v1119_v2  ;;  %v591_v49 = vpop.f32.mrb[3].mxu1  ;;  %v532_v50 = vadd.f32 %v1119_v2, %v531_v48 }
  0xf8   : > { %v592_v51 = vadd.f32 %v1119_v2, %v591_v49  ;;  %644 = vst.msk [vmem:[%s1126_s17 + $0x18] sm:$0xff] %vm640_vm1, %v537_v46 }
  0xf9   : > { %656 = vst.msk [vmem:[%s1126_s17 + $0x78] sm:$0xff] %vm640_vm1, %v597_v47  ;;  %643 = vst.msk [vmem:[%s1126_s17 + $0x10] sm:$0xff] %vm640_vm1, %v532_v50  ;;  %v826_v52 = vpop.f32.mrb[4].mxu0 }
  0xfa   : > { %655 = vst.msk [vmem:[%s1126_s17 + $0x70] sm:$0xff] %vm640_vm1, %v592_v51  ;;  %v844_v53 = vpop.f32.mrb[4].mxu1  ;;  %v547_v54 = vadd.f32 %v826_v52, %v1119_v2  ;;  %v541_v56 = vpop.f32.mrb[5].mxu0 }
  0xfb   : > { %v607_v55 = vadd.f32 %v844_v53, %v1119_v2  ;;  %v601_v57 = vpop.f32.mrb[5].mxu1  ;;  %v542_v58 = vadd.f32 %v1119_v2, %v541_v56 }
  0xfc   : > { %v602_v59 = vadd.f32 %v1119_v2, %v601_v57  ;;  %646 = vst.msk [vmem:[%s1126_s17 + $0x28] sm:$0xff] %vm640_vm1, %v547_v54 }
  0xfd   : > { %658 = vst.msk [vmem:[%s1126_s17 + $0x88] sm:$0xff] %vm640_vm1, %v607_v55  ;;  %645 = vst.msk [vmem:[%s1126_s17 + $0x20] sm:$0xff] %vm640_vm1, %v542_v58  ;;  %v829_v60 = vpop.f32.mrb[6].mxu0 }
  0xfe   : > { %657 = vst.msk [vmem:[%s1126_s17 + $0x80] sm:$0xff] %vm640_vm1, %v602_v59  ;;  %v847_v61 = vpop.f32.mrb[6].mxu1  ;;  %v557_v62 = vadd.f32 %v829_v60, %v1119_v2  ;;  %v551_v0 = vpop.f32.mrb[7].mxu0 }
  0xff   : > { %v617_v63 = vadd.f32 %v847_v61, %v1119_v2  ;;  %v611_v3 = vpop.f32.mrb[7].mxu1  ;;  %v552_v4 = vadd.f32 %v1119_v2, %v551_v0 }
 0x100   : > { %v612_v5 = vadd.f32 %v1119_v2, %v611_v3  ;;  %648 = vst.msk [vmem:[%s1126_s17 + $0x38] sm:$0xff] %vm640_vm1, %v557_v62 }
 0x101   : > { %660 = vst.msk [vmem:[%s1126_s17 + $0x98] sm:$0xff] %vm640_vm1, %v617_v63  ;;  %647 = vst.msk [vmem:[%s1126_s17 + $0x30] sm:$0xff] %vm640_vm1, %v552_v4  ;;  %v832_v6 = vpop.f32.mrb[8].mxu0 }
 0x102   : > { %659 = vst.msk [vmem:[%s1126_s17 + $0x90] sm:$0xff] %vm640_vm1, %v612_v5  ;;  %v850_v7 = vpop.f32.mrb[8].mxu1  ;;  %v567_v8 = vadd.f32 %v832_v6, %v1119_v2  ;;  %v561_v10 = vpop.f32.mrb[9].mxu0 }
 0x103   : > { %v627_v9 = vadd.f32 %v850_v7, %v1119_v2  ;;  %v621_v11 = vpop.f32.mrb[9].mxu1  ;;  %v562_v12 = vadd.f32 %v1119_v2, %v561_v10 }
 0x104   : > { %v622_v13 = vadd.f32 %v1119_v2, %v621_v11  ;;  %650 = vst.msk [vmem:[%s1126_s17 + $0x48] sm:$0xff] %vm640_vm1, %v567_v8 }
 0x105   : > { %662 = vst.msk [vmem:[%s1126_s17 + $0xa8] sm:$0xff] %vm640_vm1, %v627_v9  ;;  %649 = vst.msk [vmem:[%s1126_s17 + $0x40] sm:$0xff] %vm640_vm1, %v562_v12  ;;  %v835_v14 = vpop.f32.mrb[10].mxu0 }
 0x106   : > { %661 = vst.msk [vmem:[%s1126_s17 + $0xa0] sm:$0xff] %vm640_vm1, %v622_v13  ;;  %v853_v15 = vpop.f32.mrb[10].mxu1  ;;  %v577_v16 = vadd.f32 %v835_v14, %v1119_v2  ;;  %v571_v18 = vpop.f32.mrb[11].mxu0 }
 0x107   : > { %v637_v17 = vadd.f32 %v853_v15, %v1119_v2  ;;  %v631_v19 = vpop.f32.mrb[11].mxu1  ;;  %v572_v20 = vadd.f32 %v1119_v2, %v571_v18 }
 0x108   : > { %v632_v21 = vadd.f32 %v1119_v2, %v631_v19  ;;  %652 = vst.msk [vmem:[%s1126_s17 + $0x58] sm:$0xff] %vm640_vm1, %v577_v16 }
 0x109   : > { %664 = vst.msk [vmem:[%s1126_s17 + $0xb8] sm:$0xff] %vm640_vm1, %v637_v17  ;;  %651 = vst.msk [vmem:[%s1126_s17 + $0x50] sm:$0xff] %vm640_vm1, %v572_v20 }
 0x10a   : > { %663 = vst.msk [vmem:[%s1126_s17 + $0xb0] sm:$0xff] %vm640_vm1, %v632_v21 }
 0x10b PF: > { %s15_s22 = sadd.s32 1, %s935_s22   ;;  %s1221_s18 = smov %s927_s20 }
 0x10c   : > { %p12_p7 = scmp.ge.s32.totalorder %s15_s22, 8   ;;  %s1222_s19 = smov %s931_s21 }
 0x10d   : > { %s1223_s20 = smov %s1226_s23  ;;  %s1224_s21 = smov %s1230_s24 }
 0x10e   :  { %14 = sbr.rel (!%p12_p7) target bundleno = 3 (0x3), region = 70 }

// kernel: decoder_block_forward.3
= control target key start
LH: loop header
LB: loop body
LE: loop exit
PB: predicated region body
PF: predicated region fallthrough
CT: control target
= control target key end

     0   :  { %s5719_s15 = smov 0   ;;  %s8521_s0 = inlined_call_operand.vmem [shape: f32[2,640,4], index: 0, kind: input, shape index: {}]   ;;  %s8522_s1 = inlined_call_operand.vmem [shape: f32[3,12,8], index: 1, kind: input, shape index: {}]   ;;  %s8523_s2 = inlined_call_operand.vmem [shape: f32[640,1], index: 2, kind: input, shape index: {}]   ;;  %s8524_s3 = inlined_call_operand.vmem [shape: f32[2,640,8], index: 3, kind: output, shape index: {0}]   ;;  %s8525_s4 = inlined_call_operand.vmem [shape: f32[2,2,8], index: 4, kind: output, shape index: {1}]  }
   0x1 LB: > { %s4602_s16 = sadd.s32 4294967295, %s5688_s15   ;;  %p4606_p0 = scmp.ge.s32.totalorder %s5688_s15, 1  ;;  %s5688_s15 = sphi %s5719_s15, %s15_s15  }
   0x2   : > { %p165_p1 = scmp.lt.s32.totalorder %s5688_s15, 3 }
   0x4   : > { %p166_p2 = pnand %p4606_p0, %p165_p1 }
   0x6   : > { %169 = sbr.rel (%p166_p2) target bundleno = 879 (0x36f), region = 32 }
   0xd   : > { %p195_p3 = scmp.lt.s32.totalorder %s4602_s16, 1  ;;  %v5690_v0 = vmov 0   ;;  %vm271_vm0 = vcmask 1046528   ;;  %s5691_s21 = smov 4   ;;  %vm715_vm1 = vcmask 1043456   ;;  %vm5692_vm2 = vmmov 1  }
   0xe   : > { %5657 = vset.pattern.permute.xlu1 %v5690_v0  ;;  %5656 = vset.pattern.permute.xlu0 %v5690_v0  ;;  %vm5912_vm3 = vmpackc.low %vm715_vm1, %vm5692_vm2  ;;  %vm423_vm4 = vcmask 1045504   ;;  %s5693_s30 = smov 8   ;;  %vm606_vm5 = vcmask 64512   ;;  %vm575_vm6 = vcmask 31744   ;;  %vm642_vm7 = vcmask 97280  }
   0xf   : > { %s8668_s16 = smov (!%p195_p3, %s4602_s16), 1  ;;  %vm4513_vm8 = vcmask 57344  }
  0x10   : > { %s5643_s17 = smul.u32 640, %s8668_s16 }
  0x12   : > { %s5735_s20 = scalar_lea.vmem %s8521_s0, %s5643_s17  ;;  %s7410_s28 = scalar_lea.vmem %s8524_s3, %s5643_s17 }
  0x13   : > { %v5738_v1 = vld [vmem:[%s5735_s20 + $0x17] sm:$0xff]  ;;  %v5741_v2 = vld [vmem:[%s5735_s20 + $0x1f] sm:$0xff]  ;;  %v5744_v3 = vld [vmem:[%s5735_s20 + $0x7] sm:$0xff] }
  0x14   : > { %v275_v4 = vrot.slane %v5738_v1, 1  ;;  %v277_v5 = vrot.slane %v5741_v2, 1  ;;  %v5749_v6 = vld [vmem:[%s5735_s20 + $0xf] sm:$0xff]  ;;  %v272_v7 = vrot.slane %v5744_v3, 1  ;;  %v5753_v8 = vld [vmem:[%s5735_s20 + $0x27] sm:$0xff]  ;;  %v5761_v12 = vld [vmem:[%s5735_s20 + $0x37] sm:$0xff] }
  0x15   : > { %v273_v9 = vrot.slane %v5749_v6, 1  ;;  %v279_v10 = vrot.slane %v5753_v8, 1  ;;  %v5758_v11 = vld [vmem:[%s5735_s20 + $0x2f] sm:$0xff]  ;;  %v283_v17 = vrot.slane %v5761_v12, 1  ;;  %v5772_v19 = vld [vmem:[%s5735_s20 + $0x3f] sm:$0xff]  ;;  %v5775_v20 = vld [vmem:[%s5735_s20 + $0x47] sm:$0xff] }
  0x16   : > { %v278_v13 = vsel %vm271_vm0, %v275_v4, %v277_v5  ;;  %v281_v16 = vrot.slane %v5758_v11, 1  ;;  %v285_v22 = vrot.slane %v5772_v19, 1  ;;  %v287_v23 = vrot.slane %v5775_v20, 1  ;;  %v5784_v25 = vld [vmem:[%s5735_s20 + $0x4f] sm:$0xff]  ;;  %v5787_v26 = vld [vmem:[%s5735_s20 + $0x57] sm:$0xff]  ;;  %v5796_v31 = vld [vmem:[%s5735_s20 + $0x5f] sm:$0xff] }
  0x17   : > { %337 = vrot.lane.b32.xlu1 %v278_v13, %s5691_s21  ;;  %v274_v14 = vsel %vm271_vm0, %v272_v7, %v273_v9  ;;  %v280_v15 = vsel %vm271_vm0, %v277_v5, %v279_v10  ;;  %v276_v18 = vsel %vm271_vm0, %v273_v9, %v275_v4  ;;  %v289_v28 = vrot.slane %v5784_v25, 1  ;;  %v5799_v32 = vld [vmem:[%s5735_s20 + $0x67] sm:$0xff]  ;;  %v5808_v37 = vld [vmem:[%s5735_s20 + $0x6f] sm:$0xff]  ;;  %v5811_v38 = vld [vmem:[%s5735_s20 + $0x77] sm:$0xff] }
  0x18   : > { %333 = vrot.lane.b32.xlu0 %v274_v14, %s5691_s21  ;;  %v284_v21 = vsel %vm271_vm0, %v281_v16, %v283_v17  ;;  %v282_v24 = vsel %vm271_vm0, %v279_v10, %v281_v16  ;;  %v288_v27 = vsel %vm271_vm0, %v285_v22, %v287_v23  ;;  %v291_v29 = vrot.slane %v5787_v26, 1  ;;  %v5820_v43 = vld [vmem:[%s5735_s20 + $0x7f] sm:$0xff]  ;;  %v5823_v44 = vld [vmem:[%s5735_s20 + $0x87] sm:$0xff]  ;;  %v5832_v49 = vld [vmem:[%s5735_s20 + $0x8f] sm:$0xff] }
  0x19   : > { %v286_v30 = vsel %vm271_vm0, %v283_v17, %v285_v22  ;;  %v293_v34 = vrot.slane %v5796_v31, 1  ;;  %v295_v35 = vrot.slane %v5799_v32, 1  ;;  %v290_v36 = vsel %vm271_vm0, %v287_v23, %v289_v28  ;;  %v5835_v50 = vld [vmem:[%s5735_s20 + $0x97] sm:$0xff]  ;;  %v5844_v55 = vld [vmem:[%s5735_s20 + $0x9f] sm:$0xff]  ;;  %v5847_v56 = vld [vmem:[%s5735_s20 + $0xa7] sm:$0xff] }
  0x1a   : > { %v292_v33 = vsel %vm271_vm0, %v289_v28, %v291_v29  ;;  %v297_v40 = vrot.slane %v5808_v37, 1  ;;  %v299_v41 = vrot.slane %v5811_v38, 1  ;;  %v301_v46 = vrot.slane %v5820_v43, 1  ;;  %8566 = vst [vmem:[#allocation2_spill] sm:$0xff] %v5847_v56  ;;  %v5856_v61 = vld [vmem:[%s5735_s20 + $0xaf] sm:$0xff]  ;;  %v5859_v62 = vld [vmem:[%s5735_s20 + $0xb7] sm:$0xff] }
  0x1b   : > { %339 = vrot.lane.b32.xlu1 %v280_v15, %s5691_s21  ;;  %v296_v39 = vsel %vm271_vm0, %v293_v34, %v295_v35  ;;  %v294_v42 = vsel %vm271_vm0, %v291_v29, %v293_v34  ;;  %v303_v47 = vrot.slane %v5823_v44, 1  ;;  %v305_v52 = vrot.slane %v5832_v49, 1  ;;  %8567 = vst [vmem:[#allocation3_spill] sm:$0xff] %v5859_v62  ;;  %v5868_v7 = vld [vmem:[%s5735_s20 + $0xbf] sm:$0xff]  ;;  %v5871_v9 = vld [vmem:[%s5735_s20 + $0xc7] sm:$0xff]  ;;  %v5880_v16 = vld [vmem:[%s5735_s20 + $0xcf] sm:$0xff] }
  0x1c   : > { %335 = vrot.lane.b32.xlu0 %v276_v18, %s5691_s21  ;;  %v300_v45 = vsel %vm271_vm0, %v297_v40, %v299_v41  ;;  %v298_v48 = vsel %vm271_vm0, %v295_v35, %v297_v40  ;;  %v307_v53 = vrot.slane %v5835_v50, 1  ;;  %v302_v54 = vsel %vm271_vm0, %v299_v41, %v301_v46  ;;  %8568 = vst [vmem:[#allocation4_spill] sm:$0xff] %v5868_v7  ;;  %v5883_v17 = vld [vmem:[%s5735_s20 + $0xd7] sm:$0xff]  ;;  %v637_v28 = vld [vmem:[%s8522_s1] sm:$0xff]  ;;  %v638_v29 = vld [vmem:[%s8522_s1 + $0x8] sm:$0xf] }
  0x1d   : > { %v304_v51 = vsel %vm271_vm0, %v301_v46, %v303_v47  ;;  %v309_v58 = vrot.slane %v5844_v55, 1  ;;  %v311_v59 = vrot.slane %v5847_v56, 1  ;;  %v306_v60 = vsel %vm271_vm0, %v303_v47, %v305_v52  ;;  %8569 = vst [vmem:[#allocation5_spill] sm:$0xff] %v5871_v9  ;;  %8570 = vst [vmem:[#allocation6_spill] sm:$0xff] %v5880_v16  ;;  %v5918_v40 = vld [vmem:[%s5735_s20 + $0xef] sm:$0xff] }
  0x1e   : > { %v308_v57 = vsel %vm271_vm0, %v305_v52, %v307_v53  ;;  %v313_v0 = vrot.slane %v5856_v61, 1  ;;  %v315_v4 = vrot.slane %v5859_v62, 1  ;;  %v317_v13 = vrot.slane %v5868_v7, 1  ;;  %8571 = vst [vmem:[#allocation7_spill] sm:$0xff] %v5883_v17  ;;  %8577 = vst [vmem:[#allocation11_spill] sm:$0xff] %v5918_v40 }
  0x1f   : > { %343 = vrot.lane.b32.xlu1 %v284_v21, %s5691_s21  ;;  %v312_v63 = vsel %vm271_vm0, %v309_v58, %v311_v59  ;;  %v310_v5 = vsel %vm271_vm0, %v307_v53, %v309_v58  ;;  %v319_v14 = vrot.slane %v5871_v9, 1  ;;  %v321_v21 = vrot.slane %v5880_v16, 1  ;;  %v5921_v41 = vld [vmem:[%s5735_s20 + $0xf7] sm:$0x3] }
  0x20   : > { %341 = vrot.lane.b32.xlu0 %v282_v24, %s5691_s21  ;;  %v316_v10 = vsel %vm271_vm0, %v313_v0, %v315_v4  ;;  %v314_v15 = vsel %vm271_vm0, %v311_v59, %v313_v0  ;;  %v323_v22 = vrot.slane %v5883_v17, 1  ;;  %v318_v23 = vsel %vm271_vm0, %v315_v4, %v317_v13  ;;  %v5892_v24 = vld [vmem:[%s5735_s20 + $0xdf] sm:$0xff] }
  0x21   : > { %v320_v18 = vsel %vm271_vm0, %v317_v13, %v319_v14  ;;  %8572 = vst [vmem:[#allocation8_spill] sm:$0xff] %v5892_v24  ;;  %v5909_v34 = vrot.slane %v5892_v24, 1  ;;  %v331_v46 = vrot.slane %v5921_v41, 1  ;;  %v424_v59 = vrot.slane %v5744_v3, 2 }
  0x22   : > { %v431_v0 = vrot.slane %v5753_v8, 2  ;;  %v435_v13 = vrot.slane %v5761_v12, 2 }
  0x23   : > { %347 = vrot.lane.b32.xlu1 %v288_v27, %s5691_s21  ;;  %v5895_v27 = vld [vmem:[%s5735_s20 + $0xe7] sm:$0xff]  ;;  %8574 = vst [vmem:[#allocation10_spill] sm:$0xff] %v5909_v34  ;;  %v326_v47 = vsel %vm271_vm0, %v323_v22, %v5909_v34 }
  0x24   : > { %345 = vrot.lane.b32.xlu0 %v286_v30, %s5691_s21  ;;  %8573 = vst [vmem:[#allocation9_spill] sm:$0xff] %v5895_v27  ;;  %v5904_v30 = vpack.c.bf16 %v638_v29, %v637_v28  ;;  %v327_v35 = vrot.slane %v5895_v27, 1  ;;  %v4663_v28 = vld [vmem:[%s8522_s1 + $0x28] sm:$0xf] }
  0x26   : > { %5451 = vmatprep.subr.msk.bf16.mxu0 %vm5912_vm3, %v5904_v30 }
  0x27   : > { %351 = vrot.lane.b32.xlu1 %v292_v33, %s5691_s21  ;;  %v324_v33 = vsel %vm271_vm0, %v321_v21, %v323_v22  ;;  %5454 = vmatpush3.bf16.msk.msra.mxu0 %vm5912_vm3, %v5904_v30 }
  0x28   : > { %349 = vrot.lane.b32.xlu0 %v290_v36, %s5691_s21 }
  0x2b   : > { %355 = vrot.lane.b32.xlu1 %v296_v39, %s5691_s21  ;;  %v322_v39 = vsel %vm271_vm0, %v319_v14, %v321_v21  ;;  %v439_v21 = vrot.slane %v5775_v20, 2 }
  0x2c   : > { %353 = vrot.lane.b32.xlu0 %v294_v42, %s5691_s21  ;;  %v5933_v42 = vsel %vm271_vm0, %v5909_v34, %v327_v35 }
  0x2f   : > { %359 = vrot.lane.b32.xlu1 %v300_v45, %s5691_s21  ;;  %v5936_v45 = vrot.slane %v5918_v40, 1 }
  0x30   : > { %357 = vrot.lane.b32.xlu0 %v298_v48, %s5691_s21  ;;  %v5944_v48 = vld [vmem:[%s8522_s1 + $0x10] sm:$0xff] }
  0x31   : > { %v332_v53 = vsel %vm271_vm0, %v5936_v45, %v331_v46  ;;  %v5961_v58 = vsel %vm271_vm0, %v327_v35, %v5936_v45  ;;  %v443_v35 = vrot.slane %v5787_v26, 2 }
  0x33   : > { %363 = vrot.lane.b32.xlu1 %v304_v51, %s5691_s21  ;;  %v4611_v51 = vld [vmem:[%s8522_s1 + $0x18] sm:$0xf] }
  0x34   : > { %361 = vrot.lane.b32.xlu0 %v302_v54, %s5691_s21  ;;  %v5443_v52 = vpack.c.bf16 %v4611_v51, %v5944_v48  ;;  %v425_v54 = vrot.slane %v5749_v6, 2  ;;  %v445_v51 = vrot.slane %v5796_v31, 2 }
  0x36   : > { %5445 = vmatprep.subr.msk.bf16.mxu1 %vm5912_vm3, %v5443_v52  ;;  %v426_v4 = vsel %vm423_vm4, %v424_v59, %v425_v54  ;;  %v451_v59 = vrot.slane %v5811_v38, 2 }
  0x37   : > { %367 = vrot.lane.b32.xlu1 %v308_v57, %s5691_s21  ;;  %v427_v57 = vrot.slane %v5738_v1, 2  ;;  %5448 = vmatpush3.bf16.msk.msra.mxu1 %vm5912_vm3, %v5443_v52  ;;  %v447_v52 = vrot.slane %v5799_v32, 2 }
  0x38   : > { %365 = vrot.lane.b32.xlu0 %v306_v60, %s5691_s21  ;;  %5497 = vmatprep.subr.msk.bf16.mxu1 %vm5912_vm3, %v5904_v30 }
  0x39   : > { %v428_v60 = vsel %vm423_vm4, %v425_v54, %v427_v57  ;;  %v448_v54 = vsel %vm423_vm4, %v445_v51, %v447_v52 }
  0x3b   : > { %371 = vrot.lane.b32.xlu1 %v312_v63, %s5691_s21  ;;  %v429_v63 = vrot.slane %v5741_v2, 2 }
  0x3c   : > { %369 = vrot.lane.b32.xlu0 %v310_v5, %s5691_s21 }
  0x3d   : > { %v432_v5 = vsel %vm423_vm4, %v429_v63, %v431_v0  ;;  %v430_v14 = vsel %vm423_vm4, %v427_v57, %v429_v63  ;;  %v449_v57 = vrot.slane %v5808_v37, 2 }
  0x3f   : > { %375 = vrot.lane.b32.xlu1 %v316_v10, %s5691_s21  ;;  %v433_v10 = vrot.slane %v5758_v11, 2  ;;  %v452_v63 = vsel %vm423_vm4, %v449_v57, %v451_v59 }
  0x40   : > { %373 = vrot.lane.b32.xlu0 %v314_v15, %s5691_s21 }
  0x41   : > { %v436_v15 = vsel %vm423_vm4, %v433_v10, %v435_v13  ;;  %v434_v22 = vsel %vm423_vm4, %v431_v0, %v433_v10  ;;  %v453_v0 = vrot.slane %v5820_v43, 2 }
  0x43   : > { %379 = vrot.lane.b32.xlu1 %v320_v18, %s5691_s21  ;;  %v437_v18 = vrot.slane %v5772_v19, 2 }
  0x44   : > { %377 = vrot.lane.b32.xlu0 %v318_v23, %s5691_s21  ;;  %v4662_v23 = vld [vmem:[%s8522_s1 + $0x20] sm:$0xff] }
  0x45   : > { %v440_v29 = vsel %vm423_vm4, %v437_v18, %v439_v21  ;;  %v438_v46 = vsel %vm423_vm4, %v435_v13, %v437_v18  ;;  %v457_v13 = vrot.slane %v5832_v49, 2 }
  0x47   : > { %383 = vrot.lane.b32.xlu1 %v324_v33, %s5691_s21  ;;  %v441_v33 = vrot.slane %v5784_v25, 2 }
  0x48   : > { %381 = vrot.lane.b32.xlu0 %v322_v39, %s5691_s21  ;;  %v5999_v39 = vpack.c.bf16 %v4663_v28, %v4662_v23 }
  0x4a   : > { %5457 = vmatprep.subr.msk.bf16.mxu0 %vm5912_vm3, %v5999_v39 }
  0x4b   : > { %387 = vrot.lane.b32.xlu1 %v5933_v42, %s5691_s21 }
  0x4c   : > { %385 = vrot.lane.b32.xlu0 %v326_v47, %s5691_s21  ;;  %v444_v47 = vsel %vm423_vm4, %v441_v33, %v443_v35 }
  0x4f   : > { %391 = vrot.lane.b32.xlu1 %v332_v53, %s5691_s21  ;;  %v442_v53 = vsel %vm423_vm4, %v439_v21, %v441_v33  ;;  %v461_v21 = vrot.slane %v5844_v55, 2  ;;  %v467_v33 = vrot.slane %v5859_v62, 2  ;;  %v6210_v62 = vld [vmem:[%s5735_s20 + $0x1a7] sm:$0xff] }
  0x50   : > { %389 = vrot.lane.b32.xlu0 %v5961_v58, %s5691_s21  ;;  %8583 = vst [vmem:[#allocation17_spill] sm:$0xff] %v6210_v62 }
  0x53   : > { %487 = vrot.lane.b32.xlu1 %v428_v60, %s5693_s30  ;;  %v446_v60 = vsel %vm423_vm4, %v443_v35, %v445_v51  ;;  %v471_v51 = vrot.slane %v5871_v9, 2 }
  0x54   : > { %485 = vrot.lane.b32.xlu0 %v426_v4, %s5693_s30  ;;  %v455_v4 = vrot.slane %v5823_v44, 2 }
  0x56   : > { %v456_v10 = vsel %vm423_vm4, %v453_v0, %v455_v4  ;;  %v458_v23 = vsel %vm423_vm4, %v455_v4, %v457_v13 }
  0x57   : > { %491 = vrot.lane.b32.xlu1 %v432_v5, %s5693_s30  ;;  %v450_v5 = vsel %vm423_vm4, %v447_v52, %v449_v57  ;;  %v475_v57 = vrot.slane %v5883_v17, 2 }
  0x58   : > { %489 = vrot.lane.b32.xlu0 %v430_v14, %s5693_s30  ;;  %v459_v14 = vrot.slane %v5835_v50, 2 }
  0x5a   : > { %v460_v18 = vsel %vm423_vm4, %v457_v13, %v459_v14  ;;  %v462_v35 = vsel %vm423_vm4, %v459_v14, %v461_v21  ;;  %v483_v13 = vrot.slane %v5921_v41, 2  ;;  %v1326_v41 = vld [vmem:[%s8523_s2 + $0x28] sm:$0xff] }
  0x5b   : > { %495 = vrot.lane.b32.xlu1 %v436_v15, %s5693_s30  ;;  %v454_v15 = vsel %vm423_vm4, %v451_v59, %v453_v0  ;;  %v479_v0 = vrot.slane %v5895_v27, 2 }
  0x5c   : > { %493 = vrot.lane.b32.xlu0 %v434_v22, %s5693_s30  ;;  %v463_v22 = vrot.slane %v5847_v56, 2 }
  0x5e   : > { %v464_v28 = vsel %vm423_vm4, %v461_v21, %v463_v22 }
  0x5f   : > { %499 = vrot.lane.b32.xlu1 %v440_v29, %s5693_s30  ;;  %v465_v29 = vrot.slane %v5856_v61, 2 }
  0x60   : > { %497 = vrot.lane.b32.xlu0 %v438_v46, %s5693_s30 }
  0x61   : > { %v468_v46 = vsel %vm423_vm4, %v465_v29, %v467_v33  ;;  %v466_v52 = vsel %vm423_vm4, %v463_v22, %v465_v29 }
  0x63   : > { %503 = vrot.lane.b32.xlu1 %v444_v47, %s5693_s30  ;;  %v469_v47 = vrot.slane %v5868_v7, 2  ;;  %v6219_v7 = vld [vmem:[%s5735_s20 + $0x1af] sm:$0xff] }
  0x64   : > { %501 = vrot.lane.b32.xlu0 %v442_v53, %s5693_s30 }
  0x65   : > { %v472_v53 = vsel %vm423_vm4, %v469_v47, %v471_v51  ;;  %v470_v59 = vsel %vm423_vm4, %v467_v33, %v469_v47  ;;  %v1327_v33 = vld [vmem:[%s8523_s2 + $0x30] sm:$0xff] }
  0x67   : > { %507 = vrot.lane.b32.xlu1 %v448_v54, %s5693_s30  ;;  %v473_v54 = vrot.slane %v5880_v16, 2  ;;  %v6207_v16 = vld [vmem:[%s5735_s20 + $0x19f] sm:$0xff] }
  0x68   : > { %505 = vrot.lane.b32.xlu0 %v446_v60, %s5693_s30 }
  0x69   : > { %v476_v60 = vsel %vm423_vm4, %v473_v54, %v475_v57  ;;  %v474_v4 = vsel %vm423_vm4, %v471_v51, %v473_v54  ;;  %v1329_v51 = vld [vmem:[%s8523_s2 + $0x40] sm:$0xff] }
  0x6b   : > { %511 = vrot.lane.b32.xlu1 %v452_v63, %s5693_s30  ;;  %v6057_v63 = vrot.slane %v5892_v24, 2  ;;  %v1346_v24 = vld [vmem:[%s8523_s2 + $0xc8] sm:$0xff] }
  0x6c   : > { %509 = vrot.lane.b32.xlu0 %v450_v5, %s5693_s30 }
  0x6d   : > { %8578 = vst [vmem:[#allocation12_spill] sm:$0xff] %v6057_v63  ;;  %v6065_v5 = vsel %vm423_vm4, %v6057_v63, %v479_v0  ;;  %v478_v14 = vsel %vm423_vm4, %v475_v57, %v6057_v63  ;;  %v1331_v57 = vld [vmem:[%s8523_s2 + $0x50] sm:$0xff]  ;;  %v1341_v63 = vld [vmem:[%s8523_s2 + $0xa0] sm:$0xff] }
  0x6f   : > { %515 = vrot.lane.b32.xlu1 %v456_v10, %s5693_s30  ;;  %v6068_v10 = vrot.slane %v5918_v40, 2  ;;  %v1344_v40 = vld [vmem:[%s8523_s2 + $0xb8] sm:$0xff] }
  0x70   : > { %513 = vrot.lane.b32.xlu0 %v454_v15, %s5693_s30 }
  0x71   : > { %v484_v15 = vsel %vm423_vm4, %v6068_v10, %v483_v13  ;;  %v6082_v21 = vsel %vm423_vm4, %v479_v0, %v6068_v10 }
  0x73   : > { %519 = vrot.lane.b32.xlu1 %v460_v18, %s5693_s30 }
  0x74   : > { %517 = vrot.lane.b32.xlu0 %v458_v23, %s5693_s30 }
  0x77   : > { %523 = vrot.lane.b32.xlu1 %v464_v28, %s5693_s30  ;;  %v1325_v28 = vld [vmem:[%s8523_s2 + $0x20] sm:$0xff] }
  0x78   : > { %521 = vrot.lane.b32.xlu0 %v462_v35, %s5693_s30 }
  0x7b   : > { %527 = vrot.lane.b32.xlu1 %v468_v46, %s5693_s30  ;;  %v1328_v46 = vld [vmem:[%s8523_s2 + $0x38] sm:$0xff] }
  0x7c   : > { %525 = vrot.lane.b32.xlu0 %v466_v52, %s5693_s30 }
  0x7f   : > { %531 = vrot.lane.b32.xlu1 %v472_v53, %s5693_s30  ;;  %v1330_v53 = vld [vmem:[%s8523_s2 + $0x48] sm:$0xff] }
  0x80   : > { %529 = vrot.lane.b32.xlu0 %v470_v59, %s5693_s30 }
  0x83   : > { %535 = vrot.lane.b32.xlu1 %v476_v60, %s5693_s30  ;;  %v1332_v60 = vld [vmem:[%s8523_s2 + $0x58] sm:$0xff] }
  0x84   : > { %533 = vrot.lane.b32.xlu0 %v474_v4, %s5693_s30  ;;  %v1333_v4 = vld [vmem:[%s8523_s2 + $0x60] sm:$0xff] }
  0x87   : > { %539 = vrot.lane.b32.xlu1 %v6065_v5, %s5693_s30 }
  0x88   : > { %537 = vrot.lane.b32.xlu0 %v478_v14, %s5693_s30  ;;  %v1334_v14 = vld [vmem:[%s8523_s2 + $0x68] sm:$0xff] }
  0x89   : > { %v6078_v18 = vpop.permute.xlu1 %337 }
  0x8a   : > { %v6084_v22 = vpop.permute.xlu0 %333 }
  0x8b   : > { %543 = vrot.lane.b32.xlu1 %v484_v15, %s5693_s30 }
  0x8c   : > { %541 = vrot.lane.b32.xlu0 %v6082_v21, %s5693_s30 }
  0x8d   : > { %v6092_v23 = vpop.permute.xlu1 %339 }
  0x8e   : > { %v6097_v29 = vpop.permute.xlu0 %335 }
  0x8f   : > { %1356 = vperm.xlu1 %5657, %v1326_v41   ;;  %v1335_v41 = vld [vmem:[%s8523_s2 + $0x70] sm:$0xff] }
  0x90   : > { %1351 = vperm.xlu0 %5656, %v1325_v28  }
  0x91   : > { %v6102_v35 = vpop.permute.xlu1 %343 }
  0x92   : > { %v6107_v47 = vpop.permute.xlu0 %341 }
  0x93   : > { %1361 = vperm.xlu1 %5657, %v1327_v33   ;;  %v1336_v33 = vld [vmem:[%s8523_s2 + $0x78] sm:$0xff] }
  0x94   : > { %1366 = vperm.xlu0 %5656, %v1328_v46  }
  0x95   : > { %v6112_v52 = vpop.permute.xlu1 %347 }
  0x96   : > { %v6117_v54 = vpop.permute.xlu0 %345 }
  0x97   : > { %1371 = vperm.xlu1 %5657, %v1329_v51   ;;  %v1337_v51 = vld [vmem:[%s8523_s2 + $0x80] sm:$0xff] }
  0x98   : > { %1376 = vperm.xlu0 %5656, %v1330_v53  }
  0x99   : > { %v6122_v59 = vpop.permute.xlu1 %351 }
  0x9a   : > { %v6127_v0 = vpop.permute.xlu0 %349 }
  0x9b   : > { %1381 = vperm.xlu1 %5657, %v1331_v57   ;;  %v1338_v57 = vld [vmem:[%s8523_s2 + $0x88] sm:$0xff] }
  0x9c   : > { %1386 = vperm.xlu0 %5656, %v1332_v60  }
  0x9d   : > { %v6132_v13 = vpop.permute.xlu1 %355 }
  0x9e   : > { %v6137_v15 = vpop.permute.xlu0 %353 }
  0x9f   : > { %1391 = vperm.xlu1 %5657, %v1333_v4   ;;  %v1339_v4 = vld [vmem:[%s8523_s2 + $0x90] sm:$0xff] }
  0xa0   : > { %1396 = vperm.xlu0 %5656, %v1334_v14  }
  0xa1   : > { %v6142_v28 = vpop.permute.xlu1 %359 }
  0xa2   : > { %v6147_v46 = vpop.permute.xlu0 %357 }
  0xa3   : > { %1401 = vperm.xlu1 %5657, %v1335_v41   ;;  %v1340_v41 = vld [vmem:[%s8523_s2 + $0x98] sm:$0xff] }
  0xa4   : > { %1406 = vperm.xlu0 %5656, %v1336_v33  }
  0xa5   : > { %v6152_v53 = vpop.permute.xlu1 %363 }
  0xa6   : > { %v6157_v60 = vpop.permute.xlu0 %361 }
  0xa7   : > { %1411 = vperm.xlu1 %5657, %v1337_v51  }
  0xa8   : > { %1416 = vperm.xlu0 %5656, %v1338_v57   ;;  %v1342_v57 = vld [vmem:[%s8523_s2 + $0xa8] sm:$0xff] }
  0xa9   : > { %v6162_v14 = vpop.permute.xlu1 %367 }
  0xaa   : > { %v6167_v33 = vpop.permute.xlu0 %365 }
  0xab   : > { %1421 = vperm.xlu1 %5657, %v1339_v4   ;;  %v1343_v4 = vld [vmem:[%s8523_s2 + $0xb0] sm:$0xff] }
  0xac   : > { %1426 = vperm.xlu0 %5656, %v1340_v41  }
  0xad   : > { %v6172_v51 = vpop.permute.xlu1 %371 }
  0xae   : > { %v6177_v34 = vpop.permute.xlu0 %369 }
  0xaf   : > { %1431 = vperm.xlu1 %5657, %v1341_v63   ;;  %v1345_v63 = vld [vmem:[%s8523_s2 + $0xc0] sm:$0xff] }
  0xb0   : > { %1436 = vperm.xlu0 %5656, %v1342_v57  }
  0xb1   : > { %v6182_v41 = vpop.permute.xlu1 %375 }
  0xb2   : > { %v6187_v27 = vpop.permute.xlu0 %373 }
  0xb3   : > { %1441 = vperm.xlu1 %5657, %v1343_v4   ;;  %v1347_v4 = vld [vmem:[%s8523_s2 + $0xd0] sm:$0xff] }
  0xb4   : > { %1446 = vperm.xlu0 %5656, %v1344_v40  }
  0xb5   : > { %v6192_v57 = vpop.permute.xlu1 %379 }
  0xb6   : > { %8579 = vst [vmem:[#allocation13_spill] sm:$0xff] %v6192_v57  ;;  %v6197_v17 = vpop.permute.xlu0 %377  ;;  %v3301_v57 = vrot.slane %v6210_v62, 2 }
  0xb7   : > { %8580 = vst [vmem:[#allocation14_spill] sm:$0xff] %v6197_v17  ;;  %1451 = vperm.xlu1 %5657, %v1345_v63   ;;  %v3150_v63 = vrot.slane %v6210_v62, 1  ;;  %v8588_v62 = vrot.slane %v6207_v16, 2 }
  0xb8   : > { %1456 = vperm.xlu0 %5656, %v1346_v24   ;;  %v8537_v24 = vrot.slane %v6207_v16, 1 }
  0xb9   : > { %v6202_v40 = vpop.permute.xlu1 %383 }
  0xba   : > { %8581 = vst [vmem:[#allocation15_spill] sm:$0xff] %v6202_v40  ;;  %v6204_v9 = vpop.permute.xlu0 %381 }
  0xbb   : > { %8582 = vst [vmem:[#allocation16_spill] sm:$0xff] %v6204_v9  ;;  %1461 = vperm.xlu1 %5657, %v1347_v4   ;;  %v8539_v4 = vrot.slane %v6219_v7, 1 }
  0xbc   : > { %1778 = vrot.lane.b32.xlu0 %v5933_v42, %s5691_s21  ;;  %v3151_v42 = vsel %vm271_vm0, %v8537_v24, %v3150_v63  ;;  %v577_v24 = vsel %vm575_vm6, %v5749_v6, %v6097_v29 }
  0xbd   : > { %v6214_v17 = vpop.permute.xlu1 %387 }
  0xbe   : > { %8584 = vst [vmem:[#allocation18_spill] sm:$0xff] %v6214_v17  ;;  %v6221_v40 = vpop.permute.xlu0 %385 }
  0xbf   : > { %8585 = vst [vmem:[#allocation19_spill] sm:$0xff] %v6221_v40  ;;  %1780 = vrot.lane.b32.xlu1 %v5961_v58, %s5691_s21  ;;  %v6236_v40 = vld [vmem:[%s5735_s20 + $0xf7] sm:$0xff]  ;;  %v3153_v58 = vsel %vm271_vm0, %v3150_v63, %v8539_v4  ;;  %v576_v63 = vsel %vm575_vm6, %v5744_v3, %v6084_v22 }
  0xc0   : > { %1929 = vrot.lane.b32.xlu0 %v6065_v5, %s5693_s30  ;;  %v1722_v5 = vrot.slane %v6236_v40, 1 }
  0xc1   : > { %v6228_v9 = vpop.permute.xlu1 %391 }
  0xc2   : > { %8586 = vst [vmem:[#allocation20_spill] sm:$0xff] %v6228_v9  ;;  %v6238_v56 = vpop.permute.xlu0 %389  ;;  %v3302_v9 = vsel %vm423_vm4, %v8588_v62, %v3301_v57  ;;  %v4769_v62 = vld [vmem:[%s8522_s1 + $0x18] sm:$0xf]  ;;  %v1723_v29 = vsel %vm271_vm0, %v5936_v45, %v1722_v5  ;;  %v578_v45 = vsel %vm575_vm6, %v5738_v1, %v6078_v18 }
  0xc3   : > { %8587 = vst [vmem:[#allocation21_spill] sm:$0xff] %v6238_v56  ;;  %1931 = vrot.lane.b32.xlu1 %v6082_v21, %s5693_s30  ;;  %v3303_v21 = vrot.slane %v6219_v7, 2  ;;  %v6255_v56 = vld [vmem:[%s5735_s20 + $0xff] sm:$0xff] }
  0xc4   : > { %3210 = vrot.lane.b32.xlu0 %v3151_v42, %s5691_s21  ;;  %v1724_v3 = vrot.slane %v6255_v56, 1  ;;  %v1875_v18 = vrot.slane %v6255_v56, 2 }
  0xc5   : > { %v488_v17 = vpop.permute.xlu1 %487 }
  0xc6   : > { %v608_v42 = vsel %vm606_vm5, %v577_v24, %v488_v17  ;;  %v486_v4 = vpop.permute.xlu0 %485  ;;  %v579_v17 = vsel %vm575_vm6, %v5741_v2, %v6092_v23  ;;  %v3304_v24 = vsel %vm423_vm4, %v3301_v57, %v3303_v21  ;;  %v6287_v2 = vld [vmem:[%s5735_s20 + $0x1b7] sm:$0xff]  ;;  %v1725_v1 = vsel %vm271_vm0, %v1722_v5, %v1724_v3 }
  0xc7   : > { %3212 = vrot.lane.b32.xlu1 %v3153_v58, %s5691_s21  ;;  %v607_v6 = vsel %vm606_vm5, %v576_v63, %v486_v4  ;;  %v6280_v4 = vpack.c.bf16 %v4769_v62, %v5944_v48  ;;  %v581_v57 = vsel %vm575_vm6, %v5758_v11, %v6102_v35  ;;  %v3154_v62 = vrot.slane %v6287_v2, 1 }
  0xc8   : > { %3361 = vrot.lane.b32.xlu0 %v3302_v9, %s5693_s30  ;;  %5127 = vmatprep.mubr.msk.f32.mxu0 %vm642_vm7, %v607_v6  ;;  %v1873_v9 = vrot.slane %v6236_v40, 2  ;;  %v580_v5 = vsel %vm575_vm6, %v5753_v8, %v6107_v47  ;;  %v583_v47 = vsel %vm575_vm6, %v5772_v19, %v6112_v52 }
  0xc9   : > { %5128 = vmatmul.mubr.msk.f32.vlgmr.msra.gmra.mrb[0].mxu0 %vm642_vm7, %v608_v42  ;;  %v492_v22 = vpop.permute.xlu1 %491 }
  0xca   : > { %v490_v58 = vpop.permute.xlu0 %489  ;;  %v610_v63 = vsel %vm606_vm5, %v579_v17, %v492_v22  ;;  %5460 = vmatpush3.bf16.msk.msra.mxu0 %vm5912_vm3, %v5999_v39  ;;  %v4690_v39 = vld [vmem:[%s8522_s1 + $0x18] sm:$0xf]  ;;  %v1874_v6 = vsel %vm423_vm4, %v6068_v10, %v1873_v9  ;;  %v1876_v22 = vsel %vm423_vm4, %v1873_v9, %v1875_v18  ;;  %v582_v9 = vsel %vm575_vm6, %v5761_v12, %v6117_v54 }
  0xcb   : > { %v609_v23 = vsel %vm606_vm5, %v578_v45, %v490_v58  ;;  %1782 = vrot.lane.b32.xlu1 %v1723_v29, %s5691_s21  ;;  %5087 = vmatprep.mubr.msk.f32.mxu1 %vm642_vm7, %v610_v63  ;;  %v6312_v29 = vld [vmem:[%s5735_s20 + $0x1bf] sm:$0xff]  ;;  %v6324_v10 = vpack.c.bf16 %v4690_v39, %v5944_v48  ;;  %v3305_v58 = vrot.slane %v6287_v2, 2 }
  0xcc   : > { %3363 = vrot.lane.b32.xlu0 %v3304_v24, %s5693_s30  ;;  %5130 = vmatprep.mubr.msk.f32.mxu0 %vm642_vm7, %v609_v23  ;;  %v3156_v8 = vrot.slane %v6312_v29, 1  ;;  %v8589_v24 = vrot.slane %v6219_v7, 1 }
  0xcd   : > { %5131 = vmatmul.mubr.msk.f32.gmra.mrb[2].mxu0 %vm642_vm7, %v610_v63  ;;  %v496_v42 = vpop.permute.xlu1 %495  ;;  %5481 = vmatprep.subr.msk.bf16.mxu0 %vm5912_vm3, %v6280_v4  ;;  %v6342_v63 = vld [vmem:[%s5735_s20 + $0x107] sm:$0xff]  ;;  %v3306_v39 = vsel %vm423_vm4, %v3303_v21, %v3305_v58  ;;  %v587_v21 = vsel %vm575_vm6, %v5796_v31, %v6132_v13 }
  0xce   : > { %v612_v11 = vsel %vm606_vm5, %v581_v57, %v496_v42  ;;  %v494_v35 = vpop.permute.xlu0 %493  ;;  %v3155_v45 = vsel %vm271_vm0, %v8589_v24, %v3154_v62  ;;  %v3157_v12 = vsel %vm271_vm0, %v3154_v62, %v3156_v8  ;;  %v1726_v54 = vrot.slane %v6342_v63, 1  ;;  %v6376_v42 = vld [vmem:[%s5735_s20 + $0x10f] sm:$0xff] }
  0xcf   : > { %v611_v17 = vsel %vm606_vm5, %v580_v5, %v494_v35  ;;  %1784 = vrot.lane.b32.xlu1 %v1725_v1, %s5691_s21  ;;  %v3307_v57 = vrot.slane %v6312_v29, 2  ;;  %v1877_v35 = vrot.slane %v6342_v63, 2 }
  0xd0   : > { %1933 = vrot.lane.b32.xlu0 %v1874_v6, %s5693_s30  ;;  %5088 = vmatmul.mubr.msk.f32.vlgmr.msra.gmra.mrb[0].mxu1 %vm642_vm7, %v611_v17  ;;  %v584_v6 = vsel %vm575_vm6, %v5775_v20, %v6127_v0  ;;  %v1727_v20 = vsel %vm271_vm0, %v1724_v3, %v1726_v54  ;;  %v1728_v0 = vrot.slane %v6376_v42, 1  ;;  %v586_v3 = vsel %vm575_vm6, %v5787_v26, %v6137_v15 }
  0xd1   : > { %5133 = vmatprep.mubr.msk.f32.mxu0 %vm642_vm7, %v611_v17  ;;  %5090 = vmatprep.mubr.msk.f32.mxu1 %vm642_vm7, %v612_v11  ;;  %v500_v48 = vpop.permute.xlu1 %499  ;;  %v6413_v17 = vld [vmem:[%s5735_s20 + $0x1c7] sm:$0xff]  ;;  %v1879_v15 = vrot.slane %v6376_v42, 2  ;;  %v1878_v24 = vsel %vm423_vm4, %v1875_v18, %v1877_v35 }
  0xd2   : > { %5134 = vmatmul.mubr.msk.f32.gmra.mrb[4].mxu0 %vm642_vm7, %v612_v11  ;;  %v6349_v19 = vsel %vm606_vm5, %v583_v47, %v500_v48  ;;  %v498_v52 = vpop.permute.xlu0 %497  ;;  %5498 = vmatpush3.bf16.msk.msra.mxu1 %vm5912_vm3, %v5904_v30  ;;  %v585_v30 = vsel %vm575_vm6, %v5784_v25, %v6122_v59  ;;  %v3308_v11 = vsel %vm423_vm4, %v3305_v58, %v3307_v57  ;;  %v6434_v58 = vld [vmem:[%s5735_s20 + $0x1cf] sm:$0xff] }
  0xd3   : > { %v613_v23 = vsel %vm606_vm5, %v582_v9, %v498_v52  ;;  %1935 = vrot.lane.b32.xlu1 %v1876_v22, %s5693_s30  ;;  %5463 = vmatprep.subr.msk.bf16.mxu1 %vm5912_vm3, %v6324_v10  ;;  %v1729_v26 = vsel %vm271_vm0, %v1726_v54, %v1728_v0  ;;  %v589_v47 = vsel %vm575_vm6, %v5808_v37, %v6142_v28  ;;  %v3309_v54 = vrot.slane %v6413_v17, 2 }
  0xd4   : > { %3214 = vrot.lane.b32.xlu0 %v3155_v45, %s5691_s21  ;;  %5091 = vmatmul.mubr.msk.f32.gmra.mrb[2].mxu1 %vm642_vm7, %v613_v23  ;;  %v3158_v45 = vrot.slane %v6413_v17, 1  ;;  %v588_v9 = vsel %vm575_vm6, %v5799_v32, %v6147_v46  ;;  %v1880_v32 = vsel %vm423_vm4, %v1877_v35, %v1879_v15  ;;  %v3160_v46 = vrot.slane %v6434_v58, 1 }
  0xd5   : > { %5136 = vmatprep.mubr.msk.f32.mxu0 %vm642_vm7, %v613_v23  ;;  %5093 = vmatprep.mubr.msk.f32.mxu1 %vm642_vm7, %v6349_v19  ;;  %v504_v1 = vpop.permute.xlu1 %503  ;;  %v591_v52 = vsel %vm575_vm6, %v5820_v43, %v6152_v53 }
  0xd6   : > { %5137 = vmatmul.mubr.msk.f32.gmra.mrb[6].mxu0 %vm642_vm7, %v6349_v19  ;;  %v6384_v25 = vsel %vm606_vm5, %v585_v30, %v504_v1  ;;  %v502_v59 = vpop.permute.xlu0 %501  ;;  %v6466_v30 = vld [vmem:[%s5735_s20 + $0x117] sm:$0xff]  ;;  %v590_v1 = vsel %vm575_vm6, %v5811_v38, %v6157_v60  ;;  %v3161_v38 = vsel %vm271_vm0, %v3158_v45, %v3160_v46 }
  0xd7   : > { %v615_v62 = vsel %vm606_vm5, %v584_v6, %v502_v59  ;;  %3216 = vrot.lane.b32.xlu1 %v3157_v12, %s5691_s21  ;;  %v3159_v12 = vsel %vm271_vm0, %v3156_v8, %v3158_v45  ;;  %v1730_v60 = vrot.slane %v6466_v30, 1  ;;  %v3310_v6 = vsel %vm423_vm4, %v3307_v57, %v3309_v54  ;;  %v8591_v45 = vld [vmem:[#allocation13_spill] sm:$0xff] }
  0xd8   : > { %3365 = vrot.lane.b32.xlu0 %v3306_v39, %s5693_s30  ;;  %5094 = vmatmul.mubr.msk.f32.gmra.mrb[4].mxu1 %vm642_vm7, %v615_v62  ;;  %v3311_v59 = vrot.slane %v6434_v58, 2 }
  0xd9   : > { %5139 = vmatprep.mubr.msk.f32.mxu0 %vm642_vm7, %v615_v62  ;;  %5096 = vmatprep.mubr.msk.f32.mxu1 %vm642_vm7, %v6384_v25  ;;  %v508_v5 = vpop.permute.xlu1 %507 }
  0xda   : > { %5140 = vmatmul.mubr.msk.f32.gmra.mrb[8].mxu0 %vm642_vm7, %v6384_v25  ;;  %v6410_v31 = vsel %vm606_vm5, %v587_v21, %v508_v5  ;;  %v506_v13 = vpop.permute.xlu0 %505  ;;  %v3312_v21 = vsel %vm423_vm4, %v3309_v54, %v3311_v59  ;;  %v1881_v5 = vrot.slane %v6466_v30, 2  ;;  %v8593_v54 = vld [vmem:[#allocation14_spill] sm:$0xff] }
  0xdb   : > { %v617_v22 = vsel %vm606_vm5, %v586_v3, %v506_v13  ;;  %1786 = vrot.lane.b32.xlu1 %v1727_v20, %s5691_s21  ;;  %v597_v3 = vsel %vm575_vm6, %v5856_v61, %v6182_v41 }
  0xdc   : > { %3367 = vrot.lane.b32.xlu0 %v3308_v11, %s5693_s30  ;;  %5097 = vmatmul.mubr.msk.f32.gmra.mrb[6].mxu1 %vm642_vm7, %v617_v22  ;;  %v6541_v11 = vld [vmem:[%s5735_s20 + $0x1d7] sm:$0xff]  ;;  %v1882_v13 = vsel %vm423_vm4, %v1879_v15, %v1881_v5 }
  0xdd   : > { %5142 = vmatprep.mubr.msk.f32.mxu0 %vm642_vm7, %v617_v22  ;;  %5099 = vmatprep.mubr.msk.f32.mxu1 %vm642_vm7, %v6410_v31  ;;  %v512_v48 = vpop.permute.xlu1 %511 }
  0xde   : > { %5143 = vmatmul.mubr.msk.f32.gmra.mrb[10].mxu0 %vm642_vm7, %v6410_v31  ;;  %v6442_v37 = vsel %vm606_vm5, %v589_v47, %v512_v48  ;;  %v510_v28 = vpop.permute.xlu0 %509  ;;  %v8590_v47 = vld [vmem:[#allocation2_spill] sm:$0xff] }
  0xdf   : > { %5167 = vmatprep.mubr.msk.f32.mxu0 %vm642_vm7, %v613_v23  ;;  %v6446_v18 = vsel %vm606_vm5, %v588_v9, %v510_v28  ;;  %1788 = vrot.lane.b32.xlu1 %v1729_v26, %s5691_s21  ;;  %v6566_v26 = vld [vmem:[%s5735_s20 + $0x1df] sm:$0xff]  ;;  %v596_v48 = vsel %vm575_vm6, %v8590_v47, %v6187_v27  ;;  %v8592_v9 = vld [vmem:[#allocation4_spill] sm:$0xff] }
  0xe0   : > { %1937 = vrot.lane.b32.xlu0 %v1878_v24, %s5693_s30  ;;  %5100 = vmatmul.mubr.msk.f32.gmra.mrb[8].mxu1 %vm642_vm7, %v6446_v18  ;;  %v3164_v24 = vrot.slane %v6566_v26, 1  ;;  %v599_v28 = vsel %vm575_vm6, %v8592_v9, %v8591_v45  ;;  %v6657_v9 = vld [vmem:[%s5735_s20 + $0x1e7] sm:$0xff] }
  0xe1   : > { %5102 = vmatprep.mubr.msk.f32.mxu1 %vm642_vm7, %v6442_v37  ;;  %v516_v23 = vpop.permute.xlu1 %515 }
  0xe2   : > { %5168 = vmatmul.mubr.msk.f32.vlgmr.msra.gmra.mrb[0].mxu0 %vm642_vm7, %v6349_v19  ;;  %v6474_v43 = vsel %vm606_vm5, %v591_v52, %v516_v23  ;;  %v514_v53 = vpop.permute.xlu0 %513  ;;  %v593_v19 = vsel %vm575_vm6, %v5832_v49, %v6162_v14  ;;  %v592_v49 = vsel %vm575_vm6, %v5823_v44, %v6167_v33  ;;  %v1731_v44 = vsel %vm271_vm0, %v1728_v0, %v1730_v60 }
  0xe3   : > { %5170 = vmatprep.mubr.msk.f32.mxu0 %vm642_vm7, %v615_v62  ;;  %v6478_v8 = vsel %vm606_vm5, %v590_v1, %v514_v53  ;;  %1939 = vrot.lane.b32.xlu1 %v1880_v32, %s5693_s30  ;;  %v6498_v62 = vld [vmem:[%s5735_s20 + $0x11f] sm:$0xff]  ;;  %v594_v0 = vsel %vm575_vm6, %v5835_v50, %v6177_v34  ;;  %v3313_v23 = vrot.slane %v6541_v11, 2  ;;  %v8594_v1 = vld [vmem:[#allocation3_spill] sm:$0xff] }
  0xe4   : > { %3218 = vrot.lane.b32.xlu0 %v3159_v12, %s5691_s21  ;;  %5103 = vmatmul.mubr.msk.f32.gmra.mrb[10].mxu1 %vm642_vm7, %v6478_v8  ;;  %v1732_v33 = vrot.slane %v6498_v62, 1  ;;  %v1883_v34 = vrot.slane %v6498_v62, 2  ;;  %v6599_v12 = vld [vmem:[%s5735_s20 + $0x127] sm:$0xff]  ;;  %v598_v53 = vsel %vm575_vm6, %v8594_v1, %v8593_v54  ;;  %v6674_v54 = vld [vmem:[%s5735_s20 + $0x1ef] sm:$0xff] }
  0xe5   : > { %5105 = vmatprep.mubr.msk.f32.mxu1 %vm642_vm7, %v6474_v43  ;;  %v520_v39 = vpop.permute.xlu1 %519  ;;  %5484 = vmatpush3.bf16.msk.msra.mxu0 %vm5912_vm3, %v6280_v4  ;;  %v595_v4 = vsel %vm575_vm6, %v5844_v55, %v6172_v51  ;;  %v1885_v47 = vrot.slane %v6599_v12, 2 }
  0xe6   : > { %5171 = vmatmul.mubr.msk.f32.gmra.mrb[2].mxu0 %vm642_vm7, %v6384_v25  ;;  %v6509_v14 = vsel %vm606_vm5, %v593_v19, %v520_v39  ;;  %v518_v20 = vpop.permute.xlu0 %517  ;;  %v1733_v50 = vsel %vm271_vm0, %v1730_v60, %v1732_v33  ;;  %v1884_v27 = vsel %vm423_vm4, %v1881_v5, %v1883_v34  ;;  %v1734_v39 = vrot.slane %v6599_v12, 1  ;;  %v8597_v5 = vld [vmem:[#allocation16_spill] sm:$0xff] }
  0xe7   : > { %5173 = vmatprep.mubr.msk.f32.mxu0 %vm642_vm7, %v617_v22  ;;  %v6513_v57 = vsel %vm606_vm5, %v592_v49, %v518_v20  ;;  %3220 = vrot.lane.b32.xlu1 %v3161_v38, %s5691_s21  ;;  %v3162_v22 = vrot.slane %v6541_v11, 1  ;;  %v8596_v49 = vld [vmem:[#allocation6_spill] sm:$0xff] }
  0xe8   : > { %3369 = vrot.lane.b32.xlu0 %v3310_v6, %s5693_s30  ;;  %5106 = vmatmul.mubr.msk.f32.gmra.mrb[12].mxu1 %vm642_vm7, %v6513_v57  ;;  %v8595_v6 = vld [vmem:[#allocation15_spill] sm:$0xff] }
  0xe9   : > { %5108 = vmatprep.mubr.msk.f32.mxu1 %vm642_vm7, %v6509_v14  ;;  %v524_v25 = vpop.permute.xlu1 %523  ;;  %v3163_v52 = vsel %vm271_vm0, %v3160_v46, %v3162_v22  ;;  %v3165_v19 = vsel %vm271_vm0, %v3162_v22, %v3164_v24  ;;  %v601_v20 = vsel %vm575_vm6, %v8596_v49, %v8595_v6  ;;  %v8602_v49 = vld [vmem:[#allocation8_spill] sm:$0xff] }
  0xea   : > { %5174 = vmatmul.mubr.msk.f32.gmra.mrb[4].mxu0 %vm642_vm7, %v6410_v31  ;;  %v6538_v55 = vsel %vm606_vm5, %v595_v4, %v524_v25  ;;  %v522_v51 = vpop.permute.xlu0 %521  ;;  %v3314_v4 = vsel %vm423_vm4, %v3311_v59, %v3313_v23  ;;  %v3315_v25 = vrot.slane %v6566_v26, 2 }
  0xeb   : > { %5176 = vmatprep.mubr.msk.f32.mxu0 %vm642_vm7, %v6446_v18  ;;  %v6546_v35 = vsel %vm606_vm5, %v594_v0, %v522_v51  ;;  %1790 = vrot.lane.b32.xlu1 %v1731_v44, %s5691_s21  ;;  %v8598_v0 = vld [vmem:[#allocation5_spill] sm:$0xff] }
  0xec   : > { %3371 = vrot.lane.b32.xlu0 %v3312_v21, %s5693_s30  ;;  %5109 = vmatmul.mubr.msk.f32.gmra.mrb[14].mxu1 %vm642_vm7, %v6546_v35  ;;  %v6630_v21 = vld [vmem:[%s5735_s20 + $0x12f] sm:$0xff]  ;;  %v600_v51 = vsel %vm575_vm6, %v8598_v0, %v8597_v5  ;;  %v3316_v22 = vsel %vm423_vm4, %v3313_v23, %v3315_v25  ;;  %v3166_v23 = vrot.slane %v6657_v9, 1 }
  0xed   : > { %5111 = vmatprep.mubr.msk.f32.mxu1 %vm642_vm7, %v6538_v55  ;;  %v528_v31 = vpop.permute.xlu1 %527 }
  0xee   : > { %5177 = vmatmul.mubr.msk.f32.gmra.mrb[6].mxu0 %vm642_vm7, %v6442_v37  ;;  %v6574_v61 = vsel %vm606_vm5, %v597_v3, %v528_v31  ;;  %v526_v41 = vpop.permute.xlu0 %525  ;;  %v1735_v31 = vsel %vm271_vm0, %v1732_v33, %v1734_v39  ;;  %v3167_v1 = vsel %vm271_vm0, %v3164_v24, %v3166_v23 }
  0xef   : > { %5179 = vmatprep.mubr.msk.f32.mxu0 %vm642_vm7, %v6478_v8  ;;  %v6579_v15 = vsel %vm606_vm5, %v596_v48, %v526_v41  ;;  %1792 = vrot.lane.b32.xlu1 %v1733_v50, %s5691_s21  ;;  %v8599_v48 = vld [vmem:[#allocation19_spill] sm:$0xff] }
  0xf0   : > { %1941 = vrot.lane.b32.xlu0 %v1882_v13, %s5693_s30  ;;  %5112 = vmatmul.mubr.msk.f32.gmra.mrb[16].mxu1 %vm642_vm7, %v6579_v15  ;;  %v1736_v13 = vrot.slane %v6630_v21, 1  ;;  %v8600_v41 = vld [vmem:[#allocation7_spill] sm:$0xff] }
  0xf1   : > { %5114 = vmatprep.mubr.msk.f32.mxu1 %vm642_vm7, %v6574_v61  ;;  %v532_v32 = vpop.permute.xlu1 %531 }
  0xf2   : > { %5180 = vmatmul.mubr.msk.f32.gmra.mrb[8].mxu0 %vm642_vm7, %v6474_v43  ;;  %v6607_v38 = vsel %vm606_vm5, %v599_v28, %v532_v32  ;;  %v530_v60 = vpop.permute.xlu0 %529  ;;  %v1737_v28 = vsel %vm271_vm0, %v1734_v39, %v1736_v13  ;;  %v1887_v32 = vrot.slane %v6630_v21, 2  ;;  %v6710_v39 = vld [vmem:[%s5735_s20 + $0x13f] sm:$0xff] }
  0xf3   : > { %5182 = vmatprep.mubr.msk.f32.mxu0 %vm642_vm7, %v6513_v57  ;;  %v6612_v46 = vsel %vm606_vm5, %v598_v53, %v530_v60  ;;  %1943 = vrot.lane.b32.xlu1 %v1884_v27, %s5693_s30  ;;  %v602_v27 = vsel %vm575_vm6, %v8600_v41, %v8599_v48  ;;  %v3317_v53 = vrot.slane %v6657_v9, 2  ;;  %v6691_v60 = vld [vmem:[%s5735_s20 + $0x137] sm:$0xff] }
  0xf4   : > { %3222 = vrot.lane.b32.xlu0 %v3163_v52, %s5691_s21  ;;  %5115 = vmatmul.mubr.msk.f32.gmra.mrb[18].mxu1 %vm642_vm7, %v6612_v46  ;;  %v1886_v52 = vsel %vm423_vm4, %v1883_v34, %v1885_v47  ;;  %v3168_v34 = vrot.slane %v6674_v54, 1  ;;  %v1738_v24 = vrot.slane %v6691_v60, 1 }
  0xf5   : > { %5117 = vmatprep.mubr.msk.f32.mxu1 %vm642_vm7, %v6607_v38  ;;  %v536_v44 = vpop.permute.xlu1 %535 }
  0xf6   : > { %5183 = vmatmul.mubr.msk.f32.gmra.mrb[10].mxu0 %vm642_vm7, %v6509_v14  ;;  %v632_v50 = vsel %vm606_vm5, %v601_v20, %v536_v44  ;;  %v534_v3 = vpop.permute.xlu0 %533  ;;  %v1740_v44 = vrot.slane %v6710_v39, 1 }
  0xf7   : > { %5185 = vmatprep.mubr.msk.f32.mxu0 %vm642_vm7, %v6546_v35  ;;  %v631_v59 = vsel %vm606_vm5, %v600_v51, %v534_v3  ;;  %3224 = vrot.lane.b32.xlu1 %v3165_v19, %s5691_s21  ;;  %v3319_v19 = vrot.slane %v6674_v54, 2 }
  0xf8   : > { %3373 = vrot.lane.b32.xlu0 %v3314_v4, %s5693_s30  ;;  %5118 = vmatmul.mubr.msk.f32.gmra.mrb[20].mxu1 %vm642_vm7, %v631_v59  ;;  %v8603_v4 = vld [vmem:[#allocation21_spill] sm:$0xff] }
  0xf9   : > { %5120 = vmatprep.mubr.msk.f32.mxu1 %vm642_vm7, %v632_v50  ;;  %v3320_v51 = vsel %vm423_vm4, %v3317_v53, %v3319_v19 }
  0xfa   : > { %5186 = vmatmul.mubr.msk.f32.gmra.mrb[12].mxu0 %vm642_vm7, %v6538_v55  ;;  %v538_v45 = vpop.permute.xlu0 %537 }
  0xfb   : > { %5188 = vmatprep.mubr.msk.f32.mxu0 %vm642_vm7, %v6579_v15  ;;  %v633_v33 = vsel %vm606_vm5, %v602_v27, %v538_v45  ;;  %1794 = vrot.lane.b32.xlu1 %v1735_v31, %s5691_s21  ;;  %v8605_v31 = vld [vmem:[#allocation20_spill] sm:$0xff]  ;;  %v6752_v45 = vld [vmem:[%s5735_s20 + $0x1ff] sm:$0xff] }
  0xfc   : > { %3375 = vrot.lane.b32.xlu0 %v3316_v22, %s5693_s30  ;;  %5121 = vmatmul.mubr.msk.f32.gmra.mrb[22].mxu1 %vm642_vm7, %v633_v33  ;;  %v1741_v22 = vsel %vm271_vm0, %v1738_v24, %v1740_v44 }
  0xfd   : > { %5145 = vmatprep.mubr.msk.f32.mxu1 %vm642_vm7, %v6446_v18  ;;  %v1888_v18 = vsel %vm423_vm4, %v1885_v47, %v1887_v32  ;;  %v1891_v47 = vrot.slane %v6710_v39, 2 }
  0xfe   : > { %5189 = vmatmul.mubr.msk.f32.gmra.mrb[14].mxu0 %vm642_vm7, %v6574_v61  ;;  %v542_v6 = vpop.permute.xlu0 %541 }
  0xff   : > { %5191 = vmatprep.mubr.msk.f32.mxu0 %vm642_vm7, %v6612_v46  ;;  %1796 = vrot.lane.b32.xlu1 %v1737_v28, %s5691_s21  ;;  %v3172_v28 = vrot.slane %v6752_v45, 1 }
 0x100   : > { %1945 = vrot.lane.b32.xlu0 %v1886_v52, %s5693_s30  ;;  %5146 = vmatmul.mubr.msk.f32.vlgmr.msra.gmra.mrb[12].mxu1 %vm642_vm7, %v6442_v37  ;;  %v540_v37 = vpop.permute.xlu1 %539 }
 0x101   : > { %5148 = vmatprep.mubr.msk.f32.mxu1 %vm642_vm7, %v6478_v8  ;;  %5466 = vmatpush3.bf16.msk.msra.mxu1 %vm5912_vm3, %v6324_v10  ;;  %v3169_v8 = vsel %vm271_vm0, %v3166_v23, %v3168_v34  ;;  %v3318_v10 = vsel %vm423_vm4, %v3315_v25, %v3317_v53  ;;  %v8604_v25 = vld [vmem:[#allocation9_spill] sm:$0xff]  ;;  %v6770_v23 = vld [vmem:[%s5735_s20 + $0x147] sm:$0xff]  ;;  %v3323_v53 = vrot.slane %v6752_v45, 2 }
 0x102   : > { %5192 = vmatmul.mubr.msk.f32.gmra.mrb[16].mxu0 %vm642_vm7, %v6607_v38  ;;  %v604_v5 = vsel %vm575_vm6, %v8604_v25, %v8603_v4 }
 0x103   : > { %5194 = vmatprep.mubr.msk.f32.mxu0 %vm642_vm7, %v631_v59  ;;  %1947 = vrot.lane.b32.xlu1 %v1888_v18, %s5693_s30  ;;  %v6734_v59 = vld [vmem:[%s5735_s20 + $0x1f7] sm:$0xff] }
 0x104   : > { %3226 = vrot.lane.b32.xlu0 %v3167_v1, %s5691_s21  ;;  %5149 = vmatmul.mubr.msk.f32.gmra.mrb[14].mxu1 %vm642_vm7, %v6474_v43  ;;  %v8601_v43 = vld [vmem:[#allocation18_spill] sm:$0xff]  ;;  %v544_v3 = vpop.permute.xlu1 %543  ;;  %v3170_v27 = vrot.slane %v6734_v59, 1  ;;  %v3321_v52 = vrot.slane %v6734_v59, 2 }
 0x105   : > { %5151 = vmatprep.mubr.msk.f32.mxu1 %vm642_vm7, %v6513_v57  ;;  %v603_v20 = vsel %vm575_vm6, %v8602_v49, %v8601_v43  ;;  %v1739_v57 = vsel %vm271_vm0, %v1736_v13, %v1738_v24  ;;  %v8606_v13 = vld [vmem:[#allocation11_spill] sm:$0xff] }
 0x106   : > { %5195 = vmatmul.mubr.msk.f32.gmra.mrb[18].mxu0 %vm642_vm7, %v632_v50  ;;  %v634_v0 = vsel %vm606_vm5, %v603_v20, %v540_v37  ;;  %v1889_v50 = vrot.slane %v6691_v60, 2  ;;  %v6785_v37 = vld [vmem:[%s5735_s20 + $0x14f] sm:$0xff]  ;;  %v6800_v49 = vld [vmem:[%s5735_s20 + $0x207] sm:$0xff] }
 0x107   : > { %5197 = vmatprep.mubr.msk.f32.mxu0 %vm642_vm7, %v633_v33  ;;  %3228 = vrot.lane.b32.xlu1 %v3169_v8, %s5691_s21  ;;  %v3174_v25 = vrot.slane %v6800_v49, 1 }
 0x108   : > { %3377 = vrot.lane.b32.xlu0 %v3318_v10, %s5693_s30  ;;  %5152 = vmatmul.mubr.msk.f32.gmra.mrb[16].mxu1 %vm642_vm7, %v6509_v14  ;;  %v635_v14 = vsel %vm606_vm5, %v604_v5, %v542_v6  ;;  %v1890_v41 = vsel %vm423_vm4, %v1887_v32, %v1889_v50  ;;  %v3171_v32 = vsel %vm271_vm0, %v3168_v34, %v3170_v27  ;;  %v1744_v10 = vrot.slane %v6785_v37, 1  ;;  %v6811_v5 = vld [vmem:[%s5735_s20 + $0x20f] sm:$0xff] }
 0x109   : > { %5154 = vmatprep.mubr.msk.f32.mxu1 %vm642_vm7, %v6546_v35  ;;  %v605_v35 = vsel %vm575_vm6, %v8606_v13, %v8605_v31  ;;  %v3322_v34 = vsel %vm423_vm4, %v3319_v19, %v3321_v52  ;;  %v3324_v6 = vsel %vm423_vm4, %v3321_v52, %v3323_v53  ;;  %v1893_v19 = vrot.slane %v6770_v23, 2  ;;  %v6824_v13 = vld [vmem:[%s5735_s20 + $0x157] sm:$0xff] }
 0x10a   : > { %5198 = vmatmul.mubr.msk.f32.gmra.mrb[20].mxu0 %vm642_vm7, %v634_v0  ;;  %v636_v48 = vsel %vm606_vm5, %v605_v35, %v544_v3  ;;  %v3176_v3 = vrot.slane %v6811_v5, 1  ;;  %v3325_v31 = vrot.slane %v6800_v49, 2 }
 0x10b   : > { %5200 = vmatprep.mubr.msk.f32.mxu0 %vm642_vm7, %v635_v14  ;;  %1798 = vrot.lane.b32.xlu1 %v1739_v57, %s5691_s21  ;;  %v1894_v4 = vsel %vm423_vm4, %v1891_v47, %v1893_v19  ;;  %v3175_v14 = vsel %vm271_vm0, %v3172_v28, %v3174_v25 }
 0x10c   : > { %3379 = vrot.lane.b32.xlu0 %v3320_v51, %s5693_s30  ;;  %5155 = vmatmul.mubr.msk.f32.gmra.mrb[18].mxu1 %vm642_vm7, %v6538_v55 }
 0x10d   : > { %5157 = vmatprep.mubr.msk.f32.mxu1 %vm642_vm7, %v6579_v15  ;;  %v1892_v15 = vsel %vm423_vm4, %v1889_v50, %v1891_v47  ;;  %v3177_v47 = vsel %vm271_vm0, %v3174_v25, %v3176_v3  ;;  %v6863_v25 = vld [vmem:[%s5735_s20 + $0x21f] sm:$0xff] }
 0x10e   : > { %5201 = vmatmul.mubr.msk.f32.gmra.mrb[22].mxu0 %vm642_vm7, %v636_v48  ;;  %v6755_v33 = vpop.permute.xlu1 %1356  ;;  %v1746_v48 = vrot.slane %v6824_v13, 1 }
 0x10f   : > { %v6757_v55 = vpop.permute.xlu0 %1351  ;;  %1800 = vrot.lane.b32.xlu1 %v1741_v22, %s5691_s21 }
 0x110   : > { %1949 = vrot.lane.b32.xlu0 %v1890_v41, %s5693_s30  ;;  %5158 = vmatmul.mubr.msk.f32.gmra.mrb[20].mxu1 %vm642_vm7, %v6574_v61  ;;  %v3173_v61 = vsel %vm271_vm0, %v3170_v27, %v3172_v28  ;;  %v3326_v41 = vsel %vm423_vm4, %v3323_v53, %v3325_v31  ;;  %v3327_v27 = vrot.slane %v6811_v5, 2  ;;  %v1747_v52 = vsel %vm271_vm0, %v1744_v10, %v1746_v48 }
 0x111   : > { %5160 = vmatprep.mubr.msk.f32.mxu1 %vm642_vm7, %v6612_v46  ;;  %v1742_v46 = vrot.slane %v6770_v23, 1 }
 0x112   : > { %v6772_v18 = vpop.permute.xlu1 %1361 }
 0x113   : > { %v6774_v1 = vpop.permute.xlu0 %1366  ;;  %1951 = vrot.lane.b32.xlu1 %v1892_v15, %s5693_s30  ;;  %v1745_v57 = vsel %vm271_vm0, %v1742_v46, %v1744_v10  ;;  %v6837_v15 = vld [vmem:[%s5735_s20 + $0x15f] sm:$0xff] }
 0x114   : > { %3230 = vrot.lane.b32.xlu0 %v3171_v32, %s5691_s21  ;;  %5161 = vmatmul.mubr.msk.f32.gmra.mrb[22].mxu1 %vm642_vm7, %v6607_v38  ;;  %v1743_v38 = vsel %vm271_vm0, %v1740_v44, %v1742_v46  ;;  %v1895_v44 = vrot.slane %v6785_v37, 2  ;;  %v3328_v46 = vsel %vm423_vm4, %v3325_v31, %v3327_v27  ;;  %v1899_v10 = vrot.slane %v6837_v15, 2 }
 0x116   : > { %v6787_v8 = vpop.permute.xlu1 %1371  ;;  %v1896_v50 = vsel %vm423_vm4, %v1893_v19, %v1895_v44 }
 0x117   : > { %v6789_v24 = vpop.permute.xlu0 %1376  ;;  %3232 = vrot.lane.b32.xlu1 %v3173_v61, %s5691_s21  ;;  %v1748_v61 = vrot.slane %v6837_v15, 1 }
 0x118   : > { %3381 = vrot.lane.b32.xlu0 %v3322_v34, %s5693_s30  ;;  %v1897_v34 = vrot.slane %v6824_v13, 2 }
 0x119   : > { %v1749_v19 = vsel %vm271_vm0, %v1746_v48, %v1748_v61 }
 0x11a   : > { %v6797_v43 = vpop.permute.xlu1 %1381  ;;  %v1900_v31 = vsel %vm423_vm4, %v1897_v34, %v1899_v10 }
 0x11b   : > { %v6802_v20 = vpop.permute.xlu0 %1386  ;;  %1802 = vrot.lane.b32.xlu1 %v1743_v38, %s5691_s21  ;;  %v6852_v38 = vld [vmem:[%s5735_s20 + $0x217] sm:$0xff] }
 0x11c   : > { %3383 = vrot.lane.b32.xlu0 %v3324_v6, %s5693_s30 }
 0x11e   : > { %v6813_v0 = vpop.permute.xlu1 %1391 }
 0x11f   : > { %v6815_v51 = vpop.permute.xlu0 %1396  ;;  %1804 = vrot.lane.b32.xlu1 %v1745_v57, %s5691_s21  ;;  %v1898_v57 = vsel %vm423_vm4, %v1895_v44, %v1897_v34  ;;  %v3329_v44 = vrot.slane %v6852_v38, 2 }
 0x120   : > { %1953 = vrot.lane.b32.xlu0 %v1894_v4, %s5693_s30  ;;  %v3178_v4 = vrot.slane %v6852_v38, 1 }
 0x122   : > { %v6826_v35 = vpop.permute.xlu1 %1401  ;;  %v3179_v48 = vsel %vm271_vm0, %v3176_v3, %v3178_v4  ;;  %v3331_v3 = vrot.slane %v6863_v25, 2 }
 0x123   : > { %8607 = vst [vmem:[#allocation2_spill] sm:$0xff] %v6826_v35  ;;  %v6828_v22 = vpop.permute.xlu0 %1406  ;;  %1955 = vrot.lane.b32.xlu1 %v1896_v50, %s5693_s30  ;;  %v3103_v35 = vld [vmem:[%s5735_s20 + $0x237] sm:$0xff] }
 0x124   : > { %3234 = vrot.lane.b32.xlu0 %v3175_v14, %s5691_s21 }
 0x126   : > { %v6839_v28 = vpop.permute.xlu1 %1411 }
 0x127   : > { %8608 = vst [vmem:[#allocation13_spill] sm:$0xff] %v6839_v28  ;;  %v6841_v32 = vpop.permute.xlu0 %1416  ;;  %3236 = vrot.lane.b32.xlu1 %v3177_v47, %s5691_s21  ;;  %v3180_v47 = vrot.slane %v6863_v25, 1 }
 0x128   : > { %8609 = vst [vmem:[#allocation4_spill] sm:$0xff] %v6841_v32  ;;  %3385 = vrot.lane.b32.xlu0 %v3326_v41, %s5693_s30  ;;  %v6876_v41 = vld [vmem:[%s5735_s20 + $0x167] sm:$0xff] }
 0x129   : > { %v1750_v34 = vrot.slane %v6876_v41, 1 }
 0x12a   : > { %v6849_v53 = vpop.permute.xlu1 %1421 }
 0x12b   : > { %8610 = vst [vmem:[#allocation14_spill] sm:$0xff] %v6849_v53  ;;  %v6854_v6 = vpop.permute.xlu0 %1426  ;;  %1806 = vrot.lane.b32.xlu1 %v1747_v52, %s5691_s21  ;;  %v6904_v53 = vld [vmem:[%s5735_s20 + $0x227] sm:$0xff] }
 0x12c   : > { %8611 = vst [vmem:[#allocation3_spill] sm:$0xff] %v6854_v6  ;;  %3387 = vrot.lane.b32.xlu0 %v3328_v46, %s5693_s30  ;;  %v6915_v6 = vld [vmem:[%s5735_s20 + $0x22f] sm:$0xff] }
 0x12e   : > { %v6865_v50 = vpop.permute.xlu1 %1431 }
 0x12f   : > { %8612 = vst [vmem:[#allocation15_spill] sm:$0xff] %v6865_v50  ;;  %v6867_v14 = vpop.permute.xlu0 %1436  ;;  %1808 = vrot.lane.b32.xlu1 %v1749_v19, %s5691_s21  ;;  %v3181_v19 = vsel %vm271_vm0, %v3178_v4, %v3180_v47  ;;  %v6889_v50 = vld [vmem:[%s5735_s20 + $0x16f] sm:$0xff]  ;;  %v1751_v4 = vsel %vm271_vm0, %v1748_v61, %v1750_v34  ;;  %v5658_v61 = vld [vmem:[%s5735_s20 + $0xdf] sm:$0xff] }
 0x130   : > { %8613 = vst [vmem:[#allocation6_spill] sm:$0xff] %v6867_v14  ;;  %1957 = vrot.lane.b32.xlu0 %v1898_v57, %s5693_s30  ;;  %v3330_v57 = vsel %vm423_vm4, %v3327_v27, %v3329_v44  ;;  %v3332_v27 = vsel %vm423_vm4, %v3329_v44, %v3331_v3 }
 0x132   : > { %v6878_v52 = vpop.permute.xlu1 %1441 }
 0x133   : > { %8614 = vst [vmem:[#allocation16_spill] sm:$0xff] %v6878_v52  ;;  %v6880_v46 = vpop.permute.xlu0 %1446  ;;  %1959 = vrot.lane.b32.xlu1 %v1900_v31, %s5693_s30  ;;  %v1752_v31 = vrot.slane %v6889_v50, 1 }
 0x134   : > { %8615 = vst [vmem:[#allocation5_spill] sm:$0xff] %v6880_v46  ;;  %3238 = vrot.lane.b32.xlu0 %v3179_v48, %s5691_s21  ;;  %v1901_v48 = vrot.slane %v6876_v41, 2 }
 0x136   : > { %v6891_v14 = vpop.permute.xlu1 %1451 }
 0x137   : > { %8616 = vst [vmem:[#allocation19_spill] sm:$0xff] %v6891_v14  ;;  %v6893_v52 = vpop.permute.xlu0 %1456  ;;  %3240 = vrot.lane.b32.xlu1 %v3181_v19, %s5691_s21  ;;  %v1753_v19 = vsel %vm271_vm0, %v1750_v34, %v1752_v31  ;;  %v3184_v34 = vrot.slane %v6915_v6, 1 }
 0x138   : > { %8617 = vst [vmem:[#allocation7_spill] sm:$0xff] %v6893_v52  ;;  %3389 = vrot.lane.b32.xlu0 %v3330_v57, %s5693_s30  ;;  %v1903_v57 = vrot.slane %v6889_v50, 2  ;;  %v1902_v52 = vsel %vm423_vm4, %v1899_v10, %v1901_v48 }
 0x13a   : > { %v6901_v46 = vpop.permute.xlu1 %1461  ;;  %v1904_v50 = vsel %vm423_vm4, %v1901_v48, %v1903_v57 }
 0x13b   : > { %8618 = vst [vmem:[#allocation18_spill] sm:$0xff] %v6901_v46  ;;  %v1779_v14 = vpop.permute.xlu0 %1778  ;;  %1810 = vrot.lane.b32.xlu1 %v1751_v4, %s5691_s21  ;;  %v3182_v46 = vrot.slane %v6904_v53, 1 }
 0x13c   : > { %3391 = vrot.lane.b32.xlu0 %v3332_v27, %s5693_s30  ;;  %v2016_v44 = vsel %vm575_vm6, %v5658_v61, %v1779_v14  ;;  %v3333_v14 = vrot.slane %v6904_v53, 2  ;;  %v1671_v27 = vld [vmem:[%s5735_s20 + $0x177] sm:$0xff]  ;;  %v5659_v61 = vld [vmem:[%s5735_s20 + $0xe7] sm:$0xff] }
 0x13d   : > { %v3183_v10 = vsel %vm271_vm0, %v3180_v47, %v3182_v46  ;;  %v3185_v47 = vsel %vm271_vm0, %v3182_v46, %v3184_v34  ;;  %v1754_v48 = vrot.slane %v1671_v27, 1 }
 0x13e   : > { %v1781_v28 = vpop.permute.xlu1 %1780 }
 0x13f   : > { %v1930_v32 = vpop.permute.xlu0 %1929  ;;  %1812 = vrot.lane.b32.xlu1 %v1753_v19, %s5691_s21  ;;  %v2017_v19 = vsel %vm575_vm6, %v5659_v61, %v1781_v28  ;;  %v3334_v28 = vsel %vm423_vm4, %v3331_v3, %v3333_v14  ;;  %v3335_v61 = vrot.slane %v6915_v6, 2  ;;  %v1755_v46 = vsel %vm271_vm0, %v1752_v31, %v1754_v48 }
 0x140   : > { %v6919_v4 = vsel %vm606_vm5, %v2016_v44, %v1930_v32  ;;  %1961 = vrot.lane.b32.xlu0 %v1902_v52, %s5693_s30  ;;  %v1905_v3 = vrot.slane %v1671_v27, 2  ;;  %v3186_v27 = vrot.slane %v3103_v35, 1 }
 0x141   : > { %8619 = vst [vmem:[#allocation8_spill] sm:$0xff] %v6919_v4  ;;  %5207 = vmatprep.mubr.msk.f32.mxu1 %vm642_vm7, %v6919_v4  ;;  %v3336_v6 = vsel %vm423_vm4, %v3333_v14, %v3335_v61 }
 0x142   : > { %v1932_v32 = vpop.permute.xlu1 %1931  ;;  %v1906_v14 = vsel %vm423_vm4, %v1903_v57, %v1905_v3  ;;  %v3187_v57 = vsel %vm271_vm0, %v3184_v34, %v3186_v27 }
 0x143   : > { %v6932_v44 = vsel %vm606_vm5, %v2017_v19, %v1932_v32  ;;  %v3211_v52 = vpop.permute.xlu0 %3210  ;;  %1963 = vrot.lane.b32.xlu1 %v1904_v50, %s5693_s30  ;;  %v6944_v19 = vld [vmem:[%s5735_s20 + $0x17f] sm:$0xff] }
 0x144   : > { %8620 = vst [vmem:[#allocation21_spill] sm:$0xff] %v6932_v44  ;;  %3242 = vrot.lane.b32.xlu0 %v3183_v10, %s5691_s21  ;;  %5208 = vmatmul.mubr.msk.f32.vlgmr.msra.gmra.mrb[24].mxu1 %vm642_vm7, %v6932_v44  ;;  %v3448_v4 = vsel %vm575_vm6, %v6207_v16, %v3211_v52  ;;  %v1756_v44 = vrot.slane %v6944_v19, 1 }
 0x146   : > { %v3213_v32 = vpop.permute.xlu1 %3212 }
 0x147   : > { %v3362_v50 = vpop.permute.xlu0 %3361  ;;  %3244 = vrot.lane.b32.xlu1 %v3185_v47, %s5691_s21  ;;  %v8622_v47 = vld [vmem:[#allocation17_spill] sm:$0xff] }
 0x148   : > { %v6948_v10 = vsel %vm606_vm5, %v3448_v4, %v3362_v50  ;;  %3393 = vrot.lane.b32.xlu0 %v3334_v28, %s5693_s30  ;;  %v3449_v4 = vsel %vm575_vm6, %v8622_v47, %v3213_v32  ;;  %v1757_v28 = vsel %vm271_vm0, %v1754_v48, %v1756_v44  ;;  %v6970_v32 = vld [vmem:[%s5735_s20 + $0x23f] sm:$0xff] }
 0x149   : > { %8621 = vst [vmem:[#allocation9_spill] sm:$0xff] %v6948_v10  ;;  %5327 = vmatprep.mubr.msk.f32.mxu0 %vm642_vm7, %v6948_v10  ;;  %v1907_v10 = vrot.slane %v6944_v19, 2 }
 0x14a   : > { %v1783_v52 = vpop.permute.xlu1 %1782 }
 0x14b   : > { %v3364_v50 = vpop.permute.xlu0 %3363  ;;  %1814 = vrot.lane.b32.xlu1 %v1755_v46, %s5691_s21  ;;  %v5660_v46 = vld [vmem:[%s5735_s20 + $0xef] sm:$0xff]  ;;  %v1908_v19 = vsel %vm423_vm4, %v1905_v3, %v1907_v10 }
 0x14c   : > { %v6961_v31 = vsel %vm606_vm5, %v3449_v4, %v3364_v50  ;;  %3395 = vrot.lane.b32.xlu0 %v3336_v6, %s5693_s30  ;;  %v2018_v4 = vsel %vm575_vm6, %v5660_v46, %v1783_v52  ;;  %v3188_v6 = vrot.slane %v6970_v32, 1  ;;  %v1673_v52 = vld [vmem:[%s5735_s20 + $0x187] sm:$0xff] }
 0x14d   : > { %8623 = vst [vmem:[#allocation20_spill] sm:$0xff] %v6961_v31  ;;  %5328 = vmatmul.mubr.msk.f32.vlgmr.msra.gmra.mrb[24].mxu0 %vm642_vm7, %v6961_v31  ;;  %v3337_v31 = vrot.slane %v3103_v35, 2  ;;  %v1758_v34 = vrot.slane %v1673_v52, 1 }
 0x14e   : > { %v1785_v47 = vpop.permute.xlu1 %1784  ;;  %v3189_v3 = vsel %vm271_vm0, %v3186_v27, %v3188_v6 }
 0x14f   : > { %v1934_v50 = vpop.permute.xlu0 %1933  ;;  %1816 = vrot.lane.b32.xlu1 %v1757_v28, %s5691_s21  ;;  %v2019_v28 = vsel %vm575_vm6, %v6236_v40, %v1785_v47  ;;  %v3338_v40 = vsel %vm423_vm4, %v3335_v61, %v3337_v31  ;;  %v3339_v47 = vrot.slane %v6970_v32, 2  ;;  %v1759_v27 = vsel %vm271_vm0, %v1756_v44, %v1758_v34 }
 0x150   : > { %v6976_v48 = vsel %vm606_vm5, %v2018_v4, %v1934_v50  ;;  %1965 = vrot.lane.b32.xlu0 %v1906_v14, %s5693_s30  ;;  %v7000_v50 = vld [vmem:[%s5735_s20 + $0x18f] sm:$0xff]  ;;  %v1909_v61 = vrot.slane %v1673_v52, 2  ;;  %v8655_v36 = vld [vmem:[#allocation9_spill] sm:$0xff] }
 0x151   : > { %5210 = vmatprep.mubr.msk.f32.mxu1 %vm642_vm7, %v6976_v48  ;;  %v7028_v52 = vld [vmem:[%s5735_s20 + $0x24f] sm:$0xff] }
 0x152   : > { %v1936_v46 = vpop.permute.xlu1 %1935 }
 0x153   : > { %v6988_v4 = vsel %vm606_vm5, %v2019_v28, %v1936_v46  ;;  %v3215_v14 = vpop.permute.xlu0 %3214  ;;  %1967 = vrot.lane.b32.xlu1 %v1908_v19, %s5693_s30  ;;  %v1760_v46 = vrot.slane %v7000_v50, 1 }
 0x154   : > { %3246 = vrot.lane.b32.xlu0 %v3187_v57, %s5691_s21  ;;  %5211 = vmatmul.mubr.msk.f32.gmra.mrb[26].mxu1 %vm642_vm7, %v6988_v4  ;;  %v3450_v35 = vsel %vm575_vm6, %v6219_v7, %v3215_v14  ;;  %v3340_v7 = vsel %vm423_vm4, %v3337_v31, %v3339_v47  ;;  %v3105_v14 = vld [vmem:[%s5735_s20 + $0x247] sm:$0xff]  ;;  %v1910_v31 = vsel %vm423_vm4, %v1907_v10, %v1909_v61  ;;  %v3192_v10 = vrot.slane %v7028_v52, 1 }
 0x155   : > { %v7021_v44 = vsel %vm271_vm0, %v1758_v34, %v1760_v46 }
 0x156   : > { %v3217_v28 = vpop.permute.xlu1 %3216 }
 0x157   : > { %v3366_v19 = vpop.permute.xlu0 %3365  ;;  %3248 = vrot.lane.b32.xlu1 %v3189_v3, %s5691_s21  ;;  %v3451_v3 = vsel %vm575_vm6, %v6287_v2, %v3217_v28  ;;  %v3190_v2 = vrot.slane %v3105_v14, 1 }
 0x158   : > { %v7004_v57 = vsel %vm606_vm5, %v3450_v35, %v3366_v19  ;;  %3397 = vrot.lane.b32.xlu0 %v3338_v40, %s5693_s30  ;;  %v1911_v19 = vrot.slane %v7000_v50, 2 }
 0x159   : > { %8624 = vst [vmem:[#allocation11_spill] sm:$0xff] %v7004_v57  ;;  %5330 = vmatprep.mubr.msk.f32.mxu0 %vm642_vm7, %v7004_v57 }
 0x15a   : > { %v1787_v32 = vpop.permute.xlu1 %1786  ;;  %v7039_v50 = vsel %vm423_vm4, %v1909_v61, %v1911_v19 }
 0x15b   : > { %v3368_v35 = vpop.permute.xlu0 %3367  ;;  %1818 = vrot.lane.b32.xlu1 %v1759_v27, %s5691_s21  ;;  %v2020_v27 = vsel %vm575_vm6, %v6255_v56, %v1787_v32  ;;  %v3191_v56 = vsel %vm271_vm0, %v3188_v6, %v3190_v2  ;;  %v1675_v32 = vld [vmem:[%s5735_s20 + $0x197] sm:$0xff]  ;;  %v3193_v6 = vsel %vm271_vm0, %v3190_v2, %v3192_v10  ;;  %v2074_v2 = vld [vmem:[%s8522_s1 + $0x8] sm:$0xf] }
 0x15c   : > { %v7017_v40 = vsel %vm606_vm5, %v3451_v3, %v3368_v35  ;;  %3399 = vrot.lane.b32.xlu0 %v3340_v7, %s5693_s30  ;;  %v3341_v7 = vrot.slane %v3105_v14, 2  ;;  %v7057_v61 = vrot.slane %v1675_v32, 1  ;;  %v7085_v57 = vrot.slane %v1675_v32, 2 }
 0x15d   : > { %8625 = vst [vmem:[#allocation17_spill] sm:$0xff] %v7017_v40  ;;  %5331 = vmatmul.mubr.msk.f32.gmra.mrb[26].mxu0 %vm642_vm7, %v7017_v40 }
 0x15e   : > { %v1789_v28 = vpop.permute.xlu1 %1788  ;;  %v3342_v14 = vsel %vm423_vm4, %v3339_v47, %v3341_v7 }
 0x15f   : > { %v1938_v3 = vpop.permute.xlu0 %1937  ;;  %1820 = vrot.lane.b32.xlu1 %v7021_v44, %s5691_s21  ;;  %v2021_v35 = vsel %vm575_vm6, %v6342_v63, %v1789_v28  ;;  %v3343_v28 = vrot.slane %v7028_v52, 2  ;;  %v7079_v52 = vsel %vm271_vm0, %v1760_v46, %v7057_v61  ;;  %v3107_v46 = vld [vmem:[%s5735_s20 + $0x257] sm:$0xff] }
 0x160   : > { %v7035_v34 = vsel %vm606_vm5, %v2020_v27, %v1938_v3  ;;  %1969 = vrot.lane.b32.xlu0 %v1910_v31, %s5693_s30 }
 0x161   : > { %5213 = vmatprep.mubr.msk.f32.mxu1 %vm642_vm7, %v7035_v34 }
 0x162   : > { %v1940_v27 = vpop.permute.xlu1 %1939 }
 0x163   : > { %v7049_v3 = vsel %vm606_vm5, %v2021_v35, %v1940_v27  ;;  %v3219_v31 = vpop.permute.xlu0 %3218  ;;  %1971 = vrot.lane.b32.xlu1 %v7039_v50, %s5693_s30  ;;  %v7064_v35 = vld [vmem:[%s5735_s20 + $0x19f] sm:$0xff] }
 0x164   : > { %8626 = vst [vmem:[#allocation22_spill] sm:$0xff] %v7049_v3  ;;  %3250 = vrot.lane.b32.xlu0 %v3191_v56, %s5691_s21  ;;  %5214 = vmatmul.mubr.msk.f32.gmra.mrb[28].mxu1 %vm642_vm7, %v7049_v3  ;;  %v3452_v63 = vsel %vm575_vm6, %v6312_v29, %v3219_v31  ;;  %v2073_v56 = vld [vmem:[%s8522_s1] sm:$0xff]  ;;  %v8549_v31 = vrot.slane %v7064_v35, 1  ;;  %v3344_v3 = vsel %vm423_vm4, %v3341_v7, %v3343_v28 }
 0x165   : > { %v5467_v29 = vpack.c.bf16 %v2074_v2, %v2073_v56 }
 0x166   : > { %v3221_v27 = vpop.permute.xlu1 %3220  ;;  %v1765_v2 = vsel %vm271_vm0, %v7057_v61, %v8549_v31 }
 0x167   : > { %v3370_v40 = vpop.permute.xlu0 %3369  ;;  %3252 = vrot.lane.b32.xlu1 %v3193_v6, %s5691_s21  ;;  %5469 = vmatprep.subr.msk.bf16.mxu1 %vm5912_vm3, %v5467_v29 }
 0x168   : > { %v7074_v47 = vsel %vm606_vm5, %v3452_v63, %v3370_v40  ;;  %3401 = vrot.lane.b32.xlu0 %v3342_v14, %s5693_s30  ;;  %v3506_v40 = vld [vmem:[%s8522_s1 + $0x8] sm:$0xf]  ;;  %5472 = vmatpush3.bf16.msk.msra.mxu1 %vm5912_vm3, %v5467_v29  ;;  %v3453_v14 = vsel %vm575_vm6, %v6413_v17, %v3221_v27  ;;  %v8554_v29 = vrot.slane %v7064_v35, 2  ;;  %v7114_v17 = vsel %vm423_vm4, %v1911_v19, %v7085_v57  ;;  %v7117_v27 = vld [vmem:[%s5735_s20 + $0x25f] sm:$0xff] }
 0x169   : > { %8627 = vst [vmem:[#allocation23_spill] sm:$0xff] %v7074_v47  ;;  %5333 = vmatprep.mubr.msk.f32.mxu0 %vm642_vm7, %v7074_v47  ;;  %v5485_v63 = vpack.c.bf16 %v3506_v40, %v2073_v56  ;;  %v8557_v31 = vrot.slane %v7117_v27, 1 }
 0x16a   : > { %v1791_v6 = vpop.permute.xlu1 %1790  ;;  %v1916_v19 = vsel %vm423_vm4, %v7085_v57, %v8554_v29 }
 0x16b   : > { %v3372_v7 = vpop.permute.xlu0 %3371  ;;  %1822 = vrot.lane.b32.xlu1 %v7079_v52, %s5691_s21  ;;  %5487 = vmatprep.subr.msk.bf16.mxu0 %vm5912_vm3, %v5485_v63  ;;  %v2022_v40 = vsel %vm575_vm6, %v6376_v42, %v1791_v6  ;;  %v3345_v6 = vrot.slane %v3107_v46, 2 }
 0x16c   : > { %v7100_v32 = vsel %vm606_vm5, %v3453_v14, %v3372_v7  ;;  %3403 = vrot.lane.b32.xlu0 %v3344_v3, %s5693_s30  ;;  %v3194_v3 = vrot.slane %v3107_v46, 1  ;;  %5490 = vmatpush3.bf16.msk.msra.mxu0 %vm5912_vm3, %v5485_v63  ;;  %v1649_v63 = vld [vmem:[%s5735_s20 + $0xc7] sm:$0xff] }
 0x16d   : > { %8628 = vst [vmem:[#allocation24_spill] sm:$0xff] %v7100_v32  ;;  %5334 = vmatmul.mubr.msk.f32.gmra.mrb[28].mxu0 %vm642_vm7, %v7100_v32  ;;  %v1711_v46 = vrot.slane %v1649_v63, 1 }
 0x16e   : > { %v1793_v56 = vpop.permute.xlu1 %1792  ;;  %v3195_v42 = vsel %vm271_vm0, %v3192_v10, %v3194_v3  ;;  %v3197_v10 = vsel %vm271_vm0, %v3194_v3, %v8557_v31 }
 0x16f   : > { %v1942_v14 = vpop.permute.xlu0 %1941  ;;  %1824 = vrot.lane.b32.xlu1 %v1765_v2, %s5691_s21  ;;  %v1650_v2 = vld [vmem:[%s5735_s20 + $0xcf] sm:$0xff] }
 0x170   : > { %v7125_v7 = vsel %vm606_vm5, %v2022_v40, %v1942_v14  ;;  %1973 = vrot.lane.b32.xlu0 %v7114_v17, %s5693_s30  ;;  %v2023_v40 = vsel %vm575_vm6, %v6466_v30, %v1793_v56  ;;  %v1712_v29 = vrot.slane %v1650_v2, 1  ;;  %v3346_v56 = vsel %vm423_vm4, %v3343_v28, %v3345_v6 }
 0x171   : > { %8629 = vst [vmem:[#allocation25_spill] sm:$0xff] %v7125_v7  ;;  %5216 = vmatprep.mubr.msk.f32.mxu1 %vm642_vm7, %v7125_v7  ;;  %v1862_v28 = vrot.slane %v1649_v63, 2 }
 0x172   : > { %v1944_v14 = vpop.permute.xlu1 %1943  ;;  %v1713_v3 = vsel %vm271_vm0, %v1711_v46, %v1712_v29 }
 0x173   : > { %v7142_v32 = vsel %vm606_vm5, %v2023_v40, %v1944_v14  ;;  %v3223_v47 = vpop.permute.xlu0 %3222  ;;  %1975 = vrot.lane.b32.xlu1 %v1916_v19, %s5693_s30  ;;  %v3347_v40 = vrot.slane %v7117_v27, 2  ;;  %v1651_v14 = vld [vmem:[%s5735_s20 + $0xd7] sm:$0xff] }
 0x174   : > { %8630 = vst [vmem:[#allocation26_spill] sm:$0xff] %v7142_v32  ;;  %3254 = vrot.lane.b32.xlu0 %v3195_v42, %s5691_s21  ;;  %5217 = vmatmul.mubr.msk.f32.gmra.mrb[30].mxu1 %vm642_vm7, %v7142_v32  ;;  %v3454_v30 = vsel %vm575_vm6, %v6434_v58, %v3223_v47  ;;  %v1714_v31 = vrot.slane %v1651_v14, 1  ;;  %v1863_v47 = vrot.slane %v1650_v2, 2 }
 0x175   : > { %v3348_v58 = vsel %vm423_vm4, %v3345_v6, %v3347_v40 }
 0x176   : > { %v3225_v19 = vpop.permute.xlu1 %3224  ;;  %v1715_v46 = vsel %vm271_vm0, %v1712_v29, %v1714_v31  ;;  %v1864_v6 = vsel %vm423_vm4, %v1862_v28, %v1863_v47 }
 0x177   : > { %v3374_v7 = vpop.permute.xlu0 %3373  ;;  %3256 = vrot.lane.b32.xlu1 %v3197_v10, %s5691_s21  ;;  %v3455_v10 = vsel %vm575_vm6, %v6541_v11, %v3225_v19 }
 0x178   : > { %v7158_v42 = vsel %vm606_vm5, %v3454_v30, %v3374_v7  ;;  %3405 = vrot.lane.b32.xlu0 %v3346_v56, %s5693_s30  ;;  %v1865_v56 = vrot.slane %v1651_v14, 2 }
 0x179   : > { %5336 = vmatprep.mubr.msk.f32.mxu0 %vm642_vm7, %v7158_v42 }
 0x17a   : > { %v1795_v32 = vpop.permute.xlu1 %1794  ;;  %v1866_v29 = vsel %vm423_vm4, %v1863_v47, %v1865_v56 }
 0x17b   : > { %v3376_v7 = vpop.permute.xlu0 %3375  ;;  %1772 = vrot.lane.b32.xlu1 %v1713_v3, %s5691_s21  ;;  %v2024_v11 = vsel %vm575_vm6, %v6498_v62, %v1795_v32 }
 0x17c   : > { %v7171_v30 = vsel %vm606_vm5, %v3455_v10, %v3376_v7  ;;  %3407 = vrot.lane.b32.xlu0 %v3348_v58, %s5693_s30  ;;  %v8631_v10 = vld [vmem:[#allocation10_spill] sm:$0xff] }
 0x17d   : > { %5337 = vmatmul.mubr.msk.f32.gmra.mrb[30].mxu0 %vm642_vm7, %v7171_v30 }
 0x17e   : > { %v1797_v63 = vpop.permute.xlu1 %1796 }
 0x17f   : > { %v1946_v2 = vpop.permute.xlu0 %1945  ;;  %1774 = vrot.lane.b32.xlu1 %v1715_v46, %s5691_s21  ;;  %v2025_v14 = vsel %vm575_vm6, %v6599_v12, %v1797_v63  ;;  %v8633_v63 = vrot.slane %v6207_v16, 1 }
 0x180   : > { %v7182_v19 = vsel %vm606_vm5, %v2024_v11, %v1946_v2  ;;  %1923 = vrot.lane.b32.xlu0 %v1864_v6, %s5693_s30 }
 0x181   : > { %5219 = vmatprep.mubr.msk.f32.mxu1 %vm642_vm7, %v7182_v19 }
 0x182   : > { %v1948_v3 = vpop.permute.xlu1 %1947 }
 0x183   : > { %v7191_v62 = vsel %vm606_vm5, %v2025_v14, %v1948_v3  ;;  %v3227_v32 = vpop.permute.xlu0 %3226  ;;  %1925 = vrot.lane.b32.xlu1 %v1866_v29, %s5693_s30  ;;  %v7232_v29 = vld [vmem:[%s5735_s20 + $0x267] sm:$0xff] }
 0x184   : > { %3204 = vrot.lane.b32.xlu0 %v7021_v44, %s5691_s21  ;;  %5220 = vmatmul.mubr.msk.f32.gmra.mrb[32].mxu1 %vm642_vm7, %v7191_v62  ;;  %v3456_v58 = vsel %vm575_vm6, %v6566_v26, %v3227_v32  ;;  %v1717_v44 = vsel %vm271_vm0, %v1714_v31, %v8631_v10  ;;  %v7212_v26 = vld [vmem:[%s5735_s20 + $0x1a7] sm:$0xff]  ;;  %v8634_v32 = vrot.slane %v6207_v16, 2  ;;  %v8635_v10 = vrot.slane %v7064_v35, 1 }
 0x185   : > { %v1766_v11 = vrot.slane %v7212_v26, 1  ;;  %v3198_v16 = vrot.slane %v7232_v29, 1 }
 0x186   : > { %v3229_v28 = vpop.permute.xlu1 %3228 }
 0x187   : > { %v3378_v47 = vpop.permute.xlu0 %3377  ;;  %3206 = vrot.lane.b32.xlu1 %v7079_v52, %s5691_s21  ;;  %v3457_v46 = vsel %vm575_vm6, %v6657_v9, %v3229_v28  ;;  %v3149_v9 = vsel %vm271_vm0, %v7057_v61, %v8633_v63  ;;  %v4742_v61 = vld [vmem:[%s8522_s1 + $0x28] sm:$0xf] }
 0x188   : > { %v7203_v12 = vsel %vm606_vm5, %v3456_v58, %v3378_v47  ;;  %3355 = vrot.lane.b32.xlu0 %v7039_v50, %s5693_s30  ;;  %v8632_v50 = vld [vmem:[#allocation12_spill] sm:$0xff]  ;;  %v1917_v58 = vrot.slane %v7212_v26, 2  ;;  %v4821_v47 = vld [vmem:[%s8522_s1 + $0x28] sm:$0xf] }
 0x189   : > { %5339 = vmatprep.mubr.msk.f32.mxu0 %vm642_vm7, %v7203_v12  ;;  %v1868_v31 = vsel %vm423_vm4, %v1865_v56, %v8632_v50  ;;  %v4741_v56 = vld [vmem:[%s8522_s1 + $0x20] sm:$0xff] }
 0x18a   : > { %v1799_v7 = vpop.permute.xlu1 %1798  ;;  %v7252_v28 = vpack.c.bf16 %v4742_v61, %v4741_v56 }
 0x18b   : > { %v3380_v52 = vpop.permute.xlu0 %3379  ;;  %1776 = vrot.lane.b32.xlu1 %v1717_v44, %s5691_s21  ;;  %v1767_v44 = vsel %vm271_vm0, %v8635_v10, %v1766_v11 }
 0x18c   : > { %v7218_v6 = vsel %vm606_vm5, %v3457_v46, %v3380_v52  ;;  %3357 = vrot.lane.b32.xlu0 %v7114_v17, %s5693_s30  ;;  %v2026_v17 = vsel %vm575_vm6, %v6630_v21, %v1799_v7  ;;  %v3300_v21 = vsel %vm423_vm4, %v7085_v57, %v8634_v32  ;;  %v1678_v7 = vld [vmem:[%s5735_s20 + $0x1af] sm:$0xff]  ;;  %v7264_v57 = vpack.c.bf16 %v4821_v47, %v4741_v56  ;;  %v1679_v56 = vld [vmem:[%s5735_s20 + $0x1b7] sm:$0x3] }
 0x18d   : > { %5340 = vmatmul.mubr.msk.f32.gmra.mrb[32].mxu0 %vm642_vm7, %v7218_v6  ;;  %5475 = vmatprep.subr.msk.bf16.mxu1 %vm5912_vm3, %v7252_v28  ;;  %v1768_v63 = vrot.slane %v1678_v7, 1  ;;  %v1770_v47 = vrot.slane %v1679_v56, 1 }
 0x18e   : > { %v1801_v2 = vpop.permute.xlu1 %1800  ;;  %5493 = vmatprep.subr.msk.bf16.mxu0 %vm5912_vm3, %v7264_v57 }
 0x18f   : > { %v1950_v14 = vpop.permute.xlu0 %1949  ;;  %1927 = vrot.lane.b32.xlu1 %v1868_v31, %s5693_s30  ;;  %v2027_v26 = vsel %vm575_vm6, %v6691_v60, %v1801_v2  ;;  %v8636_v60 = vrot.slane %v7064_v35, 2  ;;  %v8637_v2 = vrot.slane %v7117_v27, 1 }
 0x190   : > { %v7244_v3 = vsel %vm606_vm5, %v2026_v17, %v1950_v14  ;;  %3208 = vrot.lane.b32.xlu0 %v3149_v9, %s5691_s21  ;;  %v3349_v14 = vrot.slane %v7232_v29, 2  ;;  %v1919_v29 = vrot.slane %v1678_v7, 2  ;;  %v3111_v7 = vld [vmem:[%s5735_s20 + $0x277] sm:$0x3] }
 0x191   : > { %5222 = vmatprep.mubr.msk.f32.mxu1 %vm642_vm7, %v7244_v3  ;;  %v1918_v31 = vsel %vm423_vm4, %v8636_v60, %v1917_v58  ;;  %v3199_v17 = vsel %vm271_vm0, %v8637_v2, %v3198_v16  ;;  %v1921_v60 = vrot.slane %v1679_v56, 2 }
 0x192   : > { %v1952_v46 = vpop.permute.xlu1 %1951  ;;  %v1920_v27 = vsel %vm423_vm4, %v1917_v58, %v1919_v29 }
 0x193   : > { %v7272_v52 = vsel %vm606_vm5, %v2027_v26, %v1952_v46  ;;  %v3231_v50 = vpop.permute.xlu0 %3230  ;;  %3359 = vrot.lane.b32.xlu1 %v3300_v21, %s5693_s30  ;;  %v1769_v21 = vsel %vm271_vm0, %v1766_v11, %v1768_v63 }
 0x194   : > { %1826 = vrot.lane.b32.xlu0 %v1767_v44, %s5691_s21  ;;  %5223 = vmatmul.mubr.msk.f32.gmra.mrb[34].mxu1 %vm642_vm7, %v7272_v52  ;;  %v3458_v9 = vsel %vm575_vm6, %v6674_v54, %v3231_v50  ;;  %v3350_v54 = vsel %vm423_vm4, %v3347_v40, %v3349_v14  ;;  %v3110_v44 = vld [vmem:[%s5735_s20 + $0x26f] sm:$0xff]  ;;  %v1771_v50 = vsel %vm271_vm0, %v1768_v63, %v1770_v47 }
 0x195   : > { %v3200_v40 = vrot.slane %v3110_v44, 1  ;;  %v1922_v63 = vsel %vm423_vm4, %v1919_v29, %v1921_v60  ;;  %v3351_v56 = vrot.slane %v3110_v44, 2  ;;  %v3353_v29 = vrot.slane %v3111_v7, 2 }
 0x196   : > { %v3233_v61 = vpop.permute.xlu1 %3232 }
 0x197   : > { %v3382_v32 = vpop.permute.xlu0 %3381  ;;  %1977 = vrot.lane.b32.xlu1 %v1918_v31, %s5693_s30  ;;  %v3459_v26 = vsel %vm575_vm6, %v6734_v59, %v3233_v61  ;;  %v3201_v58 = vsel %vm271_vm0, %v3198_v16, %v3200_v40 }
 0x198   : > { %v7293_v35 = vsel %vm606_vm5, %v3458_v9, %v3382_v32  ;;  %3258 = vrot.lane.b32.xlu0 %v3199_v17, %s5691_s21  ;;  %v3202_v17 = vrot.slane %v3111_v7, 1 }
 0x199   : > { %5342 = vmatprep.mubr.msk.f32.mxu0 %vm642_vm7, %v7293_v35 }
 0x19a   : > { %v1803_v10 = vpop.permute.xlu1 %1802  ;;  %v3203_v16 = vsel %vm271_vm0, %v3200_v40, %v3202_v17 }
 0x19b   : > { %v3384_v46 = vpop.permute.xlu0 %3383  ;;  %1828 = vrot.lane.b32.xlu1 %v1769_v21, %s5691_s21  ;;  %v2028_v59 = vsel %vm575_vm6, %v6710_v39, %v1803_v10  ;;  %v3352_v10 = vsel %vm423_vm4, %v3349_v14, %v3351_v56 }
 0x19c   : > { %v7307_v11 = vsel %vm606_vm5, %v3459_v26, %v3384_v46  ;;  %3409 = vrot.lane.b32.xlu0 %v3350_v54, %s5693_s30 }
 0x19d   : > { %5343 = vmatmul.mubr.msk.f32.gmra.mrb[34].mxu0 %vm642_vm7, %v7307_v11 }
 0x19e   : > { %v1805_v31 = vpop.permute.xlu1 %1804 }
 0x19f   : > { %v1954_v9 = vpop.permute.xlu0 %1953  ;;  %1830 = vrot.lane.b32.xlu1 %v1771_v50, %s5691_s21  ;;  %v2029_v39 = vsel %vm575_vm6, %v6770_v23, %v1805_v31 }
 0x1a0   : > { %v7319_v2 = vsel %vm606_vm5, %v2028_v59, %v1954_v9  ;;  %1979 = vrot.lane.b32.xlu0 %v1920_v27, %s5693_s30  ;;  %v3354_v27 = vsel %vm423_vm4, %v3351_v56, %v3353_v29 }
 0x1a1   : > { %5225 = vmatprep.mubr.msk.f32.mxu1 %vm642_vm7, %v7319_v2 }
 0x1a2   : > { %v1956_v61 = vpop.permute.xlu1 %1955 }
 0x1a3   : > { %v7329_v32 = vsel %vm606_vm5, %v2029_v39, %v1956_v61  ;;  %v5089_v21 = vpop.f32.mrb[0].mxu1  ;;  %v3235_v47 = vpop.permute.xlu0 %3234  ;;  %1981 = vrot.lane.b32.xlu1 %v1922_v63, %s5693_s30  ;;  %v2757_v63 = vld [vmem:[%s8523_s2 + $0xe0] sm:$0xff] }
 0x1a4   : > { %v785_v54 = vpop.f32.mrb[1].mxu1  ;;  %3260 = vrot.lane.b32.xlu0 %v3201_v58, %s5691_s21  ;;  %5226 = vmatmul.mubr.msk.f32.gmra.mrb[36].mxu1 %vm642_vm7, %v7329_v32  ;;  %v3460_v23 = vsel %vm575_vm6, %v6752_v45, %v3235_v47  ;;  %v1348_v45 = vld [vmem:[%s8523_s2 + $0xd8] sm:$0xff] }
 0x1a6   : > { %v3237_v44 = vpop.permute.xlu1 %3236 }
 0x1a7   : > { %v7339_v26 = vpop.f32.mrb[2].mxu1  ;;  %v3386_v46 = vpop.permute.xlu0 %3385  ;;  %3262 = vrot.lane.b32.xlu1 %v3203_v16, %s5691_s21  ;;  %v3461_v40 = vsel %vm575_vm6, %v6800_v49, %v3237_v44  ;;  %v2758_v49 = vld [vmem:[%s8523_s2 + $0xe8] sm:$0xff]  ;;  %v2759_v16 = vld [vmem:[%s8523_s2 + $0xf0] sm:$0xff] }
 0x1a8   : > { %v7343_v50 = vsel %vm606_vm5, %v3460_v23, %v3386_v46  ;;  %v7345_v60 = vpop.f32.mrb[3].mxu1  ;;  %3411 = vrot.lane.b32.xlu0 %v3352_v10, %s5693_s30 }
 0x1a9   : > { %5345 = vmatprep.mubr.msk.f32.mxu0 %vm642_vm7, %v7343_v50 }
 0x1aa   : > { %v1807_v14 = vpop.permute.xlu1 %1806 }
 0x1ab   : > { %v7356_v7 = vpop.f32.mrb[4].mxu1  ;;  %v3388_v31 = vpop.permute.xlu0 %3387  ;;  %3413 = vrot.lane.b32.xlu1 %v3354_v27, %s5693_s30  ;;  %v2030_v58 = vsel %vm575_vm6, %v6785_v37, %v1807_v14  ;;  %v2760_v37 = vld [vmem:[%s8523_s2 + $0xf8] sm:$0xff] }
 0x1ac   : > { %v7360_v59 = vsel %vm606_vm5, %v3461_v40, %v3388_v31  ;;  %v7362_v9 = vpop.f32.mrb[5].mxu1  ;;  %1466 = vperm.xlu0 %5656, %v1348_v45   ;;  %v2761_v45 = vld [vmem:[%s8523_s2 + $0x100] sm:$0xff]  ;;  %v2762_v40 = vld [vmem:[%s8523_s2 + $0x108] sm:$0xff] }
 0x1ad   : > { %8638 = vst [vmem:[#allocation10_spill] sm:$0xff] %v7360_v59  ;;  %5346 = vmatmul.mubr.msk.f32.gmra.mrb[36].mxu0 %vm642_vm7, %v7360_v59 }
 0x1ae   : > { %v1809_v17 = vpop.permute.xlu1 %1808 }
 0x1af   : > { %v7374_v56 = vpop.f32.mrb[6].mxu1  ;;  %v1958_v39 = vpop.permute.xlu0 %1957  ;;  %2783 = vperm.xlu1 %5657, %v2757_v63   ;;  %v2031_v29 = vsel %vm575_vm6, %v6824_v13, %v1809_v17 }
 0x1b0   : > { %v7377_v61 = vsel %vm606_vm5, %v2030_v58, %v1958_v39  ;;  %v7379_v47 = vpop.f32.mrb[7].mxu1  ;;  %2788 = vperm.xlu0 %5656, %v2758_v49  }
 0x1b1   : > { %5228 = vmatprep.mubr.msk.f32.mxu1 %vm642_vm7, %v7377_v61 }
 0x1b2   : > { %v1960_v23 = vpop.permute.xlu1 %1959 }
 0x1b3   : > { %v7392_v10 = vsel %vm606_vm5, %v2031_v29, %v1960_v23  ;;  %v7394_v44 = vpop.f32.mrb[8].mxu1  ;;  %v3239_v46 = vpop.permute.xlu0 %3238  ;;  %2793 = vperm.xlu1 %5657, %v2759_v16  }
 0x1b4   : > { %8639 = vst [vmem:[#allocation12_spill] sm:$0xff] %v7392_v10  ;;  %v7396_v27 = vpop.f32.mrb[9].mxu1  ;;  %2798 = vperm.xlu0 %5656, %v2760_v37   ;;  %5229 = vmatmul.mubr.msk.f32.gmra.mrb[38].mxu1 %vm642_vm7, %v7392_v10  ;;  %v3462_v13 = vsel %vm575_vm6, %v6811_v5, %v3239_v46 }
 0x1b5   : > { %v5169_v14 = vpop.f32.mrb[0].mxu0 }
 0x1b6   : > { %v5499_v31 = vadd.f32 %v5169_v14, %v5089_v21  ;;  %v1182_v63 = vpop.f32.mrb[1].mxu0  ;;  %v3241_v49 = vpop.permute.xlu1 %3240  ;;  %v2763_v21 = vld [vmem:[%s8523_s2 + $0x110] sm:$0xff] }
 0x1b7   : > { %v5500_v17 = vadd.f32 %v1182_v63, %v785_v54  ;;  %v7415_v58 = vpop.f32.mrb[10].mxu1  ;;  %v3390_v5 = vpop.permute.xlu0 %3389  ;;  %2803 = vperm.xlu1 %5657, %v2761_v45   ;;  %v3463_v63 = vsel %vm575_vm6, %v6852_v38, %v3241_v49 }
 0x1b8   : > { %v1470_v39 = vmul.f32 %v5499_v31, %v6755_v33  ;;  %1626 = vst.msk [vmem:[%s7410_s28 + $0x28] sm:$0xff] %vm606_vm5, %v5499_v31  ;;  %v7421_v16 = vsel %vm606_vm5, %v3462_v13, %v3390_v5  ;;  %v7423_v37 = vpop.f32.mrb[11].mxu1  ;;  %2808 = vperm.xlu0 %5656, %v2762_v40   ;;  %v2764_v33 = vld [vmem:[%s8523_s2 + $0x118] sm:$0xff] }
 0x1b9   : > { %8640 = vst [vmem:[#allocation27_spill] sm:$0xff] %v7421_v16  ;;  %v1469_v54 = vmul.f32 %v5500_v17, %v6757_v55  ;;  %1625 = vst.msk [vmem:[%s7410_s28 + $0x20] sm:$0xff] %vm606_vm5, %v5500_v17  ;;  %v5172_v29 = vpop.f32.mrb[2].mxu0  ;;  %5348 = vmatprep.mubr.msk.f32.mxu0 %vm642_vm7, %v7421_v16 }
 0x1ba   : > { %v1494_v23 = vsel %vm606_vm5, %v1470_v39, 0.0  ;;  %v1548_v46 = vmul.f32 %v5499_v31, %v1470_v39  ;;  %v5501_v45 = vadd.f32 %v5172_v29, %v7339_v26  ;;  %v1192_v13 = vpop.f32.mrb[3].mxu0  ;;  %v1811_v14 = vpop.permute.xlu1 %1810 }
 0x1bb   : > { %v1493_v55 = vsel %vm606_vm5, %v1469_v54, 0.0  ;;  %v1547_v40 = vmul.f32 %v5500_v17, %v1469_v54  ;;  %v5502_v5 = vadd.f32 %v1192_v13, %v7345_v60  ;;  %v3392_v16 = vpop.permute.xlu0 %3391  ;;  %2813 = vperm.xlu1 %5657, %v2763_v21   ;;  %v2765_v17 = vld [vmem:[%s8523_s2 + $0x120] sm:$0xff] }
 0x1bc   : > { %v1572_v59 = vsel %vm606_vm5, %v1548_v46, 0.0  ;;  %v1495_v10 = vadd.f32 %v1494_v23, %v1493_v55  ;;  %v1472_v31 = vmul.f32 %v5501_v45, %v6774_v1  ;;  %1628 = vst.msk [vmem:[%s7410_s28 + $0x38] sm:$0xff] %vm606_vm5, %v5501_v45  ;;  %v7447_v26 = vsel %vm606_vm5, %v3463_v63, %v3392_v16  ;;  %2818 = vperm.xlu0 %5656, %v2764_v33   ;;  %v2766_v1 = vld [vmem:[%s8523_s2 + $0x128] sm:$0xff] }
 0x1bd   : > { %v1571_v38 = vsel %vm606_vm5, %v1547_v40, 0.0  ;;  %v1471_v60 = vmul.f32 %v5502_v5, %v6772_v18  ;;  %1627 = vst.msk [vmem:[%s7410_s28 + $0x30] sm:$0xff] %vm606_vm5, %v5502_v5  ;;  %v5175_v49 = vpop.f32.mrb[4].mxu0  ;;  %5349 = vmatmul.mubr.msk.f32.gmra.mrb[38].mxu0 %vm642_vm7, %v7447_v26  ;;  %v2032_v23 = vsel %vm575_vm6, %v6837_v15, %v1811_v14  ;;  %v2768_v14 = vld [vmem:[%s8523_s2 + $0x138] sm:$0xff] }
 0x1be   : > { %v1573_v39 = vadd.f32 %v1572_v59, %v1571_v38  ;;  %v1550_v16 = vmul.f32 %v5501_v45, %v1472_v31  ;;  %v5503_v21 = vadd.f32 %v5175_v49, %v7356_v7  ;;  %v1202_v54 = vpop.f32.mrb[5].mxu0  ;;  %v1813_v29 = vpop.permute.xlu1 %1812  ;;  %v2767_v59 = vld [vmem:[%s8523_s2 + $0x130] sm:$0xff]  ;;  %v1498_v45 = vsel %vm606_vm5, %v1472_v31, 0.0 }
 0x1bf   : > { %v1496_v18 = vsel %vm606_vm5, %v1471_v60, 0.0  ;;  %v1549_v33 = vmul.f32 %v5502_v5, %v1471_v60  ;;  %v5504_v46 = vadd.f32 %v1202_v54, %v7362_v9  ;;  %v1962_v13 = vpop.permute.xlu0 %1961  ;;  %2823 = vperm.xlu1 %5657, %v2765_v17  }
 0x1c0   : > { %v1497_v55 = vadd.f32 %v1496_v18, %v1495_v10  ;;  %v1474_v40 = vmul.f32 %v5503_v21, %v6789_v24  ;;  %1630 = vst.msk [vmem:[%s7410_s28 + $0x48] sm:$0xff] %vm606_vm5, %v5503_v21  ;;  %v7470_v7 = vsel %vm606_vm5, %v2032_v23, %v1962_v13  ;;  %2828 = vperm.xlu0 %5656, %v2766_v1   ;;  %v1576_v63 = vsel %vm606_vm5, %v1550_v16, 0.0 }
 0x1c1   : > { %v1574_v15 = vsel %vm606_vm5, %v1549_v33, 0.0  ;;  %v1473_v9 = vmul.f32 %v5504_v46, %v6787_v8  ;;  %1629 = vst.msk [vmem:[%s7410_s28 + $0x40] sm:$0xff] %vm606_vm5, %v5504_v46  ;;  %v2033_v24 = vsel %vm575_vm6, %v6876_v41, %v1813_v29  ;;  %v5178_v10 = vpop.f32.mrb[6].mxu0  ;;  %5231 = vmatprep.mubr.msk.f32.mxu1 %vm642_vm7, %v7470_v7 }
 0x1c2   : > { %v1575_v5 = vadd.f32 %v1574_v15, %v1573_v39  ;;  %v1552_v31 = vmul.f32 %v5503_v21, %v1474_v40  ;;  %v1499_v17 = vadd.f32 %v1498_v45, %v1497_v55  ;;  %v1212_v38 = vpop.f32.mrb[7].mxu0  ;;  %v1964_v8 = vpop.permute.xlu1 %1963  ;;  %v5505_v49 = vadd.f32 %v5178_v10, %v7374_v56  ;;  %v2769_v39 = vld [vmem:[%s8523_s2 + $0x140] sm:$0xff] }
 0x1c3   : > { %v1500_v60 = vsel %vm606_vm5, %v1473_v9, 0.0  ;;  %v1551_v41 = vmul.f32 %v5504_v46, %v1473_v9  ;;  %v5506_v1 = vadd.f32 %v1212_v38, %v7379_v47  ;;  %v3243_v54 = vpop.permute.xlu0 %3242  ;;  %2833 = vperm.xlu1 %5657, %v2767_v59   ;;  %v7492_v16 = vsel %vm606_vm5, %v2033_v24, %v1964_v8  ;;  %v2770_v46 = vld [vmem:[%s8523_s2 + $0x148] sm:$0xff]  ;;  %v2772_v8 = vld [vmem:[%s8523_s2 + $0x158] sm:$0xff] }
 0x1c4   : > { %v1501_v29 = vadd.f32 %v1500_v60, %v1499_v17  ;;  %v1577_v18 = vadd.f32 %v1576_v63, %v1575_v5  ;;  %2838 = vperm.xlu0 %5656, %v2768_v14   ;;  %v1502_v21 = vsel %vm606_vm5, %v1474_v40, 0.0  ;;  %v1476_v56 = vmul.f32 %v5505_v49, %v6802_v20  ;;  %1632 = vst.msk [vmem:[%s7410_s28 + $0x58] sm:$0xff] %vm606_vm5, %v5505_v49 }
 0x1c5   : > { %v1578_v33 = vsel %vm606_vm5, %v1551_v41, 0.0  ;;  %v1475_v47 = vmul.f32 %v5506_v1, %v6797_v43  ;;  %1631 = vst.msk [vmem:[%s7410_s28 + $0x50] sm:$0xff] %vm606_vm5, %v5506_v1  ;;  %v5181_v23 = vpop.f32.mrb[8].mxu0  ;;  %5232 = vmatmul.mubr.msk.f32.gmra.mrb[40].mxu1 %vm642_vm7, %v7492_v16  ;;  %v3464_v20 = vsel %vm575_vm6, %v6863_v25, %v3243_v54  ;;  %v1580_v45 = vsel %vm606_vm5, %v1552_v31, 0.0 }
 0x1c6   : > { %v1579_v13 = vadd.f32 %v1578_v33, %v1577_v18  ;;  %v1503_v55 = vadd.f32 %v1502_v21, %v1501_v29  ;;  %v5507_v40 = vadd.f32 %v5181_v23, %v7394_v44  ;;  %v1222_v59 = vpop.f32.mrb[9].mxu0  ;;  %v3245_v43 = vpop.permute.xlu1 %3244  ;;  %v1554_v15 = vmul.f32 %v5505_v49, %v1476_v56  ;;  %v2771_v44 = vld [vmem:[%s8523_s2 + $0x150] sm:$0xff]  ;;  %v4189_v23 = vld [vmem:[%s8523_s2 + $0x1a0] sm:$0xff] }
 0x1c7   : > { %v1504_v9 = vsel %vm606_vm5, %v1475_v47, 0.0  ;;  %v1553_v24 = vmul.f32 %v5506_v1, %v1475_v47  ;;  %v3394_v10 = vpop.permute.xlu0 %3393  ;;  %2843 = vperm.xlu1 %5657, %v2769_v39   ;;  %v5508_v25 = vadd.f32 %v1222_v59, %v7396_v27  ;;  %v3465_v47 = vsel %vm575_vm6, %v6904_v53, %v3245_v43  ;;  %v4190_v53 = vld [vmem:[%s8523_s2 + $0x1a8] sm:$0xff] }
 0x1c8   : > { %v1505_v14 = vadd.f32 %v1504_v9, %v1503_v55  ;;  %v1581_v63 = vadd.f32 %v1580_v45, %v1579_v13  ;;  %v1478_v5 = vmul.f32 %v5507_v40, %v6815_v51  ;;  %1634 = vst.msk [vmem:[%s7410_s28 + $0x68] sm:$0xff] %vm606_vm5, %v5507_v40  ;;  %2848 = vperm.xlu0 %5656, %v2770_v46   ;;  %v1506_v51 = vsel %vm606_vm5, %v1476_v56, 0.0 }
 0x1c9   : > { %v1582_v31 = vsel %vm606_vm5, %v1553_v24, 0.0  ;;  %v7524_v17 = vsel %vm606_vm5, %v3464_v20, %v3394_v10  ;;  %v5184_v38 = vpop.f32.mrb[10].mxu0  ;;  %v1584_v60 = vsel %vm606_vm5, %v1554_v15, 0.0  ;;  %v1477_v41 = vmul.f32 %v5508_v25, %v6813_v0  ;;  %1633 = vst.msk [vmem:[%s7410_s28 + $0x60] sm:$0xff] %vm606_vm5, %v5508_v25  ;;  %v5661_v24 = vld [vmem:[%s5735_s20 + $0x16f] sm:$0xff] }
 0x1ca   : > { %v1583_v27 = vadd.f32 %v1582_v31, %v1581_v63  ;;  %v1232_v49 = vpop.f32.mrb[11].mxu0  ;;  %5351 = vmatprep.mubr.msk.f32.mxu0 %vm642_vm7, %v7524_v17  ;;  %v1815_v1 = vpop.permute.xlu1 %1814  ;;  %v1556_v54 = vmul.f32 %v5507_v40, %v1478_v5  ;;  %v1507_v29 = vadd.f32 %v1506_v51, %v1505_v14  ;;  %v5509_v18 = vadd.f32 %v5184_v38, %v7415_v58  ;;  %v4191_v31 = vld [vmem:[%s8523_s2 + $0x1b0] sm:$0xff] }
 0x1cb   : > { %v5510_v39 = vadd.f32 %v1232_v49, %v7423_v37  ;;  %v3396_v21 = vpop.permute.xlu0 %3395  ;;  %2853 = vperm.xlu1 %5657, %v2771_v44   ;;  %v1508_v33 = vsel %vm606_vm5, %v1477_v41, 0.0  ;;  %v1555_v0 = vmul.f32 %v5508_v25, %v1477_v41  ;;  %v8641_v37 = vld [vmem:[#allocation2_spill] sm:$0xff]  ;;  %v1510_v40 = vsel %vm606_vm5, %v1478_v5, 0.0  ;;  %v5662_v49 = vld [vmem:[%s5735_s20 + $0x177] sm:$0xff] }
 0x1cc   : > { %v1585_v56 = vadd.f32 %v1584_v60, %v1583_v27  ;;  %2858 = vperm.xlu0 %5656, %v2772_v8   ;;  %v1509_v46 = vadd.f32 %v1508_v33, %v1507_v29  ;;  %v1480_v58 = vmul.f32 %v5509_v18, %v6828_v22  ;;  %1636 = vst.msk [vmem:[%s7410_s28 + $0x78] sm:$0xff] %vm606_vm5, %v5509_v18  ;;  %v1588_v45 = vsel %vm606_vm5, %v1556_v54, 0.0  ;;  %v4192_v60 = vld [vmem:[%s8523_s2 + $0x1b8] sm:$0xff] }
 0x1cd   : > { %v1479_v13 = vmul.f32 %v5510_v39, %v8641_v37  ;;  %1635 = vst.msk [vmem:[%s7410_s28 + $0x70] sm:$0xff] %vm606_vm5, %v5510_v39  ;;  %v7551_v55 = vsel %vm606_vm5, %v3465_v47, %v3396_v21  ;;  %v5187_v20 = vpop.f32.mrb[12].mxu0  ;;  %v1586_v59 = vsel %vm606_vm5, %v1555_v0, 0.0  ;;  %v2034_v10 = vsel %vm575_vm6, %v5661_v24, %v1815_v1 }
 0x1ce   : > { %v1242_v43 = vpop.f32.mrb[13].mxu0  ;;  %5352 = vmatmul.mubr.msk.f32.gmra.mrb[40].mxu0 %vm642_vm7, %v7551_v55  ;;  %v1817_v22 = vpop.permute.xlu1 %1816  ;;  %v1587_v15 = vadd.f32 %v1586_v59, %v1585_v56  ;;  %v1511_v9 = vadd.f32 %v1510_v40, %v1509_v46  ;;  %v1558_v63 = vmul.f32 %v5509_v18, %v1480_v58  ;;  %v1514_v27 = vsel %vm606_vm5, %v1480_v58, 0.0  ;;  %v4193_v46 = vld [vmem:[%s8523_s2 + $0x1c0] sm:$0xff]  ;;  %v5663_v58 = vld [vmem:[%s5735_s20 + $0x22f] sm:$0xff] }
 0x1cf   : > { %v1966_v14 = vpop.permute.xlu0 %1965  ;;  %4215 = vperm.xlu1 %5657, %v4189_v23   ;;  %v1512_v5 = vsel %vm606_vm5, %v1479_v13, 0.0  ;;  %v1557_v25 = vmul.f32 %v5510_v39, %v1479_v13  ;;  %v2035_v1 = vsel %vm575_vm6, %v5662_v49, %v1817_v22  ;;  %v8642_v59 = vld [vmem:[#allocation4_spill] sm:$0xff]  ;;  %v8644_v49 = vld [vmem:[#allocation3_spill] sm:$0xff] }
 0x1d0   : > { %v7565_v44 = vsel %vm606_vm5, %v2034_v10, %v1966_v14  ;;  %4220 = vperm.xlu0 %5656, %v4190_v53   ;;  %v1513_v38 = vadd.f32 %v1512_v5, %v1511_v9  ;;  %v1589_v8 = vadd.f32 %v1588_v45, %v1587_v15  ;;  %v1592_v56 = vsel %vm606_vm5, %v1558_v63, 0.0  ;;  %v8643_v9 = vld [vmem:[#allocation13_spill] sm:$0xff] }
 0x1d1   : > { %v5190_v51 = vpop.f32.mrb[14].mxu0  ;;  %5234 = vmatprep.mubr.msk.f32.mxu1 %vm642_vm7, %v7565_v44  ;;  %v1590_v41 = vsel %vm606_vm5, %v1557_v25, 0.0 }
 0x1d2   : > { %v1252_v54 = vpop.f32.mrb[15].mxu0  ;;  %v1968_v29 = vpop.permute.xlu1 %1967  ;;  %v1591_v18 = vadd.f32 %v1590_v41, %v1589_v8  ;;  %v1515_v0 = vadd.f32 %v1514_v27, %v1513_v38 }
 0x1d3   : > { %v7580_v39 = vsel %vm606_vm5, %v2035_v1, %v1968_v29  ;;  %v5147_v21 = vpop.f32.mrb[12].mxu1  ;;  %v3247_v33 = vpop.permute.xlu0 %3246  ;;  %4225 = vperm.xlu1 %5657, %v4191_v31   ;;  %v4195_v31 = vld [vmem:[%s8523_s2 + $0x1d0] sm:$0xff] }
 0x1d4   : > { %v5511_v47 = vadd.f32 %v5187_v20, %v5147_v21  ;;  %v1042_v23 = vpop.f32.mrb[13].mxu1  ;;  %4230 = vperm.xlu0 %5656, %v4192_v60   ;;  %5235 = vmatmul.mubr.msk.f32.gmra.mrb[42].mxu1 %vm642_vm7, %v7580_v39  ;;  %v3466_v37 = vsel %vm575_vm6, %v5663_v58, %v3247_v33  ;;  %v1593_v53 = vadd.f32 %v1592_v56, %v1591_v18  ;;  %v4194_v20 = vld [vmem:[%s8523_s2 + $0x1c8] sm:$0xff] }
 0x1d5   : > { %v5512_v13 = vadd.f32 %v1242_v43, %v1042_v23  ;;  %v5193_v40 = vpop.f32.mrb[16].mxu0 }
 0x1d6   : > { %v1482_v22 = vmul.f32 %v5511_v47, %v8642_v59  ;;  %1638 = vst.msk [vmem:[%s7410_s28 + $0x88] sm:$0xff] %vm606_vm5, %v5511_v47  ;;  %v1262_v45 = vpop.f32.mrb[17].mxu0  ;;  %v3249_v15 = vpop.permute.xlu1 %3248 }
 0x1d7   : > { %v1481_v24 = vmul.f32 %v5512_v13, %v8643_v9  ;;  %1637 = vst.msk [vmem:[%s7410_s28 + $0x80] sm:$0xff] %vm606_vm5, %v5512_v13  ;;  %v5150_v10 = vpop.f32.mrb[14].mxu1  ;;  %v3398_v14 = vpop.permute.xlu0 %3397  ;;  %4235 = vperm.xlu1 %5657, %v4193_v46  }
 0x1d8   : > { %v1560_v43 = vmul.f32 %v5511_v47, %v1482_v22  ;;  %v5513_v63 = vadd.f32 %v5190_v51, %v5150_v10  ;;  %v7600_v5 = vsel %vm606_vm5, %v3466_v37, %v3398_v14  ;;  %v1052_v25 = vpop.f32.mrb[15].mxu1  ;;  %4240 = vperm.xlu0 %5656, %v4194_v20   ;;  %v4196_v51 = vld [vmem:[%s8523_s2 + $0x1d8] sm:$0xff]  ;;  %v1518_v21 = vsel %vm606_vm5, %v1482_v22, 0.0  ;;  %v8645_v47 = vld [vmem:[#allocation14_spill] sm:$0xff] }
 0x1d9   : > { %v1516_v38 = vsel %vm606_vm5, %v1481_v24, 0.0  ;;  %v1559_v8 = vmul.f32 %v5512_v13, %v1481_v24  ;;  %v5514_v60 = vadd.f32 %v1252_v54, %v1052_v25  ;;  %v5196_v27 = vpop.f32.mrb[18].mxu0  ;;  %5354 = vmatprep.mubr.msk.f32.mxu0 %vm642_vm7, %v7600_v5  ;;  %v5664_v54 = vld [vmem:[%s5735_s20 + $0x237] sm:$0xff]  ;;  %v4197_v22 = vld [vmem:[%s8523_s2 + $0x1e0] sm:$0xff] }
 0x1da   : > { %v1517_v41 = vadd.f32 %v1516_v38, %v1515_v0  ;;  %v1484_v1 = vmul.f32 %v5513_v63, %v8644_v49  ;;  %1640 = vst.msk [vmem:[%s7410_s28 + $0x98] sm:$0xff] %vm606_vm5, %v5513_v63  ;;  %v1272_v29 = vpop.f32.mrb[19].mxu0  ;;  %v1819_v18 = vpop.permute.xlu1 %1818  ;;  %v3467_v56 = vsel %vm575_vm6, %v5664_v54, %v3249_v15  ;;  %v1596_v0 = vsel %vm606_vm5, %v1560_v43, 0.0  ;;  %v5665_v25 = vld [vmem:[%s5735_s20 + $0x17f] sm:$0xff]  ;;  %v8647_v54 = vld [vmem:[#allocation15_spill] sm:$0xff] }
 0x1db   : > { %v1594_v33 = vsel %vm606_vm5, %v1559_v8, 0.0  ;;  %v1483_v23 = vmul.f32 %v5514_v60, %v8645_v47  ;;  %1639 = vst.msk [vmem:[%s7410_s28 + $0x90] sm:$0xff] %vm606_vm5, %v5514_v60  ;;  %v5153_v46 = vpop.f32.mrb[16].mxu1  ;;  %v3400_v58 = vpop.permute.xlu0 %3399  ;;  %4245 = vperm.xlu1 %5657, %v4195_v31   ;;  %v2036_v31 = vsel %vm575_vm6, %v5665_v25, %v1819_v18  ;;  %v8646_v49 = vld [vmem:[#allocation6_spill] sm:$0xff] }
 0x1dc   : > { %v1595_v37 = vadd.f32 %v1594_v33, %v1593_v53  ;;  %v1562_v13 = vmul.f32 %v5513_v63, %v1484_v1  ;;  %v1519_v20 = vadd.f32 %v1518_v21, %v1517_v41  ;;  %v1062_v59 = vpop.f32.mrb[17].mxu1  ;;  %4250 = vperm.xlu0 %5656, %v4196_v51   ;;  %v5515_v24 = vadd.f32 %v5193_v40, %v5153_v46  ;;  %v4198_v53 = vld [vmem:[%s8523_s2 + $0x1e8] sm:$0xff]  ;;  %v4199_v46 = vld [vmem:[%s8523_s2 + $0x1f0] sm:$0xff] }
 0x1dd   : > { %v1520_v15 = vsel %vm606_vm5, %v1483_v23, 0.0  ;;  %v1561_v9 = vmul.f32 %v5514_v60, %v1483_v23  ;;  %v7627_v10 = vsel %vm606_vm5, %v3467_v56, %v3400_v58  ;;  %v5199_v14 = vpop.f32.mrb[20].mxu0  ;;  %v5516_v38 = vadd.f32 %v1262_v45, %v1062_v59 }
 0x1de   : > { %v1521_v43 = vadd.f32 %v1520_v15, %v1519_v20  ;;  %v1597_v63 = vadd.f32 %v1596_v0, %v1595_v37  ;;  %v1282_v8 = vpop.f32.mrb[21].mxu0  ;;  %5355 = vmatmul.mubr.msk.f32.gmra.mrb[42].mxu0 %vm642_vm7, %v7627_v10  ;;  %v1821_v40 = vpop.permute.xlu1 %1820  ;;  %v1522_v60 = vsel %vm606_vm5, %v1484_v1, 0.0  ;;  %v1600_v51 = vsel %vm606_vm5, %v1562_v13, 0.0  ;;  %1642 = vst.msk [vmem:[%s7410_s28 + $0xa8] sm:$0xff] %vm606_vm5, %v5515_v24  ;;  %v7649_v0 = vld [vmem:[%s5735_s20 + $0x187] sm:$0xff] }
 0x1df   : > { %v1598_v41 = vsel %vm606_vm5, %v1561_v9, 0.0  ;;  %v1486_v21 = vmul.f32 %v5515_v24, %v8646_v49  ;;  %v5156_v33 = vpop.f32.mrb[18].mxu1  ;;  %v1970_v18 = vpop.permute.xlu0 %1969  ;;  %4255 = vperm.xlu1 %5657, %v4197_v22   ;;  %v1485_v56 = vmul.f32 %v5516_v38, %v8647_v54  ;;  %1641 = vst.msk [vmem:[%s7410_s28 + $0xa0] sm:$0xff] %vm606_vm5, %v5516_v38  ;;  %v2037_v37 = vsel %vm575_vm6, %v7649_v0, %v1821_v40 }
 0x1e0   : > { %v1599_v45 = vadd.f32 %v1598_v41, %v1597_v63  ;;  %v1523_v47 = vadd.f32 %v1522_v60, %v1521_v43  ;;  %v5517_v1 = vadd.f32 %v5196_v27, %v5156_v33  ;;  %v1072_v23 = vpop.f32.mrb[19].mxu1  ;;  %4260 = vperm.xlu0 %5656, %v4198_v53   ;;  %v7654_v13 = vsel %vm606_vm5, %v2036_v31, %v1970_v18  ;;  %v4200_v27 = vld [vmem:[%s8523_s2 + $0x1f8] sm:$0xff] }
 0x1e1   : > { %v1564_v58 = vmul.f32 %v5515_v24, %v1486_v21  ;;  %v5518_v20 = vadd.f32 %v1272_v29, %v1072_v23  ;;  %v5202_v59 = vpop.f32.mrb[22].mxu0  ;;  %v1524_v22 = vsel %vm606_vm5, %v1485_v56, 0.0  ;;  %v1563_v15 = vmul.f32 %v5516_v38, %v1485_v56  ;;  %v8648_v24 = vld [vmem:[#allocation5_spill] sm:$0xff]  ;;  %5237 = vmatprep.mubr.msk.f32.mxu1 %vm642_vm7, %v7654_v13  ;;  %v8649_v29 = vld [vmem:[#allocation16_spill] sm:$0xff]  ;;  %v4202_v23 = vld [vmem:[%s8523_s2 + $0x208] sm:$0xff] }
 0x1e2   : > { %v1601_v9 = vadd.f32 %v1600_v51, %v1599_v45  ;;  %v1488_v53 = vmul.f32 %v5517_v1, %v8648_v24  ;;  %1644 = vst.msk [vmem:[%s7410_s28 + $0xb8] sm:$0xff] %vm606_vm5, %v5517_v1  ;;  %v1292_v43 = vpop.f32.mrb[23].mxu0  ;;  %v1972_v63 = vpop.permute.xlu1 %1971  ;;  %v1525_v25 = vadd.f32 %v1524_v22, %v1523_v47  ;;  %v1526_v51 = vsel %vm606_vm5, %v1486_v21, 0.0  ;;  %v4201_v45 = vld [vmem:[%s8523_s2 + $0x200] sm:$0xff] }
 0x1e3   : > { %v1487_v31 = vmul.f32 %v5518_v20, %v8649_v29  ;;  %1643 = vst.msk [vmem:[%s7410_s28 + $0xb0] sm:$0xff] %vm606_vm5, %v5518_v20  ;;  %v7669_v40 = vsel %vm606_vm5, %v2037_v37, %v1972_v63  ;;  %v5159_v60 = vpop.f32.mrb[20].mxu1  ;;  %v3251_v38 = vpop.permute.xlu0 %3250  ;;  %4265 = vperm.xlu1 %5657, %v4199_v46   ;;  %v1604_v41 = vsel %vm606_vm5, %v1564_v58, 0.0  ;;  %v1602_v49 = vsel %vm606_vm5, %v1563_v15, 0.0  ;;  %v8650_v46 = vld [vmem:[#allocation7_spill] sm:$0xff]  ;;  %v5667_v37 = vld [vmem:[%s5735_s20 + $0x23f] sm:$0xff] }
 0x1e4   : > { %v5519_v33 = vadd.f32 %v5199_v14, %v5159_v60  ;;  %v1082_v18 = vpop.f32.mrb[21].mxu1  ;;  %4270 = vperm.xlu0 %5656, %v4200_v27   ;;  %5238 = vmatmul.mubr.msk.f32.gmra.mrb[44].mxu1 %vm642_vm7, %v7669_v40  ;;  %v1603_v54 = vadd.f32 %v1602_v49, %v1601_v9  ;;  %v1527_v56 = vadd.f32 %v1526_v51, %v1525_v25  ;;  %v1530_v29 = vsel %vm606_vm5, %v1488_v53, 0.0 }
 0x1e5   : > { %v1528_v47 = vsel %vm606_vm5, %v1487_v31, 0.0  ;;  %v1565_v21 = vmul.f32 %v5518_v20, %v1487_v31  ;;  %v1566_v14 = vmul.f32 %v5517_v1, %v1488_v53  ;;  %v3468_v27 = vsel %vm575_vm6, %v5667_v37, %v3251_v38  ;;  %v8651_v31 = vld [vmem:[#allocation19_spill] sm:$0xff]  ;;  %v8652_v37 = vld [vmem:[#allocation18_spill] sm:$0xff] }
 0x1e6   : > { %v1490_v58 = vmul.f32 %v5519_v33, %v8650_v46  ;;  %1646 = vst.msk [vmem:[%s7410_s28 + $0xc8] sm:$0xff] %vm606_vm5, %v5519_v33  ;;  %v5520_v22 = vadd.f32 %v1282_v8, %v1082_v18  ;;  %v3253_v15 = vpop.permute.xlu1 %3252  ;;  %v1529_v9 = vadd.f32 %v1528_v47, %v1527_v56  ;;  %v1605_v24 = vadd.f32 %v1604_v41, %v1603_v54  ;;  %v4203_v8 = vld [vmem:[%s8523_s2 + $0x210] sm:$0xff]  ;;  %v2773_v18 = vld [vmem:[%s8523_s2 + $0x160] sm:$0xff] }
 0x1e7   : > { %v1606_v63 = vsel %vm606_vm5, %v1565_v21, 0.0  ;;  %v5162_v20 = vpop.f32.mrb[22].mxu1  ;;  %v3402_v25 = vpop.permute.xlu0 %3401  ;;  %4275 = vperm.xlu1 %5657, %v4201_v45  }
 0x1e8   : > { %v1489_v1 = vmul.f32 %v5520_v22, %v8651_v31  ;;  %1645 = vst.msk [vmem:[%s7410_s28 + $0xc0] sm:$0xff] %vm606_vm5, %v5520_v22  ;;  %v7693_v60 = vadd.f32 %v5202_v59, %v5162_v20  ;;  %v1092_v51 = vpop.f32.mrb[23].mxu1  ;;  %4280 = vperm.xlu0 %5656, %v4202_v23   ;;  %v1607_v38 = vadd.f32 %v1606_v63, %v1605_v24  ;;  %v1608_v59 = vsel %vm606_vm5, %v1566_v14, 0.0  ;;  %v4204_v24 = vld [vmem:[%s8523_s2 + $0x218] sm:$0xff]  ;;  %v2774_v20 = vld [vmem:[%s8523_s2 + $0x168] sm:$0xff] }
 0x1e9   : > { %v1531_v41 = vadd.f32 %v1530_v29, %v1529_v9  ;;  %v7699_v49 = vsel %vm606_vm5, %v3468_v27, %v3402_v25  ;;  %v5522_v53 = vadd.f32 %v1292_v43, %v1092_v51  ;;  %v1568_v45 = vmul.f32 %v5519_v33, %v1490_v58  ;;  %v5668_v43 = vld [vmem:[%s5735_s20 + $0x247] sm:$0xff]  ;;  %v7733_v51 = vld [vmem:[%s5735_s20 + $0x18f] sm:$0xff] }
 0x1ea   : > { %v1532_v54 = vsel %vm606_vm5, %v1489_v1, 0.0  ;;  %v1567_v56 = vmul.f32 %v5520_v22, %v1489_v1  ;;  %1648 = vst.msk [vmem:[%s7410_s28 + $0xd8] sm:$0xff] %vm606_vm5, %v7693_v60  ;;  %5357 = vmatprep.mubr.msk.f32.mxu0 %vm642_vm7, %v7699_v49  ;;  %v1823_v47 = vpop.permute.xlu1 %1822  ;;  %v1609_v23 = vadd.f32 %v1608_v59, %v1607_v38  ;;  %v3469_v46 = vsel %vm575_vm6, %v5668_v43, %v3253_v15  ;;  %v4205_v59 = vld [vmem:[%s8523_s2 + $0x220] sm:$0xff] }
 0x1eb   : > { %v1533_v21 = vadd.f32 %v1532_v54, %v1531_v41  ;;  %v1491_v27 = vmul.f32 %v5522_v53, %v8652_v37  ;;  %1647 = vst.msk [vmem:[%s7410_s28 + $0xd0] sm:$0xff] %vm606_vm5, %v5522_v53  ;;  %v3404_v33 = vpop.permute.xlu0 %3403  ;;  %4285 = vperm.xlu1 %5657, %v4203_v8   ;;  %v1534_v14 = vsel %vm606_vm5, %v1490_v58, 0.0  ;;  %v1612_v29 = vsel %vm606_vm5, %v1568_v45, 0.0  ;;  %v2775_v45 = vld [vmem:[%s8523_s2 + $0x170] sm:$0xff] }
 0x1ec   : > { %v1610_v22 = vsel %vm606_vm5, %v1567_v56, 0.0  ;;  %v7719_v9 = vsel %vm606_vm5, %v3469_v46, %v3404_v33  ;;  %2863 = vperm.xlu0 %5656, %v2773_v18   ;;  %v2038_v8 = vsel %vm575_vm6, %v7733_v51, %v1823_v47  ;;  %v7753_v56 = vld [vmem:[%s5735_s20 + $0x197] sm:$0xff]  ;;  %v4206_v46 = vld [vmem:[%s8523_s2 + $0x228] sm:$0xff] }
 0x1ed   : > { %v1611_v15 = vadd.f32 %v1610_v22, %v1609_v23  ;;  %v1569_v63 = vmul.f32 %v5522_v53, %v1491_v27  ;;  %5358 = vmatmul.mubr.msk.f32.gmra.mrb[44].mxu0 %vm642_vm7, %v7719_v9  ;;  %v1535_v58 = vadd.f32 %v1534_v14, %v1533_v21  ;;  %v1536_v25 = vsel %vm606_vm5, %v1491_v27, 0.0  ;;  %v5671_v37 = vld [vmem:[%s5735_s20 + $0x24f] sm:$0xff]  ;;  %v2776_v33 = vld [vmem:[%s8523_s2 + $0x178] sm:$0xff] }
 0x1ee   : > { %v1825_v31 = vpop.permute.xlu1 %1824 }
 0x1ef   : > { %v1614_v1 = vsel %vm606_vm5, %v1569_v63, 0.0  ;;  %v1974_v38 = vpop.permute.xlu0 %1973  ;;  %4290 = vperm.xlu1 %5657, %v4204_v24   ;;  %v7737_v41 = vadd.f32 %v1536_v25, %v1535_v58  ;;  %v1613_v53 = vadd.f32 %v1612_v29, %v1611_v15  ;;  %v2039_v47 = vsel %vm575_vm6, %v7753_v56, %v1825_v31  ;;  %v4207_v15 = vld [vmem:[%s8523_s2 + $0x230] sm:$0xff]  ;;  %v2777_v63 = vld [vmem:[%s8523_s2 + $0x180] sm:$0xff] }
 0x1f0   : > { %v7740_v18 = vsel %vm606_vm5, %v2038_v8, %v1974_v38  ;;  %2868 = vperm.xlu0 %5656, %v2774_v20   ;;  %v5672_v58 = vld [vmem:[%s5735_s20 + $0x257] sm:$0xff]  ;;  %v2778_v8 = vld [vmem:[%s8523_s2 + $0x188] sm:$0xff] }
 0x1f1   : > { %5240 = vmatprep.mubr.msk.f32.mxu1 %vm642_vm7, %v7740_v18  ;;  %v7750_v54 = vadd.f32 %v1614_v1, %v1613_v53  ;;  %v4208_v1 = vld [vmem:[%s8523_s2 + $0x238] sm:$0xff]  ;;  %v5673_v53 = vld [vmem:[%s5735_s20 + $0xc7] sm:$0xff] }
 0x1f2   : > { %v1976_v21 = vpop.permute.xlu1 %1975 }
 0x1f3   : > { %v7758_v23 = vsel %vm606_vm5, %v2039_v47, %v1976_v21  ;;  %v3255_v43 = vpop.permute.xlu0 %3254  ;;  %4295 = vperm.xlu1 %5657, %v4205_v59   ;;  %v4209_v21 = vld [vmem:[%s8523_s2 + $0x240] sm:$0xff] }
 0x1f4   : > { %2873 = vperm.xlu0 %5656, %v2775_v45   ;;  %5241 = vmatmul.mubr.msk.f32.gmra.mrb[46].mxu1 %vm642_vm7, %v7758_v23  ;;  %v3470_v27 = vsel %vm575_vm6, %v5671_v37, %v3255_v43  ;;  %v2779_v43 = vld [vmem:[%s8523_s2 + $0x190] sm:$0xff] }
 0x1f6   : > { %v3257_v14 = vpop.permute.xlu1 %3256 }
 0x1f7   : > { %v3406_v22 = vpop.permute.xlu0 %3405  ;;  %4300 = vperm.xlu1 %5657, %v4206_v46   ;;  %v3471_v25 = vsel %vm575_vm6, %v5672_v58, %v3257_v14  ;;  %v5674_v46 = vld [vmem:[%s5735_s20 + $0xcf] sm:$0xff] }
 0x1f8   : > { %v7771_v24 = vsel %vm606_vm5, %v3470_v27, %v3406_v22  ;;  %2878 = vperm.xlu0 %5656, %v2776_v33   ;;  %v4210_v22 = vld [vmem:[%s8523_s2 + $0x248] sm:$0xff] }
 0x1f9   : > { %5360 = vmatprep.mubr.msk.f32.mxu0 %vm642_vm7, %v7771_v24 }
 0x1fa   : > { %v1773_v20 = vpop.permute.xlu1 %1772 }
 0x1fb   : > { %v3408_v29 = vpop.permute.xlu0 %3407  ;;  %4305 = vperm.xlu1 %5657, %v4207_v15   ;;  %v2013_v59 = vsel %vm575_vm6, %v5673_v53, %v1773_v20  ;;  %v5675_v53 = vld [vmem:[%s5735_s20 + $0xd7] sm:$0xff] }
 0x1fc   : > { %v7784_v31 = vsel %vm606_vm5, %v3471_v25, %v3408_v29  ;;  %2883 = vperm.xlu0 %5656, %v2777_v63   ;;  %v2780_v63 = vld [vmem:[%s8523_s2 + $0x198] sm:$0xff]  ;;  %v4211_v29 = vld [vmem:[%s8523_s2 + $0x250] sm:$0xff] }
 0x1fd   : > { %5361 = vmatmul.mubr.msk.f32.gmra.mrb[46].mxu0 %vm642_vm7, %v7784_v31 }
 0x1fe   : > { %v1775_v38 = vpop.permute.xlu1 %1774 }
 0x1ff   : > { %v1924_v45 = vpop.permute.xlu0 %1923  ;;  %4310 = vperm.xlu1 %5657, %v4208_v1   ;;  %v2014_v37 = vsel %vm575_vm6, %v5674_v46, %v1775_v38 }
 0x200   : > { %v2043_v47 = vsel %vm606_vm5, %v2013_v59, %v1924_v45  ;;  %2888 = vperm.xlu0 %5656, %v2778_v8  }
 0x201   : > { %5247 = vmatprep.mubr.msk.f32.mxu1 %vm642_vm7, %v2043_v47 }
 0x202   : > { %v1926_v27 = vpop.permute.xlu1 %1925 }
 0x203   : > { %v2044_v33 = vsel %vm606_vm5, %v2014_v37, %v1926_v27  ;;  %v3205_v14 = vpop.permute.xlu0 %3204  ;;  %4315 = vperm.xlu1 %5657, %v4209_v21   ;;  %v8654_v37 = vld [vmem:[#allocation21_spill] sm:$0xff] }
 0x204   : > { %2893 = vperm.xlu0 %5656, %v2779_v43   ;;  %5248 = vmatmul.mubr.msk.f32.vlgmr.msra.gmra.mrb[24].mxu1 %vm642_vm7, %v2044_v33  ;;  %v3445_v15 = vsel %vm575_vm6, %v7649_v0, %v3205_v14  ;;  %v4212_v0 = vld [vmem:[%s8523_s2 + $0x258] sm:$0xff]  ;;  %v8653_v43 = vld [vmem:[#allocation8_spill] sm:$0xff]  ;;  %v8657_v14 = vld [vmem:[#allocation11_spill] sm:$0xff] }
 0x205   : > { %5478 = vmatpush3.bf16.msk.msra.mxu1 %vm5912_vm3, %v7252_v28 }
 0x206   : > { %v3207_v20 = vpop.permute.xlu1 %3206 }
 0x207   : > { %v3356_v58 = vpop.permute.xlu0 %3355  ;;  %4320 = vperm.xlu1 %5657, %v4210_v22   ;;  %v3446_v28 = vsel %vm575_vm6, %v7733_v51, %v3207_v20  ;;  %v8658_v22 = vld [vmem:[#allocation22_spill] sm:$0xff]  ;;  %v8661_v20 = vld [vmem:[#allocation23_spill] sm:$0xff] }
 0x208   : > { %v3475_v25 = vsel %vm606_vm5, %v3445_v15, %v3356_v58  ;;  %2898 = vperm.xlu0 %5656, %v2780_v63   ;;  %v8660_v63 = vld [vmem:[#allocation25_spill] sm:$0xff]  ;;  %v8662_v58 = vld [vmem:[#allocation26_spill] sm:$0xff] }
 0x209   : > { %5367 = vmatprep.mubr.msk.f32.mxu0 %vm642_vm7, %v3475_v25  ;;  %v8663_v25 = vld [vmem:[#allocation24_spill] sm:$0xff] }
 0x20a   : > { %v1777_v1 = vpop.permute.xlu1 %1776 }
 0x20b   : > { %v3358_v8 = vpop.permute.xlu0 %3357  ;;  %4325 = vperm.xlu1 %5657, %v4211_v29   ;;  %v2015_v59 = vsel %vm575_vm6, %v5675_v53, %v1777_v1 }
 0x20c   : > { %v3476_v38 = vsel %vm606_vm5, %v3446_v28, %v3358_v8  ;;  %4330 = vperm.xlu0 %5656, %v4212_v0  }
 0x20d   : > { %5368 = vmatmul.mubr.msk.f32.vlgmr.msra.gmra.mrb[24].mxu0 %vm642_vm7, %v3476_v38 }
 0x20e   : > { %v1928_v45 = vpop.permute.xlu1 %1927  ;;  %5496 = vmatpush3.bf16.msk.msra.mxu0 %vm5912_vm3, %v7264_v57  ;;  %v8656_v57 = vld [vmem:[#allocation20_spill] sm:$0xff] }
 0x20f   : > { %v2045_v47 = vsel %vm606_vm5, %v2015_v59, %v1928_v45  ;;  %v3209_v21 = vpop.permute.xlu0 %3208  ;;  %v8664_v59 = vld [vmem:[#allocation12_spill] sm:$0xff]  ;;  %v8665_v45 = vld [vmem:[#allocation10_spill] sm:$0xff] }
 0x210   : > { %v3447_v51 = vsel %vm575_vm6, %v7753_v56, %v3209_v21  ;;  %5250 = vmatprep.mubr.msk.f32.mxu1 %vm642_vm7, %v2045_v47 }
 0x211   : > { %5251 = vmatmul.mubr.msk.f32.gmra.mrb[26].mxu1 %vm642_vm7, %v8653_v43  ;;  %v8666_v43 = vld [vmem:[#allocation27_spill] sm:$0xff] }
 0x212   : > { %v3360_v46 = vpop.permute.xlu1 %3359  ;;  %5253 = vmatprep.mubr.msk.f32.mxu1 %vm642_vm7, %v8654_v37 }
 0x213   : > { %v3477_v27 = vsel %vm606_vm5, %v3447_v51, %v3360_v46  ;;  %v7845_v33 = vpop.permute.xlu0 %1826 }
 0x214   : > { %5370 = vmatprep.mubr.msk.f32.mxu0 %vm642_vm7, %v3477_v27 }
 0x215   : > { %5254 = vmatmul.mubr.msk.f32.gmra.mrb[28].mxu1 %vm642_vm7, %v6976_v48  ;;  %5371 = vmatmul.mubr.msk.f32.gmra.mrb[26].mxu0 %vm642_vm7, %v8655_v36  ;;  %v8659_v48 = vld [vmem:[#allocation17_spill] sm:$0xff] }
 0x216   : > { %5256 = vmatprep.mubr.msk.f32.mxu1 %vm642_vm7, %v6988_v4  ;;  %5373 = vmatprep.mubr.msk.f32.mxu0 %vm642_vm7, %v8656_v57 }
 0x217   : > { %v7856_v56 = vpop.permute.xlu0 %3258 }
 0x219   : > { %5257 = vmatmul.mubr.msk.f32.gmra.mrb[30].mxu1 %vm642_vm7, %v7035_v34  ;;  %5374 = vmatmul.mubr.msk.f32.gmra.mrb[28].mxu0 %vm642_vm7, %v8657_v14 }
 0x21a   : > { %5259 = vmatprep.mubr.msk.f32.mxu1 %vm642_vm7, %v8658_v22  ;;  %5376 = vmatprep.mubr.msk.f32.mxu0 %vm642_vm7, %v8659_v48 }
 0x21b   : > { %v7866_v15 = vpop.permute.xlu0 %3409 }
 0x21d   : > { %5260 = vmatmul.mubr.msk.f32.gmra.mrb[32].mxu1 %vm642_vm7, %v8660_v63  ;;  %5377 = vmatmul.mubr.msk.f32.gmra.mrb[30].mxu0 %vm642_vm7, %v8661_v20 }
 0x21e   : > { %5262 = vmatprep.mubr.msk.f32.mxu1 %vm642_vm7, %v8662_v58  ;;  %5379 = vmatprep.mubr.msk.f32.mxu0 %vm642_vm7, %v8663_v25 }
 0x21f   : > { %v7876_v29 = vpop.permute.xlu0 %1979 }
 0x221   : > { %5263 = vmatmul.mubr.msk.f32.gmra.mrb[34].mxu1 %vm642_vm7, %v7182_v19  ;;  %5380 = vmatmul.mubr.msk.f32.gmra.mrb[32].mxu0 %vm642_vm7, %v7158_v42 }
 0x222   : > { %5265 = vmatprep.mubr.msk.f32.mxu1 %vm642_vm7, %v7191_v62  ;;  %5382 = vmatprep.mubr.msk.f32.mxu0 %vm642_vm7, %v7171_v30 }
 0x223   : > { %v7886_v0 = vpop.permute.xlu0 %3260 }
 0x225   : > { %5266 = vmatmul.mubr.msk.f32.gmra.mrb[36].mxu1 %vm642_vm7, %v7244_v3  ;;  %5383 = vmatmul.mubr.msk.f32.gmra.mrb[34].mxu0 %vm642_vm7, %v7203_v12 }
 0x226   : > { %5268 = vmatprep.mubr.msk.f32.mxu1 %vm642_vm7, %v7272_v52  ;;  %5385 = vmatprep.mubr.msk.f32.mxu0 %vm642_vm7, %v7218_v6 }
 0x227   : > { %v7896_v1 = vpop.permute.xlu0 %3411 }
 0x229   : > { %5269 = vmatmul.mubr.msk.f32.gmra.mrb[38].mxu1 %vm642_vm7, %v7319_v2  ;;  %5386 = vmatmul.mubr.msk.f32.gmra.mrb[36].mxu0 %vm642_vm7, %v7293_v35 }
 0x22a   : > { %5271 = vmatprep.mubr.msk.f32.mxu1 %vm642_vm7, %v7329_v32  ;;  %5388 = vmatprep.mubr.msk.f32.mxu0 %vm642_vm7, %v7307_v11 }
 0x22b   : > { %v1467_v28 = vpop.permute.xlu0 %1466 }
 0x22c   : > { %v1492_v8 = vmul.f32 %v7693_v60, %v1467_v28 }
 0x22d   : > { %5272 = vmatmul.mubr.msk.f32.gmra.mrb[40].mxu1 %vm642_vm7, %v7377_v61  ;;  %5389 = vmatmul.mubr.msk.f32.gmra.mrb[38].mxu0 %vm642_vm7, %v7343_v50 }
 0x22e   : > { %v1538_v38 = vsel %vm606_vm5, %v1492_v8, 0.0  ;;  %v1570_v53 = vmul.f32 %v7693_v60, %v1492_v8  ;;  %5274 = vmatprep.mubr.msk.f32.mxu1 %vm642_vm7, %v8664_v59  ;;  %5391 = vmatprep.mubr.msk.f32.mxu0 %vm642_vm7, %v8665_v45 }
 0x22f   : > { %v7918_v47 = vadd.f32 %v1538_v38, %v7737_v41 }
 0x230   : > { %v1616_v21 = vsel %vm606_vm5, %v1570_v53, 0.0 }
 0x231   : > { %v7922_v51 = vadd.f32 %v1616_v21, %v7750_v54  ;;  %5275 = vmatmul.mubr.msk.f32.gmra.mrb[42].mxu1 %vm642_vm7, %v7470_v7  ;;  %5392 = vmatmul.mubr.msk.f32.gmra.mrb[40].mxu0 %vm642_vm7, %v8666_v43  ;;  %v1540_v8 = vrot.slane %v7918_v47, 4 }
 0x232   : > { %5277 = vmatprep.mubr.msk.f32.mxu1 %vm642_vm7, %v7492_v16  ;;  %5394 = vmatprep.mubr.msk.f32.mxu0 %vm642_vm7, %v7447_v26 }
 0x233   : > { %v1618_v53 = vrot.slane %v7922_v51, 4 }
 0x235   : > { %5278 = vmatmul.mubr.msk.f32.gmra.mrb[44].mxu1 %vm642_vm7, %v7565_v44  ;;  %5395 = vmatmul.mubr.msk.f32.gmra.mrb[42].mxu0 %vm642_vm7, %v7524_v17 }
 0x236   : > { %5280 = vmatprep.mubr.msk.f32.mxu1 %vm642_vm7, %v7580_v39  ;;  %5397 = vmatprep.mubr.msk.f32.mxu0 %vm642_vm7, %v7551_v55 }
 0x239   : > { %5281 = vmatmul.mubr.msk.f32.gmra.mrb[46].mxu1 %vm642_vm7, %v7654_v13  ;;  %5398 = vmatmul.mubr.msk.f32.gmra.mrb[44].mxu0 %vm642_vm7, %v7600_v5 }
 0x23a   : > { %5287 = vmatprep.mubr.msk.f32.mxu1 %vm642_vm7, %v6988_v4  ;;  %5400 = vmatprep.mubr.msk.f32.mxu0 %vm642_vm7, %v7627_v10  ;;  %v1978_v4 = vpop.permute.xlu1 %1977 }
 0x23d   : > { %5288 = vmatmul.mubr.msk.f32.vlgmr.msra.gmra.mrb[24].mxu1 %vm642_vm7, %v7035_v34  ;;  %5401 = vmatmul.mubr.msk.f32.gmra.mrb[46].mxu0 %vm642_vm7, %v7699_v49 }
 0x23e   : > { %5290 = vmatprep.mubr.msk.f32.mxu1 %vm642_vm7, %v8658_v22  ;;  %5407 = vmatprep.mubr.msk.f32.mxu0 %vm642_vm7, %v8659_v48  ;;  %v1829_v34 = vpop.permute.xlu1 %1828 }
 0x241   : > { %5291 = vmatmul.mubr.msk.f32.gmra.mrb[26].mxu1 %vm642_vm7, %v8660_v63  ;;  %5408 = vmatmul.mubr.msk.f32.vlgmr.msra.gmra.mrb[24].mxu0 %vm642_vm7, %v8661_v20 }
 0x242   : > { %5293 = vmatprep.mubr.msk.f32.mxu1 %vm642_vm7, %v8662_v58  ;;  %5410 = vmatprep.mubr.msk.f32.mxu0 %vm642_vm7, %v8663_v25 }
 0x245   : > { %5294 = vmatmul.mubr.msk.f32.gmra.mrb[28].mxu1 %vm642_vm7, %v7182_v19  ;;  %5411 = vmatmul.mubr.msk.f32.gmra.mrb[26].mxu0 %vm642_vm7, %v7158_v42  ;;  %v1831_v42 = vpop.permute.xlu1 %1830  ;;  %v5676_v19 = vld [vmem:[%s5735_s20 + $0x19f] sm:$0xff] }
 0x246   : > { %5296 = vmatprep.mubr.msk.f32.mxu1 %vm642_vm7, %v7191_v62  ;;  %5413 = vmatprep.mubr.msk.f32.mxu0 %vm642_vm7, %v7171_v30  ;;  %v2040_v62 = vsel %vm575_vm6, %v5676_v19, %v7845_v33 }
 0x249   : > { %5297 = vmatmul.mubr.msk.f32.gmra.mrb[30].mxu1 %vm642_vm7, %v7244_v3  ;;  %5414 = vmatmul.mubr.msk.f32.gmra.mrb[28].mxu0 %vm642_vm7, %v7203_v12  ;;  %v1982_v30 = vpop.permute.xlu1 %1981  ;;  %v5677_v12 = vld [vmem:[%s5735_s20 + $0x1a7] sm:$0xff]  ;;  %v2070_v3 = vsel %vm606_vm5, %v2040_v62, %v1978_v4 }
 0x24a   : > { %5299 = vmatprep.mubr.msk.f32.mxu1 %vm642_vm7, %v7272_v52  ;;  %5416 = vmatprep.mubr.msk.f32.mxu0 %vm642_vm7, %v7218_v6  ;;  %v2041_v6 = vsel %vm575_vm6, %v5677_v12, %v1829_v34  ;;  %v5678_v52 = vld [vmem:[%s5735_s20 + $0x267] sm:$0xff] }
 0x24d   : > { %5300 = vmatmul.mubr.msk.f32.gmra.mrb[32].mxu1 %vm642_vm7, %v7319_v2  ;;  %5417 = vmatmul.mubr.msk.f32.gmra.mrb[30].mxu0 %vm642_vm7, %v7293_v35  ;;  %v3473_v35 = vsel %vm575_vm6, %v5678_v52, %v7886_v0 }
 0x24e   : > { %5302 = vmatprep.mubr.msk.f32.mxu1 %vm642_vm7, %v7329_v32  ;;  %5419 = vmatprep.mubr.msk.f32.mxu0 %vm642_vm7, %v7307_v11  ;;  %v5679_v11 = vld [vmem:[%s5735_s20 + $0x25f] sm:$0xff]  ;;  %v5680_v32 = vld [vmem:[%s5735_s20 + $0x1af] sm:$0xff] }
 0x24f   : > { %v3472_v2 = vsel %vm575_vm6, %v5679_v11, %v7856_v56 }
 0x251   : > { %5303 = vmatmul.mubr.msk.f32.gmra.mrb[34].mxu1 %vm642_vm7, %v7377_v61  ;;  %5420 = vmatmul.mubr.msk.f32.gmra.mrb[32].mxu0 %vm642_vm7, %v7343_v50  ;;  %v2042_v50 = vsel %vm575_vm6, %v5680_v32, %v1831_v42  ;;  %v2071_v61 = vsel %vm606_vm5, %v2041_v6, %v7876_v29 }
 0x252   : > { %5305 = vmatprep.mubr.msk.f32.mxu1 %vm642_vm7, %v8664_v59  ;;  %5422 = vmatprep.mubr.msk.f32.mxu0 %vm642_vm7, %v8665_v45 }
 0x255   : > { %5306 = vmatmul.mubr.msk.f32.gmra.mrb[36].mxu1 %vm642_vm7, %v7470_v7  ;;  %5423 = vmatmul.mubr.msk.f32.gmra.mrb[34].mxu0 %vm642_vm7, %v8666_v43  ;;  %v3503_v7 = vsel %vm606_vm5, %v3473_v35, %v7896_v1  ;;  %v8122_v35 = vadd.f32 %v1540_v8, %v7918_v47 }
 0x256   : > { %5308 = vmatprep.mubr.msk.f32.mxu1 %vm642_vm7, %v7492_v16  ;;  %5425 = vmatprep.mubr.msk.f32.mxu0 %vm642_vm7, %v7447_v26  ;;  %v3263_v26 = vpop.permute.xlu1 %3262  ;;  %v3502_v16 = vsel %vm606_vm5, %v3472_v2, %v7866_v15 }
 0x259   : > { %5309 = vmatmul.mubr.msk.f32.gmra.mrb[38].mxu1 %vm642_vm7, %v7565_v44  ;;  %5426 = vmatmul.mubr.msk.f32.gmra.mrb[36].mxu0 %vm642_vm7, %v7524_v17  ;;  %v2072_v17 = vsel %vm606_vm5, %v2042_v50, %v1982_v30  ;;  %v8130_v50 = vadd.f32 %v1618_v53, %v7922_v51 }
 0x25a   : > { %5311 = vmatprep.mubr.msk.f32.mxu1 %vm642_vm7, %v7580_v39  ;;  %5428 = vmatprep.mubr.msk.f32.mxu0 %vm642_vm7, %v7551_v55  ;;  %v5681_v55 = vld [vmem:[%s5735_s20 + $0x26f] sm:$0xff]  ;;  %v3414_v39 = vpop.permute.xlu1 %3413  ;;  %s4609_s20 = sshll.u32 %s8668_s16, 1 }
 0x25b   : > { %v3474_v44 = vsel %vm575_vm6, %v5681_v55, %v3263_v26  ;;  %s208_s27 = scalar_lea.vmem %s8525_s4, %s4609_s20 }
 0x25d   : > { %5312 = vmatmul.mubr.msk.f32.gmra.mrb[40].mxu1 %vm642_vm7, %v7654_v13  ;;  %5429 = vmatmul.mubr.msk.f32.gmra.mrb[38].mxu0 %vm642_vm7, %v7600_v5  ;;  %v3504_v5 = vsel %vm606_vm5, %v3474_v44, %v3414_v39  ;;  %v2789_v13 = vpop.permute.xlu0 %2788 }
 0x25e   : > { %5314 = vmatprep.mubr.msk.f32.mxu1 %vm642_vm7, %v7669_v40  ;;  %5431 = vmatprep.mubr.msk.f32.mxu0 %vm642_vm7, %v7627_v10  ;;  %v2784_v10 = vpop.permute.xlu1 %2783 }
 0x261   : > { %5315 = vmatmul.mubr.msk.f32.gmra.mrb[42].mxu1 %vm642_vm7, %v7740_v18  ;;  %5432 = vmatmul.mubr.msk.f32.gmra.mrb[40].mxu0 %vm642_vm7, %v7699_v49  ;;  %v2799_v60 = vpop.permute.xlu0 %2798 }
 0x262   : > { %5317 = vmatprep.mubr.msk.f32.mxu1 %vm642_vm7, %v7758_v23  ;;  %5434 = vmatprep.mubr.msk.f32.mxu0 %vm642_vm7, %v7719_v9  ;;  %v2794_v40 = vpop.permute.xlu1 %2793 }
 0x265   : > { %5318 = vmatmul.mubr.msk.f32.gmra.mrb[44].mxu1 %vm642_vm7, %v2070_v3  ;;  %5435 = vmatmul.mubr.msk.f32.gmra.mrb[42].mxu0 %vm642_vm7, %v7771_v24  ;;  %v8064_v9 = vpop.permute.xlu0 %2808 }
 0x266   : > { %5320 = vmatprep.mubr.msk.f32.mxu1 %vm642_vm7, %v2071_v61  ;;  %5437 = vmatprep.mubr.msk.f32.mxu0 %vm642_vm7, %v7784_v31  ;;  %v8062_v49 = vpop.permute.xlu1 %2803 }
 0x269   : > { %5321 = vmatmul.mubr.msk.f32.gmra.mrb[46].mxu1 %vm642_vm7, %v2072_v17  ;;  %5438 = vmatmul.mubr.msk.f32.gmra.mrb[44].mxu0 %vm642_vm7, %v3502_v16  ;;  %v8068_v18 = vpop.permute.xlu0 %2818 }
 0x26a   : > { %5440 = vmatprep.mubr.msk.f32.mxu0 %vm642_vm7, %v3503_v7  ;;  %v8066_v41 = vpop.permute.xlu1 %2813 }
 0x26d   : > { %5441 = vmatmul.mubr.msk.f32.gmra.mrb[46].mxu0 %vm642_vm7, %v3504_v5  ;;  %v8072_v23 = vpop.permute.xlu0 %2828 }
 0x26e   : > { %v8070_v54 = vpop.permute.xlu1 %2823 }
 0x271   : > { %v8076_v31 = vpop.permute.xlu0 %2838 }
 0x272   : > { %v8074_v24 = vpop.permute.xlu1 %2833 }
 0x275   : > { %v8080_v37 = vpop.permute.xlu0 %2848 }
 0x276   : > { %v8078_v46 = vpop.permute.xlu1 %2843 }
 0x279   : > { %v8084_v33 = vpop.permute.xlu0 %2858 }
 0x27a   : > { %v8082_v27 = vpop.permute.xlu1 %2853 }
 0x27d   : > { %v4221_v57 = vpop.permute.xlu0 %4220 }
 0x27e   : > { %v4216_v36 = vpop.permute.xlu1 %4215 }
 0x281   : > { %v4231_v14 = vpop.permute.xlu0 %4230 }
 0x282   : > { %v8086_v56 = vpop.permute.xlu1 %4225 }
 0x285   : > { %v8090_v48 = vpop.permute.xlu0 %4240 }
 0x286   : > { %v8088_v22 = vpop.permute.xlu1 %4235 }
 0x289   : > { %v8094_v63 = vpop.permute.xlu0 %4250 }
 0x28a   : > { %v8092_v15 = vpop.permute.xlu1 %4245 }
 0x28d   : > { %v8098_v58 = vpop.permute.xlu0 %4260 }
 0x28e   : > { %v8096_v20 = vpop.permute.xlu1 %4255 }
 0x291   : > { %v8102_v29 = vpop.permute.xlu0 %4270 }
 0x292   : > { %v8100_v25 = vpop.permute.xlu1 %4265 }
 0x295   : > { %v8112_v45 = vpop.permute.xlu0 %4280 }
 0x296   : > { %v8110_v59 = vpop.permute.xlu1 %4275 }
 0x299   : > { %v8149_v8 = vpop.permute.xlu0 %2863 }
 0x310   : > { %v5289_v0 = vpop.f32.mrb[24].mxu1 }
 0x311   : > { %v2902_v1 = vmul.f32 %v5289_v0, %v2789_v13  ;;  %3058 = vst.msk [vmem:[%s7410_s28 + $0xe8] sm:$0xff] %vm606_vm5, %v5289_v0  ;;  %v2614_v28 = vpop.f32.mrb[25].mxu1 }
 0x312   : > { %v2901_v38 = vmul.f32 %v2784_v10, %v2614_v28  ;;  %3057 = vst.msk [vmem:[%s7410_s28 + $0xe0] sm:$0xff] %vm606_vm5, %v2614_v28 }
 0x313   : > { %v2926_v21 = vsel %vm606_vm5, %v2902_v1, 0.0  ;;  %v2980_v43 = vmul.f32 %v5289_v0, %v2902_v1 }
 0x314   : > { %v2925_v4 = vsel %vm606_vm5, %v2901_v38, 0.0  ;;  %v2979_v34 = vmul.f32 %v2901_v38, %v2614_v28  ;;  %v5292_v42 = vpop.f32.mrb[26].mxu1  ;;  %v5409_v30 = vpop.f32.mrb[24].mxu0 }
 0x315   : > { %v3004_v19 = vsel %vm606_vm5, %v2980_v43, 0.0  ;;  %v2927_v62 = vadd.f32 %v2926_v21, %v2925_v4  ;;  %v2904_v12 = vmul.f32 %v5292_v42, %v2799_v60  ;;  %3060 = vst.msk [vmem:[%s7410_s28 + $0xf8] sm:$0xff] %vm606_vm5, %v5292_v42  ;;  %v4334_v6 = vmul.f32 %v5409_v30, %v4221_v57  ;;  %4490 = vst.msk [vmem:[%s7410_s28 + $0x1a8] sm:$0xff] %vm606_vm5, %v5409_v30  ;;  %v2624_v3 = vpop.f32.mrb[27].mxu1  ;;  %v4046_v52 = vpop.f32.mrb[25].mxu0 }
 0x316   : > { %v3003_v11 = vsel %vm606_vm5, %v2979_v34, 0.0  ;;  %v2903_v2 = vmul.f32 %v2794_v40, %v2624_v3  ;;  %3059 = vst.msk [vmem:[%s7410_s28 + $0xf0] sm:$0xff] %vm606_vm5, %v2624_v3  ;;  %v4333_v32 = vmul.f32 %v4216_v36, %v4046_v52  ;;  %4489 = vst.msk [vmem:[%s7410_s28 + $0x1a0] sm:$0xff] %vm606_vm5, %v4046_v52  ;;  %v8147_v28 = vpop.permute.xlu1 %4285  ;;  %v1542_v4 = vrot.slane %v8122_v35, 2 }
 0x317   : > { %v3005_v61 = vadd.f32 %v3004_v19, %v3003_v11  ;;  %v2982_v26 = vmul.f32 %v5292_v42, %v2904_v12  ;;  %v4358_v7 = vsel %vm606_vm5, %v4334_v6, 0.0  ;;  %v4412_v16 = vmul.f32 %v5409_v30, %v4334_v6 }
 0x318   : > { %v2928_v47 = vsel %vm606_vm5, %v2903_v2, 0.0  ;;  %v2981_v17 = vmul.f32 %v2903_v2, %v2624_v3  ;;  %v4357_v55 = vsel %vm606_vm5, %v4333_v32, 0.0  ;;  %v5295_v44 = vpop.f32.mrb[28].mxu1  ;;  %v5412_v39 = vpop.f32.mrb[26].mxu0  ;;  %v2930_v5 = vsel %vm606_vm5, %v2904_v12, 0.0 }
 0x319   : > { %v2929_v10 = vadd.f32 %v2928_v47, %v2927_v62  ;;  %v4359_v13 = vadd.f32 %v4358_v7, %v4357_v55  ;;  %v4411_v51 = vmul.f32 %v4333_v32, %v4046_v52  ;;  %3062 = vst.msk [vmem:[%s7410_s28 + $0x108] sm:$0xff] %vm606_vm5, %v5295_v44  ;;  %4492 = vst.msk [vmem:[%s7410_s28 + $0x1b8] sm:$0xff] %vm606_vm5, %v5412_v39  ;;  %v2634_v40 = vpop.f32.mrb[29].mxu1  ;;  %v4056_v60 = vpop.f32.mrb[27].mxu0  ;;  %v4436_v36 = vsel %vm606_vm5, %v4412_v16, 0.0 }
 0x31a   : > { %v3006_v57 = vsel %vm606_vm5, %v2981_v17, 0.0  ;;  %v2906_v0 = vmul.f32 %v5295_v44, %v8064_v9  ;;  %v4336_v1 = vmul.f32 %v5412_v39, %v4231_v14  ;;  %3061 = vst.msk [vmem:[%s7410_s28 + $0x100] sm:$0xff] %vm606_vm5, %v2634_v40  ;;  %4491 = vst.msk [vmem:[%s7410_s28 + $0x1b0] sm:$0xff] %vm606_vm5, %v4056_v60  ;;  %v2905_v21 = vmul.f32 %v8062_v49, %v2634_v40 }
 0x31b   : > { %v3007_v38 = vadd.f32 %v3006_v57, %v3005_v61  ;;  %v4435_v53 = vsel %vm606_vm5, %v4411_v51, 0.0  ;;  %v2931_v43 = vadd.f32 %v2930_v5, %v2929_v10  ;;  %v3008_v9 = vsel %vm606_vm5, %v2982_v26, 0.0 }
 0x31c   : > { %v4437_v14 = vadd.f32 %v4436_v36, %v4435_v53  ;;  %v2984_v34 = vmul.f32 %v5295_v44, %v2906_v0  ;;  %v5298_v42 = vpop.f32.mrb[30].mxu1  ;;  %v5415_v30 = vpop.f32.mrb[28].mxu0  ;;  %v4414_v19 = vmul.f32 %v5412_v39, %v4336_v1  ;;  %v2932_v62 = vsel %vm606_vm5, %v2905_v21, 0.0 }
 0x31d   : > { %v2983_v12 = vmul.f32 %v2905_v21, %v2634_v40  ;;  %v3009_v6 = vadd.f32 %v3008_v9, %v3007_v38  ;;  %3064 = vst.msk [vmem:[%s7410_s28 + $0x118] sm:$0xff] %vm606_vm5, %v5298_v42  ;;  %4494 = vst.msk [vmem:[%s7410_s28 + $0x1c8] sm:$0xff] %vm606_vm5, %v5415_v30  ;;  %v2644_v49 = vpop.f32.mrb[31].mxu1  ;;  %v4066_v3 = vpop.f32.mrb[29].mxu0  ;;  %v1620_v52 = vrot.slane %v8130_v50, 2  ;;  %v2933_v11 = vadd.f32 %v2932_v62, %v2931_v43 }
 0x31e   : > { %v4335_v2 = vmul.f32 %v8086_v56, %v4056_v60  ;;  %v2908_v32 = vmul.f32 %v5298_v42, %v8068_v18  ;;  %3063 = vst.msk [vmem:[%s7410_s28 + $0x110] sm:$0xff] %vm606_vm5, %v2644_v49  ;;  %4493 = vst.msk [vmem:[%s7410_s28 + $0x1c0] sm:$0xff] %vm606_vm5, %v4066_v3  ;;  %v2934_v61 = vsel %vm606_vm5, %v2906_v0, 0.0  ;;  %v4338_v7 = vmul.f32 %v5415_v30, %v8090_v48  ;;  %v8191_v0 = vpop.permute.xlu0 %2868 }
 0x31f   : > { %v3010_v26 = vsel %vm606_vm5, %v2983_v12, 0.0  ;;  %v2907_v16 = vmul.f32 %v8066_v41, %v2644_v49  ;;  %v4362_v47 = vsel %vm606_vm5, %v4336_v1, 0.0  ;;  %v3012_v39 = vsel %vm606_vm5, %v2984_v34, 0.0 }
 0x320   : > { %v3011_v17 = vadd.f32 %v3010_v26, %v3009_v6  ;;  %v4360_v56 = vsel %vm606_vm5, %v4335_v2, 0.0  ;;  %v4413_v18 = vmul.f32 %v4335_v2, %v4056_v60  ;;  %v5301_v55 = vpop.f32.mrb[32].mxu1  ;;  %v5418_v44 = vpop.f32.mrb[30].mxu0  ;;  %v4440_v5 = vsel %vm606_vm5, %v4414_v19, 0.0 }
 0x321   : > { %v4361_v10 = vadd.f32 %v4360_v56, %v4359_v13  ;;  %v2938_v51 = vsel %vm606_vm5, %v2908_v32, 0.0  ;;  %3066 = vst.msk [vmem:[%s7410_s28 + $0x128] sm:$0xff] %vm606_vm5, %v5301_v55  ;;  %4496 = vst.msk [vmem:[%s7410_s28 + $0x1d8] sm:$0xff] %vm606_vm5, %v5418_v44  ;;  %v2654_v41 = vpop.f32.mrb[33].mxu1  ;;  %v8180_v48 = vpop.f32.mrb[31].mxu0  ;;  %v2935_v60 = vadd.f32 %v2934_v61, %v2933_v11  ;;  %v2936_v36 = vsel %vm606_vm5, %v2907_v16, 0.0 }
 0x322   : > { %v4438_v40 = vsel %vm606_vm5, %v4413_v18, 0.0  ;;  %v2985_v57 = vmul.f32 %v2907_v16, %v2644_v49  ;;  %3065 = vst.msk [vmem:[%s7410_s28 + $0x120] sm:$0xff] %vm606_vm5, %v2654_v41  ;;  %4495 = vst.msk [vmem:[%s7410_s28 + $0x1d0] sm:$0xff] %vm606_vm5, %v8180_v48  ;;  %v8189_v13 = vpop.permute.xlu1 %4290  ;;  %v2986_v38 = vmul.f32 %v5298_v42, %v2908_v32  ;;  %v4416_v53 = vmul.f32 %v5415_v30, %v4338_v7 }
 0x323   : > { %v4439_v1 = vadd.f32 %v4438_v40, %v4437_v14  ;;  %v3013_v21 = vadd.f32 %v3012_v39, %v3011_v17  ;;  %v2937_v43 = vadd.f32 %v2936_v36, %v2935_v60  ;;  %v4337_v34 = vmul.f32 %v8088_v22, %v4066_v3 }
 0x324   : > { %v3014_v9 = vsel %vm606_vm5, %v2985_v57, 0.0  ;;  %v4363_v19 = vadd.f32 %v4362_v47, %v4361_v10  ;;  %v5304_v62 = vpop.f32.mrb[34].mxu1  ;;  %v8195_v12 = vpop.f32.mrb[32].mxu0  ;;  %v2910_v11 = vmul.f32 %v5301_v55, %v8072_v23  ;;  %v4340_v14 = vmul.f32 %v5418_v44, %v8094_v63 }
 0x325   : > { %v3015_v6 = vadd.f32 %v3014_v9, %v3013_v21  ;;  %v4441_v49 = vadd.f32 %v4440_v5, %v4439_v1  ;;  %3068 = vst.msk [vmem:[%s7410_s28 + $0x138] sm:$0xff] %vm606_vm5, %v5304_v62  ;;  %4498 = vst.msk [vmem:[%s7410_s28 + $0x1e8] sm:$0xff] %vm606_vm5, %v8195_v12  ;;  %v2664_v42 = vpop.f32.mrb[35].mxu1  ;;  %v8204_v30 = vpop.f32.mrb[33].mxu0  ;;  %v4364_v22 = vsel %vm606_vm5, %v4337_v34, 0.0  ;;  %v4415_v2 = vmul.f32 %v4337_v34, %v4066_v3 }
 0x326   : > { %v2909_v32 = vmul.f32 %v8070_v54, %v2654_v41  ;;  %v2939_v61 = vadd.f32 %v2938_v51, %v2937_v43  ;;  %3067 = vst.msk [vmem:[%s7410_s28 + $0x130] sm:$0xff] %vm606_vm5, %v2664_v42  ;;  %4497 = vst.msk [vmem:[%s7410_s28 + $0x1e0] sm:$0xff] %vm606_vm5, %v8204_v30  ;;  %v3016_v23 = vsel %vm606_vm5, %v2986_v38, 0.0  ;;  %v4366_v63 = vsel %vm606_vm5, %v4338_v7, 0.0  ;;  %v8242_v36 = vpop.permute.xlu1 %4295  ;;  %v8244_v57 = vpop.permute.xlu0 %2873 }
 0x327   : > { %v4444_v26 = vsel %vm606_vm5, %v4416_v53, 0.0  ;;  %v4365_v16 = vadd.f32 %v4364_v22, %v4363_v19  ;;  %v4442_v47 = vsel %vm606_vm5, %v4415_v2, 0.0  ;;  %v2988_v3 = vmul.f32 %v5301_v55, %v2910_v11 }
 0x328   : > { %v2940_v54 = vsel %vm606_vm5, %v2909_v32, 0.0  ;;  %v2987_v17 = vmul.f32 %v2909_v32, %v2654_v41  ;;  %v8218_v56 = vpop.f32.mrb[36].mxu1  ;;  %v8220_v18 = vpop.f32.mrb[34].mxu0  ;;  %v4443_v39 = vadd.f32 %v4442_v47, %v4441_v49  ;;  %v4418_v5 = vmul.f32 %v5418_v44, %v4340_v14 }
 0x329   : > { %v2941_v10 = vadd.f32 %v2940_v54, %v2939_v61  ;;  %v3017_v51 = vadd.f32 %v3016_v23, %v3015_v6  ;;  %3070 = vst.msk [vmem:[%s7410_s28 + $0x148] sm:$0xff] %vm606_vm5, %v8218_v56  ;;  %4500 = vst.msk [vmem:[%s7410_s28 + $0x1f8] sm:$0xff] %vm606_vm5, %v8220_v18  ;;  %v8228_v7 = vpop.f32.mrb[37].mxu1  ;;  %v8230_v55 = vpop.f32.mrb[35].mxu0  ;;  %v2942_v41 = vsel %vm606_vm5, %v2910_v11, 0.0  ;;  %v4339_v60 = vmul.f32 %v8092_v15, %v8180_v48 }
 0x32a   : > { %v3018_v40 = vsel %vm606_vm5, %v2987_v17, 0.0  ;;  %v4367_v44 = vadd.f32 %v4366_v63, %v4365_v16  ;;  %3069 = vst.msk [vmem:[%s7410_s28 + $0x140] sm:$0xff] %vm606_vm5, %v8228_v7  ;;  %4499 = vst.msk [vmem:[%s7410_s28 + $0x1f0] sm:$0xff] %vm606_vm5, %v8230_v55  ;;  %v4445_v38 = vadd.f32 %v4444_v26, %v4443_v39  ;;  %v2912_v53 = vmul.f32 %v5304_v62, %v8076_v31 }
 0x32b   : > { %v3019_v1 = vadd.f32 %v3018_v40, %v3017_v51  ;;  %v4342_v15 = vmul.f32 %v8195_v12, %v8098_v58  ;;  %v4368_v21 = vsel %vm606_vm5, %v4339_v60, 0.0  ;;  %v4417_v43 = vmul.f32 %v4339_v60, %v8180_v48  ;;  %v8312_v60 = vpop.permute.xlu0 %2878 }
 0x32c   : > { %v2911_v9 = vmul.f32 %v8074_v24, %v2664_v42  ;;  %v2943_v34 = vadd.f32 %v2942_v41, %v2941_v10  ;;  %v8252_v19 = vpop.f32.mrb[38].mxu1  ;;  %v8254_v6 = vpop.f32.mrb[36].mxu0  ;;  %v3020_v49 = vsel %vm606_vm5, %v2988_v3, 0.0  ;;  %v4370_v31 = vsel %vm606_vm5, %v4340_v14, 0.0 }
 0x32d   : > { %v4448_v11 = vsel %vm606_vm5, %v4418_v5, 0.0  ;;  %v4369_v58 = vadd.f32 %v4368_v21, %v4367_v44  ;;  %3072 = vst.msk [vmem:[%s7410_s28 + $0x158] sm:$0xff] %vm606_vm5, %v8252_v19  ;;  %4502 = vst.msk [vmem:[%s7410_s28 + $0x208] sm:$0xff] %vm606_vm5, %v8254_v6  ;;  %v8265_v24 = vpop.f32.mrb[39].mxu1  ;;  %v8267_v48 = vpop.f32.mrb[37].mxu0  ;;  %v4446_v22 = vsel %vm606_vm5, %v4417_v43, 0.0  ;;  %v2990_v2 = vmul.f32 %v5304_v62, %v2912_v53 }
 0x32e   : > { %v2944_v32 = vsel %vm606_vm5, %v2911_v9, 0.0  ;;  %v2989_v61 = vmul.f32 %v2911_v9, %v2664_v42  ;;  %3071 = vst.msk [vmem:[%s7410_s28 + $0x150] sm:$0xff] %vm606_vm5, %v8265_v24  ;;  %4501 = vst.msk [vmem:[%s7410_s28 + $0x200] sm:$0xff] %vm606_vm5, %v8267_v48  ;;  %v4447_v14 = vadd.f32 %v4446_v22, %v4445_v38  ;;  %v4420_v23 = vmul.f32 %v8195_v12, %v4342_v15 }
 0x32f   : > { %v2945_v63 = vadd.f32 %v2944_v32, %v2943_v34  ;;  %v3021_v26 = vadd.f32 %v3020_v49, %v3019_v1  ;;  %v2946_v16 = vsel %vm606_vm5, %v2912_v53, 0.0  ;;  %v4341_v42 = vmul.f32 %v8096_v20, %v8204_v30 }
 0x330   : > { %v3022_v62 = vsel %vm606_vm5, %v2989_v61, 0.0  ;;  %v4371_v47 = vadd.f32 %v4370_v31, %v4369_v58  ;;  %v8282_v3 = vpop.f32.mrb[40].mxu1  ;;  %v8284_v54 = vpop.f32.mrb[38].mxu0  ;;  %v4449_v39 = vadd.f32 %v4448_v11, %v4447_v14  ;;  %v2914_v12 = vmul.f32 %v8218_v56, %v8080_v37 }
 0x331   : > { %v3023_v17 = vadd.f32 %v3022_v62, %v3021_v26  ;;  %v4344_v5 = vmul.f32 %v8220_v18, %v8102_v29  ;;  %3074 = vst.msk [vmem:[%s7410_s28 + $0x168] sm:$0xff] %vm606_vm5, %v8282_v3  ;;  %4504 = vst.msk [vmem:[%s7410_s28 + $0x218] sm:$0xff] %vm606_vm5, %v8284_v54  ;;  %v8296_v20 = vpop.f32.mrb[41].mxu1  ;;  %v8298_v10 = vpop.f32.mrb[39].mxu0  ;;  %v4372_v51 = vsel %vm606_vm5, %v4341_v42, 0.0  ;;  %v4419_v41 = vmul.f32 %v4341_v42, %v8204_v30 }
 0x332   : > { %v2913_v37 = vmul.f32 %v8078_v46, %v8228_v7  ;;  %v2947_v40 = vadd.f32 %v2946_v16, %v2945_v63  ;;  %3073 = vst.msk [vmem:[%s7410_s28 + $0x160] sm:$0xff] %vm606_vm5, %v8296_v20  ;;  %4503 = vst.msk [vmem:[%s7410_s28 + $0x210] sm:$0xff] %vm606_vm5, %v8298_v10  ;;  %v8310_v29 = vpop.permute.xlu1 %4300  ;;  %v3024_v44 = vsel %vm606_vm5, %v2990_v2, 0.0  ;;  %v4374_v30 = vsel %vm606_vm5, %v4342_v15, 0.0 }
 0x333   : > { %v4452_v1 = vsel %vm606_vm5, %v4420_v23, 0.0  ;;  %v4373_v46 = vadd.f32 %v4372_v51, %v4371_v47  ;;  %v4450_v38 = vsel %vm606_vm5, %v4419_v41, 0.0  ;;  %v2992_v53 = vmul.f32 %v8218_v56, %v2914_v12 }
 0x334   : > { %v2948_v21 = vsel %vm606_vm5, %v2913_v37, 0.0  ;;  %v2991_v43 = vmul.f32 %v2913_v37, %v8228_v7  ;;  %v8321_v9 = vpop.f32.mrb[42].mxu1  ;;  %v8323_v34 = vpop.f32.mrb[40].mxu0  ;;  %v4451_v49 = vadd.f32 %v4450_v38, %v4449_v39  ;;  %v4422_v15 = vmul.f32 %v8220_v18, %v4344_v5 }
 0x335   : > { %v2949_v31 = vadd.f32 %v2948_v21, %v2947_v40  ;;  %v3025_v11 = vadd.f32 %v3024_v44, %v3023_v17  ;;  %3076 = vst.msk [vmem:[%s7410_s28 + $0x178] sm:$0xff] %vm606_vm5, %v8321_v9  ;;  %4506 = vst.msk [vmem:[%s7410_s28 + $0x228] sm:$0xff] %vm606_vm5, %v8323_v34  ;;  %v8332_v56 = vpop.f32.mrb[43].mxu1  ;;  %v8334_v58 = vpop.f32.mrb[41].mxu0  ;;  %v2950_v7 = vsel %vm606_vm5, %v2914_v12, 0.0  ;;  %v4343_v2 = vmul.f32 %v8100_v25, %v8230_v55 }
 0x336   : > { %v3026_v22 = vsel %vm606_vm5, %v2991_v43, 0.0  ;;  %v4375_v18 = vadd.f32 %v4374_v30, %v4373_v46  ;;  %3075 = vst.msk [vmem:[%s7410_s28 + $0x170] sm:$0xff] %vm606_vm5, %v8332_v56  ;;  %4505 = vst.msk [vmem:[%s7410_s28 + $0x220] sm:$0xff] %vm606_vm5, %v8334_v58  ;;  %v4453_v61 = vadd.f32 %v4452_v1, %v4451_v49  ;;  %v2916_v14 = vmul.f32 %v8252_v19, %v8084_v33  ;;  %v8381_v41 = vpop.permute.xlu1 %4305  ;;  %v8383_v37 = vpop.permute.xlu0 %2883 }
 0x337   : > { %v3027_v32 = vadd.f32 %v3026_v22, %v3025_v11  ;;  %v4346_v23 = vmul.f32 %v8254_v6, %v8112_v45  ;;  %v4376_v63 = vsel %vm606_vm5, %v4343_v2, 0.0  ;;  %v4421_v25 = vmul.f32 %v4343_v2, %v8230_v55 }
 0x338   : > { %v2915_v26 = vmul.f32 %v8082_v27, %v8265_v24  ;;  %v2951_v16 = vadd.f32 %v2950_v7, %v2949_v31  ;;  %v8354_v62 = vpop.f32.mrb[44].mxu1  ;;  %v8356_v42 = vpop.f32.mrb[42].mxu0  ;;  %v3028_v47 = vsel %vm606_vm5, %v2992_v53, 0.0  ;;  %v4378_v33 = vsel %vm606_vm5, %v4344_v5, 0.0 }
 0x339   : > { %v4456_v45 = vsel %vm606_vm5, %v4422_v15, 0.0  ;;  %v4377_v17 = vadd.f32 %v4376_v63, %v4375_v18  ;;  %3078 = vst.msk [vmem:[%s7410_s28 + $0x188] sm:$0xff] %vm606_vm5, %v8354_v62  ;;  %4508 = vst.msk [vmem:[%s7410_s28 + $0x238] sm:$0xff] %vm606_vm5, %v8356_v42  ;;  %v8367_v27 = vpop.f32.mrb[45].mxu1  ;;  %v8369_v55 = vpop.f32.mrb[43].mxu0  ;;  %v4454_v39 = vsel %vm606_vm5, %v4421_v25, 0.0  ;;  %v2994_v12 = vmul.f32 %v8252_v19, %v2916_v14 }
 0x33a   : > { %v2952_v51 = vsel %vm606_vm5, %v2915_v26, 0.0  ;;  %v2993_v5 = vmul.f32 %v2915_v26, %v8265_v24  ;;  %3077 = vst.msk [vmem:[%s7410_s28 + $0x180] sm:$0xff] %vm606_vm5, %v8367_v27  ;;  %4507 = vst.msk [vmem:[%s7410_s28 + $0x230] sm:$0xff] %vm606_vm5, %v8369_v55  ;;  %v4455_v40 = vadd.f32 %v4454_v39, %v4453_v61  ;;  %v4424_v44 = vmul.f32 %v8254_v6, %v4346_v23 }
 0x33b   : > { %v2953_v19 = vadd.f32 %v2952_v51, %v2951_v16  ;;  %v3029_v30 = vadd.f32 %v3028_v47, %v3027_v32  ;;  %v2954_v1 = vsel %vm606_vm5, %v2916_v14, 0.0  ;;  %v4345_v46 = vmul.f32 %v8110_v59, %v8267_v48 }
 0x33c   : > { %v3030_v24 = vsel %vm606_vm5, %v2993_v5, 0.0  ;;  %v4379_v38 = vadd.f32 %v4378_v33, %v4377_v17  ;;  %v8390_v53 = vpop.f32.mrb[46].mxu1  ;;  %v8392_v21 = vpop.f32.mrb[44].mxu0  ;;  %v4457_v49 = vadd.f32 %v4456_v45, %v4455_v40  ;;  %v2918_v6 = vmul.f32 %v8282_v3, %v8191_v0 }
 0x33d   : > { %v3031_v43 = vadd.f32 %v3030_v24, %v3029_v30  ;;  %v4348_v15 = vmul.f32 %v8284_v54, %v8189_v13  ;;  %3080 = vst.msk [vmem:[%s7410_s28 + $0x198] sm:$0xff] %vm606_vm5, %v8390_v53  ;;  %4510 = vst.msk [vmem:[%s7410_s28 + $0x248] sm:$0xff] %vm606_vm5, %v8392_v21  ;;  %v8404_v59 = vpop.f32.mrb[47].mxu1  ;;  %v8406_v31 = vpop.f32.mrb[45].mxu0  ;;  %v4380_v11 = vsel %vm606_vm5, %v4345_v46, 0.0  ;;  %v4423_v7 = vmul.f32 %v4345_v46, %v8267_v48 }
 0x33e   : > { %v2917_v0 = vmul.f32 %v8149_v8, %v8296_v20  ;;  %v2955_v22 = vadd.f32 %v2954_v1, %v2953_v19  ;;  %3079 = vst.msk [vmem:[%s7410_s28 + $0x190] sm:$0xff] %vm606_vm5, %v8404_v59  ;;  %4509 = vst.msk [vmem:[%s7410_s28 + $0x240] sm:$0xff] %vm606_vm5, %v8406_v31  ;;  %v3032_v13 = vsel %vm606_vm5, %v2994_v12, 0.0  ;;  %v4382_v2 = vsel %vm606_vm5, %v4346_v23, 0.0  ;;  %v4311_v33 = vpop.permute.xlu1 %4310  ;;  %v2889_v45 = vpop.permute.xlu0 %2888 }
 0x33f   : > { %v4460_v18 = vsel %vm606_vm5, %v4424_v44, 0.0  ;;  %v4381_v32 = vadd.f32 %v4380_v11, %v4379_v38  ;;  %v4458_v48 = vsel %vm606_vm5, %v4423_v7, 0.0  ;;  %v2996_v61 = vmul.f32 %v8282_v3, %v2918_v6 }
 0x340   : > { %v2956_v8 = vsel %vm606_vm5, %v2917_v0, 0.0  ;;  %v2995_v14 = vmul.f32 %v2917_v0, %v8296_v20  ;;  %v8425_v63 = vpop.f32.mrb[46].mxu0  ;;  %v4459_v25 = vadd.f32 %v4458_v48, %v4457_v49  ;;  %v4426_v26 = vmul.f32 %v8284_v54, %v4348_v15 }
 0x341   : > { %v2957_v16 = vadd.f32 %v2956_v8, %v2955_v22  ;;  %v3033_v47 = vadd.f32 %v3032_v13, %v3031_v43  ;;  %4512 = vst.msk [vmem:[%s7410_s28 + $0x258] sm:$0xff] %vm606_vm5, %v8425_v63  ;;  %v8431_v23 = vpop.f32.mrb[47].mxu0  ;;  %v2958_v3 = vsel %vm606_vm5, %v2918_v6, 0.0  ;;  %v4347_v20 = vmul.f32 %v8147_v28, %v8298_v10 }
 0x342   : > { %v3034_v17 = vsel %vm606_vm5, %v2995_v14, 0.0  ;;  %v4383_v39 = vadd.f32 %v4382_v2, %v4381_v32  ;;  %4511 = vst.msk [vmem:[%s7410_s28 + $0x250] sm:$0xff] %vm606_vm5, %v8431_v23  ;;  %v4461_v12 = vadd.f32 %v4460_v18, %v4459_v25  ;;  %v2920_v51 = vmul.f32 %v8321_v9, %v8312_v60  ;;  %v4316_v11 = vpop.permute.xlu1 %4315  ;;  %v2894_v7 = vpop.permute.xlu0 %2893 }
 0x343   : > { %v3035_v54 = vadd.f32 %v3034_v17, %v3033_v47  ;;  %v4350_v5 = vmul.f32 %v8323_v34, %v8310_v29  ;;  %v4384_v40 = vsel %vm606_vm5, %v4347_v20, 0.0  ;;  %v4425_v44 = vmul.f32 %v4347_v20, %v8298_v10 }
 0x344   : > { %v2919_v19 = vmul.f32 %v8244_v57, %v8332_v56  ;;  %v2959_v28 = vadd.f32 %v2958_v3, %v2957_v16  ;;  %v3036_v30 = vsel %vm606_vm5, %v2996_v61, 0.0  ;;  %v4386_v1 = vsel %vm606_vm5, %v4348_v15, 0.0 }
 0x345   : > { %v4464_v24 = vsel %vm606_vm5, %v4426_v26, 0.0  ;;  %v4385_v46 = vadd.f32 %v4384_v40, %v4383_v39  ;;  %v4462_v60 = vsel %vm606_vm5, %v4425_v44, 0.0  ;;  %v2998_v38 = vmul.f32 %v8321_v9, %v2920_v51 }
 0x346   : > { %v2960_v29 = vsel %vm606_vm5, %v2919_v19, 0.0  ;;  %v2997_v43 = vmul.f32 %v2919_v19, %v8332_v56  ;;  %v4463_v10 = vadd.f32 %v4462_v60, %v4461_v12  ;;  %v4428_v49 = vmul.f32 %v8323_v34, %v4350_v5  ;;  %v4321_v17 = vpop.permute.xlu1 %4320  ;;  %v2899_v20 = vpop.permute.xlu0 %2898 }
 0x347   : > { %v2961_v57 = vadd.f32 %v2960_v29, %v2959_v28  ;;  %v3037_v6 = vadd.f32 %v3036_v30, %v3035_v54  ;;  %v2962_v15 = vsel %vm606_vm5, %v2920_v51, 0.0  ;;  %v4349_v22 = vmul.f32 %v8242_v36, %v8334_v58 }
 0x348   : > { %v3038_v0 = vsel %vm606_vm5, %v2997_v43, 0.0  ;;  %v4387_v13 = vadd.f32 %v4386_v1, %v4385_v46  ;;  %v4465_v2 = vadd.f32 %v4464_v24, %v4463_v10  ;;  %v2922_v18 = vmul.f32 %v8354_v62, %v2889_v45 }
 0x349   : > { %v3039_v9 = vadd.f32 %v3038_v0, %v3037_v6  ;;  %v4352_v56 = vmul.f32 %v8356_v42, %v4311_v33  ;;  %v4388_v34 = vsel %vm606_vm5, %v4349_v22, 0.0  ;;  %v4427_v32 = vmul.f32 %v4349_v22, %v8334_v58 }
 0x34a   : > { %v2921_v48 = vmul.f32 %v8383_v37, %v8367_v27  ;;  %v2963_v61 = vadd.f32 %v2962_v15, %v2961_v57  ;;  %v3040_v8 = vsel %vm606_vm5, %v2998_v38, 0.0  ;;  %v4390_v14 = vsel %vm606_vm5, %v4350_v5, 0.0  ;;  %v4326_v15 = vpop.permute.xlu1 %4325  ;;  %v4331_v0 = vpop.permute.xlu0 %4330 }
 0x34b   : > { %v4468_v36 = vsel %vm606_vm5, %v4428_v49, 0.0  ;;  %v4389_v25 = vadd.f32 %v4388_v34, %v4387_v13  ;;  %v4466_v26 = vsel %vm606_vm5, %v4427_v32, 0.0  ;;  %v2966_v16 = vsel %vm606_vm5, %v2922_v18, 0.0 }
 0x34c   : > { %v2964_v47 = vsel %vm606_vm5, %v2921_v48, 0.0  ;;  %v2999_v33 = vmul.f32 %v2921_v48, %v8367_v27  ;;  %v4467_v58 = vadd.f32 %v4466_v26, %v4465_v2  ;;  %v3000_v45 = vmul.f32 %v8354_v62, %v2922_v18 }
 0x34d   : > { %v2965_v37 = vadd.f32 %v2964_v47, %v2963_v61  ;;  %v3041_v3 = vadd.f32 %v3040_v8, %v3039_v9  ;;  %v4430_v39 = vmul.f32 %v8356_v42, %v4352_v56  ;;  %v4351_v12 = vmul.f32 %v8381_v41, %v8369_v55 }
 0x34e   : > { %v3042_v54 = vsel %vm606_vm5, %v2999_v33, 0.0  ;;  %v4391_v51 = vadd.f32 %v4390_v14, %v4389_v25  ;;  %v4469_v40 = vadd.f32 %v4468_v36, %v4467_v58  ;;  %v2924_v44 = vmul.f32 %v8390_v53, %v2899_v20 }
 0x34f   : > { %v3043_v5 = vadd.f32 %v3042_v54, %v3041_v3  ;;  %v4354_v27 = vmul.f32 %v8392_v21, %v4321_v17  ;;  %v4392_v62 = vsel %vm606_vm5, %v4351_v12, 0.0  ;;  %v4429_v19 = vmul.f32 %v4351_v12, %v8369_v55 }
 0x350   : > { %v2923_v28 = vmul.f32 %v2894_v7, %v8404_v59  ;;  %v2967_v30 = vadd.f32 %v2966_v16, %v2965_v37  ;;  %v3044_v42 = vsel %vm606_vm5, %v3000_v45, 0.0  ;;  %v4394_v1 = vsel %vm606_vm5, %v4352_v56, 0.0 }
 0x351   : > { %v4393_v24 = vadd.f32 %v4392_v62, %v4391_v51  ;;  %v3002_v41 = vmul.f32 %v8390_v53, %v2924_v44  ;;  %v4472_v46 = vsel %vm606_vm5, %v4430_v39, 0.0  ;;  %v4470_v60 = vsel %vm606_vm5, %v4429_v19, 0.0 }
 0x352   : > { %v2968_v38 = vsel %vm606_vm5, %v2923_v28, 0.0  ;;  %v3001_v29 = vmul.f32 %v2923_v28, %v8404_v59  ;;  %v4471_v43 = vadd.f32 %v4470_v60, %v4469_v40  ;;  %v2970_v55 = vsel %vm606_vm5, %v2924_v44, 0.0 }
 0x353   : > { %v2969_v10 = vadd.f32 %v2968_v38, %v2967_v30  ;;  %v3045_v49 = vadd.f32 %v3044_v42, %v3043_v5  ;;  %v4432_v57 = vmul.f32 %v8392_v21, %v4354_v27  ;;  %v4353_v7 = vmul.f32 %v4316_v11, %v8406_v31 }
 0x354   : > { %v3046_v6 = vsel %vm606_vm5, %v3001_v29, 0.0  ;;  %v4395_v53 = vadd.f32 %v4394_v1, %v4393_v24  ;;  %v3048_v22 = vsel %vm606_vm5, %v3002_v41, 0.0  ;;  %v4473_v2 = vadd.f32 %v4472_v46, %v4471_v43 }
 0x355   : > { %v2971_v13 = vadd.f32 %v2970_v55, %v2969_v10  ;;  %v3047_v9 = vadd.f32 %v3046_v6, %v3045_v49  ;;  %v4396_v59 = vsel %vm606_vm5, %v4353_v7, 0.0  ;;  %v4431_v18 = vmul.f32 %v4353_v7, %v8406_v31 }
 0x356   : > { %v4356_v56 = vmul.f32 %v8425_v63, %v4331_v0  ;;  %v4355_v21 = vmul.f32 %v4326_v15, %v8431_v23  ;;  %v1543_v11 = vadd.f32 %v1542_v4, %v8122_v35  ;;  %v4397_v48 = vadd.f32 %v4396_v59, %v4395_v53 }
 0x357   : > { %v2972_v34 = vrot.slane %v2971_v13, 4  ;;  %v3049_v32 = vadd.f32 %v3048_v22, %v3047_v9  ;;  %v4398_v61 = vsel %vm606_vm5, %v4354_v27, 0.0  ;;  %v4474_v8 = vsel %vm606_vm5, %v4431_v18, 0.0 }
 0x358   : > { %v4400_v14 = vsel %vm606_vm5, %v4355_v21, 0.0  ;;  %v4433_v36 = vmul.f32 %v4355_v21, %v8431_v23  ;;  %v4475_v26 = vadd.f32 %v4474_v8, %v4473_v2  ;;  %v4399_v16 = vadd.f32 %v4398_v61, %v4397_v48 }
 0x359   : > { %v2973_v31 = vadd.f32 %v2972_v34, %v2971_v13  ;;  %v3050_v25 = vrot.slane %v3049_v32, 4  ;;  %v1621_v47 = vadd.f32 %v1620_v52, %v8130_v50  ;;  %v4476_v35 = vsel %vm606_vm5, %v4432_v57, 0.0 }
 0x35a   : > { %v4434_v4 = vmul.f32 %v8425_v63, %v4356_v56  ;;  %v4478_v33 = vsel %vm606_vm5, %v4433_v36, 0.0  ;;  %v4401_v37 = vadd.f32 %v4400_v14, %v4399_v16  ;;  %v4477_v3 = vadd.f32 %v4476_v35, %v4475_v26 }
 0x35b   : > { %v2974_v58 = vrot.slane %v2973_v31, 2  ;;  %v3051_v45 = vadd.f32 %v3050_v25, %v3049_v32  ;;  %v1544_v17 = vrot.slane %v1543_v11, 1  ;;  %v4402_v23 = vsel %vm606_vm5, %v4356_v56, 0.0 }
 0x35c   : > { %v4403_v54 = vadd.f32 %v4402_v23, %v4401_v37  ;;  %v4479_v12 = vadd.f32 %v4478_v33, %v4477_v3  ;;  %v1622_v51 = vrot.slane %v1621_v47, 1  ;;  %v4480_v50 = vsel %vm606_vm5, %v4434_v4, 0.0 }
 0x35d   : > { %v2975_v20 = vadd.f32 %v2974_v58, %v2973_v31  ;;  %v3052_v39 = vrot.slane %v3051_v45, 2  ;;  %v1545_v44 = vadd.f32 %v1544_v17, %v1543_v11 }
 0x35e   : > { %v4404_v63 = vrot.slane %v4403_v54, 4  ;;  %v4481_v40 = vadd.f32 %v4480_v50, %v4479_v12  ;;  %v1623_v30 = vadd.f32 %v1622_v51, %v1621_v47 }
 0x35f   : > { %v2976_v52 = vrot.slane %v2975_v20, 1  ;;  %v3053_v5 = vadd.f32 %v3052_v39, %v3051_v45 }
 0x360   : > { %v4405_v19 = vadd.f32 %v4404_v63, %v4403_v54  ;;  %v4482_v28 = vrot.slane %v4481_v40, 4 }
 0x361   : > { %v2977_v27 = vadd.f32 %v2976_v52, %v2975_v20  ;;  %v3054_v62 = vrot.slane %v3053_v5, 1 }
 0x362   : > { %v4406_v24 = vrot.slane %v4405_v19, 2  ;;  %v4483_v41 = vadd.f32 %v4482_v28, %v4481_v40 }
 0x363   : > { %v2978_v42 = vadd.f32 %v2977_v27, %v1545_v44  ;;  %v3055_v1 = vadd.f32 %v3054_v62, %v3053_v5 }
 0x364   : > { %v4407_v60 = vadd.f32 %v4406_v24, %v4405_v19  ;;  %v4484_v38 = vrot.slane %v4483_v41, 2 }
 0x365   : > { %v3056_v46 = vadd.f32 %v3055_v1, %v1623_v30 }
 0x366   : > { %v4408_v29 = vrot.slane %v4407_v60, 1  ;;  %v4485_v43 = vadd.f32 %v4484_v38, %v4483_v41 }
 0x368   : > { %v4409_v55 = vadd.f32 %v4408_v29, %v4407_v60  ;;  %v4486_v10 = vrot.slane %v4485_v43, 1 }
 0x36a   : > { %v4410_v49 = vadd.f32 %v4409_v55, %v2978_v42  ;;  %v4487_v57 = vadd.f32 %v4486_v10, %v4485_v43 }
 0x36c   : > { %v4488_v6 = vadd.f32 %v4487_v57, %v3056_v46  ;;  %4514 = vst.msk [vmem:[%s208_s27] sm:$0x1] %vm4513_vm8, %v4410_v49 }
 0x36e   : > { %4515 = vst.msk [vmem:[%s208_s27 + $0x1] sm:$0x1] %vm4513_vm8, %v4488_v6 }
 0x36f PF: > { %s15_s15 = sadd.s32 1, %s5688_s15  }
 0x370   : > { %p12_p4 = scmp.ge.s32.totalorder %s15_s15, 4  }
 0x372   :  { %14 = sbr.rel (!%p12_p4) target bundleno = 1 (0x1), region = 76 }

// kernel: decoder_block_forward.4
= control target key start
LH: loop header
LB: loop body
LE: loop exit
PB: predicated region body
PF: predicated region fallthrough
CT: control target
= control target key end

     0   :  { %s6792_s21 = smov 0   ;;  %s10219_s0 = inlined_call_operand.vmem [shape: f32[2,640,8], index: 0, kind: input, shape index: {}]   ;;  %s10220_s1 = inlined_call_operand.vmem [shape: f32[1,8], index: 1, kind: input, shape index: {}]   ;;  %s10221_s2 = inlined_call_operand.vmem [shape: f32[1,8], index: 2, kind: input, shape index: {}]   ;;  %s10222_s3 = inlined_call_operand.vmem [shape: f32[3,24,8], index: 3, kind: input, shape index: {}]   ;;  %s10223_s4 = inlined_call_operand.vmem [shape: f32[640,1], index: 4, kind: input, shape index: {}]   ;;  %s10224_s5 = inlined_call_operand.vmem [shape: f32[2,576,8], index: 5, kind: output, shape index: {0}]   ;;  %s10225_s6 = inlined_call_operand.vmem [shape: f32[2,2,8], index: 6, kind: output, shape index: {1}]  }
   0x1 LB: > { %s5674_s22 = sadd.s32 4294967295, %s6752_s21   ;;  %p5678_p0 = scmp.ge.s32.totalorder %s6752_s21, 1  ;;  %s6752_s21 = sphi %s6792_s21, %s17_s21  }
   0x2   : > { %p215_p1 = scmp.lt.s32.totalorder %s6752_s21, 3 }
   0x4   : > { %p216_p2 = pnand %p5678_p0, %p215_p1 }
   0x6   : > { %219 = sbr.rel (%p216_p2) target bundleno = 1308 (0x51c), region = 40 }
   0xd   : > { %v298_v0 = vld [vmem:[%s10223_s4 + $0x17] sm:$0xff]  ;;  %v296_v1 = vld [vmem:[%s10223_s4 + $0x7] sm:$0xff]  ;;  %v299_v2 = vld [vmem:[%s10223_s4 + $0x1f] sm:$0xff]  ;;  %v10226_v3 = vmov 0   ;;  %p249_p3 = scmp.lt.s32.totalorder %s5674_s22, 1  ;;  %s6755_s27 = smov 8  }
   0xe   : > { %6739 = vset.pattern.permute.xlu1 %v10226_v3  ;;  %6738 = vset.pattern.permute.xlu0 %v10226_v3  ;;  %vm329_vm0 = vcmp.gt.f32.partialorder %v298_v0, 0.0  ;;  %vm327_vm1 = vcmp.gt.f32.partialorder %v296_v1, 0.0  ;;  %vm330_vm2 = vcmp.gt.f32.partialorder %v299_v2, 0.0  ;;  %v297_v4 = vld [vmem:[%s10223_s4 + $0xf] sm:$0xff]  ;;  %v300_v8 = vld [vmem:[%s10223_s4 + $0x27] sm:$0xff]  ;;  %v303_v11 = vld [vmem:[%s10223_s4 + $0x3f] sm:$0xff] }
   0xf   : > { %v465_v5 = vsel %vm329_vm0, 1, %v10226_v3  ;;  %v463_v6 = vsel %vm327_vm1, 1, %v10226_v3  ;;  %vm328_vm3 = vcmp.gt.f32.partialorder %v297_v4, 0.0  ;;  %v301_v7 = vld [vmem:[%s10223_s4 + $0x2f] sm:$0xff]  ;;  %v466_v9 = vsel %vm330_vm2, 1, %v10226_v3  ;;  %v302_v12 = vld [vmem:[%s10223_s4 + $0x37] sm:$0xff] }
  0x10   : > { %501 = vperm.xlu1 %6739, %v465_v5   ;;  %495 = vperm.xlu0 %6738, %v463_v6   ;;  %v464_v10 = vsel %vm328_vm3, 1, %v10226_v3  ;;  %vm332_vm4 = vcmp.gt.f32.partialorder %v301_v7, 0.0  ;;  %vm331_vm5 = vcmp.gt.f32.partialorder %v300_v8, 0.0  ;;  %vm334_vm6 = vcmp.gt.f32.partialorder %v303_v11, 0.0  ;;  %v305_v15 = vld [vmem:[%s10223_s4 + $0x4f] sm:$0xff]  ;;  %v304_v16 = vld [vmem:[%s10223_s4 + $0x47] sm:$0xff] }
  0x11   : > { %v468_v13 = vsel %vm332_vm4, 1, %v10226_v3  ;;  %v467_v14 = vsel %vm331_vm5, 1, %v10226_v3  ;;  %vm333_vm7 = vcmp.gt.f32.partialorder %v302_v12, 0.0  ;;  %v470_v17 = vsel %vm334_vm6, 1, %v10226_v3  ;;  %v307_v19 = vld [vmem:[%s10223_s4 + $0x5f] sm:$0xff]  ;;  %v306_v20 = vld [vmem:[%s10223_s4 + $0x57] sm:$0xff] }
  0x12   : > { %v469_v18 = vsel %vm333_vm7, 1, %v10226_v3  ;;  %vm336_vm8 = vcmp.gt.f32.partialorder %v305_v15, 0.0  ;;  %vm335_vm9 = vcmp.gt.f32.partialorder %v304_v16, 0.0  ;;  %vm338_vm10 = vcmp.gt.f32.partialorder %v307_v19, 0.0  ;;  %v309_v23 = vld [vmem:[%s10223_s4 + $0x6f] sm:$0xff]  ;;  %v308_v24 = vld [vmem:[%s10223_s4 + $0x67] sm:$0xff] }
  0x13   : > { %v472_v21 = vsel %vm336_vm8, 1, %v10226_v3  ;;  %v471_v22 = vsel %vm335_vm9, 1, %v10226_v3  ;;  %vm337_vm11 = vcmp.gt.f32.partialorder %v306_v20, 0.0  ;;  %v474_v25 = vsel %vm338_vm10, 1, %v10226_v3  ;;  %v311_v27 = vld [vmem:[%s10223_s4 + $0x7f] sm:$0xff]  ;;  %v310_v28 = vld [vmem:[%s10223_s4 + $0x77] sm:$0xff] }
  0x14   : > { %504 = vperm.xlu1 %6739, %v466_v9   ;;  %498 = vperm.xlu0 %6738, %v464_v10   ;;  %v473_v26 = vsel %vm337_vm11, 1, %v10226_v3  ;;  %vm340_vm12 = vcmp.gt.f32.partialorder %v309_v23, 0.0  ;;  %vm339_vm13 = vcmp.gt.f32.partialorder %v308_v24, 0.0  ;;  %vm342_vm14 = vcmp.gt.f32.partialorder %v311_v27, 0.0  ;;  %v313_v31 = vld [vmem:[%s10223_s4 + $0x8f] sm:$0xff]  ;;  %v312_v32 = vld [vmem:[%s10223_s4 + $0x87] sm:$0xff] }
  0x15   : > { %v476_v29 = vsel %vm340_vm12, 1, %v10226_v3  ;;  %v475_v30 = vsel %vm339_vm13, 1, %v10226_v3  ;;  %vm341_vm15 = vcmp.gt.f32.partialorder %v310_v28, 0.0  ;;  %v478_v33 = vsel %vm342_vm14, 1, %v10226_v3  ;;  %v315_v35 = vld [vmem:[%s10223_s4 + $0x9f] sm:$0xff]  ;;  %v314_v36 = vld [vmem:[%s10223_s4 + $0x97] sm:$0xff] }
  0x16   : > { %v477_v34 = vsel %vm341_vm15, 1, %v10226_v3  ;;  %vm344_vm0 = vcmp.gt.f32.partialorder %v313_v31, 0.0  ;;  %vm343_vm1 = vcmp.gt.f32.partialorder %v312_v32, 0.0  ;;  %vm346_vm2 = vcmp.gt.f32.partialorder %v315_v35, 0.0  ;;  %v317_v39 = vld [vmem:[%s10223_s4 + $0xaf] sm:$0xff]  ;;  %v316_v40 = vld [vmem:[%s10223_s4 + $0xa7] sm:$0xff] }
  0x17   : > { %v480_v37 = vsel %vm344_vm0, 1, %v10226_v3  ;;  %v479_v38 = vsel %vm343_vm1, 1, %v10226_v3  ;;  %vm345_vm3 = vcmp.gt.f32.partialorder %v314_v36, 0.0  ;;  %v482_v41 = vsel %vm346_vm2, 1, %v10226_v3  ;;  %v319_v43 = vld [vmem:[%s10223_s4 + $0xbf] sm:$0xff]  ;;  %v318_v44 = vld [vmem:[%s10223_s4 + $0xb7] sm:$0xff] }
  0x18   : > { %510 = vperm.xlu1 %6739, %v468_v13   ;;  %507 = vperm.xlu0 %6738, %v467_v14   ;;  %v481_v42 = vsel %vm345_vm3, 1, %v10226_v3  ;;  %vm348_vm4 = vcmp.gt.f32.partialorder %v317_v39, 0.0  ;;  %vm347_vm5 = vcmp.gt.f32.partialorder %v316_v40, 0.0  ;;  %vm350_vm6 = vcmp.gt.f32.partialorder %v319_v43, 0.0  ;;  %v321_v47 = vld [vmem:[%s10223_s4 + $0xcf] sm:$0xff]  ;;  %v320_v48 = vld [vmem:[%s10223_s4 + $0xc7] sm:$0xff] }
  0x19   : > { %v484_v45 = vsel %vm348_vm4, 1, %v10226_v3  ;;  %v483_v46 = vsel %vm347_vm5, 1, %v10226_v3  ;;  %vm349_vm7 = vcmp.gt.f32.partialorder %v318_v44, 0.0  ;;  %v486_v49 = vsel %vm350_vm6, 1, %v10226_v3  ;;  %v323_v51 = vld [vmem:[%s10223_s4 + $0xdf] sm:$0xff]  ;;  %v322_v52 = vld [vmem:[%s10223_s4 + $0xd7] sm:$0xff] }
  0x1a   : > { %v485_v50 = vsel %vm349_vm7, 1, %v10226_v3  ;;  %vm352_vm8 = vcmp.gt.f32.partialorder %v321_v47, 0.0  ;;  %vm351_vm9 = vcmp.gt.f32.partialorder %v320_v48, 0.0  ;;  %vm354_vm10 = vcmp.gt.f32.partialorder %v323_v51, 0.0  ;;  %v325_v55 = vld [vmem:[%s10223_s4 + $0xef] sm:$0xff]  ;;  %v324_v56 = vld [vmem:[%s10223_s4 + $0xe7] sm:$0xff] }
  0x1b   : > { %v488_v53 = vsel %vm352_vm8, 1, %v10226_v3  ;;  %v487_v54 = vsel %vm351_vm9, 1, %v10226_v3  ;;  %vm353_vm11 = vcmp.gt.f32.partialorder %v322_v52, 0.0  ;;  %v490_v57 = vsel %vm354_vm10, 1, %v10226_v3  ;;  %v326_v59 = vld [vmem:[%s10223_s4 + $0xf7] sm:$0x3] }
  0x1c   : > { %516 = vperm.xlu1 %6739, %v470_v17   ;;  %513 = vperm.xlu0 %6738, %v469_v18   ;;  %v489_v58 = vsel %vm353_vm11, 1, %v10226_v3  ;;  %vm356_vm12 = vcmp.gt.f32.partialorder %v325_v55, 0.0  ;;  %vm355_vm13 = vcmp.gt.f32.partialorder %v324_v56, 0.0  ;;  %vm357_vm14 = vcmp.gt.f32.partialorder %v326_v59, 0.0  ;;  %s10456_s22 = smov (!%p249_p3, %s5674_s22), 1  ;;  %s6756_s16 = smov 16  }
  0x1d   : > { %v492_v60 = vsel %vm356_vm12, 1, %v10226_v3  ;;  %v491_v61 = vsel %vm355_vm13, 1, %v10226_v3  ;;  %v493_v62 = vsel %vm357_vm14, 1, %v10226_v3  ;;  %s6725_s17 = smul.u32 640, %s10456_s22  ;;  %v6942_v0 = vld [vmem:[%s10220_s1] ss:$0 sm:$0xff] }
  0x1e   : > { %v6952_v7 = vld [vmem:[%s10221_s2] ss:$0 sm:$0xff]  ;;  %vm680_vm1 = vcmask 1046528   ;;  %s6726_s23 = smul.u32 576, %s10456_s22 }
  0x1f   : > { %s6936_s20 = scalar_lea.vmem %s10219_s0, %s6725_s17 }
  0x20   : > { %522 = vperm.xlu1 %6739, %v472_v21   ;;  %519 = vperm.xlu0 %6738, %v471_v22   ;;  %v267_v63 = vld [vmem:[%s6936_s20 + $0x17] sm:$0xff]  ;;  %v265_v1 = vld [vmem:[%s6936_s20 + $0x7] sm:$0xff]  ;;  %v268_v4 = vld [vmem:[%s6936_s20 + $0x1f] sm:$0xff]  ;;  %s8293_s29 = scalar_lea.vmem %s10224_s5, %s6726_s23 }
  0x21   : > { %v366_v2 = vmul.f32 %v6942_v0, %v267_v63  ;;  %v266_v5 = vld [vmem:[%s6936_s20 + $0xf] sm:$0xff]  ;;  %v364_v6 = vmul.f32 %v6942_v0, %v265_v1  ;;  %v367_v10 = vmul.f32 %v6942_v0, %v268_v4  ;;  %v269_v12 = vld [vmem:[%s6936_s20 + $0x27] sm:$0xff]  ;;  %v272_v15 = vld [vmem:[%s6936_s20 + $0x3f] sm:$0xff] }
  0x22   : > { %v270_v8 = vld [vmem:[%s6936_s20 + $0x2f] sm:$0xff]  ;;  %v365_v11 = vmul.f32 %v6942_v0, %v266_v5  ;;  %v368_v16 = vmul.f32 %v6942_v0, %v269_v12  ;;  %v271_v17 = vld [vmem:[%s6936_s20 + $0x37] sm:$0xff]  ;;  %v371_v21 = vmul.f32 %v6942_v0, %v272_v15  ;;  %v277_v59 = vld [vmem:[%s6936_s20 + $0x67] sm:$0xff] }
  0x23   : > { %v403_v9 = vadd.f32 %v6952_v7, %v366_v2  ;;  %v401_v13 = vadd.f32 %v6952_v7, %v364_v6  ;;  %v369_v14 = vmul.f32 %v6942_v0, %v270_v8  ;;  %v404_v19 = vadd.f32 %v6952_v7, %v367_v10  ;;  %v274_v32 = vld [vmem:[%s6936_s20 + $0x4f] sm:$0xff] }
  0x24   : > { %528 = vperm.xlu1 %6739, %v474_v25   ;;  %525 = vperm.xlu0 %6738, %v473_v26   ;;  %v402_v20 = vadd.f32 %v6952_v7, %v365_v11  ;;  %v370_v26 = vmul.f32 %v6942_v0, %v271_v17  ;;  %v405_v27 = vadd.f32 %v6952_v7, %v368_v16  ;;  %v278_v56 = vld [vmem:[%s6936_s20 + $0x6f] sm:$0xff] }
  0x25   : > { %v434_v18 = vmax.f32 %v403_v9, 0.0  ;;  %v432_v24 = vmax.f32 %v401_v13, 0.0  ;;  %v406_v25 = vadd.f32 %v6952_v7, %v369_v14  ;;  %v408_v31 = vadd.f32 %v6952_v7, %v371_v21  ;;  %v280_v13 = vld [vmem:[%s6936_s20 + $0x7f] sm:$0xff]  ;;  %v279_v14 = vld [vmem:[%s6936_s20 + $0x77] sm:$0xff] }
  0x26   : > { %v436_v40 = vmax.f32 %v405_v27, 0.0  ;;  %v377_v2 = vmul.f32 %v6942_v0, %v278_v56  ;;  %v376_v10 = vmul.f32 %v6942_v0, %v277_v59  ;;  %v283_v56 = vld [vmem:[%s6936_s20 + $0x97] sm:$0xff] }
  0x28   : > { %534 = vperm.xlu1 %6739, %v476_v29   ;;  %531 = vperm.xlu0 %6738, %v475_v30   ;;  %v435_v29 = vmax.f32 %v404_v19, 0.0  ;;  %v433_v30 = vmax.f32 %v402_v20, 0.0  ;;  %v414_v20 = vadd.f32 %v6952_v7, %v377_v2 }
  0x2c   : > { %540 = vperm.xlu1 %6739, %v478_v33   ;;  %537 = vperm.xlu0 %6738, %v477_v34   ;;  %v273_v33 = vld [vmem:[%s6936_s20 + $0x47] sm:$0xff] }
  0x30   : > { %546 = vperm.xlu1 %6739, %v480_v37   ;;  %543 = vperm.xlu0 %6738, %v479_v38   ;;  %v437_v37 = vmax.f32 %v406_v25, 0.0  ;;  %v407_v38 = vadd.f32 %v6952_v7, %v370_v26  ;;  %v379_v25 = vmul.f32 %v6942_v0, %v280_v13  ;;  %v378_v26 = vmul.f32 %v6942_v0, %v279_v14 }
  0x34   : > { %552 = vperm.xlu1 %6739, %v482_v41   ;;  %549 = vperm.xlu0 %6738, %v481_v42   ;;  %v276_v41 = vld [vmem:[%s6936_s20 + $0x5f] sm:$0xff]  ;;  %v275_v42 = vld [vmem:[%s6936_s20 + $0x57] sm:$0xff] }
  0x35   : > { %v374_v55 = vmul.f32 %v6942_v0, %v275_v42  ;;  %v416_v42 = vadd.f32 %v6952_v7, %v379_v25 }
  0x37   : > { %v411_v9 = vadd.f32 %v6952_v7, %v374_v55 }
  0x38   : > { %558 = vperm.xlu1 %6739, %v484_v45   ;;  %555 = vperm.xlu0 %6738, %v483_v46   ;;  %v373_v45 = vmul.f32 %v6942_v0, %v274_v32  ;;  %v372_v46 = vmul.f32 %v6942_v0, %v273_v33 }
  0x3a   : > { %v409_v63 = vadd.f32 %v6952_v7, %v372_v46 }
  0x3c   : > { %564 = vperm.xlu1 %6739, %v486_v49   ;;  %561 = vperm.xlu0 %6738, %v485_v50   ;;  %v439_v49 = vmax.f32 %v408_v31, 0.0 }
  0x40   : > { %570 = vperm.xlu1 %6739, %v488_v53   ;;  %567 = vperm.xlu0 %6738, %v487_v54   ;;  %v438_v53 = vmax.f32 %v407_v38, 0.0  ;;  %v375_v54 = vmul.f32 %v6942_v0, %v276_v41  ;;  %v281_v38 = vld [vmem:[%s6936_s20 + $0x87] sm:$0xff] }
  0x42   : > { %v412_v8 = vadd.f32 %v6952_v7, %v375_v54 }
  0x44   : > { %576 = vperm.xlu1 %6739, %v490_v57   ;;  %573 = vperm.xlu0 %6738, %v489_v58   ;;  %v443_v33 = vmax.f32 %v412_v8, 0.0 }
  0x48   : > { %582 = vperm.xlu1 %6739, %v492_v60   ;;  %579 = vperm.xlu0 %6738, %v491_v61  }
  0x4c   : > { %585 = vperm.xlu0 %6738, %v493_v62   ;;  %v410_v62 = vadd.f32 %v6952_v7, %v373_v45  ;;  %v415_v45 = vadd.f32 %v6952_v7, %v378_v26 }
  0x4e   : > { %v441_v17 = vmax.f32 %v410_v62, 0.0  ;;  %v447_v62 = vmax.f32 %v416_v42, 0.0  ;;  %v290_v42 = vld [vmem:[%s6936_s20 + $0xcf] sm:$0xff] }
  0x8f   : > { %v502_v22 = vpop.permute.xlu1 %501  ;;  %v496_v23 = vpop.permute.xlu0 %495 }
  0x90   : > { %vm589_vm15 = vcmp.eq.s32.totalorder %v502_v22, 1  ;;  %vm587_vm0 = vcmp.eq.s32.totalorder %v496_v23, 1 }
  0x91   : > { %v6970_v28 = vsel %vm589_vm15, %v434_v18, 0.0  ;;  %v6975_v34 = vsel %vm587_vm0, %v432_v24, 0.0  ;;  %v440_v18 = vmax.f32 %v409_v63, 0.0  ;;  %v413_v24 = vadd.f32 %v6952_v7, %v376_v10 }
  0x92   : > { %v684_v39 = vrot.slane %v6970_v28, 1  ;;  %v681_v47 = vrot.slane %v6975_v34, 1  ;;  %v446_v63 = vmax.f32 %v415_v45, 0.0 }
  0x93   : > { %v505_v35 = vpop.permute.xlu1 %504  ;;  %v499_v36 = vpop.permute.xlu0 %498 }
  0x94   : > { %vm590_vm2 = vcmp.eq.s32.totalorder %v505_v35, 1  ;;  %vm588_vm3 = vcmp.eq.s32.totalorder %v499_v36, 1  ;;  %v442_v35 = vmax.f32 %v411_v9, 0.0 }
  0x95   : > { %v6981_v43 = vsel %vm590_vm2, %v435_v29, 0.0  ;;  %v6983_v44 = vsel %vm588_vm3, %v433_v30, 0.0  ;;  %v282_v30 = vld [vmem:[%s6936_s20 + $0x8f] sm:$0xff] }
  0x96   : > { %v682_v48 = vrot.slane %v6983_v44, 1  ;;  %v686_v50 = vrot.slane %v6981_v43, 1  ;;  %v381_v46 = vmul.f32 %v6942_v0, %v282_v30 }
  0x97   : > { %v511_v51 = vpop.permute.xlu1 %510  ;;  %v508_v52 = vpop.permute.xlu0 %507 }
  0x98   : > { %vm592_vm4 = vcmp.eq.s32.totalorder %v511_v51, 1  ;;  %vm591_vm5 = vcmp.eq.s32.totalorder %v508_v52, 1  ;;  %v685_v57 = vsel %vm680_vm1, %v682_v48, %v684_v39  ;;  %v683_v58 = vsel %vm680_vm1, %v681_v47, %v682_v48  ;;  %v284_v47 = vld [vmem:[%s6936_s20 + $0x9f] sm:$0xff] }
  0x99   : > { %v6996_v60 = vsel %vm592_vm4, %v437_v37, 0.0  ;;  %v6998_v61 = vsel %vm591_vm5, %v436_v40, 0.0  ;;  %744 = vrot.lane.b32.xlu0 %v685_v57, %s6755_s27  ;;  %742 = vrot.lane.b32.xlu1 %v683_v58, %s6755_s27  ;;  %v687_v12 = vsel %vm680_vm1, %v684_v39, %v686_v50  ;;  %v445_v37 = vmax.f32 %v414_v20, 0.0 }
  0x9a   : > { %v688_v1 = vrot.slane %v6998_v61, 1  ;;  %v690_v4 = vrot.slane %v6996_v60, 1  ;;  %v444_v52 = vmax.f32 %v413_v24, 0.0  ;;  %v383_v55 = vmul.f32 %v6942_v0, %v284_v47  ;;  %v288_v24 = vld [vmem:[%s6936_s20 + $0xbf] sm:$0xff] }
  0x9b   : > { %v517_v5 = vpop.permute.xlu1 %516  ;;  %v514_v6 = vpop.permute.xlu0 %513 }
  0x9c   : > { %vm594_vm6 = vcmp.eq.s32.totalorder %v517_v5, 1  ;;  %vm593_vm7 = vcmp.eq.s32.totalorder %v514_v6, 1  ;;  %v689_v11 = vsel %vm680_vm1, %v686_v50, %v688_v1  ;;  %v691_v23 = vsel %vm680_vm1, %v688_v1, %v690_v4  ;;  %v286_v5 = vld [vmem:[%s6936_s20 + $0xaf] sm:$0xff]  ;;  %v285_v6 = vld [vmem:[%s6936_s20 + $0xa7] sm:$0xff] }
  0x9d   : > { %v7014_v15 = vsel %vm594_vm6, %v439_v49, 0.0  ;;  %v7016_v16 = vsel %vm593_vm7, %v438_v53, 0.0  ;;  %748 = vrot.lane.b32.xlu0 %v689_v11, %s6755_s27  ;;  %746 = vrot.lane.b32.xlu1 %v687_v12, %s6755_s27  ;;  %v380_v53 = vmul.f32 %v6942_v0, %v281_v38  ;;  %v418_v1 = vadd.f32 %v6952_v7, %v381_v46 }
  0x9e   : > { %v692_v19 = vrot.slane %v7016_v16, 1  ;;  %v694_v27 = vrot.slane %v7014_v15, 1  ;;  %v382_v11 = vmul.f32 %v6942_v0, %v283_v56  ;;  %v420_v13 = vadd.f32 %v6952_v7, %v383_v55  ;;  %v289_v55 = vld [vmem:[%s6936_s20 + $0xc7] sm:$0xff] }
  0x9f   : > { %v523_v21 = vpop.permute.xlu1 %522  ;;  %v520_v22 = vpop.permute.xlu0 %519  ;;  %v417_v10 = vadd.f32 %v6952_v7, %v380_v53  ;;  %v385_v20 = vmul.f32 %v6942_v0, %v286_v5  ;;  %v291_v5 = vld [vmem:[%s6936_s20 + $0xd7] sm:$0xff] }
  0xa0   : > { %vm596_vm8 = vcmp.eq.s32.totalorder %v523_v21, 1  ;;  %vm595_vm9 = vcmp.eq.s32.totalorder %v520_v22, 1  ;;  %v693_v29 = vsel %vm680_vm1, %v690_v4, %v692_v19  ;;  %v695_v49 = vsel %vm680_vm1, %v692_v19, %v694_v27 }
  0xa1   : > { %v7029_v31 = vsel %vm596_vm8, %v441_v17, 0.0  ;;  %v7031_v32 = vsel %vm595_vm9, %v440_v18, 0.0  ;;  %752 = vrot.lane.b32.xlu0 %v693_v29, %s6755_s27  ;;  %750 = vrot.lane.b32.xlu1 %v691_v23, %s6755_s27  ;;  %v449_v19 = vmax.f32 %v418_v1, 0.0  ;;  %v384_v21 = vmul.f32 %v6942_v0, %v285_v6 }
  0xa2   : > { %v696_v36 = vrot.slane %v7031_v32, 1  ;;  %v698_v39 = vrot.slane %v7029_v31, 1  ;;  %v419_v29 = vadd.f32 %v6952_v7, %v382_v11 }
  0xa3   : > { %v529_v40 = vpop.permute.xlu1 %528  ;;  %v526_v41 = vpop.permute.xlu0 %525 }
  0xa4   : > { %vm598_vm10 = vcmp.eq.s32.totalorder %v529_v40, 1  ;;  %vm597_vm11 = vcmp.eq.s32.totalorder %v526_v41, 1  ;;  %v697_v48 = vsel %vm680_vm1, %v694_v27, %v696_v36  ;;  %v699_v59 = vsel %vm680_vm1, %v696_v36, %v698_v39 }
  0xa5   : > { %v7044_v50 = vsel %vm598_vm10, %v443_v33, 0.0  ;;  %v7046_v51 = vsel %vm597_vm11, %v442_v35, 0.0  ;;  %756 = vrot.lane.b32.xlu0 %v697_v48, %s6755_s27  ;;  %754 = vrot.lane.b32.xlu1 %v695_v49, %s6755_s27  ;;  %v448_v27 = vmax.f32 %v417_v10, 0.0  ;;  %v451_v33 = vmax.f32 %v420_v13, 0.0  ;;  %v287_v35 = vld [vmem:[%s6936_s20 + $0xb7] sm:$0xff] }
  0xa6   : > { %v700_v54 = vrot.slane %v7046_v51, 1  ;;  %v702_v2 = vrot.slane %v7044_v50, 1  ;;  %v421_v40 = vadd.f32 %v6952_v7, %v384_v21  ;;  %v387_v41 = vmul.f32 %v6942_v0, %v288_v24 }
  0xa7   : > { %v535_v57 = vpop.permute.xlu1 %534  ;;  %v532_v58 = vpop.permute.xlu0 %531  ;;  %v450_v49 = vmax.f32 %v419_v29, 0.0 }
  0xa8   : > { %vm600_vm12 = vcmp.eq.s32.totalorder %v535_v57, 1  ;;  %vm599_vm13 = vcmp.eq.s32.totalorder %v532_v58, 1  ;;  %v701_v4 = vsel %vm680_vm1, %v698_v39, %v700_v54  ;;  %v703_v23 = vsel %vm680_vm1, %v700_v54, %v702_v2 }
  0xa9   : > { %v7060_v8 = vsel %vm600_vm12, %v445_v37, 0.0  ;;  %v7062_v9 = vsel %vm599_vm13, %v444_v52, 0.0  ;;  %760 = vrot.lane.b32.xlu0 %v701_v4, %s6755_s27  ;;  %758 = vrot.lane.b32.xlu1 %v699_v59, %s6755_s27  ;;  %v422_v39 = vadd.f32 %v6952_v7, %v385_v20  ;;  %v386_v52 = vmul.f32 %v6942_v0, %v287_v35  ;;  %v292_v4 = vld [vmem:[%s6936_s20 + $0xdf] sm:$0xff] }
  0xaa   : > { %v704_v12 = vrot.slane %v7062_v9, 1  ;;  %v706_v14 = vrot.slane %v7060_v8, 1  ;;  %v389_v54 = vmul.f32 %v6942_v0, %v290_v42  ;;  %v391_v21 = vmul.f32 %v6942_v0, %v292_v4 }
  0xab   : > { %v541_v17 = vpop.permute.xlu1 %540  ;;  %v538_v18 = vpop.permute.xlu0 %537  ;;  %v453_v59 = vmax.f32 %v422_v39, 0.0  ;;  %v423_v11 = vadd.f32 %v6952_v7, %v386_v52 }
  0xac   : > { %vm602_vm14 = vcmp.eq.s32.totalorder %v541_v17, 1  ;;  %vm601_vm15 = vcmp.eq.s32.totalorder %v538_v18, 1  ;;  %v705_v22 = vsel %vm680_vm1, %v702_v2, %v704_v12  ;;  %v707_v38 = vsel %vm680_vm1, %v704_v12, %v706_v14 }
  0xad   : > { %v7076_v25 = vsel %vm602_vm14, %v447_v62, 0.0  ;;  %v7078_v26 = vsel %vm601_vm15, %v446_v63, 0.0  ;;  %764 = vrot.lane.b32.xlu0 %v705_v22, %s6755_s27  ;;  %762 = vrot.lane.b32.xlu1 %v703_v23, %s6755_s27  ;;  %v452_v62 = vmax.f32 %v421_v40, 0.0  ;;  %v424_v63 = vadd.f32 %v6952_v7, %v387_v41 }
  0xae   : > { %v708_v30 = vrot.slane %v7078_v26, 1  ;;  %v710_v45 = vrot.slane %v7076_v25, 1  ;;  %v388_v12 = vmul.f32 %v6942_v0, %v289_v55  ;;  %v390_v22 = vmul.f32 %v6942_v0, %v291_v5 }
  0xaf   : > { %v547_v36 = vpop.permute.xlu1 %546  ;;  %v544_v37 = vpop.permute.xlu0 %543  ;;  %v455_v20 = vmax.f32 %v424_v63, 0.0  ;;  %v428_v42 = vadd.f32 %v6952_v7, %v391_v21 }
  0xb0   : > { %vm604_vm0 = vcmp.eq.s32.totalorder %v547_v36, 1  ;;  %vm603_vm2 = vcmp.eq.s32.totalorder %v544_v37, 1  ;;  %v709_v46 = vsel %vm680_vm1, %v706_v14, %v708_v30  ;;  %v711_v2 = vsel %vm680_vm1, %v708_v30, %v710_v45 }
  0xb1   : > { %v7092_v47 = vsel %vm604_vm0, %v449_v19, 0.0  ;;  %v7094_v48 = vsel %vm603_vm2, %v448_v27, 0.0  ;;  %768 = vrot.lane.b32.xlu0 %v709_v46, %s6755_s27  ;;  %766 = vrot.lane.b32.xlu1 %v707_v38, %s6755_s27  ;;  %v426_v14 = vadd.f32 %v6952_v7, %v389_v54  ;;  %v294_v27 = vld [vmem:[%s6936_s20 + $0xef] sm:$0xff]  ;;  %v425_v35 = vadd.f32 %v6952_v7, %v388_v12  ;;  %v293_v38 = vld [vmem:[%s6936_s20 + $0xe7] sm:$0xff] }
  0xb2   : > { %v712_v53 = vrot.slane %v7094_v48, 1  ;;  %v714_v56 = vrot.slane %v7092_v47, 1  ;;  %v393_v46 = vmul.f32 %v6942_v0, %v294_v27  ;;  %v1046_v27 = vld [vmem:[%s10222_s3] sm:$0xff]  ;;  %vm832_vm0 = vcmask 1045504  }
  0xb3   : > { %v553_v57 = vpop.permute.xlu1 %552  ;;  %v550_v58 = vpop.permute.xlu0 %549  ;;  %v457_v37 = vmax.f32 %v426_v14, 0.0  ;;  %v456_v55 = vmax.f32 %v425_v35, 0.0 }
  0xb4   : > { %vm606_vm3 = vcmp.eq.s32.totalorder %v553_v57, 1  ;;  %vm605_vm4 = vcmp.eq.s32.totalorder %v550_v58, 1  ;;  %v713_v1 = vsel %vm680_vm1, %v710_v45, %v712_v53  ;;  %v715_v19 = vsel %vm680_vm1, %v712_v53, %v714_v56  ;;  %v295_v58 = vld [vmem:[%s6936_s20 + $0xf7] sm:$0x3] }
  0xb5   : > { %v7108_v6 = vsel %vm606_vm3, %v451_v33, 0.0  ;;  %v7110_v10 = vsel %vm605_vm4, %v450_v49, 0.0  ;;  %772 = vrot.lane.b32.xlu0 %v713_v1, %s6755_s27  ;;  %770 = vrot.lane.b32.xlu1 %v711_v2, %s6755_s27  ;;  %v454_v33 = vmax.f32 %v423_v11, 0.0  ;;  %v427_v45 = vadd.f32 %v6952_v7, %v390_v22 }
  0xb6   : > { %v716_v13 = vrot.slane %v7110_v10, 1  ;;  %v718_v23 = vrot.slane %v7108_v6, 1  ;;  %v459_v1 = vmax.f32 %v428_v42, 0.0  ;;  %v430_v4 = vadd.f32 %v6952_v7, %v393_v46 }
  0xb7   : > { %v559_v17 = vpop.permute.xlu1 %558  ;;  %v556_v18 = vpop.permute.xlu0 %555  ;;  %v458_v2 = vmax.f32 %v427_v45, 0.0 }
  0xb8   : > { %vm608_vm5 = vcmp.eq.s32.totalorder %v559_v17, 1  ;;  %vm607_vm6 = vcmp.eq.s32.totalorder %v556_v18, 1  ;;  %v717_v24 = vsel %vm680_vm1, %v714_v56, %v716_v13  ;;  %v719_v52 = vsel %vm680_vm1, %v716_v13, %v718_v23 }
  0xb9   : > { %v7124_v29 = vsel %vm608_vm5, %v453_v59, 0.0  ;;  %v7126_v30 = vsel %vm607_vm6, %v452_v62, 0.0  ;;  %776 = vrot.lane.b32.xlu0 %v717_v24, %s6755_s27  ;;  %774 = vrot.lane.b32.xlu1 %v715_v19, %s6755_s27  ;;  %v392_v56 = vmul.f32 %v6942_v0, %v293_v38  ;;  %v394_v17 = vmul.f32 %v6942_v0, %v295_v58  ;;  %v1047_v0 = vld [vmem:[%s10222_s3 + $0x8] sm:$0xff] }
  0xba   : > { %v720_v36 = vrot.slane %v7126_v30, 1  ;;  %v722_v39 = vrot.slane %v7124_v29, 1  ;;  %v461_v22 = vmax.f32 %v430_v4, 0.0  ;;  %v7179_v42 = vpack.c.bf16 %v1047_v0, %v1046_v27 }
  0xbb   : > { %v565_v40 = vpop.permute.xlu1 %564  ;;  %v562_v41 = vpop.permute.xlu0 %561  ;;  %v429_v14 = vadd.f32 %v6952_v7, %v392_v56  ;;  %v842_v27 = vrot.slane %v6996_v60, 2  ;;  %v844_v0 = vrot.slane %v7016_v16, 2 }
  0xbc   : > { %vm610_vm7 = vcmp.eq.s32.totalorder %v565_v40, 1  ;;  %vm609_vm8 = vcmp.eq.s32.totalorder %v562_v41, 1  ;;  %v721_v49 = vsel %vm680_vm1, %v718_v23, %v720_v36  ;;  %v723_v63 = vsel %vm680_vm1, %v720_v36, %v722_v39  ;;  %6546 = vmatprep.subr.bf16.mxu0 %v7179_v42 }
  0xbd   : > { %v7139_v53 = vsel %vm610_vm7, %v455_v20, 0.0  ;;  %v7141_v54 = vsel %vm609_vm8, %v454_v33, 0.0  ;;  %780 = vrot.lane.b32.xlu0 %v721_v49, %s6755_s27  ;;  %778 = vrot.lane.b32.xlu1 %v719_v52, %s6755_s27  ;;  %v460_v36 = vmax.f32 %v429_v14, 0.0  ;;  %v834_v14 = vrot.slane %v6983_v44, 2 }
  0xbe   : > { %v724_v57 = vrot.slane %v7141_v54, 1  ;;  %v726_v5 = vrot.slane %v7139_v53, 1  ;;  %6548 = vmatpush3.bf16.msra.mxu0 %v7179_v42  ;;  %vm984_vm8 = vcmask 64512  }
  0xbf   : > { %v571_v59 = vpop.permute.xlu1 %570  ;;  %v568_v62 = vpop.permute.xlu0 %567 }
  0xc0   : > { %vm612_vm9 = vcmp.eq.s32.totalorder %v571_v59, 1  ;;  %vm611_vm10 = vcmp.eq.s32.totalorder %v568_v62, 1  ;;  %v725_v11 = vsel %vm680_vm1, %v722_v39, %v724_v57  ;;  %v727_v24 = vsel %vm680_vm1, %v724_v57, %v726_v5 }
  0xc1   : > { %v7152_v12 = vsel %vm612_vm9, %v457_v37, 0.0  ;;  %v7154_v13 = vsel %vm611_vm10, %v456_v55, 0.0  ;;  %784 = vrot.lane.b32.xlu0 %v725_v11, %s6755_s27  ;;  %782 = vrot.lane.b32.xlu1 %v723_v63, %s6755_s27  ;;  %v431_v37 = vadd.f32 %v6952_v7, %v394_v17  ;;  %v7192_v55 = vld [vmem:[%s10222_s3 + $0x10] sm:$0xff]  ;;  %v5684_v63 = vld [vmem:[%s10222_s3 + $0x18] sm:$0xff]  ;;  %v836_v11 = vrot.slane %v6970_v28, 2 }
  0xc2   : > { %10300 = vst [vmem:[#allocation2_spill] sm:$0xff] %v7152_v12  ;;  %10301 = vst [vmem:[#allocation3_spill] sm:$0xff] %v7154_v13  ;;  %v728_v18 = vrot.slane %v7154_v13, 1  ;;  %v730_v19 = vrot.slane %v7152_v12, 1  ;;  %6209 = vmatprep.subr.mxu0 %v7192_v55  ;;  %vm1015_vm9 = vcmask 130048   ;;  %vm1053_vm10 = vcmask 195584  }
  0xc3   : > { %v577_v20 = vpop.permute.xlu1 %576  ;;  %v574_v21 = vpop.permute.xlu0 %573  ;;  %v462_v7 = vmax.f32 %v431_v37, 0.0  ;;  %6210 = vmatpush3.msra.mxu0 %v7192_v55 }
  0xc4   : > { %vm614_vm11 = vcmp.eq.s32.totalorder %v577_v20, 1  ;;  %vm613_vm12 = vcmp.eq.s32.totalorder %v574_v21, 1  ;;  %v729_v23 = vsel %vm680_vm1, %v726_v5, %v728_v18  ;;  %v731_v41 = vsel %vm680_vm1, %v728_v18, %v730_v19 }
  0xc5   : > { %v7170_v33 = vsel %vm614_vm11, %v459_v1, 0.0  ;;  %v7172_v35 = vsel %vm613_vm12, %v458_v2, 0.0  ;;  %788 = vrot.lane.b32.xlu0 %v729_v23, %s6755_s27  ;;  %786 = vrot.lane.b32.xlu1 %v727_v24, %s6755_s27  ;;  %v5685_v1 = vld [vmem:[%s10222_s3 + $0x20] sm:$0xff]  ;;  %v833_v20 = vrot.slane %v6975_v34, 2  ;;  %v838_v21 = vrot.slane %v6981_v43, 2 }
  0xc6   : > { %10302 = vst [vmem:[#allocation4_spill] sm:$0xff] %v7170_v33  ;;  %10303 = vst [vmem:[#allocation5_spill] sm:$0xff] %v7172_v35  ;;  %v732_v38 = vrot.slane %v7172_v35, 1  ;;  %v734_v45 = vrot.slane %v7170_v33, 1  ;;  %v6541_v5 = vpack.c.bf16 %v5685_v1, %v5684_v63  ;;  %v837_v23 = vsel %vm832_vm0, %v834_v14, %v836_v11 }
  0xc7   : > { %v583_v39 = vpop.permute.xlu1 %582  ;;  %v580_v40 = vpop.permute.xlu0 %579  ;;  %v835_v24 = vsel %vm832_vm0, %v833_v20, %v834_v14  ;;  %v839_v37 = vsel %vm832_vm0, %v836_v11, %v838_v21  ;;  %v856_v63 = vrot.slane %v7062_v9, 2  ;;  %v860_v11 = vrot.slane %v7078_v26, 2 }
  0xc8   : > { %vm616_vm13 = vcmp.eq.s32.totalorder %v583_v39, 1  ;;  %vm615_vm14 = vcmp.eq.s32.totalorder %v580_v40, 1  ;;  %v733_v46 = vsel %vm680_vm1, %v730_v19, %v732_v38  ;;  %v735_v62 = vsel %vm680_vm1, %v732_v38, %v734_v45  ;;  %v5686_v19 = vld [vmem:[%s10222_s3 + $0x28] sm:$0xff]  ;;  %6542 = vmatprep.subr.bf16.mxu1 %v6541_v5 }
  0xc9   : > { %v7183_v49 = vsel %vm616_vm13, %v461_v22, 0.0  ;;  %v7185_v52 = vsel %vm615_vm14, %v460_v36, 0.0  ;;  %792 = vrot.lane.b32.xlu0 %v733_v46, %s6755_s27  ;;  %790 = vrot.lane.b32.xlu1 %v731_v41, %s6755_s27  ;;  %v840_v22 = vrot.slane %v6998_v61, 2  ;;  %v846_v38 = vrot.slane %v7014_v15, 2  ;;  %v5736_v46 = vld [vmem:[%s10222_s3 + $0x38] sm:$0xff] }
  0xca   : > { %10304 = vst [vmem:[#allocation6_spill] sm:$0xff] %v7183_v49  ;;  %10305 = vst [vmem:[#allocation7_spill] sm:$0xff] %v7185_v52  ;;  %v736_v56 = vrot.slane %v7185_v52, 1  ;;  %v738_v58 = vrot.slane %v7183_v49, 1  ;;  %6544 = vmatpush3.bf16.msra.mxu1 %v6541_v5  ;;  %v848_v39 = vrot.slane %v7031_v32, 2  ;;  %v845_v40 = vsel %vm832_vm0, %v842_v27, %v844_v0 }
  0xcb   : > { %v586_v57 = vpop.permute.xlu0 %585  ;;  %6167 = vmatprep.subr.mxu1 %v5686_v19  ;;  %v841_v36 = vsel %vm832_vm0, %v838_v21, %v840_v22  ;;  %v843_v41 = vsel %vm832_vm0, %v840_v22, %v842_v27  ;;  %v858_v5 = vrot.slane %v7060_v8, 2  ;;  %v866_v22 = vrot.slane %v7092_v47, 2 }
  0xcc   : > { %vm617_vm15 = vcmp.eq.s32.totalorder %v586_v57, 1  ;;  %v737_v59 = vsel %vm680_vm1, %v734_v45, %v736_v56  ;;  %v739_v18 = vsel %vm680_vm1, %v736_v56, %v738_v58  ;;  %v5735_v45 = vld [vmem:[%s10222_s3 + $0x30] sm:$0xff]  ;;  %v850_v56 = vrot.slane %v7029_v31, 2 }
  0xcd   : > { %v7207_v2 = vsel %vm617_vm15, %v462_v7, 0.0  ;;  %796 = vrot.lane.b32.xlu0 %v737_v59, %s6755_s27  ;;  %794 = vrot.lane.b32.xlu1 %v735_v62, %s6755_s27  ;;  %v7248_v7 = vpack.c.bf16 %v5736_v46, %v5735_v45  ;;  %v852_v57 = vrot.slane %v7046_v51, 2  ;;  %v847_v59 = vsel %vm832_vm0, %v844_v0, %v846_v38 }
  0xce   : > { %v740_v4 = vrot.slane %v7207_v2, 1  ;;  %6168 = vmatpush3.msra.mxu1 %v5686_v19  ;;  %v854_v62 = vrot.slane %v7044_v50, 2  ;;  %v864_v19 = vrot.slane %v7094_v48, 2  ;;  %v861_v20 = vsel %vm832_vm0, %v858_v5, %v860_v11 }
  0xcf   : > { %6577 = vmatprep.subr.bf16.mxu1 %v7179_v42  ;;  %6550 = vmatprep.subr.bf16.mxu0 %v7248_v7  ;;  %v853_v1 = vsel %vm832_vm0, %v850_v56, %v852_v57  ;;  %v859_v21 = vsel %vm832_vm0, %v856_v63, %v858_v5  ;;  %v870_v0 = vrot.slane %v7108_v6, 2  ;;  %v878_v46 = vrot.slane %v7139_v53, 2 }
  0xd0   : > { %v741_v17 = vsel %vm680_vm1, %v738_v58, %v740_v4  ;;  %v849_v58 = vsel %vm832_vm0, %v846_v38, %v848_v39  ;;  %v851_v4 = vsel %vm832_vm0, %v848_v39, %v850_v56  ;;  %v857_v14 = vsel %vm832_vm0, %v854_v62, %v856_v63 }
  0xd1   : > { %800 = vrot.lane.b32.xlu0 %v741_v17, %s6755_s27  ;;  %798 = vrot.lane.b32.xlu1 %v739_v18, %s6755_s27  ;;  %v855_v17 = vsel %vm832_vm0, %v852_v57, %v854_v62  ;;  %v862_v18 = vrot.slane %v7076_v25, 2  ;;  %v867_v38 = vsel %vm832_vm0, %v864_v19, %v866_v22  ;;  %v874_v39 = vrot.slane %v7124_v29, 2 }
  0xd2   : > { %v880_v56 = vrot.slane %v7154_v13, 2  ;;  %v884_v62 = vrot.slane %v7172_v35, 2  ;;  %v888_v5 = vrot.slane %v7185_v52, 2  ;;  %v2085_v52 = vld [vmem:[%s10223_s4 + $0xdf] sm:$0xff] }
  0xd3   : > { %v863_v27 = vsel %vm832_vm0, %v860_v11, %v862_v18  ;;  %vm2116_vm4 = vcmp.gt.f32.partialorder %v2085_v52, 0.0  ;;  %v2089_v52 = vld [vmem:[%s10223_s4 + $0xff] sm:$0xff] }
  0xd4   : > { %v881_v63 = vsel %vm832_vm0, %v878_v46, %v880_v56  ;;  %vm2120_vm11 = vcmp.gt.f32.partialorder %v2089_v52, 0.0 }
  0xd5   : > { %896 = vrot.lane.b32.xlu0 %v837_v23, %s6756_s16  ;;  %894 = vrot.lane.b32.xlu1 %v835_v24, %s6756_s16  ;;  %v868_v23 = vrot.slane %v7110_v10, 2  ;;  %v865_v24 = vsel %vm832_vm0, %v862_v18, %v864_v19  ;;  %v892_v18 = vrot.slane %v7207_v2, 2  ;;  %v1728_v2 = vld [vmem:[%s10223_s4 + $0x28] sm:$0xff] }
  0xd7   : > { %v871_v45 = vsel %vm832_vm0, %v868_v23, %v870_v0 }
  0xd9   : > { %900 = vrot.lane.b32.xlu0 %v841_v36, %s6756_s16  ;;  %898 = vrot.lane.b32.xlu1 %v839_v37, %s6756_s16  ;;  %v872_v36 = vrot.slane %v7126_v30, 2  ;;  %v869_v37 = vsel %vm832_vm0, %v866_v22, %v868_v23 }
  0xdd   : > { %904 = vrot.lane.b32.xlu0 %v845_v40, %s6756_s16  ;;  %902 = vrot.lane.b32.xlu1 %v843_v41, %s6756_s16  ;;  %v876_v40 = vrot.slane %v7141_v54, 2  ;;  %v873_v41 = vsel %vm832_vm0, %v870_v0, %v872_v36 }
  0xdf   : > { %v877_v57 = vsel %vm832_vm0, %v874_v39, %v876_v40 }
  0xe1   : > { %908 = vrot.lane.b32.xlu0 %v849_v58, %s6756_s16  ;;  %906 = vrot.lane.b32.xlu1 %v847_v59, %s6756_s16  ;;  %v875_v58 = vsel %vm832_vm0, %v872_v36, %v874_v39  ;;  %v882_v59 = vrot.slane %v7152_v12, 2 }
  0xe3   : > { %v885_v11 = vsel %vm832_vm0, %v882_v59, %v884_v62 }
  0xe5   : > { %912 = vrot.lane.b32.xlu0 %v853_v1, %s6756_s16  ;;  %910 = vrot.lane.b32.xlu1 %v851_v4, %s6756_s16  ;;  %v879_v1 = vsel %vm832_vm0, %v876_v40, %v878_v46  ;;  %v886_v4 = vrot.slane %v7170_v33, 2 }
  0xe7   : > { %v889_v19 = vsel %vm832_vm0, %v886_v4, %v888_v5 }
  0xe9   : > { %916 = vrot.lane.b32.xlu0 %v857_v14, %s6756_s16  ;;  %914 = vrot.lane.b32.xlu1 %v855_v17, %s6756_s16  ;;  %v883_v14 = vsel %vm832_vm0, %v880_v56, %v882_v59  ;;  %v890_v17 = vrot.slane %v7183_v49, 2 }
  0xeb   : > { %v893_v23 = vsel %vm832_vm0, %v890_v17, %v892_v18 }
  0xed   : > { %920 = vrot.lane.b32.xlu0 %v861_v20, %s6756_s16  ;;  %918 = vrot.lane.b32.xlu1 %v859_v21, %s6756_s16  ;;  %v887_v20 = vsel %vm832_vm0, %v884_v62, %v886_v4 }
  0xf1   : > { %924 = vrot.lane.b32.xlu0 %v865_v24, %s6756_s16  ;;  %922 = vrot.lane.b32.xlu1 %v863_v27, %s6756_s16  ;;  %v891_v24 = vsel %vm832_vm0, %v888_v5, %v890_v17  ;;  %v1727_v27 = vld [vmem:[%s10223_s4 + $0x20] sm:$0xff] }
  0xf5   : > { %928 = vrot.lane.b32.xlu0 %v869_v37, %s6756_s16  ;;  %926 = vrot.lane.b32.xlu1 %v867_v38, %s6756_s16  ;;  %v1730_v37 = vld [vmem:[%s10223_s4 + $0x38] sm:$0xff]  ;;  %v1729_v38 = vld [vmem:[%s10223_s4 + $0x30] sm:$0xff] }
  0xf9   : > { %932 = vrot.lane.b32.xlu0 %v873_v41, %s6756_s16  ;;  %930 = vrot.lane.b32.xlu1 %v871_v45, %s6756_s16  ;;  %v1732_v41 = vld [vmem:[%s10223_s4 + $0x48] sm:$0xff]  ;;  %v1731_v45 = vld [vmem:[%s10223_s4 + $0x40] sm:$0xff] }
  0xfd   : > { %936 = vrot.lane.b32.xlu0 %v877_v57, %s6756_s16  ;;  %934 = vrot.lane.b32.xlu1 %v875_v58, %s6756_s16  ;;  %v1734_v57 = vld [vmem:[%s10223_s4 + $0x58] sm:$0xff]  ;;  %v1733_v58 = vld [vmem:[%s10223_s4 + $0x50] sm:$0xff] }
 0x101   : > { %940 = vrot.lane.b32.xlu0 %v881_v63, %s6756_s16  ;;  %938 = vrot.lane.b32.xlu1 %v879_v1, %s6756_s16  ;;  %v1736_v63 = vld [vmem:[%s10223_s4 + $0x68] sm:$0xff]  ;;  %v1735_v1 = vld [vmem:[%s10223_s4 + $0x60] sm:$0xff] }
 0x105   : > { %944 = vrot.lane.b32.xlu0 %v885_v11, %s6756_s16  ;;  %942 = vrot.lane.b32.xlu1 %v883_v14, %s6756_s16  ;;  %v1738_v11 = vld [vmem:[%s10223_s4 + $0x78] sm:$0xff]  ;;  %v1737_v14 = vld [vmem:[%s10223_s4 + $0x70] sm:$0xff] }
 0x109   : > { %948 = vrot.lane.b32.xlu0 %v889_v19, %s6756_s16  ;;  %946 = vrot.lane.b32.xlu1 %v887_v20, %s6756_s16  ;;  %v1740_v19 = vld [vmem:[%s10223_s4 + $0x88] sm:$0xff]  ;;  %v1739_v20 = vld [vmem:[%s10223_s4 + $0x80] sm:$0xff] }
 0x10b   : > { %v7317_v21 = vpop.permute.xlu0 %744  ;;  %v7319_v22 = vpop.permute.xlu1 %742 }
 0x10d   : > { %952 = vrot.lane.b32.xlu0 %v893_v23, %s6756_s16  ;;  %950 = vrot.lane.b32.xlu1 %v891_v24, %s6756_s16 }
 0x10f   : > { %v7331_v0 = vpop.permute.xlu0 %748  ;;  %v7333_v36 = vpop.permute.xlu1 %746 }
 0x111   : > { %1758 = vperm.xlu0 %6738, %v1728_v2   ;;  %1753 = vperm.xlu1 %6739, %v1727_v27   ;;  %v1742_v2 = vld [vmem:[%s10223_s4 + $0x98] sm:$0xff]  ;;  %v1741_v27 = vld [vmem:[%s10223_s4 + $0x90] sm:$0xff] }
 0x113   : > { %v7341_v39 = vpop.permute.xlu0 %752  ;;  %v7343_v40 = vpop.permute.xlu1 %750 }
 0x115   : > { %1768 = vperm.xlu0 %6738, %v1730_v37   ;;  %1763 = vperm.xlu1 %6739, %v1729_v38  }
 0x117   : > { %v7351_v46 = vpop.permute.xlu0 %756  ;;  %v7353_v56 = vpop.permute.xlu1 %754 }
 0x119   : > { %1778 = vperm.xlu0 %6738, %v1732_v41   ;;  %1773 = vperm.xlu1 %6739, %v1731_v45   ;;  %v1744_v41 = vld [vmem:[%s10223_s4 + $0xa8] sm:$0xff]  ;;  %v1743_v45 = vld [vmem:[%s10223_s4 + $0xa0] sm:$0xff] }
 0x11b   : > { %v7361_v59 = vpop.permute.xlu0 %760  ;;  %v7363_v62 = vpop.permute.xlu1 %758 }
 0x11d   : > { %1788 = vperm.xlu0 %6738, %v1734_v57   ;;  %1783 = vperm.xlu1 %6739, %v1733_v58  }
 0x11f   : > { %v7371_v4 = vpop.permute.xlu0 %764  ;;  %v7373_v5 = vpop.permute.xlu1 %762 }
 0x121   : > { %1798 = vperm.xlu0 %6738, %v1736_v63   ;;  %1793 = vperm.xlu1 %6739, %v1735_v1   ;;  %v1746_v63 = vld [vmem:[%s10223_s4 + $0xb8] sm:$0xff]  ;;  %v1745_v1 = vld [vmem:[%s10223_s4 + $0xb0] sm:$0xff] }
 0x123   : > { %v7381_v17 = vpop.permute.xlu0 %768  ;;  %v7383_v18 = vpop.permute.xlu1 %766 }
 0x125   : > { %1808 = vperm.xlu0 %6738, %v1738_v11   ;;  %1803 = vperm.xlu1 %6739, %v1737_v14  }
 0x127   : > { %v7391_v23 = vpop.permute.xlu0 %772  ;;  %v7393_v24 = vpop.permute.xlu1 %770 }
 0x129   : > { %1818 = vperm.xlu0 %6738, %v1740_v19   ;;  %1813 = vperm.xlu1 %6739, %v1739_v20   ;;  %v1748_v19 = vld [vmem:[%s10223_s4 + $0xc8] sm:$0xff]  ;;  %v1747_v20 = vld [vmem:[%s10223_s4 + $0xc0] sm:$0xff] }
 0x12b   : > { %v7401_v37 = vpop.permute.xlu0 %776  ;;  %v7403_v38 = vpop.permute.xlu1 %774 }
 0x12d   : > { %1828 = vperm.xlu0 %6738, %v1742_v2   ;;  %1823 = vperm.xlu1 %6739, %v1741_v27  }
 0x12f   : > { %v7411_v57 = vpop.permute.xlu0 %780  ;;  %v7413_v58 = vpop.permute.xlu1 %778 }
 0x131   : > { %1838 = vperm.xlu0 %6738, %v1744_v41   ;;  %1833 = vperm.xlu1 %6739, %v1743_v45   ;;  %v2083_v41 = vld [vmem:[%s10223_s4 + $0xcf] sm:$0xff]  ;;  %v2082_v45 = vld [vmem:[%s10223_s4 + $0xc7] sm:$0xff] }
 0x132   : > { %vm2114_vm2 = vcmp.gt.f32.partialorder %v2083_v41, 0.0  ;;  %vm2113_vm3 = vcmp.gt.f32.partialorder %v2082_v45, 0.0  ;;  %v2087_v41 = vld [vmem:[%s10223_s4 + $0xef] sm:$0xff]  ;;  %v2086_v45 = vld [vmem:[%s10223_s4 + $0xe7] sm:$0xff] }
 0x133   : > { %v7421_v11 = vpop.permute.xlu0 %784  ;;  %v7423_v14 = vpop.permute.xlu1 %782  ;;  %vm2118_vm6 = vcmp.gt.f32.partialorder %v2087_v41, 0.0  ;;  %vm2117_vm7 = vcmp.gt.f32.partialorder %v2086_v45, 0.0  ;;  %v986_v41 = vsel %vm984_vm8, %v6983_v44, %v7317_v21  ;;  %v985_v45 = vsel %vm984_vm8, %v6975_v34, %v7319_v22  ;;  %v2090_v44 = vld [vmem:[%s10223_s4 + $0x107] sm:$0xff] }
 0x134   : > { %v987_v21 = vsel %vm984_vm8, %v6970_v28, %v7333_v36  ;;  %vm2121_vm14 = vcmp.gt.f32.partialorder %v2090_v44, 0.0  ;;  %v5737_v28 = vld [vmem:[%s10222_s3 + $0x40] sm:$0xff]  ;;  %v989_v36 = vsel %vm984_vm8, %v6998_v61, %v7343_v40  ;;  %v992_v40 = vsel %vm984_vm8, %v7014_v15, %v7351_v46 }
 0x135   : > { %1848 = vperm.xlu0 %6738, %v1746_v63   ;;  %1843 = vperm.xlu1 %6739, %v1745_v1   ;;  %v1750_v63 = vld [vmem:[%s10223_s4 + $0xd8] sm:$0xff]  ;;  %v1749_v1 = vld [vmem:[%s10223_s4 + $0xd0] sm:$0xff]  ;;  %v2094_v61 = vld [vmem:[%s10223_s4 + $0x127] sm:$0xff]  ;;  %v991_v44 = vsel %vm984_vm8, %v7016_v16, %v7353_v56  ;;  %v994_v56 = vsel %vm984_vm8, %v7029_v31, %v7361_v59 }
 0x136   : > { %v2097_v15 = vld [vmem:[%s10223_s4 + $0x13f] sm:$0xff]  ;;  %v2096_v16 = vld [vmem:[%s10223_s4 + $0x137] sm:$0xff]  ;;  %v2098_v59 = vld [vmem:[%s10223_s4 + $0x147] sm:$0xff] }
 0x137   : > { %v7431_v2 = vpop.permute.xlu0 %788  ;;  %v7433_v27 = vpop.permute.xlu1 %786 }
 0x139   : > { %1858 = vperm.xlu0 %6738, %v1748_v19   ;;  %1853 = vperm.xlu1 %6739, %v1747_v20   ;;  %v2084_v19 = vld [vmem:[%s10223_s4 + $0xd7] sm:$0xff]  ;;  %v10307_v20 = vmov 0  }
 0x13a   : > { %v2238_v33 = vsel %vm2114_vm2, 1, %v10307_v20  ;;  %v2237_v35 = vsel %vm2113_vm3, 1, %v10307_v20  ;;  %vm2115_vm5 = vcmp.gt.f32.partialorder %v2084_v19, 0.0  ;;  %v2241_v19 = vsel %vm2117_vm7, 1, %v10307_v20 }
 0x13b   : > { %v7447_v3 = vpop.permute.xlu0 %792  ;;  %v7449_v49 = vpop.permute.xlu1 %790  ;;  %v2244_v34 = vsel %vm2120_vm11, 1, %v10307_v20  ;;  %vm2129_vm11 = vcmp.gt.f32.partialorder %v2098_v59, 0.0 }
 0x13c   : > { %10306 = vst [vmem:[#allocation8_spill] sm:$0xff] %v7449_v49 }
 0x13d   : > { %1868 = vperm.xlu0 %6738, %v1750_v63   ;;  %1863 = vperm.xlu1 %6739, %v1749_v1   ;;  %v2240_v63 = vsel %vm2116_vm4, 1, %v10307_v20  ;;  %v2239_v1 = vsel %vm2115_vm5, 1, %v10307_v20  ;;  %vm2125_vm4 = vcmp.gt.f32.partialorder %v2094_v61, 0.0  ;;  %vm2128_vm5 = vcmp.gt.f32.partialorder %v2097_v15, 0.0 }
 0x13e   : > { %v1000_v61 = vsel %vm984_vm8, %v7076_v25, %v7391_v23  ;;  %v2105_v25 = vld [vmem:[%s10223_s4 + $0x17f] sm:$0xff] }
 0x13f   : > { %v7459_v13 = vpop.permute.xlu0 %796  ;;  %v7461_v12 = vpop.permute.xlu1 %794 }
 0x140   : > { %10308 = vst [vmem:[#allocation9_spill] sm:$0xff] %v7459_v13  ;;  %10309 = vst [vmem:[#allocation10_spill] sm:$0xff] %v7461_v12  ;;  %v2091_v12 = vld [vmem:[%s10223_s4 + $0x10f] sm:$0xff] }
 0x141   : > { %2272 = vperm.xlu0 %6738, %v2238_v33   ;;  %2269 = vperm.xlu1 %6739, %v2237_v35   ;;  %v2088_v33 = vld [vmem:[%s10223_s4 + $0xf7] sm:$0xff]  ;;  %v2242_v35 = vsel %vm2118_vm6, 1, %v10307_v20  ;;  %vm2122_vm13 = vcmp.gt.f32.partialorder %v2091_v12, 0.0  ;;  %vm2127_vm6 = vcmp.gt.f32.partialorder %v2096_v16, 0.0 }
 0x142   : > { %vm2119_vm12 = vcmp.gt.f32.partialorder %v2088_v33, 0.0  ;;  %v2092_v12 = vld [vmem:[%s10223_s4 + $0x117] sm:$0xff] }
 0x143   : > { %v7471_v49 = vpop.permute.xlu0 %800  ;;  %v7473_v13 = vpop.permute.xlu1 %798  ;;  %v2243_v33 = vsel %vm2119_vm12, 1, %v10307_v20  ;;  %vm2123_vm2 = vcmp.gt.f32.partialorder %v2092_v12, 0.0  ;;  %v995_v12 = vsel %vm984_vm8, %v7046_v51, %v7373_v5  ;;  %v2101_v51 = vld [vmem:[%s10223_s4 + $0x15f] sm:$0xff] }
 0x144   : > { %10310 = vst [vmem:[#allocation11_spill] sm:$0xff] %v7471_v49  ;;  %10311 = vst [vmem:[#allocation12_spill] sm:$0xff] %v7473_v13  ;;  %vm2132_vm12 = vcmp.gt.f32.partialorder %v2101_v51, 0.0 }
 0x145   : > { %2278 = vperm.xlu0 %6738, %v2240_v63   ;;  %2275 = vperm.xlu1 %6739, %v2239_v1  }
 0x147   : > { %v897_v49 = vpop.permute.xlu0 %896  ;;  %v895_v63 = vpop.permute.xlu1 %894 }
 0x148   : > { %v1017_v1 = vsel %vm1015_vm9, %v986_v41, %v897_v49  ;;  %v1016_v13 = vsel %vm1015_vm9, %v985_v45, %v895_v63  ;;  %v988_v49 = vsel %vm984_vm8, %v6981_v43, %v7331_v0  ;;  %v2093_v43 = vld [vmem:[%s10223_s4 + $0x11f] sm:$0xff]  ;;  %v2246_v0 = vsel %vm2122_vm13, 1, %v10307_v20 }
 0x149   : > { %2284 = vperm.xlu0 %6738, %v2242_v35   ;;  %2281 = vperm.xlu1 %6739, %v2241_v19   ;;  %v2245_v45 = vsel %vm2121_vm14, 1, %v10307_v20  ;;  %vm2124_vm15 = vcmp.gt.f32.partialorder %v2093_v43, 0.0 }
 0x14a   : > { %6211 = vmatprep.mubr.msk.f32.mxu0 %vm1053_vm10, %v1016_v13 }
 0x14b   : > { %6212 = vmatmul.mubr.msk.f32.vlgmr.msra.gmra.mrb[0].mxu0 %vm1053_vm10, %v1017_v1  ;;  %v901_v22 = vpop.permute.xlu0 %900  ;;  %v899_v52 = vpop.permute.xlu1 %898 }
 0x14c   : > { %v1018_v35 = vsel %vm1015_vm9, %v987_v21, %v899_v52  ;;  %v1019_v13 = vsel %vm1015_vm9, %v988_v49, %v901_v22  ;;  %6552 = vmatpush3.bf16.msra.mxu0 %v7248_v7  ;;  %v990_v7 = vsel %vm984_vm8, %v6996_v60, %v7341_v39  ;;  %v2095_v60 = vld [vmem:[%s10223_s4 + $0x12f] sm:$0xff]  ;;  %v2248_v39 = vsel %vm2124_vm15, 1, %v10307_v20 }
 0x14d   : > { %2290 = vperm.xlu0 %6738, %v2244_v34   ;;  %6169 = vmatprep.mubr.msk.f32.mxu1 %vm1053_vm10, %v1019_v13  ;;  %v2247_v21 = vsel %vm2123_vm2, 1, %v10307_v20  ;;  %vm2126_vm3 = vcmp.gt.f32.partialorder %v2095_v60, 0.0  ;;  %vm2136_vm2 = vcmp.gt.f32.partialorder %v2105_v25, 0.0  ;;  %v10318_v25 = vld [vmem:[#allocation4_spill] sm:$0xff] }
 0x14e   : > { %2287 = vperm.xlu1 %6739, %v2243_v33   ;;  %6214 = vmatprep.mubr.msk.f32.mxu0 %vm1053_vm10, %v1018_v35  ;;  %v2250_v46 = vsel %vm2126_vm3, 1, %v10307_v20 }
 0x14f   : > { %6215 = vmatmul.mubr.msk.f32.gmra.mrb[2].mxu0 %vm1053_vm10, %v1019_v13  ;;  %v905_v19 = vpop.permute.xlu0 %904  ;;  %v903_v41 = vpop.permute.xlu1 %902  ;;  %6251 = vmatprep.subr.mxu0 %v5737_v28  ;;  %v2249_v13 = vsel %vm2125_vm4, 1, %v10307_v20 }
 0x150   : > { %v1021_v63 = vsel %vm1015_vm9, %v990_v7, %v905_v19  ;;  %v1020_v1 = vsel %vm1015_vm9, %v989_v36, %v903_v41  ;;  %6252 = vmatpush3.msra.mxu0 %v5737_v28  ;;  %v996_v28 = vsel %vm984_vm8, %v7044_v50, %v7371_v4  ;;  %v2251_v36 = vsel %vm2127_vm6, 1, %v10307_v20  ;;  %v2100_v4 = vld [vmem:[%s10223_s4 + $0x157] sm:$0xff] }
 0x151   : > { %2296 = vperm.xlu0 %6738, %v2246_v0   ;;  %6170 = vmatmul.mubr.msk.f32.vlgmr.msra.gmra.mrb[0].mxu1 %vm1053_vm10, %v1020_v1  ;;  %v998_v41 = vsel %vm984_vm8, %v7060_v8, %v7381_v17  ;;  %vm2131_vm13 = vcmp.gt.f32.partialorder %v2100_v4, 0.0  ;;  %v2102_v17 = vld [vmem:[%s10223_s4 + $0x167] sm:$0xff] }
 0x152   : > { %2293 = vperm.xlu1 %6739, %v2245_v45   ;;  %6217 = vmatprep.mubr.msk.f32.mxu0 %vm1053_vm10, %v1020_v1  ;;  %v2253_v1 = vsel %vm2129_vm11, 1, %v10307_v20  ;;  %vm2133_vm15 = vcmp.gt.f32.partialorder %v2102_v17, 0.0 }
 0x153   : > { %6172 = vmatprep.mubr.msk.f32.mxu1 %vm1053_vm10, %v1021_v63  ;;  %6218 = vmatmul.mubr.msk.f32.gmra.mrb[4].mxu0 %vm1053_vm10, %v1021_v63  ;;  %v909_v34 = vpop.permute.xlu0 %908  ;;  %v907_v49 = vpop.permute.xlu1 %906  ;;  %v2257_v16 = vsel %vm2133_vm15, 1, %v10307_v20 }
 0x154   : > { %v7551_v22 = vsel %vm1015_vm9, %v992_v40, %v909_v34  ;;  %v1022_v52 = vsel %vm1015_vm9, %v991_v44, %v907_v49  ;;  %6579 = vmatpush3.bf16.msra.mxu1 %v7179_v42  ;;  %v993_v42 = vsel %vm984_vm8, %v7031_v32, %v7363_v62  ;;  %v2099_v32 = vld [vmem:[%s10223_s4 + $0x14f] sm:$0xff]  ;;  %v2252_v62 = vsel %vm2128_vm5, 1, %v10307_v20 }
 0x155   : > { %2302 = vperm.xlu0 %6738, %v2248_v39   ;;  %6173 = vmatmul.mubr.msk.f32.gmra.mrb[2].mxu1 %vm1053_vm10, %v1022_v52  ;;  %vm2130_vm7 = vcmp.gt.f32.partialorder %v2099_v32, 0.0  ;;  %v999_v39 = vsel %vm984_vm8, %v7078_v26, %v7393_v24  ;;  %v2255_v34 = vsel %vm2131_vm13, 1, %v10307_v20  ;;  %v2104_v26 = vld [vmem:[%s10223_s4 + $0x177] sm:$0xff]  ;;  %v1002_v24 = vsel %vm984_vm8, %v7092_v47, %v7401_v37  ;;  %v2107_v47 = vld [vmem:[%s10223_s4 + $0x18f] sm:$0xff] }
 0x156   : > { %2299 = vperm.xlu1 %6739, %v2247_v21   ;;  %6220 = vmatprep.mubr.msk.f32.mxu0 %vm1053_vm10, %v1022_v52  ;;  %v2254_v5 = vsel %vm2130_vm7, 1, %v10307_v20  ;;  %vm2135_vm3 = vcmp.gt.f32.partialorder %v2104_v26, 0.0  ;;  %v2260_v37 = vsel %vm2136_vm2, 1, %v10307_v20  ;;  %vm2138_vm4 = vcmp.gt.f32.partialorder %v2107_v47, 0.0  ;;  %v10319_v26 = vld [vmem:[#allocation12_spill] sm:$0xff] }
 0x157   : > { %6175 = vmatprep.mubr.msk.f32.mxu1 %vm1053_vm10, %v7551_v22  ;;  %6221 = vmatmul.mubr.msk.f32.gmra.mrb[6].mxu0 %vm1053_vm10, %v7551_v22  ;;  %v913_v33 = vpop.permute.xlu0 %912  ;;  %v911_v35 = vpop.permute.xlu1 %910  ;;  %v1005_v32 = vsel %vm984_vm8, %v7126_v30, %v7423_v14  ;;  %v2111_v30 = vld [vmem:[%s10223_s4 + $0x1af] sm:$0xff] }
 0x158   : > { %v7576_v43 = vsel %vm1015_vm9, %v994_v56, %v913_v33  ;;  %v1024_v31 = vsel %vm1015_vm9, %v993_v42, %v911_v35  ;;  %6578 = vmatprep.subr.mxu1 %v7192_v55  ;;  %v1003_v42 = vsel %vm984_vm8, %v7110_v10, %v7413_v58  ;;  %v2109_v10 = vld [vmem:[%s10223_s4 + $0x19f] sm:$0xff]  ;;  %v2262_v58 = vsel %vm2138_vm4, 1, %v10307_v20 }
 0x159   : > { %2308 = vperm.xlu0 %6738, %v2250_v46   ;;  %6176 = vmatmul.mubr.msk.f32.gmra.mrb[4].mxu1 %vm1053_vm10, %v1024_v31  ;;  %vm2140_vm6 = vcmp.gt.f32.partialorder %v2109_v10, 0.0  ;;  %vm2142_vm11 = vcmp.gt.f32.partialorder %v2111_v30, 0.0 }
 0x15a   : > { %2305 = vperm.xlu1 %6739, %v2249_v13   ;;  %6223 = vmatprep.mubr.msk.f32.mxu0 %vm1053_vm10, %v1024_v31  ;;  %v2259_v13 = vsel %vm2135_vm3, 1, %v10307_v20  ;;  %v7753_v14 = vsel %vm2140_vm6, 1, %v10307_v20 }
 0x15b   : > { %6178 = vmatprep.mubr.msk.f32.mxu1 %vm1053_vm10, %v7576_v43  ;;  %6224 = vmatmul.mubr.msk.f32.gmra.mrb[8].mxu0 %vm1053_vm10, %v7576_v43  ;;  %v917_v0 = vpop.permute.xlu0 %916  ;;  %v915_v7 = vpop.permute.xlu1 %914 }
 0x15c   : > { %v7601_v19 = vsel %vm1015_vm9, %v996_v28, %v917_v0  ;;  %v1026_v50 = vsel %vm1015_vm9, %v995_v12, %v915_v7  ;;  %6580 = vmatpush3.msra.mxu1 %v7192_v55  ;;  %v997_v55 = vsel %vm984_vm8, %v7062_v9, %v7383_v18  ;;  %v2103_v9 = vld [vmem:[%s10223_s4 + $0x16f] sm:$0xff]  ;;  %v2256_v18 = vsel %vm2132_vm12, 1, %v10307_v20 }
 0x15d   : > { %2314 = vperm.xlu0 %6738, %v2252_v62   ;;  %6179 = vmatmul.mubr.msk.f32.gmra.mrb[6].mxu1 %vm1053_vm10, %v1026_v50  ;;  %vm2134_vm14 = vcmp.gt.f32.partialorder %v2103_v9, 0.0  ;;  %v1008_v0 = vsel %vm984_vm8, %v7139_v53, %v7431_v2  ;;  %v1007_v7 = vsel %vm984_vm8, %v7141_v54, %v7433_v27  ;;  %v2112_v54 = vld [vmem:[%s10223_s4 + $0x1b7] sm:$0x3]  ;;  %v7778_v2 = vsel %vm2142_vm11, 1, %v10307_v20  ;;  %v10312_v27 = vld [vmem:[#allocation2_spill] sm:$0xff] }
 0x15e   : > { %2311 = vperm.xlu1 %6739, %v2251_v36   ;;  %6226 = vmatprep.mubr.msk.f32.mxu0 %vm1053_vm10, %v1026_v50  ;;  %v2258_v23 = vsel %vm2134_vm14, 1, %v10307_v20  ;;  %v1010_v4 = vsel %vm984_vm8, %v10312_v27, %v7447_v3  ;;  %vm2143_vm13 = vcmp.gt.f32.partialorder %v2112_v54, 0.0  ;;  %v10315_v3 = vld [vmem:[#allocation10_spill] sm:$0xff]  ;;  %v2056_v54 = vld [vmem:[%s6936_s20 + $0xef] sm:$0xff] }
 0x15f   : > { %6181 = vmatprep.mubr.msk.f32.mxu1 %vm1053_vm10, %v7601_v19  ;;  %6227 = vmatmul.mubr.msk.f32.gmra.mrb[10].mxu0 %vm1053_vm10, %v7601_v19  ;;  %v921_v45 = vpop.permute.xlu0 %920  ;;  %v919_v63 = vpop.permute.xlu1 %918  ;;  %v7914_v27 = vld [vmem:[%s10221_s2] ss:$0 sm:$0xff] }
 0x160   : > { %v7626_v60 = vsel %vm1015_vm9, %v998_v41, %v921_v45  ;;  %6253 = vmatprep.mubr.msk.f32.mxu0 %vm1053_vm10, %v1022_v52  ;;  %v7630_v8 = vsel %vm1015_vm9, %v997_v55, %v919_v63  ;;  %v10314_v41 = vld [vmem:[#allocation3_spill] sm:$0xff] }
 0x161   : > { %2320 = vperm.xlu0 %6738, %v2254_v5   ;;  %6182 = vmatmul.mubr.msk.f32.gmra.mrb[8].mxu1 %vm1053_vm10, %v7630_v8  ;;  %v10313_v5 = vld [vmem:[#allocation8_spill] sm:$0xff] }
 0x162   : > { %2317 = vperm.xlu1 %6739, %v2253_v1   ;;  %6184 = vmatprep.mubr.msk.f32.mxu1 %vm1053_vm10, %v7626_v60  ;;  %v1009_v55 = vsel %vm984_vm8, %v10314_v41, %v10313_v5 }
 0x163   : > { %6254 = vmatmul.mubr.msk.f32.vlgmr.msra.gmra.mrb[0].mxu0 %vm1053_vm10, %v7551_v22  ;;  %v925_v40 = vpop.permute.xlu0 %924  ;;  %v923_v44 = vpop.permute.xlu1 %922  ;;  %v1001_v22 = vsel %vm984_vm8, %v7094_v48, %v7403_v38  ;;  %v2106_v48 = vld [vmem:[%s10223_s4 + $0x187] sm:$0xff]  ;;  %v1004_v38 = vsel %vm984_vm8, %v7108_v6, %v7411_v57  ;;  %v2108_v57 = vld [vmem:[%s10223_s4 + $0x197] sm:$0xff] }
 0x164   : > { %v7653_v49 = vsel %vm1015_vm9, %v1000_v61, %v925_v40  ;;  %6256 = vmatprep.mubr.msk.f32.mxu0 %vm1053_vm10, %v1024_v31  ;;  %v7657_v21 = vsel %vm1015_vm9, %v999_v39, %v923_v44  ;;  %vm2137_vm5 = vcmp.gt.f32.partialorder %v2106_v48, 0.0  ;;  %v1006_v31 = vsel %vm984_vm8, %v7124_v29, %v7421_v11  ;;  %v2110_v11 = vld [vmem:[%s10223_s4 + $0x1a7] sm:$0xff] }
 0x165   : > { %2326 = vperm.xlu0 %6738, %v2256_v18   ;;  %6185 = vmatmul.mubr.msk.f32.gmra.mrb[10].mxu1 %vm1053_vm10, %v7657_v21  ;;  %v2261_v28 = vsel %vm2137_vm5, 1, %v10307_v20  ;;  %vm2139_vm7 = vcmp.gt.f32.partialorder %v2108_v57, 0.0  ;;  %vm2141_vm12 = vcmp.gt.f32.partialorder %v2110_v11, 0.0  ;;  %v10316_v18 = vld [vmem:[#allocation5_spill] sm:$0xff]  ;;  %v2267_v40 = vsel %vm2143_vm13, 1, %v10307_v20 }
 0x166   : > { %2323 = vperm.xlu1 %6739, %v2255_v34   ;;  %6187 = vmatprep.mubr.msk.f32.mxu1 %vm1053_vm10, %v7653_v49  ;;  %v7789_v1 = vsel %vm2141_vm12, 1, %v10307_v20  ;;  %v1011_v61 = vsel %vm984_vm8, %v10316_v18, %v10315_v3  ;;  %v2058_v18 = vld [vmem:[%s6936_s20 + $0xff] sm:$0xff] }
 0x167   : > { %6257 = vmatmul.mubr.msk.f32.gmra.mrb[2].mxu0 %vm1053_vm10, %v7576_v43  ;;  %v929_v52 = vpop.permute.xlu0 %928  ;;  %v927_v15 = vpop.permute.xlu1 %926 }
 0x168   : > { %v7680_v46 = vsel %vm1015_vm9, %v1002_v24, %v929_v52  ;;  %6259 = vmatprep.mubr.msk.f32.mxu0 %vm1053_vm10, %v1026_v50  ;;  %v7684_v56 = vsel %vm1015_vm9, %v1001_v22, %v927_v15  ;;  %v2263_v50 = vsel %vm2139_vm7, 1, %v10307_v20  ;;  %v10321_v15 = vld [vmem:[#allocation11_spill] sm:$0xff] }
 0x169   : > { %2332 = vperm.xlu0 %6738, %v2258_v23   ;;  %6188 = vmatmul.mubr.msk.f32.gmra.mrb[12].mxu1 %vm1053_vm10, %v7684_v56  ;;  %v10320_v23 = vld [vmem:[#allocation7_spill] sm:$0xff] }
 0x16a   : > { %2329 = vperm.xlu1 %6739, %v2257_v16   ;;  %6190 = vmatprep.mubr.msk.f32.mxu1 %vm1053_vm10, %v7680_v46  ;;  %v1013_v24 = vsel %vm984_vm8, %v10320_v23, %v10319_v26  ;;  %v10322_v16 = vld [vmem:[#allocation6_spill] sm:$0xff] }
 0x16b   : > { %6260 = vmatmul.mubr.msk.f32.gmra.mrb[4].mxu0 %vm1053_vm10, %v7601_v19  ;;  %v933_v33 = vpop.permute.xlu0 %932  ;;  %v931_v35 = vpop.permute.xlu1 %930 }
 0x16c   : > { %v7707_v43 = vsel %vm1015_vm9, %v1004_v38, %v933_v33  ;;  %6262 = vmatprep.mubr.msk.f32.mxu0 %vm1053_vm10, %v7630_v8  ;;  %v7712_v6 = vsel %vm1015_vm9, %v1003_v42, %v931_v35 }
 0x16d   : > { %2338 = vperm.xlu0 %6738, %v2260_v37   ;;  %6191 = vmatmul.mubr.msk.f32.gmra.mrb[14].mxu1 %vm1053_vm10, %v7712_v6 }
 0x16e   : > { %2335 = vperm.xlu1 %6739, %v2259_v13   ;;  %6193 = vmatprep.mubr.msk.f32.mxu1 %vm1053_vm10, %v7707_v43 }
 0x16f   : > { %6263 = vmatmul.mubr.msk.f32.gmra.mrb[6].mxu0 %vm1053_vm10, %v7626_v60  ;;  %v937_v59 = vpop.permute.xlu0 %936  ;;  %v935_v62 = vpop.permute.xlu1 %934 }
 0x170   : > { %v7735_v12 = vsel %vm1015_vm9, %v1006_v31, %v937_v59  ;;  %6265 = vmatprep.mubr.msk.f32.mxu0 %vm1053_vm10, %v7657_v21  ;;  %v7740_v29 = vsel %vm1015_vm9, %v1005_v32, %v935_v62 }
 0x171   : > { %2344 = vperm.xlu0 %6738, %v2262_v58   ;;  %6194 = vmatmul.mubr.msk.f32.gmra.mrb[16].mxu1 %vm1053_vm10, %v7740_v29 }
 0x172   : > { %2341 = vperm.xlu1 %6739, %v2261_v28   ;;  %6196 = vmatprep.mubr.msk.f32.mxu1 %vm1053_vm10, %v7735_v12 }
 0x173   : > { %6266 = vmatmul.mubr.msk.f32.gmra.mrb[8].mxu0 %vm1053_vm10, %v7653_v49  ;;  %v941_v36 = vpop.permute.xlu0 %940  ;;  %v939_v19 = vpop.permute.xlu1 %938 }
 0x174   : > { %v7765_v51 = vsel %vm1015_vm9, %v1008_v0, %v941_v36  ;;  %6268 = vmatprep.mubr.msk.f32.mxu0 %vm1053_vm10, %v7684_v56  ;;  %v1038_v53 = vsel %vm1015_vm9, %v1007_v7, %v939_v19  ;;  %v7900_v0 = vld [vmem:[%s10220_s1] ss:$0 sm:$0xff] }
 0x175   : > { %2350 = vperm.xlu0 %6738, %v7753_v14   ;;  %6197 = vmatmul.mubr.msk.f32.gmra.mrb[18].mxu1 %vm1053_vm10, %v1038_v53  ;;  %v2054_v19 = vld [vmem:[%s6936_s20 + $0xdf] sm:$0xff] }
 0x176   : > { %2347 = vperm.xlu1 %6739, %v2263_v50   ;;  %6199 = vmatprep.mubr.msk.f32.mxu1 %vm1053_vm10, %v7765_v51  ;;  %v2053_v50 = vld [vmem:[%s6936_s20 + $0xd7] sm:$0xff]  ;;  %v2147_v41 = vmul.f32 %v7900_v0, %v2054_v19 }
 0x177   : > { %6269 = vmatmul.mubr.msk.f32.gmra.mrb[10].mxu0 %vm1053_vm10, %v7680_v46  ;;  %v945_v45 = vpop.permute.xlu0 %944  ;;  %v943_v63 = vpop.permute.xlu1 %942 }
 0x178   : > { %v1041_v9 = vsel %vm1015_vm9, %v1010_v4, %v945_v45  ;;  %6271 = vmatprep.mubr.msk.f32.mxu0 %vm1053_vm10, %v7712_v6  ;;  %v1040_v17 = vsel %vm1015_vm9, %v1009_v55, %v943_v63  ;;  %v2146_v55 = vmul.f32 %v7900_v0, %v2053_v50  ;;  %v2055_v45 = vld [vmem:[%s6936_s20 + $0xe7] sm:$0xff] }
 0x179   : > { %2356 = vperm.xlu0 %6738, %v7778_v2   ;;  %6200 = vmatmul.mubr.msk.f32.gmra.mrb[20].mxu1 %vm1053_vm10, %v1040_v17  ;;  %v2148_v3 = vmul.f32 %v7900_v0, %v2055_v45 }
 0x17a   : > { %2353 = vperm.xlu1 %6739, %v7789_v1   ;;  %6202 = vmatprep.mubr.msk.f32.mxu1 %vm1053_vm10, %v1041_v9 }
 0x17b   : > { %6272 = vmatmul.mubr.msk.f32.gmra.mrb[12].mxu0 %vm1053_vm10, %v7707_v43  ;;  %v947_v39 = vpop.permute.xlu1 %946  ;;  %v949_v34 = vpop.permute.xlu0 %948  ;;  %v2179_v26 = vadd.f32 %v7914_v27, %v2148_v3 }
 0x17c   : > { %6274 = vmatprep.mubr.msk.f32.mxu0 %vm1053_vm10, %v7740_v29  ;;  %v1042_v44 = vsel %vm1015_vm9, %v1011_v61, %v947_v39 }
 0x17d   : > { %6203 = vmatmul.mubr.msk.f32.gmra.mrb[22].mxu1 %vm1053_vm10, %v1042_v44  ;;  %v2210_v50 = vmax.f32 %v2179_v26, 0.0 }
 0x17e   : > { %2359 = vperm.xlu1 %6739, %v2267_v40   ;;  %6229 = vmatprep.mubr.msk.f32.mxu1 %vm1053_vm10, %v7630_v8  ;;  %v2178_v40 = vadd.f32 %v7914_v27, %v2147_v41 }
 0x17f   : > { %6275 = vmatmul.mubr.msk.f32.gmra.mrb[14].mxu0 %vm1053_vm10, %v7735_v12  ;;  %v951_v8 = vpop.permute.xlu1 %950  ;;  %v953_v22 = vpop.permute.xlu0 %952 }
 0x180   : > { %6277 = vmatprep.mubr.msk.f32.mxu0 %vm1053_vm10, %v1038_v53  ;;  %v1044_v52 = vsel %vm1015_vm9, %v1013_v24, %v951_v8 }
 0x181   : > { %6230 = vmatmul.mubr.msk.f32.vlgmr.msra.gmra.mrb[12].mxu1 %vm1053_vm10, %v7626_v60  ;;  %v10317_v60 = vld [vmem:[#allocation9_spill] sm:$0xff] }
 0x182   : > { %6232 = vmatprep.mubr.msk.f32.mxu1 %vm1053_vm10, %v7657_v21  ;;  %v1012_v21 = vsel %vm984_vm8, %v10318_v25, %v10317_v60  ;;  %v2151_v25 = vmul.f32 %v7900_v0, %v2058_v18 }
 0x183   : > { %6278 = vmatmul.mubr.msk.f32.gmra.mrb[16].mxu0 %vm1053_vm10, %v7765_v51 }
 0x184   : > { %6280 = vmatprep.mubr.msk.f32.mxu0 %vm1053_vm10, %v1040_v17  ;;  %v2149_v17 = vmul.f32 %v7900_v0, %v2056_v54  ;;  %v2062_v54 = vld [vmem:[%s6936_s20 + $0x11f] sm:$0xff] }
 0x185   : > { %6233 = vmatmul.mubr.msk.f32.gmra.mrb[14].mxu1 %vm1053_vm10, %v7653_v49  ;;  %v1043_v49 = vsel %vm1015_vm9, %v1012_v21, %v949_v34  ;;  %v2057_v21 = vld [vmem:[%s6936_s20 + $0xf7] sm:$0xff] }
 0x186   : > { %6235 = vmatprep.mubr.msk.f32.mxu1 %vm1053_vm10, %v7684_v56  ;;  %v2180_v60 = vadd.f32 %v7914_v27, %v2149_v17 }
 0x187   : > { %6281 = vmatmul.mubr.msk.f32.gmra.mrb[18].mxu0 %vm1053_vm10, %v1041_v9 }
 0x188   : > { %6283 = vmatprep.mubr.msk.f32.mxu0 %vm1053_vm10, %v1042_v44  ;;  %v2177_v44 = vadd.f32 %v7914_v27, %v2146_v55 }
 0x189   : > { %6236 = vmatmul.mubr.msk.f32.gmra.mrb[16].mxu1 %vm1053_vm10, %v7680_v46  ;;  %v1014_v46 = vsel %vm984_vm8, %v10322_v16, %v10321_v15  ;;  %v2150_v16 = vmul.f32 %v7900_v0, %v2057_v21 }
 0x18a   : > { %6238 = vmatprep.mubr.msk.f32.mxu1 %vm1053_vm10, %v7712_v6  ;;  %v1045_v56 = vsel %vm1015_vm9, %v1014_v46, %v953_v22  ;;  %v2208_v22 = vmax.f32 %v2177_v44, 0.0  ;;  %v2060_v46 = vld [vmem:[%s6936_s20 + $0x10f] sm:$0xff]  ;;  %v2061_v44 = vld [vmem:[%s6936_s20 + $0x117] sm:$0xff] }
 0x18b   : > { %6284 = vmatmul.mubr.msk.f32.gmra.mrb[20].mxu0 %vm1053_vm10, %v1043_v49  ;;  %v2209_v49 = vmax.f32 %v2178_v40, 0.0  ;;  %v2153_v41 = vmul.f32 %v7900_v0, %v2060_v46  ;;  %v2181_v3 = vadd.f32 %v7914_v27, %v2150_v16  ;;  %v2155_v40 = vmul.f32 %v7900_v0, %v2062_v54 }
 0x18c   : > { %6286 = vmatprep.mubr.msk.f32.mxu0 %vm1053_vm10, %v1044_v52 }
 0x18d   : > { %6239 = vmatmul.mubr.msk.f32.gmra.mrb[18].mxu1 %vm1053_vm10, %v7707_v43  ;;  %v2184_v21 = vadd.f32 %v7914_v27, %v2153_v41  ;;  %v2212_v16 = vmax.f32 %v2181_v3, 0.0 }
 0x18e   : > { %6241 = vmatprep.mubr.msk.f32.mxu1 %vm1053_vm10, %v7740_v29  ;;  %v2051_v29 = vld [vmem:[%s6936_s20 + $0xc7] sm:$0xff] }
 0x18f   : > { %6287 = vmatmul.mubr.msk.f32.gmra.mrb[22].mxu0 %vm1053_vm10, %v1045_v56  ;;  %v2144_v36 = vmul.f32 %v7900_v0, %v2051_v29  ;;  %v2059_v56 = vld [vmem:[%s6936_s20 + $0x107] sm:$0xff]  ;;  %v2215_v41 = vmax.f32 %v2184_v21, 0.0 }
 0x190   : > { %v7850_v47 = vpop.permute.xlu0 %1758  ;;  %v7852_v48 = vpop.permute.xlu1 %1753  ;;  %v2152_v55 = vmul.f32 %v7900_v0, %v2059_v56  ;;  %v2186_v56 = vadd.f32 %v7914_v27, %v2155_v40 }
 0x191   : > { %6242 = vmatmul.mubr.msk.f32.gmra.mrb[20].mxu1 %vm1053_vm10, %v7735_v12  ;;  %v2052_v12 = vld [vmem:[%s6936_s20 + $0xcf] sm:$0xff]  ;;  %v2175_v5 = vadd.f32 %v7914_v27, %v2144_v36  ;;  %v2182_v36 = vadd.f32 %v7914_v27, %v2151_v25 }
 0x192   : > { %6244 = vmatprep.mubr.msk.f32.mxu1 %vm1053_vm10, %v1038_v53  ;;  %v2145_v7 = vmul.f32 %v7900_v0, %v2052_v12  ;;  %v2183_v26 = vadd.f32 %v7914_v27, %v2152_v55 }
 0x193   : > { %v2206_v39 = vmax.f32 %v2175_v5, 0.0 }
 0x194   : > { %v7857_v37 = vpop.permute.xlu0 %1768  ;;  %v7859_v38 = vpop.permute.xlu1 %1763  ;;  %v2176_v4 = vadd.f32 %v7914_v27, %v2145_v7  ;;  %v2211_v7 = vmax.f32 %v2180_v60, 0.0  ;;  %v2214_v55 = vmax.f32 %v2183_v26, 0.0 }
 0x195   : > { %6245 = vmatmul.mubr.msk.f32.gmra.mrb[22].mxu1 %vm1053_vm10, %v7765_v51 }
 0x196   : > { %v2207_v61 = vmax.f32 %v2176_v4, 0.0 }
 0x198   : > { %v7863_v42 = vpop.permute.xlu0 %1778  ;;  %v7865_v33 = vpop.permute.xlu1 %1773 }
 0x19c   : > { %v7867_v35 = vpop.permute.xlu0 %1788  ;;  %v7869_v13 = vpop.permute.xlu1 %1783 }
 0x1a0   : > { %v7871_v43 = vpop.permute.xlu0 %1798  ;;  %v7873_v6 = vpop.permute.xlu1 %1793 }
 0x1a4   : > { %v7875_v10 = vpop.permute.xlu0 %1808  ;;  %v7877_v57 = vpop.permute.xlu1 %1803 }
 0x1a8   : > { %v7879_v58 = vpop.permute.xlu0 %1818  ;;  %v7881_v31 = vpop.permute.xlu1 %1813 }
 0x1ac   : > { %v7883_v32 = vpop.permute.xlu0 %1828  ;;  %v7885_v59 = vpop.permute.xlu1 %1823 }
 0x1b0   : > { %v7887_v62 = vpop.permute.xlu0 %1838  ;;  %v7889_v28 = vpop.permute.xlu1 %1833 }
 0x1b4   : > { %v7893_v30 = vpop.permute.xlu0 %1848  ;;  %v7895_v11 = vpop.permute.xlu1 %1843 }
 0x1b8   : > { %v7906_v51 = vpop.permute.xlu0 %1858  ;;  %v7908_v53 = vpop.permute.xlu1 %1853 }
 0x1bc   : > { %v7921_v63 = vpop.permute.xlu0 %1868  ;;  %v7923_v9 = vpop.permute.xlu1 %1863 }
 0x1c0   : > { %v2273_v34 = vpop.permute.xlu0 %2272  ;;  %v2270_v8 = vpop.permute.xlu1 %2269 }
 0x1c1   : > { %vm2362_vm14 = vcmp.eq.s32.totalorder %v2273_v34, 1  ;;  %vm2361_vm15 = vcmp.eq.s32.totalorder %v2270_v8, 1 }
 0x1c2   : > { %v7934_v23 = vsel %vm2362_vm14, %v2207_v61, 0.0  ;;  %v7936_v24 = vsel %vm2361_vm15, %v2206_v39, 0.0  ;;  %v2213_v39 = vmax.f32 %v2182_v36, 0.0 }
 0x1c3   : > { %10323 = vst [vmem:[#allocation2_spill] sm:$0xff] %v7934_v23  ;;  %10324 = vst [vmem:[#allocation8_spill] sm:$0xff] %v7936_v24  ;;  %v2455_v52 = vrot.slane %v7934_v23, 1  ;;  %v2454_v15 = vrot.slane %v7936_v24, 1 }
 0x1c4   : > { %v2279_v12 = vpop.permute.xlu0 %2278  ;;  %v2276_v29 = vpop.permute.xlu1 %2275 }
 0x1c5   : > { %vm2364_vm2 = vcmp.eq.s32.totalorder %v2279_v12, 1  ;;  %vm2363_vm3 = vcmp.eq.s32.totalorder %v2276_v29, 1  ;;  %v2456_v19 = vsel %vm680_vm1, %v2454_v15, %v2455_v52  ;;  %v2063_v12 = vld [vmem:[%s6936_s20 + $0x127] sm:$0xff] }
 0x1c6   : > { %v7946_v4 = vsel %vm2364_vm2, %v2209_v49, 0.0  ;;  %v7948_v5 = vsel %vm2363_vm3, %v2208_v22, 0.0  ;;  %2515 = vrot.lane.b32.xlu0 %v2456_v19, %s6755_s27  ;;  %v2064_v49 = vld [vmem:[%s6936_s20 + $0x12f] sm:$0xff] }
 0x1c7   : > { %10325 = vst [vmem:[#allocation3_spill] sm:$0xff] %v7948_v5  ;;  %v2459_v45 = vrot.slane %v7946_v4, 1  ;;  %v2457_v17 = vrot.slane %v7948_v5, 1  ;;  %v2157_v19 = vmul.f32 %v7900_v0, %v2064_v49 }
 0x1c8   : > { %v2285_v18 = vpop.permute.xlu0 %2284  ;;  %v2282_v61 = vpop.permute.xlu1 %2281 }
 0x1c9   : > { %vm2366_vm4 = vcmp.eq.s32.totalorder %v2285_v18, 1  ;;  %vm2365_vm5 = vcmp.eq.s32.totalorder %v2282_v61, 1  ;;  %v2460_v34 = vsel %vm680_vm1, %v2457_v17, %v2459_v45  ;;  %v2458_v8 = vsel %vm680_vm1, %v2455_v52, %v2457_v17  ;;  %v2065_v17 = vld [vmem:[%s6936_s20 + $0x137] sm:$0xff] }
 0x1ca   : > { %v7960_v60 = vsel %vm2366_vm4, %v2211_v7, 0.0  ;;  %v7962_v25 = vsel %vm2365_vm5, %v2210_v50, 0.0  ;;  %2519 = vrot.lane.b32.xlu0 %v2460_v34, %s6755_s27  ;;  %2517 = vrot.lane.b32.xlu1 %v2458_v8, %s6755_s27  ;;  %v2154_v52 = vmul.f32 %v7900_v0, %v2061_v44  ;;  %v2066_v50 = vld [vmem:[%s6936_s20 + $0x13f] sm:$0xff]  ;;  %v2156_v61 = vmul.f32 %v7900_v0, %v2063_v12 }
 0x1cb   : > { %v2463_v22 = vrot.slane %v7960_v60, 1  ;;  %v2461_v15 = vrot.slane %v7962_v25, 1  ;;  %v2159_v44 = vmul.f32 %v7900_v0, %v2066_v50  ;;  %v2217_v8 = vmax.f32 %v2186_v56, 0.0  ;;  %v2067_v50 = vld [vmem:[%s6936_s20 + $0x147] sm:$0xff] }
 0x1cc   : > { %v2291_v46 = vpop.permute.xlu0 %2290  ;;  %v2188_v21 = vadd.f32 %v7914_v27, %v2157_v19  ;;  %v2158_v26 = vmul.f32 %v7900_v0, %v2065_v17 }
 0x1cd   : > { %vm2368_vm6 = vcmp.eq.s32.totalorder %v2291_v46, 1  ;;  %v2288_v29 = vpop.permute.xlu1 %2287  ;;  %v2464_v7 = vsel %vm680_vm1, %v2461_v15, %v2463_v22  ;;  %v2462_v36 = vsel %vm680_vm1, %v2459_v45, %v2461_v15  ;;  %v2185_v45 = vadd.f32 %v7914_v27, %v2154_v52  ;;  %v2068_v52 = vld [vmem:[%s6936_s20 + $0x14f] sm:$0xff] }
 0x1ce   : > { %v7978_v54 = vsel %vm2368_vm6, %v2213_v39, 0.0  ;;  %vm2367_vm7 = vcmp.eq.s32.totalorder %v2288_v29, 1  ;;  %2523 = vrot.lane.b32.xlu0 %v2464_v7, %s6755_s27  ;;  %2521 = vrot.lane.b32.xlu1 %v2462_v36, %s6755_s27  ;;  %v2187_v29 = vadd.f32 %v7914_v27, %v2156_v61  ;;  %v2190_v19 = vadd.f32 %v7914_v27, %v2159_v44 }
 0x1cf   : > { %v2467_v3 = vrot.slane %v7978_v54, 1  ;;  %v7984_v18 = vsel %vm2367_vm7, %v2212_v16, 0.0  ;;  %v2216_v56 = vmax.f32 %v2185_v45, 0.0  ;;  %v2161_v17 = vmul.f32 %v7900_v0, %v2068_v52  ;;  %v2069_v52 = vld [vmem:[%s6936_s20 + $0x157] sm:$0xff] }
 0x1d0   : > { %v2465_v39 = vrot.slane %v7984_v18, 1  ;;  %v2297_v40 = vpop.permute.xlu0 %2296 }
 0x1d1   : > { %vm2370_vm11 = vcmp.eq.s32.totalorder %v2297_v40, 1  ;;  %v2294_v34 = vpop.permute.xlu1 %2293  ;;  %v2070_v40 = vld [vmem:[%s6936_s20 + $0x15f] sm:$0xff] }
 0x1d2   : > { %v7992_v49 = vsel %vm2370_vm11, %v2215_v41, 0.0  ;;  %vm2369_vm12 = vcmp.eq.s32.totalorder %v2294_v34, 1  ;;  %v2468_v15 = vsel %vm680_vm1, %v2465_v39, %v2467_v3  ;;  %v2466_v16 = vsel %vm680_vm1, %v2463_v22, %v2465_v39 }
 0x1d3   : > { %v2471_v46 = vrot.slane %v7992_v49, 1  ;;  %v7998_v12 = vsel %vm2369_vm12, %v2214_v55, 0.0  ;;  %2527 = vrot.lane.b32.xlu0 %v2468_v15, %s6755_s27  ;;  %2525 = vrot.lane.b32.xlu1 %v2466_v16, %s6755_s27  ;;  %v2219_v41 = vmax.f32 %v2188_v21, 0.0  ;;  %v2189_v55 = vadd.f32 %v7914_v27, %v2158_v26 }
 0x1d4   : > { %v2469_v7 = vrot.slane %v7998_v12, 1  ;;  %v2303_v36 = vpop.permute.xlu0 %2302  ;;  %v2218_v21 = vmax.f32 %v2187_v29, 0.0  ;;  %v2221_v16 = vmax.f32 %v2190_v19, 0.0 }
 0x1d5   : > { %vm2372_vm13 = vcmp.eq.s32.totalorder %v2303_v36, 1  ;;  %v2300_v22 = vpop.permute.xlu1 %2299  ;;  %v2192_v36 = vadd.f32 %v7914_v27, %v2161_v17 }
 0x1d6   : > { %v8008_v39 = vsel %vm2372_vm13, %v2217_v8, 0.0  ;;  %vm2371_vm14 = vcmp.eq.s32.totalorder %v2300_v22, 1  ;;  %v2472_v45 = vsel %vm680_vm1, %v2469_v7, %v2471_v46  ;;  %v2470_v61 = vsel %vm680_vm1, %v2467_v3, %v2469_v7  ;;  %v2072_v22 = vld [vmem:[%s6936_s20 + $0x16f] sm:$0xff] }
 0x1d7   : > { %10326 = vst [vmem:[#allocation10_spill] sm:$0xff] %v8008_v39  ;;  %v2475_v44 = vrot.slane %v8008_v39, 1  ;;  %v8014_v34 = vsel %vm2371_vm14, %v2216_v56, 0.0  ;;  %2531 = vrot.lane.b32.xlu0 %v2472_v45, %s6755_s27  ;;  %2529 = vrot.lane.b32.xlu1 %v2470_v61, %s6755_s27  ;;  %v2160_v8 = vmul.f32 %v7900_v0, %v2067_v50  ;;  %v2220_v7 = vmax.f32 %v2189_v55, 0.0  ;;  %v2071_v61 = vld [vmem:[%s6936_s20 + $0x167] sm:$0xff] }
 0x1d8   : > { %v2473_v26 = vrot.slane %v8014_v34, 1  ;;  %v2309_v15 = vpop.permute.xlu0 %2308  ;;  %v2163_v56 = vmul.f32 %v7900_v0, %v2070_v40 }
 0x1d9   : > { %vm2374_vm15 = vcmp.eq.s32.totalorder %v2309_v15, 1  ;;  %v2306_v3 = vpop.permute.xlu1 %2305  ;;  %v2191_v55 = vadd.f32 %v7914_v27, %v2160_v8  ;;  %v2165_v15 = vmul.f32 %v7900_v0, %v2072_v22 }
 0x1da   : > { %v8024_v45 = vsel %vm2374_vm15, %v2219_v41, 0.0  ;;  %vm2373_vm2 = vcmp.eq.s32.totalorder %v2306_v3, 1  ;;  %v2476_v29 = vsel %vm680_vm1, %v2473_v26, %v2475_v44  ;;  %v2474_v50 = vsel %vm680_vm1, %v2471_v46, %v2473_v26 }
 0x1db   : > { %10327 = vst [vmem:[#allocation5_spill] sm:$0xff] %v8024_v45  ;;  %v2479_v5 = vrot.slane %v8024_v45, 1  ;;  %v8030_v19 = vsel %vm2373_vm2, %v2218_v21, 0.0  ;;  %2535 = vrot.lane.b32.xlu0 %v2476_v29, %s6755_s27  ;;  %2533 = vrot.lane.b32.xlu1 %v2474_v50, %s6755_s27  ;;  %v2162_v41 = vmul.f32 %v7900_v0, %v2069_v52  ;;  %v2223_v26 = vmax.f32 %v2192_v36, 0.0  ;;  %v2074_v50 = vld [vmem:[%s6936_s20 + $0x17f] sm:$0xff] }
 0x1dc   : > { %10328 = vst [vmem:[#allocation9_spill] sm:$0xff] %v8030_v19  ;;  %v2477_v17 = vrot.slane %v8030_v19, 1  ;;  %v2315_v40 = vpop.permute.xlu0 %2314  ;;  %v2194_v21 = vadd.f32 %v7914_v27, %v2163_v56  ;;  %v2164_v3 = vmul.f32 %v7900_v0, %v2071_v61  ;;  %v2222_v36 = vmax.f32 %v2191_v55, 0.0 }
 0x1dd   : > { %vm2376_vm3 = vcmp.eq.s32.totalorder %v2315_v40, 1  ;;  %v2312_v46 = vpop.permute.xlu1 %2311  ;;  %v2193_v56 = vadd.f32 %v7914_v27, %v2162_v41  ;;  %v2196_v61 = vadd.f32 %v7914_v27, %v2165_v15  ;;  %v2073_v40 = vld [vmem:[%s6936_s20 + $0x177] sm:$0xff] }
 0x1de   : > { %v8040_v29 = vsel %vm2376_vm3, %v2221_v16, 0.0  ;;  %vm2375_vm4 = vcmp.eq.s32.totalorder %v2312_v46, 1  ;;  %v2480_v8 = vsel %vm680_vm1, %v2477_v17, %v2479_v5  ;;  %v2478_v52 = vsel %vm680_vm1, %v2475_v44, %v2477_v17 }
 0x1df   : > { %10329 = vst [vmem:[#allocation4_spill] sm:$0xff] %v8040_v29  ;;  %v2483_v24 = vrot.slane %v8040_v29, 1  ;;  %v8046_v23 = vsel %vm2375_vm4, %v2220_v7, 0.0  ;;  %2539 = vrot.lane.b32.xlu0 %v2480_v8, %s6755_s27  ;;  %2537 = vrot.lane.b32.xlu1 %v2478_v52, %s6755_s27  ;;  %v2225_v17 = vmax.f32 %v2194_v21, 0.0  ;;  %v2195_v7 = vadd.f32 %v7914_v27, %v2164_v3  ;;  %v2076_v52 = vld [vmem:[%s6936_s20 + $0x18f] sm:$0xff] }
 0x1e0   : > { %10330 = vst [vmem:[#allocation12_spill] sm:$0xff] %v8046_v23  ;;  %v2481_v16 = vrot.slane %v8046_v23, 1  ;;  %v2321_v22 = vpop.permute.xlu0 %2320  ;;  %v2167_v46 = vmul.f32 %v7900_v0, %v2074_v50  ;;  %v2224_v21 = vmax.f32 %v2193_v56, 0.0  ;;  %v2166_v3 = vmul.f32 %v7900_v0, %v2073_v40 }
 0x1e1   : > { %vm2378_vm5 = vcmp.eq.s32.totalorder %v2321_v22, 1  ;;  %v2318_v44 = vpop.permute.xlu1 %2317  ;;  %v2227_v22 = vmax.f32 %v2196_v61, 0.0 }
 0x1e2   : > { %v8056_v8 = vsel %vm2378_vm5, %v2223_v26, 0.0  ;;  %vm2377_vm6 = vcmp.eq.s32.totalorder %v2318_v44, 1  ;;  %v2484_v55 = vsel %vm680_vm1, %v2481_v16, %v2483_v24  ;;  %v2482_v41 = vsel %vm680_vm1, %v2479_v5, %v2481_v16  ;;  %v2075_v44 = vld [vmem:[%s6936_s20 + $0x187] sm:$0xff] }
 0x1e3   : > { %10331 = vst [vmem:[#allocation7_spill] sm:$0xff] %v8056_v8  ;;  %v2487_v29 = vrot.slane %v8056_v8, 1  ;;  %v8062_v15 = vsel %vm2377_vm6, %v2222_v36, 0.0  ;;  %2543 = vrot.lane.b32.xlu0 %v2484_v55, %s6755_s27  ;;  %2541 = vrot.lane.b32.xlu1 %v2482_v41, %s6755_s27  ;;  %v2226_v5 = vmax.f32 %v2195_v7, 0.0  ;;  %v2198_v16 = vadd.f32 %v7914_v27, %v2167_v46 }
 0x1e4   : > { %v2485_v26 = vrot.slane %v8062_v15, 1  ;;  %v2327_v50 = vpop.permute.xlu0 %2326  ;;  %v2169_v36 = vmul.f32 %v7900_v0, %v2076_v52  ;;  %v2197_v61 = vadd.f32 %v7914_v27, %v2166_v3  ;;  %v2168_v7 = vmul.f32 %v7900_v0, %v2075_v44 }
 0x1e5   : > { %vm2380_vm7 = vcmp.eq.s32.totalorder %v2327_v50, 1  ;;  %v2324_v23 = vpop.permute.xlu1 %2323 }
 0x1e6   : > { %v8071_v8 = vsel %vm2380_vm7, %v2225_v17, 0.0  ;;  %vm2379_vm11 = vcmp.eq.s32.totalorder %v2324_v23, 1  ;;  %v2488_v55 = vsel %vm680_vm1, %v2485_v26, %v2487_v29  ;;  %v2486_v56 = vsel %vm680_vm1, %v2483_v24, %v2485_v26 }
 0x1e7   : > { %10332 = vst [vmem:[#allocation11_spill] sm:$0xff] %v8071_v8  ;;  %v2491_v40 = vrot.slane %v8071_v8, 1  ;;  %v8076_v41 = vsel %vm2379_vm11, %v2224_v21, 0.0  ;;  %2547 = vrot.lane.b32.xlu0 %v2488_v55, %s6755_s27  ;;  %2545 = vrot.lane.b32.xlu1 %v2486_v56, %s6755_s27  ;;  %v2229_v24 = vmax.f32 %v2198_v16, 0.0  ;;  %v2200_v52 = vadd.f32 %v7914_v27, %v2169_v36  ;;  %v2080_v55 = vld [vmem:[%s6936_s20 + $0x1af] sm:$0xff] }
 0x1e8   : > { %v2489_v17 = vrot.slane %v8076_v41, 1  ;;  %v2333_v23 = vpop.permute.xlu0 %2332  ;;  %v2228_v56 = vmax.f32 %v2197_v61, 0.0  ;;  %v2199_v16 = vadd.f32 %v7914_v27, %v2168_v7 }
 0x1e9   : > { %vm2382_vm12 = vcmp.eq.s32.totalorder %v2333_v23, 1  ;;  %v2330_v46 = vpop.permute.xlu1 %2329  ;;  %v2079_v23 = vld [vmem:[%s6936_s20 + $0x1a7] sm:$0xff]  ;;  %v2231_v8 = vmax.f32 %v2200_v52, 0.0 }
 0x1ea   : > { %v8084_v26 = vsel %vm2382_vm12, %v2227_v22, 0.0  ;;  %vm2381_vm13 = vcmp.eq.s32.totalorder %v2330_v46, 1  ;;  %v2492_v21 = vsel %vm680_vm1, %v2489_v17, %v2491_v40  ;;  %v2490_v50 = vsel %vm680_vm1, %v2487_v29, %v2489_v17 }
 0x1eb   : > { %10333 = vst [vmem:[#allocation6_spill] sm:$0xff] %v8084_v26  ;;  %v2495_v3 = vrot.slane %v8084_v26, 1  ;;  %v8090_v44 = vsel %vm2381_vm13, %v2226_v5, 0.0  ;;  %2551 = vrot.lane.b32.xlu0 %v2492_v21, %s6755_s27  ;;  %2549 = vrot.lane.b32.xlu1 %v2490_v50, %s6755_s27  ;;  %v2173_v29 = vmul.f32 %v7900_v0, %v2080_v55  ;;  %v2230_v7 = vmax.f32 %v2199_v16, 0.0 }
 0x1ec   : > { %10334 = vst [vmem:[#allocation13_spill] sm:$0xff] %v8090_v44  ;;  %v2493_v22 = vrot.slane %v8090_v44, 1  ;;  %v2339_v36 = vpop.permute.xlu0 %2338  ;;  %v2172_v52 = vmul.f32 %v7900_v0, %v2079_v23 }
 0x1ed   : > { %vm2384_vm14 = vcmp.eq.s32.totalorder %v2339_v36, 1  ;;  %v2336_v46 = vpop.permute.xlu1 %2335 }
 0x1ee   : > { %v8098_v17 = vsel %vm2384_vm14, %v2229_v24, 0.0  ;;  %vm2383_vm15 = vcmp.eq.s32.totalorder %v2336_v46, 1  ;;  %v2496_v5 = vsel %vm680_vm1, %v2493_v22, %v2495_v3  ;;  %v2494_v21 = vsel %vm680_vm1, %v2491_v40, %v2493_v22 }
 0x1ef   : > { %10335 = vst [vmem:[#allocation14_spill] sm:$0xff] %v8098_v17  ;;  %v2499_v61 = vrot.slane %v8098_v17, 1  ;;  %v8103_v50 = vsel %vm2383_vm15, %v2228_v56, 0.0  ;;  %2555 = vrot.lane.b32.xlu0 %v2496_v5, %s6755_s27  ;;  %2553 = vrot.lane.b32.xlu1 %v2494_v21, %s6755_s27  ;;  %v8110_v46 = vadd.f32 %v7914_v27, %v2173_v29  ;;  %v8122_v0 = vadd.f32 %v7914_v27, %v2172_v52 }
 0x1f0   : > { %10336 = vst [vmem:[#allocation15_spill] sm:$0xff] %v8103_v50  ;;  %v2497_v55 = vrot.slane %v8103_v50, 1  ;;  %v2345_v24 = vpop.permute.xlu0 %2344 }
 0x1f1   : > { %vm2386_vm2 = vcmp.eq.s32.totalorder %v2345_v24, 1  ;;  %v2342_v36 = vpop.permute.xlu1 %2341  ;;  %v10252_v27 = vmax.f32 %v8122_v0, 0.0 }
 0x1f2   : > { %v8112_v40 = vsel %vm2386_vm2, %v2231_v8, 0.0  ;;  %vm2385_vm3 = vcmp.eq.s32.totalorder %v2342_v36, 1  ;;  %v2500_v56 = vsel %vm680_vm1, %v2497_v55, %v2499_v61  ;;  %v2498_v22 = vsel %vm680_vm1, %v2495_v3, %v2497_v55  ;;  %v3855_v55 = vld [vmem:[%s10223_s4 + $0x1b7] sm:$0xff] }
 0x1f3   : > { %10337 = vst [vmem:[#allocation16_spill] sm:$0xff] %v8112_v40  ;;  %v10250_v5 = vrot.slane %v8112_v40, 1  ;;  %v8117_v16 = vsel %vm2385_vm3, %v2230_v7, 0.0  ;;  %2559 = vrot.lane.b32.xlu0 %v2500_v56, %s6755_s27  ;;  %2557 = vrot.lane.b32.xlu1 %v2498_v22, %s6755_s27  ;;  %v10251_v7 = vmax.f32 %v8110_v46, 0.0  ;;  %vm3886_vm5 = vcmp.gt.f32.partialorder %v3855_v55, 0.0  ;;  %v3856_v56 = vld [vmem:[%s10223_s4 + $0x1bf] sm:$0xff] }
 0x1f4   : > { %10338 = vst [vmem:[#allocation17_spill] sm:$0xff] %v8117_v16  ;;  %v2501_v23 = vrot.slane %v8117_v16, 1  ;;  %v8125_v8 = vpop.permute.xlu0 %2350  ;;  %vm3887_vm11 = vcmp.gt.f32.partialorder %v3856_v56, 0.0  ;;  %v3859_v55 = vld [vmem:[%s10223_s4 + $0x1d7] sm:$0xff] }
 0x1f5   : > { %10339 = vst [vmem:[#allocation18_spill] sm:$0xff] %v8125_v8  ;;  %v8127_v29 = vpop.permute.xlu1 %2347  ;;  %vm3890_vm12 = vcmp.gt.f32.partialorder %v3859_v55, 0.0  ;;  %v3863_v55 = vld [vmem:[%s10223_s4 + $0x1f7] sm:$0xff] }
 0x1f6   : > { %10340 = vst [vmem:[#allocation19_spill] sm:$0xff] %v8127_v29  ;;  %v2504_v3 = vsel %vm680_vm1, %v2501_v23, %v10250_v5  ;;  %v2502_v21 = vsel %vm680_vm1, %v2499_v61, %v2501_v23  ;;  %v3857_v61 = vld [vmem:[%s10223_s4 + $0x1c7] sm:$0xff]  ;;  %v4014_v56 = vsel %vm3890_vm12, 1, %v10307_v20  ;;  %vm3894_vm2 = vcmp.gt.f32.partialorder %v3863_v55, 0.0  ;;  %v3866_v55 = vld [vmem:[%s10223_s4 + $0x20f] sm:$0xff] }
 0x1f7   : > { %2563 = vrot.lane.b32.xlu0 %v2504_v3, %s6755_s27  ;;  %2561 = vrot.lane.b32.xlu1 %v2502_v21, %s6755_s27  ;;  %v4010_v21 = vsel %vm3886_vm5, 1, %v10307_v20  ;;  %vm3888_vm7 = vcmp.gt.f32.partialorder %v3857_v61, 0.0  ;;  %v3861_v61 = vld [vmem:[%s10223_s4 + $0x1e7] sm:$0xff] }
 0x1f8   : > { %v2357_v52 = vpop.permute.xlu0 %2356  ;;  %vm3892_vm14 = vcmp.gt.f32.partialorder %v3861_v61, 0.0  ;;  %v3864_v61 = vld [vmem:[%s10223_s4 + $0x1ff] sm:$0xff] }
 0x1f9   : > { %vm2390_vm4 = vcmp.eq.s32.totalorder %v2357_v52, 1  ;;  %v2354_v24 = vpop.permute.xlu1 %2353  ;;  %v3858_v52 = vld [vmem:[%s10223_s4 + $0x1cf] sm:$0xff]  ;;  %vm3895_vm5 = vcmp.gt.f32.partialorder %v3864_v61, 0.0 }
 0x1fa   : > { %v8142_v36 = vsel %vm2390_vm4, %v10251_v7, 0.0  ;;  %vm2389_vm6 = vcmp.eq.s32.totalorder %v2354_v24, 1  ;;  %v4011_v24 = vsel %vm3887_vm11, 1, %v10307_v20  ;;  %vm3889_vm13 = vcmp.gt.f32.partialorder %v3858_v52, 0.0  ;;  %v3862_v52 = vld [vmem:[%s10223_s4 + $0x1ef] sm:$0xff] }
 0x1fb   : > { %10341 = vst [vmem:[#allocation20_spill] sm:$0xff] %v8142_v36  ;;  %v10248_v22 = vrot.slane %v8142_v36, 2  ;;  %v8153_v23 = vsel %vm2389_vm6, %v10252_v27, 0.0  ;;  %4048 = vperm.xlu0 %6738, %v7789_v1   ;;  %4045 = vperm.xlu1 %6739, %v7753_v14   ;;  %v4012_v1 = vsel %vm3888_vm7, 1, %v10307_v20  ;;  %vm3893_vm3 = vcmp.gt.f32.partialorder %v3862_v52, 0.0 }
 0x1fc   : > { %10342 = vst [vmem:[#allocation21_spill] sm:$0xff] %v8153_v23  ;;  %v10249_v3 = vrot.slane %v8153_v23, 2  ;;  %vm3897_vm7 = vcmp.gt.f32.partialorder %v3866_v55, 0.0 }
 0x1fe   : > { %v8171_v14 = vsel %vm832_vm0, %v10249_v3, %v10248_v22  ;;  %v4016_v22 = vsel %vm3892_vm14, 1, %v10307_v20 }
 0x1ff   : > { %4054 = vperm.xlu0 %6738, %v4010_v21   ;;  %4051 = vperm.xlu1 %6739, %v7778_v2   ;;  %10343 = vst [vmem:[#allocation22_spill] sm:$0xff] %v8171_v14  ;;  %v3860_v2 = vld [vmem:[%s10223_s4 + $0x1df] sm:$0xff]  ;;  %v4013_v21 = vsel %vm3889_vm13, 1, %v10307_v20 }
 0x200   : > { %vm3891_vm15 = vcmp.gt.f32.partialorder %v3860_v2, 0.0  ;;  %v4018_v2 = vsel %vm3894_vm2, 1, %v10307_v20 }
 0x203   : > { %4060 = vperm.xlu0 %6738, %v4012_v1   ;;  %4057 = vperm.xlu1 %6739, %v4011_v24   ;;  %v4015_v1 = vsel %vm3891_vm15, 1, %v10307_v20  ;;  %v3865_v24 = vld [vmem:[%s10223_s4 + $0x207] sm:$0xff] }
 0x204   : > { %vm3896_vm4 = vcmp.gt.f32.partialorder %v3865_v24, 0.0  ;;  %v3868_v24 = vld [vmem:[%s10223_s4 + $0x21f] sm:$0xff] }
 0x205   : > { %v4020_v52 = vsel %vm3896_vm4, 1, %v10307_v20  ;;  %vm3899_vm12 = vcmp.gt.f32.partialorder %v3868_v24, 0.0 }
 0x207   : > { %4066 = vperm.xlu0 %6738, %v4014_v56   ;;  %4063 = vperm.xlu1 %6739, %v4013_v21   ;;  %v4017_v56 = vsel %vm3893_vm3, 1, %v10307_v20  ;;  %v3867_v21 = vld [vmem:[%s10223_s4 + $0x217] sm:$0xff] }
 0x208   : > { %vm3898_vm6 = vcmp.gt.f32.partialorder %v3867_v21, 0.0  ;;  %v3870_v21 = vld [vmem:[%s10223_s4 + $0x22f] sm:$0xff] }
 0x209   : > { %v4022_v61 = vsel %vm3898_vm6, 1, %v10307_v20  ;;  %vm3901_vm14 = vcmp.gt.f32.partialorder %v3870_v21, 0.0 }
 0x20b   : > { %4072 = vperm.xlu0 %6738, %v4016_v22   ;;  %4069 = vperm.xlu1 %6739, %v4015_v1   ;;  %v4019_v22 = vsel %vm3895_vm5, 1, %v10307_v20  ;;  %v3869_v1 = vld [vmem:[%s10223_s4 + $0x227] sm:$0xff] }
 0x20c   : > { %vm3900_vm11 = vcmp.gt.f32.partialorder %v3869_v1, 0.0  ;;  %v3872_v1 = vld [vmem:[%s10223_s4 + $0x23f] sm:$0xff] }
 0x20d   : > { %v4024_v55 = vsel %vm3900_vm11, 1, %v10307_v20  ;;  %vm3903_vm2 = vcmp.gt.f32.partialorder %v3872_v1, 0.0 }
 0x20f   : > { %4078 = vperm.xlu0 %6738, %v4018_v2   ;;  %4075 = vperm.xlu1 %6739, %v4017_v56   ;;  %v4021_v2 = vsel %vm3897_vm7, 1, %v10307_v20  ;;  %v3871_v56 = vld [vmem:[%s10223_s4 + $0x237] sm:$0xff] }
 0x210   : > { %vm3902_vm13 = vcmp.gt.f32.partialorder %v3871_v56, 0.0  ;;  %v3874_v56 = vld [vmem:[%s10223_s4 + $0x24f] sm:$0xff] }
 0x211   : > { %v4026_v24 = vsel %vm3902_vm13, 1, %v10307_v20  ;;  %vm3905_vm4 = vcmp.gt.f32.partialorder %v3874_v56, 0.0  ;;  %v3850_v56 = vld [vmem:[%s10223_s4 + $0x18f] sm:$0xff] }
 0x212   : > { %vm3881_vm11 = vcmp.gt.f32.partialorder %v3850_v56, 0.0  ;;  %v10258_v56 = vrot.slane %v7946_v4, 2 }
 0x213   : > { %4084 = vperm.xlu0 %6738, %v4020_v52   ;;  %4081 = vperm.xlu1 %6739, %v4019_v22   ;;  %v4023_v52 = vsel %vm3899_vm12, 1, %v10307_v20  ;;  %v3873_v22 = vld [vmem:[%s10223_s4 + $0x247] sm:$0xff]  ;;  %v4005_v27 = vsel %vm3881_vm11, 1, %v10307_v20 }
 0x214   : > { %vm3904_vm15 = vcmp.gt.f32.partialorder %v3873_v22, 0.0  ;;  %v3876_v22 = vld [vmem:[%s10223_s4 + $0x25f] sm:$0xff] }
 0x215   : > { %v4028_v21 = vsel %vm3904_vm15, 1, %v10307_v20  ;;  %vm3907_vm6 = vcmp.gt.f32.partialorder %v3876_v22, 0.0 }
 0x216   : > { %v4031_v5 = vsel %vm3907_vm6, 1, %v10307_v20 }
 0x217   : > { %4090 = vperm.xlu0 %6738, %v4022_v61   ;;  %4087 = vperm.xlu1 %6739, %v4021_v2   ;;  %v4025_v61 = vsel %vm3901_vm14, 1, %v10307_v20  ;;  %v3875_v2 = vld [vmem:[%s10223_s4 + $0x257] sm:$0xff] }
 0x218   : > { %vm3906_vm3 = vcmp.gt.f32.partialorder %v3875_v2, 0.0  ;;  %v3851_v2 = vld [vmem:[%s10223_s4 + $0x197] sm:$0xff] }
 0x219   : > { %vm3882_vm7 = vcmp.gt.f32.partialorder %v3851_v2, 0.0  ;;  %v5762_v2 = vld [vmem:[%s10222_s3 + $0x18] sm:$0xff] }
 0x21a   : > { %v4006_v22 = vsel %vm3882_vm7, 1, %v10307_v20 }
 0x21b   : > { %4096 = vperm.xlu0 %6738, %v4024_v55   ;;  %4093 = vperm.xlu1 %6739, %v4023_v52   ;;  %v4027_v55 = vsel %vm3903_vm2, 1, %v10307_v20  ;;  %v3849_v52 = vld [vmem:[%s10223_s4 + $0x187] sm:$0xff] }
 0x21c   : > { %vm3880_vm5 = vcmp.gt.f32.partialorder %v3849_v52, 0.0 }
 0x21f   : > { %4102 = vperm.xlu0 %6738, %v4026_v24   ;;  %4099 = vperm.xlu1 %6739, %v4025_v61   ;;  %v4030_v24 = vsel %vm3906_vm3, 1, %v10307_v20  ;;  %v4029_v61 = vsel %vm3905_vm4, 1, %v10307_v20 }
 0x223   : > { %4108 = vperm.xlu0 %6738, %v4028_v21   ;;  %4105 = vperm.xlu1 %6739, %v4027_v55   ;;  %v4004_v55 = vsel %vm3880_vm5, 1, %v10307_v20 }
 0x224   : > { %v6171_v1 = vpop.f32.mrb[0].mxu1 }
 0x225   : > { %v1192_v3 = vpop.f32.mrb[1].mxu1 }
 0x227   : > { %4114 = vperm.xlu0 %6738, %v4030_v24   ;;  %4111 = vperm.xlu1 %6739, %v4029_v61   ;;  %v10257_v24 = vrot.slane %v7960_v60, 2  ;;  %v2612_v61 = vrot.slane %v7962_v25, 2 }
 0x228   : > { %v6174_v21 = vpop.f32.mrb[2].mxu1 }
 0x229   : > { %v1202_v7 = vpop.f32.mrb[3].mxu1 }
 0x22b   : > { %4036 = vperm.xlu0 %6738, %v4004_v55   ;;  %4117 = vperm.xlu1 %6739, %v4031_v5   ;;  %v5763_v5 = vld [vmem:[%s10222_s3 + $0x20] sm:$0xff] }
 0x22c   : > { %v8255_v52 = vpop.f32.mrb[4].mxu1  ;;  %v6553_v36 = vpack.c.bf16 %v5763_v5, %v5762_v2  ;;  %v5764_v2 = vld [vmem:[%s10222_s3 + $0x28] sm:$0xff] }
 0x22d   : > { %v8259_v14 = vpop.f32.mrb[5].mxu1 }
 0x22e   : > { %6554 = vmatprep.subr.bf16.mxu1 %v6553_v36  ;;  %6566 = vmatprep.subr.bf16.mxu0 %v6553_v36 }
 0x22f   : > { %4042 = vperm.xlu0 %6738, %v4006_v22   ;;  %4039 = vperm.xlu1 %6739, %v4005_v27   ;;  %v2615_v22 = vsel %vm832_vm0, %v2612_v61, %v10257_v24  ;;  %v2613_v27 = vsel %vm832_vm0, %v10258_v56, %v2612_v61 }
 0x230   : > { %v8270_v55 = vpop.f32.mrb[6].mxu1  ;;  %6556 = vmatpush3.bf16.msra.mxu1 %v6553_v36  ;;  %6568 = vmatpush3.bf16.msra.mxu0 %v6553_v36 }
 0x231   : > { %v8272_v23 = vpop.f32.mrb[7].mxu1  ;;  %6293 = vmatprep.subr.mxu1 %v5764_v2  ;;  %6419 = vmatprep.subr.mxu0 %v5764_v2 }
 0x233   : > { %2674 = vrot.lane.b32.xlu0 %v2615_v22, %s6756_s16  ;;  %2672 = vrot.lane.b32.xlu1 %v2613_v27, %s6756_s16  ;;  %v8295_v22 = vpop.permute.xlu1 %2359 }
 0x234   : > { %v8286_v5 = vpop.f32.mrb[8].mxu1  ;;  %10344 = vst [vmem:[#allocation23_spill] sm:$0xff] %v8295_v22  ;;  %6294 = vmatpush3.msra.mxu1 %v5764_v2  ;;  %6420 = vmatpush3.msra.mxu0 %v5764_v2 }
 0x235   : > { %v8288_v24 = vpop.f32.mrb[9].mxu1 }
 0x236   : > { %v6255_v61 = vpop.f32.mrb[0].mxu0 }
 0x237   : > { %v6581_v27 = vadd.f32 %v6255_v61, %v6171_v1  ;;  %v1584_v56 = vpop.f32.mrb[1].mxu0 }
 0x238   : > { %v6582_v20 = vadd.f32 %v1584_v56, %v1192_v3  ;;  %v8297_v8 = vpop.f32.mrb[10].mxu1  ;;  %v8299_v36 = vpop.permute.xlu0 %2515 }
 0x239   : > { %10345 = vst [vmem:[#allocation24_spill] sm:$0xff] %v8299_v36  ;;  %v1872_v29 = vmul.f32 %v6581_v27, %v7850_v47  ;;  %2028 = vst.msk [vmem:[%s8293_s29 + $0x8] sm:$0xff] %vm984_vm8, %v6581_v27  ;;  %v8304_v40 = vpop.f32.mrb[11].mxu1 }
 0x23a   : > { %v1871_v16 = vmul.f32 %v6582_v20, %v7852_v48  ;;  %2027 = vst.msk [vmem:[%s8293_s29] sm:$0xff] %vm984_vm8, %v6582_v20  ;;  %v6258_v1 = vpop.f32.mrb[2].mxu0 }
 0x23b   : > { %v1896_v3 = vsel %vm984_vm8, %v1872_v29, 0.0  ;;  %v1950_v56 = vmul.f32 %v6581_v27, %v1872_v29  ;;  %v6583_v61 = vadd.f32 %v6258_v1, %v6174_v21  ;;  %v1594_v36 = vpop.f32.mrb[3].mxu0 }
 0x23c   : > { %v1895_v2 = vsel %vm984_vm8, %v1871_v16, 0.0  ;;  %v1949_v22 = vmul.f32 %v6582_v20, %v1871_v16  ;;  %v6584_v47 = vadd.f32 %v1594_v36, %v1202_v7  ;;  %v8311_v17 = vpop.permute.xlu0 %2519  ;;  %v8313_v50 = vpop.permute.xlu1 %2517 }
 0x23d   : > { %10346 = vst [vmem:[#allocation25_spill] sm:$0xff] %v8311_v17  ;;  %10347 = vst [vmem:[#allocation26_spill] sm:$0xff] %v8313_v50  ;;  %v1974_v26 = vsel %vm984_vm8, %v1950_v56, 0.0  ;;  %v1897_v48 = vadd.f32 %v1896_v3, %v1895_v2  ;;  %v1874_v44 = vmul.f32 %v6583_v61, %v7857_v37 }
 0x23e   : > { %2030 = vst.msk [vmem:[%s8293_s29 + $0x18] sm:$0xff] %vm984_vm8, %v6583_v61  ;;  %v1973_v29 = vsel %vm984_vm8, %v1949_v22, 0.0  ;;  %v1873_v21 = vmul.f32 %v6584_v47, %v7859_v38  ;;  %2029 = vst.msk [vmem:[%s8293_s29 + $0x10] sm:$0xff] %vm984_vm8, %v6584_v47  ;;  %v6261_v20 = vpop.f32.mrb[4].mxu0 }
 0x23f   : > { %v1975_v16 = vadd.f32 %v1974_v26, %v1973_v29  ;;  %v1952_v7 = vmul.f32 %v6583_v61, %v1874_v44  ;;  %v6585_v27 = vadd.f32 %v6261_v20, %v8255_v52  ;;  %v1604_v36 = vpop.f32.mrb[5].mxu0  ;;  %v1900_v26 = vsel %vm984_vm8, %v1874_v44, 0.0 }
 0x240   : > { %v1898_v1 = vsel %vm984_vm8, %v1873_v21, 0.0  ;;  %v1951_v3 = vmul.f32 %v6584_v47, %v1873_v21  ;;  %v6586_v37 = vadd.f32 %v1604_v36, %v8259_v14  ;;  %v8326_v56 = vpop.permute.xlu0 %2523  ;;  %v8328_v2 = vpop.permute.xlu1 %2521 }
 0x241   : > { %v1899_v22 = vadd.f32 %v1898_v1, %v1897_v48  ;;  %v1876_v38 = vmul.f32 %v6585_v27, %v7863_v42  ;;  %2032 = vst.msk [vmem:[%s8293_s29 + $0x28] sm:$0xff] %vm984_vm8, %v6585_v27  ;;  %v1978_v14 = vsel %vm984_vm8, %v1952_v7, 0.0 }
 0x242   : > { %v1976_v61 = vsel %vm984_vm8, %v1951_v3, 0.0  ;;  %v1875_v52 = vmul.f32 %v6586_v37, %v7865_v33  ;;  %2031 = vst.msk [vmem:[%s8293_s29 + $0x20] sm:$0xff] %vm984_vm8, %v6586_v37  ;;  %v6264_v47 = vpop.f32.mrb[6].mxu0 }
 0x243   : > { %v1977_v29 = vadd.f32 %v1976_v61, %v1975_v16  ;;  %v1954_v21 = vmul.f32 %v6585_v27, %v1876_v38  ;;  %v1901_v48 = vadd.f32 %v1900_v26, %v1899_v22  ;;  %v1614_v20 = vpop.f32.mrb[7].mxu0  ;;  %v6587_v44 = vadd.f32 %v6264_v47, %v8270_v55 }
 0x244   : > { %v1902_v42 = vsel %vm984_vm8, %v1875_v52, 0.0  ;;  %v1953_v36 = vmul.f32 %v6586_v37, %v1875_v52  ;;  %v6588_v1 = vadd.f32 %v1614_v20, %v8272_v23  ;;  %v1904_v7 = vsel %vm984_vm8, %v1876_v38, 0.0 }
 0x245   : > { %v1903_v3 = vadd.f32 %v1902_v42, %v1901_v48  ;;  %v1979_v33 = vadd.f32 %v1978_v14, %v1977_v29  ;;  %v8342_v17 = vpop.permute.xlu0 %2527  ;;  %v8344_v50 = vpop.permute.xlu1 %2525  ;;  %v1878_v27 = vmul.f32 %v6587_v44, %v7867_v35  ;;  %2034 = vst.msk [vmem:[%s8293_s29 + $0x38] sm:$0xff] %vm984_vm8, %v6587_v44  ;;  %v1982_v52 = vsel %vm984_vm8, %v1954_v21, 0.0 }
 0x246   : > { %v1980_v16 = vsel %vm984_vm8, %v1953_v36, 0.0  ;;  %v1877_v37 = vmul.f32 %v6588_v1, %v7869_v13  ;;  %2033 = vst.msk [vmem:[%s8293_s29 + $0x30] sm:$0xff] %vm984_vm8, %v6588_v1  ;;  %v6267_v23 = vpop.f32.mrb[8].mxu0 }
 0x247   : > { %v1981_v55 = vadd.f32 %v1980_v16, %v1979_v33  ;;  %v1905_v22 = vadd.f32 %v1904_v7, %v1903_v3  ;;  %v6589_v26 = vadd.f32 %v6267_v23, %v8286_v5  ;;  %v1624_v61 = vpop.f32.mrb[9].mxu0  ;;  %v1956_v38 = vmul.f32 %v6587_v44, %v1878_v27 }
 0x248   : > { %v1906_v47 = vsel %vm984_vm8, %v1877_v37, 0.0  ;;  %v1955_v35 = vmul.f32 %v6588_v1, %v1877_v37  ;;  %v6590_v13 = vadd.f32 %v1624_v61, %v8288_v24  ;;  %v1908_v36 = vsel %vm984_vm8, %v1878_v27, 0.0 }
 0x249   : > { %v1907_v14 = vadd.f32 %v1906_v47, %v1905_v22  ;;  %v1983_v29 = vadd.f32 %v1982_v52, %v1981_v55  ;;  %v1880_v48 = vmul.f32 %v6589_v26, %v7871_v43  ;;  %2036 = vst.msk [vmem:[%s8293_s29 + $0x48] sm:$0xff] %vm984_vm8, %v6589_v26  ;;  %v8361_v20 = vpop.permute.xlu0 %2531  ;;  %v8363_v42 = vpop.permute.xlu1 %2529  ;;  %v1986_v3 = vsel %vm984_vm8, %v1956_v38, 0.0 }
 0x24a   : > { %v1984_v5 = vsel %vm984_vm8, %v1955_v35, 0.0  ;;  %v6270_v21 = vpop.f32.mrb[10].mxu0  ;;  %v1879_v1 = vmul.f32 %v6590_v13, %v7873_v6  ;;  %2035 = vst.msk [vmem:[%s8293_s29 + $0x40] sm:$0xff] %vm984_vm8, %v6590_v13 }
 0x24b   : > { %v1985_v44 = vadd.f32 %v1984_v5, %v1983_v29  ;;  %v1634_v43 = vpop.f32.mrb[11].mxu0  ;;  %v1909_v24 = vadd.f32 %v1908_v36, %v1907_v14  ;;  %v6591_v33 = vadd.f32 %v6270_v21, %v8297_v8  ;;  %v1958_v16 = vmul.f32 %v6589_v26, %v1880_v48 }
 0x24c   : > { %v6592_v7 = vadd.f32 %v1634_v43, %v8304_v40  ;;  %v1910_v37 = vsel %vm984_vm8, %v1879_v1, 0.0  ;;  %v1957_v23 = vmul.f32 %v6590_v13, %v1879_v1  ;;  %v1912_v40 = vsel %vm984_vm8, %v1880_v48, 0.0 }
 0x24d   : > { %v1987_v27 = vadd.f32 %v1986_v3, %v1985_v44  ;;  %v8374_v55 = vpop.permute.xlu0 %2535  ;;  %v8376_v22 = vpop.permute.xlu1 %2533  ;;  %v1911_v6 = vadd.f32 %v1910_v37, %v1909_v24  ;;  %v1882_v61 = vmul.f32 %v6591_v33, %v7875_v10  ;;  %2038 = vst.msk [vmem:[%s8293_s29 + $0x58] sm:$0xff] %vm984_vm8, %v6591_v33  ;;  %v1990_v14 = vsel %vm984_vm8, %v1958_v16, 0.0 }
 0x24e   : > { %v1881_v52 = vmul.f32 %v6592_v7, %v7877_v57  ;;  %2037 = vst.msk [vmem:[%s8293_s29 + $0x50] sm:$0xff] %vm984_vm8, %v6592_v7  ;;  %v6273_v8 = vpop.f32.mrb[12].mxu0  ;;  %v1988_v26 = vsel %vm984_vm8, %v1957_v23, 0.0 }
 0x24f   : > { %v1644_v38 = vpop.f32.mrb[13].mxu0  ;;  %v1989_v47 = vadd.f32 %v1988_v26, %v1987_v27  ;;  %v1913_v35 = vadd.f32 %v1912_v40, %v1911_v6  ;;  %v1960_v29 = vmul.f32 %v6591_v33, %v1882_v61  ;;  %v1916_v48 = vsel %vm984_vm8, %v1882_v61, 0.0 }
 0x250   : > { %v1914_v13 = vsel %vm984_vm8, %v1881_v52, 0.0  ;;  %v1959_v10 = vmul.f32 %v6592_v7, %v1881_v52 }
 0x251   : > { %v8388_v5 = vpop.permute.xlu0 %2539  ;;  %v8390_v21 = vpop.permute.xlu1 %2537  ;;  %v1915_v57 = vadd.f32 %v1914_v13, %v1913_v35  ;;  %v1991_v36 = vadd.f32 %v1990_v14, %v1989_v47  ;;  %v1994_v16 = vsel %vm984_vm8, %v1960_v29, 0.0 }
 0x252   : > { %10348 = vst [vmem:[#allocation27_spill] sm:$0xff] %v8388_v5  ;;  %v6276_v44 = vpop.f32.mrb[14].mxu0  ;;  %v1992_v1 = vsel %vm984_vm8, %v1959_v10, 0.0  ;;  %v2628_v5 = vrot.slane %v8030_v19, 2 }
 0x253   : > { %v1654_v43 = vpop.f32.mrb[15].mxu0  ;;  %v1993_v3 = vadd.f32 %v1992_v1, %v1991_v36  ;;  %v1917_v33 = vadd.f32 %v1916_v48, %v1915_v57 }
 0x254   : > { %v6231_v24 = vpop.f32.mrb[12].mxu1 }
 0x255   : > { %v6593_v7 = vadd.f32 %v6273_v8, %v6231_v24  ;;  %v8395_v37 = vpop.permute.xlu0 %2543  ;;  %v1446_v23 = vpop.f32.mrb[13].mxu1  ;;  %v1995_v27 = vadd.f32 %v1994_v16, %v1993_v3 }
 0x256   : > { %10349 = vst [vmem:[#allocation28_spill] sm:$0xff] %v8395_v37  ;;  %v6279_v6 = vpop.f32.mrb[16].mxu0  ;;  %v8400_v61 = vpop.permute.xlu1 %2541  ;;  %v6594_v40 = vadd.f32 %v1644_v38, %v1446_v23 }
 0x257   : > { %v1884_v52 = vmul.f32 %v6593_v7, %v7879_v58  ;;  %2040 = vst.msk [vmem:[%s8293_s29 + $0x68] sm:$0xff] %vm984_vm8, %v6593_v7  ;;  %10350 = vst [vmem:[#allocation29_spill] sm:$0xff] %v8400_v61  ;;  %v1664_v26 = vpop.f32.mrb[17].mxu0 }
 0x258   : > { %v6234_v47 = vpop.f32.mrb[14].mxu1  ;;  %v1883_v35 = vmul.f32 %v6594_v40, %v7881_v31  ;;  %2039 = vst.msk [vmem:[%s8293_s29 + $0x60] sm:$0xff] %vm984_vm8, %v6594_v40 }
 0x259   : > { %v6595_v8 = vadd.f32 %v6276_v44, %v6234_v47  ;;  %v1456_v14 = vpop.f32.mrb[15].mxu1  ;;  %v1962_v13 = vmul.f32 %v6593_v7, %v1884_v52  ;;  %v1920_v31 = vsel %vm984_vm8, %v1884_v52, 0.0  ;;  %v8411_v3 = vpop.permute.xlu0 %2547 }
 0x25a   : > { %v6282_v29 = vpop.f32.mrb[18].mxu0  ;;  %v1918_v10 = vsel %vm984_vm8, %v1883_v35, 0.0  ;;  %v1961_v57 = vmul.f32 %v6594_v40, %v1883_v35  ;;  %v6596_v48 = vadd.f32 %v1654_v43, %v1456_v14  ;;  %10351 = vst [vmem:[#allocation30_spill] sm:$0xff] %v8411_v3  ;;  %v8413_v24 = vpop.permute.xlu1 %2545 }
 0x25b   : > { %v1886_v58 = vmul.f32 %v6595_v8, %v7883_v32  ;;  %2042 = vst.msk [vmem:[%s8293_s29 + $0x78] sm:$0xff] %vm984_vm8, %v6595_v8  ;;  %v1674_v36 = vpop.f32.mrb[19].mxu0  ;;  %v1919_v38 = vadd.f32 %v1918_v10, %v1917_v33  ;;  %10352 = vst [vmem:[#allocation31_spill] sm:$0xff] %v8413_v24  ;;  %v1998_v43 = vsel %vm984_vm8, %v1962_v13, 0.0 }
 0x25c   : > { %v6237_v1 = vpop.f32.mrb[16].mxu1  ;;  %v1996_v44 = vsel %vm984_vm8, %v1961_v57, 0.0  ;;  %v1885_v23 = vmul.f32 %v6596_v48, %v7885_v59  ;;  %2041 = vst.msk [vmem:[%s8293_s29 + $0x70] sm:$0xff] %vm984_vm8, %v6596_v48 }
 0x25d   : > { %v6597_v16 = vadd.f32 %v6279_v6, %v6237_v1  ;;  %v1997_v7 = vadd.f32 %v1996_v44, %v1995_v27  ;;  %v1921_v32 = vadd.f32 %v1920_v31, %v1919_v38  ;;  %v1466_v33 = vpop.f32.mrb[17].mxu1  ;;  %v1964_v47 = vmul.f32 %v6595_v8, %v1886_v58 }
 0x25e   : > { %v6285_v40 = vpop.f32.mrb[20].mxu0  ;;  %v6598_v52 = vadd.f32 %v1664_v26, %v1466_v33  ;;  %v1922_v14 = vsel %vm984_vm8, %v1885_v23, 0.0  ;;  %v1963_v10 = vmul.f32 %v6596_v48, %v1885_v23  ;;  %v1924_v13 = vsel %vm984_vm8, %v1886_v58, 0.0  ;;  %v8432_v33 = vpop.permute.xlu1 %2549 }
 0x25f   : > { %2044 = vst.msk [vmem:[%s8293_s29 + $0x88] sm:$0xff] %vm984_vm8, %v6597_v16  ;;  %v1684_v35 = vpop.f32.mrb[21].mxu0  ;;  %v1999_v6 = vadd.f32 %v1998_v43, %v1997_v7  ;;  %v1888_v27 = vmul.f32 %v6597_v16, %v7887_v62  ;;  %v1923_v57 = vadd.f32 %v1922_v14, %v1921_v32  ;;  %v2002_v44 = vsel %vm984_vm8, %v1964_v47, 0.0  ;;  %v8429_v7 = vpop.permute.xlu0 %2551  ;;  %10354 = vst [vmem:[#allocation33_spill] sm:$0xff] %v8432_v33 }
 0x260   : > { %v6240_v59 = vpop.f32.mrb[18].mxu1  ;;  %v1887_v38 = vmul.f32 %v6598_v52, %v7889_v28  ;;  %2043 = vst.msk [vmem:[%s8293_s29 + $0x80] sm:$0xff] %vm984_vm8, %v6598_v52  ;;  %v2000_v8 = vsel %vm984_vm8, %v1963_v10, 0.0  ;;  %10353 = vst [vmem:[#allocation32_spill] sm:$0xff] %v8429_v7  ;;  %v2624_v7 = vrot.slane %v8014_v34, 2 }
 0x261   : > { %v6599_v1 = vadd.f32 %v6282_v29, %v6240_v59  ;;  %v1476_v26 = vpop.f32.mrb[19].mxu1  ;;  %v2001_v48 = vadd.f32 %v2000_v8, %v1999_v6  ;;  %v1925_v62 = vadd.f32 %v1924_v13, %v1923_v57  ;;  %v1966_v32 = vmul.f32 %v6597_v16, %v1888_v27 }
 0x262   : > { %v6288_v31 = vpop.f32.mrb[22].mxu0  ;;  %v1926_v23 = vsel %vm984_vm8, %v1887_v38, 0.0  ;;  %v1965_v58 = vmul.f32 %v6598_v52, %v1887_v38  ;;  %v6600_v29 = vadd.f32 %v1674_v36, %v1476_v26  ;;  %v1928_v59 = vsel %vm984_vm8, %v1888_v27, 0.0 }
 0x263   : > { %v1694_v28 = vpop.f32.mrb[23].mxu0  ;;  %v1890_v43 = vmul.f32 %v6599_v1, %v7893_v30  ;;  %2046 = vst.msk [vmem:[%s8293_s29 + $0x98] sm:$0xff] %vm984_vm8, %v6599_v1  ;;  %v1927_v47 = vadd.f32 %v1926_v23, %v1925_v62  ;;  %v2003_v10 = vadd.f32 %v2002_v44, %v2001_v48  ;;  %v2006_v30 = vsel %vm984_vm8, %v1966_v32, 0.0  ;;  %v8447_v44 = vpop.permute.xlu0 %2555 }
 0x264   : > { %v6243_v14 = vpop.f32.mrb[20].mxu1  ;;  %v2004_v57 = vsel %vm984_vm8, %v1965_v58, 0.0  ;;  %v1889_v13 = vmul.f32 %v6600_v29, %v7895_v11  ;;  %2045 = vst.msk [vmem:[%s8293_s29 + $0x90] sm:$0xff] %vm984_vm8, %v6600_v29  ;;  %10355 = vst [vmem:[#allocation34_spill] sm:$0xff] %v8447_v44  ;;  %v8449_v62 = vpop.permute.xlu1 %2553 }
 0x265   : > { %v6601_v6 = vadd.f32 %v6285_v40, %v6243_v14  ;;  %v1486_v16 = vpop.f32.mrb[21].mxu1  ;;  %v2005_v8 = vadd.f32 %v2004_v57, %v2003_v10  ;;  %v1929_v52 = vadd.f32 %v1928_v59, %v1927_v47  ;;  %v1968_v36 = vmul.f32 %v6599_v1, %v1890_v43  ;;  %10356 = vst [vmem:[#allocation35_spill] sm:$0xff] %v8449_v62 }
 0x266   : > { %v1930_v38 = vsel %vm984_vm8, %v1889_v13, 0.0  ;;  %v1967_v26 = vmul.f32 %v6600_v29, %v1889_v13  ;;  %v1932_v27 = vsel %vm984_vm8, %v1890_v43, 0.0  ;;  %v6602_v1 = vadd.f32 %v1684_v35, %v1486_v16 }
 0x267   : > { %2048 = vst.msk [vmem:[%s8293_s29 + $0xa8] sm:$0xff] %vm984_vm8, %v6601_v6  ;;  %v1931_v11 = vadd.f32 %v1930_v38, %v1929_v52  ;;  %v2007_v48 = vadd.f32 %v2006_v30, %v2005_v8  ;;  %v1892_v58 = vmul.f32 %v6601_v6, %v7906_v51  ;;  %v2010_v10 = vsel %vm984_vm8, %v1968_v36, 0.0  ;;  %v8466_v30 = vpop.permute.xlu0 %2559 }
 0x268   : > { %v6246_v40 = vpop.f32.mrb[22].mxu1  ;;  %v2008_v23 = vsel %vm984_vm8, %v1967_v26, 0.0  ;;  %v1891_v43 = vmul.f32 %v6602_v1, %v7908_v53  ;;  %2047 = vst.msk [vmem:[%s8293_s29 + $0xa0] sm:$0xff] %vm984_vm8, %v6602_v1  ;;  %10357 = vst [vmem:[#allocation36_spill] sm:$0xff] %v8466_v30  ;;  %v8468_v36 = vpop.permute.xlu1 %2557 }
 0x269   : > { %v6603_v32 = vadd.f32 %v6288_v31, %v6246_v40  ;;  %v1496_v29 = vpop.f32.mrb[23].mxu1  ;;  %v2009_v14 = vadd.f32 %v2008_v23, %v2007_v48  ;;  %v1933_v47 = vadd.f32 %v1932_v27, %v1931_v11  ;;  %v1970_v13 = vmul.f32 %v6601_v6, %v1892_v58  ;;  %v2078_v31 = vld [vmem:[%s6936_s20 + $0x19f] sm:$0xff]  ;;  %10358 = vst [vmem:[#allocation37_spill] sm:$0xff] %v8468_v36 }
 0x26a   : > { %v6604_v59 = vadd.f32 %v1694_v28, %v1496_v29  ;;  %v1934_v51 = vsel %vm984_vm8, %v1891_v43, 0.0  ;;  %v1969_v8 = vmul.f32 %v6602_v1, %v1891_v43  ;;  %v1936_v53 = vsel %vm984_vm8, %v1892_v58, 0.0 }
 0x26b   : > { %2050 = vst.msk [vmem:[%s8293_s29 + $0xb8] sm:$0xff] %vm984_vm8, %v6603_v32  ;;  %v2011_v57 = vadd.f32 %v2010_v10, %v2009_v14  ;;  %v1894_v35 = vmul.f32 %v6603_v32, %v7921_v63  ;;  %v1935_v16 = vadd.f32 %v1934_v51, %v1933_v47  ;;  %v8475_v63 = vld [vmem:[%s10220_s1] ss:$0 sm:$0xff]  ;;  %v2014_v27 = vsel %vm984_vm8, %v1970_v13, 0.0  ;;  %v8492_v43 = vpop.permute.xlu0 %2563 }
 0x26c   : > { %2049 = vst.msk [vmem:[%s8293_s29 + $0xb0] sm:$0xff] %vm984_vm8, %v6604_v59  ;;  %v1893_v52 = vmul.f32 %v6604_v59, %v7923_v9  ;;  %v2012_v28 = vsel %vm984_vm8, %v1969_v8, 0.0  ;;  %v2171_v9 = vmul.f32 %v8475_v63, %v2078_v31  ;;  %v8486_v47 = vld [vmem:[%s10221_s2] ss:$0 sm:$0xff]  ;;  %10360 = vst [vmem:[#allocation39_spill] sm:$0xff] %v8492_v43  ;;  %v2620_v43 = vrot.slane %v7998_v12, 2 }
 0x26d   : > { %v2013_v6 = vadd.f32 %v2012_v28, %v2011_v57  ;;  %v1937_v38 = vadd.f32 %v1936_v53, %v1935_v16  ;;  %v1972_v11 = vmul.f32 %v6603_v32, %v1894_v35  ;;  %v1940_v1 = vsel %vm984_vm8, %v1894_v35, 0.0  ;;  %v3824_v57 = vld [vmem:[%s6936_s20 + $0x1b7] sm:$0xff]  ;;  %v3825_v16 = vld [vmem:[%s6936_s20 + $0x1bf] sm:$0xff] }
 0x26e   : > { %v1938_v26 = vsel %vm984_vm8, %v1893_v52, 0.0  ;;  %v1971_v40 = vmul.f32 %v6604_v59, %v1893_v52  ;;  %v8489_v10 = vadd.f32 %v8486_v47, %v2171_v9  ;;  %v8494_v59 = vpop.permute.xlu1 %2561  ;;  %v3917_v51 = vmul.f32 %v8475_v63, %v3824_v57  ;;  %v3826_v57 = vld [vmem:[%s6936_s20 + $0x1c7] sm:$0xff] }
 0x26f   : > { %v1939_v48 = vadd.f32 %v1938_v26, %v1937_v38  ;;  %v2015_v23 = vadd.f32 %v2014_v27, %v2013_v6  ;;  %v2018_v32 = vsel %vm984_vm8, %v1972_v11, 0.0  ;;  %10361 = vst [vmem:[#allocation40_spill] sm:$0xff] %v8494_v59  ;;  %v10363_v52 = vmax.f32 %v8122_v0, 0.0 }
 0x270   : > { %v2016_v58 = vsel %vm984_vm8, %v1971_v40, 0.0  ;;  %v10274_v8 = vmax.f32 %v8489_v10, 0.0  ;;  %v3948_v38 = vadd.f32 %v8486_v47, %v3917_v51  ;;  %v3918_v26 = vmul.f32 %v8475_v63, %v3825_v16 }
 0x271   : > { %v8481_v29 = vadd.f32 %v1940_v1, %v1939_v48  ;;  %v2017_v14 = vadd.f32 %v2016_v58, %v2015_v23  ;;  %v10364_v48 = vmax.f32 %v8110_v46, 0.0  ;;  %v2616_v46 = vrot.slane %v7984_v18, 2 }
 0x272   : > { %v3979_v1 = vmax.f32 %v3948_v38, 0.0  ;;  %v2622_v36 = vrot.slane %v7992_v49, 2 }
 0x273   : > { %10359 = vst [vmem:[#allocation38_spill] sm:$0xff] %v8481_v29  ;;  %v8497_v13 = vadd.f32 %v2018_v32, %v2017_v14  ;;  %v3949_v14 = vadd.f32 %v8486_v47, %v3918_v26  ;;  %v3919_v26 = vmul.f32 %v8475_v63, %v3826_v57 }
 0x275   : > { %10362 = vst [vmem:[#allocation41_spill] sm:$0xff] %v8497_v13 }
 0x27a   : > { %v4049_v35 = vpop.permute.xlu0 %4048  ;;  %v4046_v31 = vpop.permute.xlu1 %4045 }
 0x27b   : > { %vm4132_vm12 = vcmp.eq.s32.totalorder %v4049_v35, 1  ;;  %vm4131_vm13 = vcmp.eq.s32.totalorder %v4046_v31, 1 }
 0x27c   : > { %v8504_v53 = vsel %vm4132_vm12, %v10363_v52, 0.0  ;;  %v8508_v28 = vsel %vm4131_vm13, %v10274_v8, 0.0 }
 0x27d   : > { %v4228_v6 = vrot.slane %v8504_v53, 1  ;;  %v10272_v40 = vrot.slane %v8508_v28, 1  ;;  %v4379_v0 = vrot.slane %v8504_v53, 2  ;;  %v10273_v11 = vrot.slane %v8508_v28, 2 }
 0x27e   : > { %v4055_v9 = vpop.permute.xlu0 %4054  ;;  %v4052_v27 = vpop.permute.xlu1 %4051 }
 0x27f   : > { %vm4133_vm14 = vcmp.eq.s32.totalorder %v4052_v27, 1  ;;  %v4229_v58 = vsel %vm680_vm1, %v10272_v40, %v4228_v6  ;;  %vm4134_vm15 = vcmp.eq.s32.totalorder %v4055_v9, 1  ;;  %v4380_v16 = vsel %vm832_vm0, %v10273_v11, %v4379_v0 }
 0x280   : > { %v8518_v23 = vsel %vm4133_vm14, %v10364_v48, 0.0  ;;  %4288 = vrot.lane.b32.xlu1 %v4229_v58, %s6755_s27  ;;  %v8533_v38 = vsel %vm4134_vm15, %v3979_v1, 0.0  ;;  %v3980_v9 = vmax.f32 %v3949_v14, 0.0  ;;  %v3827_v48 = vld [vmem:[%s6936_s20 + $0x1cf] sm:$0xff]  ;;  %v2618_v40 = vrot.slane %v7978_v54, 2 }
 0x281   : > { %v4230_v32 = vrot.slane %v8518_v23, 1  ;;  %v4381_v31 = vrot.slane %v8518_v23, 2  ;;  %v4232_v11 = vrot.slane %v8533_v38, 1  ;;  %v3950_v14 = vadd.f32 %v8486_v47, %v3919_v26 }
 0x282   : > { %v4061_v51 = vpop.permute.xlu0 %4060  ;;  %v4058_v35 = vpop.permute.xlu1 %4057  ;;  %v4383_v13 = vrot.slane %v8533_v38, 2  ;;  %v2619_v26 = vsel %vm832_vm0, %v2616_v46, %v2618_v40 }
 0x283   : > { %v4231_v52 = vsel %vm680_vm1, %v4228_v6, %v4230_v32  ;;  %vm4135_vm2 = vcmp.eq.s32.totalorder %v4058_v35, 1  ;;  %v10365_v6 = vrot.slane %v7960_v60, 2  ;;  %v4382_v57 = vsel %vm832_vm0, %v4379_v0, %v4381_v31 }
 0x284   : > { %4439 = vrot.lane.b32.xlu1 %v4380_v16, %s6756_s16  ;;  %4290 = vrot.lane.b32.xlu0 %v4231_v52, %s6755_s27  ;;  %v8548_v16 = vsel %vm4135_vm2, %v3980_v9, 0.0  ;;  %v3920_v35 = vmul.f32 %v8475_v63, %v3827_v48  ;;  %v4233_v0 = vsel %vm680_vm1, %v4230_v32, %v4232_v11  ;;  %v3981_v9 = vmax.f32 %v3950_v14, 0.0  ;;  %v3828_v48 = vld [vmem:[%s6936_s20 + $0x1d7] sm:$0xff] }
 0x285   : > { %v2617_v1 = vsel %vm832_vm0, %v10365_v6, %v2616_v46  ;;  %v4234_v6 = vrot.slane %v8548_v16, 1  ;;  %vm4136_vm3 = vcmp.eq.s32.totalorder %v4061_v51, 1  ;;  %v4385_v32 = vrot.slane %v8548_v16, 2  ;;  %v3829_v51 = vld [vmem:[%s6936_s20 + $0x1df] sm:$0xff] }
 0x286   : > { %v8538_v27 = vpop.permute.xlu0 %4066  ;;  %v4064_v58 = vpop.permute.xlu1 %4063  ;;  %v3951_v29 = vadd.f32 %v8486_v47, %v3920_v35  ;;  %v4384_v46 = vsel %vm832_vm0, %v4381_v31, %v4383_v13  ;;  %v8573_v35 = vsel %vm4136_vm3, %v3981_v9, 0.0 }
 0x287   : > { %v4235_v14 = vsel %vm680_vm1, %v4232_v11, %v4234_v6  ;;  %vm4137_vm4 = vcmp.eq.s32.totalorder %v4064_v58, 1  ;;  %v4236_v31 = vrot.slane %v8573_v35, 1  ;;  %v2621_v11 = vsel %vm832_vm0, %v2618_v40, %v2620_v43 }
 0x288   : > { %2676 = vrot.lane.b32.xlu1 %v2617_v1, %s6756_s16  ;;  %4441 = vrot.lane.b32.xlu0 %v4382_v57, %s6756_s16  ;;  %v3982_v59 = vmax.f32 %v3951_v29, 0.0  ;;  %v4386_v9 = vsel %vm832_vm0, %v4383_v13, %v4385_v32  ;;  %v3922_v58 = vmul.f32 %v8475_v63, %v3829_v51  ;;  %v4387_v44 = vrot.slane %v8573_v35, 2  ;;  %v3830_v51 = vld [vmem:[%s6936_s20 + $0x1e7] sm:$0xff] }
 0x289   : > { %v4237_v13 = vsel %vm680_vm1, %v4234_v6, %v4236_v31  ;;  %vm4138_vm5 = vcmp.eq.s32.totalorder %v8538_v27, 1  ;;  %v3831_v27 = vld [vmem:[%s6936_s20 + $0x1ef] sm:$0xff] }
 0x28a   : > { %v8553_v52 = vpop.permute.xlu0 %4072  ;;  %v8555_v8 = vpop.permute.xlu1 %4069  ;;  %v3953_v62 = vadd.f32 %v8486_v47, %v3922_v58 }
 0x28b   : > { %vm4139_vm6 = vcmp.eq.s32.totalorder %v8555_v8, 1  ;;  %v3924_v8 = vmul.f32 %v8475_v63, %v3831_v27  ;;  %vm4140_vm7 = vcmp.eq.s32.totalorder %v8553_v52, 1  ;;  %v3832_v27 = vld [vmem:[%s6936_s20 + $0x1f7] sm:$0xff]  ;;  %v3833_v52 = vld [vmem:[%s6936_s20 + $0x1ff] sm:$0xff] }
 0x28c   : > { %4292 = vrot.lane.b32.xlu1 %v4233_v0, %s6755_s27  ;;  %2678 = vrot.lane.b32.xlu0 %v2619_v26, %s6756_s16  ;;  %v3921_v0 = vmul.f32 %v8475_v63, %v3828_v48  ;;  %v8588_v48 = vsel %vm4137_vm4, %v3982_v59, 0.0 }
 0x28d   : > { %v4238_v40 = vrot.slane %v8588_v48, 1  ;;  %v4389_v6 = vrot.slane %v8588_v48, 2  ;;  %v3955_v61 = vadd.f32 %v8486_v47, %v3924_v8 }
 0x28e   : > { %v8565_v1 = vpop.permute.xlu0 %4078  ;;  %v8567_v57 = vpop.permute.xlu1 %4075  ;;  %v3952_v29 = vadd.f32 %v8486_v47, %v3921_v0  ;;  %v2623_v0 = vsel %vm832_vm0, %v2620_v43, %v2622_v36  ;;  %v4388_v43 = vsel %vm832_vm0, %v4385_v32, %v4387_v44  ;;  %v2626_v32 = vrot.slane %v8008_v39, 2 }
 0x28f   : > { %vm4141_vm11 = vcmp.eq.s32.totalorder %v8567_v57, 1  ;;  %vm4142_vm12 = vcmp.eq.s32.totalorder %v8565_v1, 1 }
 0x290   : > { %4443 = vrot.lane.b32.xlu1 %v4384_v46, %s6756_s16  ;;  %4294 = vrot.lane.b32.xlu0 %v4235_v14, %s6755_s27  ;;  %v3983_v59 = vmax.f32 %v3952_v29, 0.0  ;;  %v4239_v29 = vsel %vm680_vm1, %v4236_v31, %v4238_v40 }
 0x292   : > { %v8579_v26 = vpop.permute.xlu0 %4084  ;;  %v8581_v30 = vpop.permute.xlu1 %4081  ;;  %v8614_v58 = vsel %vm4138_vm5, %v3983_v59, 0.0  ;;  %v2625_v59 = vsel %vm832_vm0, %v2622_v36, %v2624_v7 }
 0x293   : > { %10366 = vst [vmem:[#allocation42_spill] sm:$0xff] %v8614_v58  ;;  %v4240_v31 = vrot.slane %v8614_v58, 1  ;;  %v4391_v37 = vrot.slane %v8614_v58, 2  ;;  %vm4143_vm13 = vcmp.eq.s32.totalorder %v8581_v30, 1  ;;  %vm4144_vm14 = vcmp.eq.s32.totalorder %v8579_v26, 1  ;;  %v3837_v26 = vld [vmem:[%s6936_s20 + $0x21f] sm:$0xff] }
 0x294   : > { %2680 = vrot.lane.b32.xlu1 %v2621_v11, %s6756_s16  ;;  %4445 = vrot.lane.b32.xlu0 %v4386_v9, %s6756_s16 }
 0x296   : > { %v8593_v46 = vpop.permute.xlu0 %4090  ;;  %v8595_v14 = vpop.permute.xlu1 %4087 }
 0x297   : > { %vm4145_vm15 = vcmp.eq.s32.totalorder %v8595_v14, 1  ;;  %vm4146_vm2 = vcmp.eq.s32.totalorder %v8593_v46, 1  ;;  %v3839_v46 = vld [vmem:[%s6936_s20 + $0x22f] sm:$0xff] }
 0x298   : > { %4296 = vrot.lane.b32.xlu1 %v4237_v13, %s6755_s27  ;;  %2682 = vrot.lane.b32.xlu0 %v2623_v0, %s6756_s16  ;;  %v3923_v13 = vmul.f32 %v8475_v63, %v3830_v51  ;;  %v3984_v0 = vmax.f32 %v3953_v62, 0.0  ;;  %v4390_v51 = vsel %vm832_vm0, %v4387_v44, %v4389_v6  ;;  %v4241_v44 = vsel %vm680_vm1, %v4238_v40, %v4240_v31 }
 0x29a   : > { %v8606_v11 = vpop.permute.xlu0 %4096  ;;  %v8608_v9 = vpop.permute.xlu1 %4093  ;;  %v3954_v62 = vadd.f32 %v8486_v47, %v3923_v13  ;;  %v2627_v13 = vsel %vm832_vm0, %v2624_v7, %v2626_v32  ;;  %v4392_v7 = vsel %vm832_vm0, %v4389_v6, %v4391_v37  ;;  %v2630_v6 = vrot.slane %v8024_v45, 2 }
 0x29b   : > { %vm4147_vm3 = vcmp.eq.s32.totalorder %v8608_v9, 1  ;;  %vm4148_vm4 = vcmp.eq.s32.totalorder %v8606_v11, 1  ;;  %v3841_v11 = vld [vmem:[%s6936_s20 + $0x23f] sm:$0xff] }
 0x29c   : > { %4447 = vrot.lane.b32.xlu1 %v4388_v43, %s6756_s16  ;;  %4298 = vrot.lane.b32.xlu0 %v4239_v29, %s6755_s27  ;;  %v8630_v43 = vsel %vm4139_vm6, %v3984_v0, 0.0  ;;  %v3985_v0 = vmax.f32 %v3954_v62, 0.0 }
 0x29d   : > { %10367 = vst [vmem:[#allocation43_spill] sm:$0xff] %v8630_v43  ;;  %v4242_v36 = vrot.slane %v8630_v43, 1  ;;  %v4393_v40 = vrot.slane %v8630_v43, 2 }
 0x29e   : > { %v8621_v33 = vpop.permute.xlu0 %4102  ;;  %v8623_v3 = vpop.permute.xlu1 %4099  ;;  %v8656_v8 = vsel %vm4140_vm7, %v3985_v0, 0.0  ;;  %v2629_v0 = vsel %vm832_vm0, %v2626_v32, %v2628_v5 }
 0x29f   : > { %v4243_v62 = vsel %vm680_vm1, %v4240_v31, %v4242_v36  ;;  %10368 = vst [vmem:[#allocation44_spill] sm:$0xff] %v8656_v8  ;;  %v4244_v31 = vrot.slane %v8656_v8, 1  ;;  %v4395_v43 = vrot.slane %v8656_v8, 2  ;;  %vm4149_vm5 = vcmp.eq.s32.totalorder %v8623_v3, 1 }
 0x2a0   : > { %2684 = vrot.lane.b32.xlu1 %v2625_v59, %s6756_s16  ;;  %4449 = vrot.lane.b32.xlu0 %v4390_v51, %s6756_s16  ;;  %vm4150_vm6 = vcmp.eq.s32.totalorder %v8621_v33, 1  ;;  %v3843_v33 = vld [vmem:[%s6936_s20 + $0x24f] sm:$0xff] }
 0x2a2   : > { %v8635_v29 = vpop.permute.xlu0 %4108  ;;  %v8637_v24 = vpop.permute.xlu1 %4105 }
 0x2a3   : > { %vm4151_vm7 = vcmp.eq.s32.totalorder %v8637_v24, 1 }
 0x2a4   : > { %4300 = vrot.lane.b32.xlu1 %v4241_v44, %s6755_s27  ;;  %2686 = vrot.lane.b32.xlu0 %v2627_v13, %s6756_s16  ;;  %v3925_v44 = vmul.f32 %v8475_v63, %v3832_v27  ;;  %v3986_v13 = vmax.f32 %v3955_v61, 0.0  ;;  %v4394_v27 = vsel %vm832_vm0, %v4391_v37, %v4393_v40  ;;  %v4245_v37 = vsel %vm680_vm1, %v4242_v36, %v4244_v31  ;;  %v3834_v36 = vld [vmem:[%s6936_s20 + $0x207] sm:$0xff] }
 0x2a5   : > { %v3927_v39 = vmul.f32 %v8475_v63, %v3834_v36 }
 0x2a6   : > { %v8648_v59 = vpop.permute.xlu0 %4114  ;;  %v8650_v51 = vpop.permute.xlu1 %4111  ;;  %v3956_v61 = vadd.f32 %v8486_v47, %v3925_v44  ;;  %v2631_v44 = vsel %vm832_vm0, %v2628_v5, %v2630_v6 }
 0x2a8   : > { %4451 = vrot.lane.b32.xlu1 %v4392_v7, %s6756_s16  ;;  %4302 = vrot.lane.b32.xlu0 %v4243_v62, %s6755_s27  ;;  %v8672_v7 = vsel %vm4141_vm11, %v3986_v13, 0.0  ;;  %v3926_v62 = vmul.f32 %v8475_v63, %v3833_v52  ;;  %v3987_v13 = vmax.f32 %v3956_v61, 0.0  ;;  %vm4152_vm11 = vcmp.eq.s32.totalorder %v8635_v29, 1  ;;  %v10385_v29 = vld [vmem:[#allocation16_spill] sm:$0xff] }
 0x2a9   : > { %v4246_v32 = vrot.slane %v8672_v7, 1 }
 0x2aa   : > { %v8663_v58 = vpop.permute.xlu0 %4036  ;;  %v8665_v19 = vpop.permute.xlu1 %4117  ;;  %v3957_v52 = vadd.f32 %v8486_v47, %v3926_v62  ;;  %v8708_v1 = vsel %vm4142_vm12, %v3987_v13, 0.0  ;;  %vm4153_vm12 = vcmp.eq.s32.totalorder %v8650_v51, 1  ;;  %v3845_v51 = vld [vmem:[%s6936_s20 + $0x25f] sm:$0xff] }
 0x2ab   : > { %v4399_v30 = vrot.slane %v8708_v1, 2 }
 0x2ac   : > { %2688 = vrot.lane.b32.xlu1 %v2629_v0, %s6756_s16  ;;  %4453 = vrot.lane.b32.xlu0 %v4394_v27, %s6756_s16  ;;  %v2760_v0 = vsel %vm984_vm8, %v7962_v25, %v8326_v56  ;;  %v2759_v27 = vsel %vm984_vm8, %v7946_v4, %v8328_v2  ;;  %v4397_v25 = vrot.slane %v8672_v7, 2  ;;  %v4396_v56 = vsel %vm832_vm0, %v4393_v40, %v4395_v43  ;;  %v10372_v40 = vld [vmem:[#allocation4_spill] sm:$0xff] }
 0x2ad   : > { %v4247_v2 = vsel %vm680_vm1, %v4244_v31, %v4246_v32  ;;  %v2634_v31 = vrot.slane %v10372_v40, 2 }
 0x2ae   : > { %v8677_v57 = vpop.permute.xlu0 %4042  ;;  %v8679_v45 = vpop.permute.xlu1 %4039  ;;  %v4398_v36 = vsel %vm832_vm0, %v4395_v43, %v4397_v25  ;;  %v3836_v43 = vld [vmem:[%s6936_s20 + $0x217] sm:$0xff] }
 0x2b0   : > { %4304 = vrot.lane.b32.xlu1 %v4245_v37, %s6755_s27  ;;  %2690 = vrot.lane.b32.xlu0 %v2631_v44, %s6756_s16  ;;  %v10371_v44 = vld [vmem:[#allocation12_spill] sm:$0xff] }
 0x2b1   : > { %v2632_v8 = vrot.slane %v10371_v44, 2 }
 0x2b2   : > { %v2675_v5 = vpop.permute.xlu0 %2674  ;;  %v2673_v61 = vpop.permute.xlu1 %2672 }
 0x2b3   : > { %v8697_v62 = vsel %vm1015_vm9, %v2760_v0, %v2675_v5  ;;  %v8700_v37 = vsel %vm1015_vm9, %v2759_v27, %v2673_v61  ;;  %v3988_v0 = vmax.f32 %v3957_v52, 0.0  ;;  %v3835_v27 = vld [vmem:[%s6936_s20 + $0x20f] sm:$0xff]  ;;  %v4248_v5 = vrot.slane %v8708_v1, 1 }
 0x2b4   : > { %10369 = vst [vmem:[#allocation45_spill] sm:$0xff] %v8697_v62  ;;  %10370 = vst [vmem:[#allocation46_spill] sm:$0xff] %v8700_v37  ;;  %6295 = vmatprep.mubr.msk.f32.mxu1 %vm1053_vm10, %v8700_v37  ;;  %4455 = vrot.lane.b32.xlu1 %v4396_v56, %s6756_s16  ;;  %v2633_v13 = vsel %vm832_vm0, %v2630_v6, %v2632_v8  ;;  %v3958_v52 = vadd.f32 %v8486_v47, %v3927_v39 }
 0x2b5   : > { %4306 = vrot.lane.b32.xlu0 %v4247_v2, %s6755_s27  ;;  %6296 = vmatmul.mubr.msk.f32.vlgmr.msra.gmra.mrb[24].mxu1 %vm1053_vm10, %v8697_v62  ;;  %v8722_v61 = vsel %vm4143_vm13, %v3988_v0, 0.0  ;;  %v3928_v56 = vmul.f32 %v8475_v63, %v3835_v27  ;;  %v4249_v62 = vsel %vm680_vm1, %v4246_v32, %v4248_v5  ;;  %v2635_v6 = vsel %vm832_vm0, %v2632_v8, %v2634_v31 }
 0x2b6   : > { %v4250_v2 = vrot.slane %v8722_v61, 1  ;;  %v3989_v37 = vmax.f32 %v3958_v52, 0.0  ;;  %v2636_v0 = vrot.slane %v8062_v15, 2  ;;  %v4401_v27 = vrot.slane %v8722_v61, 2 }
 0x2b7   : > { %v3959_v39 = vadd.f32 %v8486_v47, %v3928_v56 }
 0x2b8   : > { %2692 = vrot.lane.b32.xlu1 %v2633_v13, %s6756_s16  ;;  %v4400_v13 = vsel %vm832_vm0, %v4397_v25, %v4399_v30  ;;  %v4251_v32 = vsel %vm680_vm1, %v4248_v5, %v4250_v2  ;;  %v8740_v8 = vsel %vm4144_vm14, %v3989_v37, 0.0  ;;  %v2637_v25 = vsel %vm832_vm0, %v2634_v31, %v2636_v0 }
 0x2b9   : > { %4457 = vrot.lane.b32.xlu0 %v4398_v36, %s6756_s16  ;;  %v3929_v36 = vmul.f32 %v8475_v63, %v3836_v43  ;;  %v3990_v52 = vmax.f32 %v3959_v39, 0.0  ;;  %v4402_v37 = vsel %vm832_vm0, %v4399_v30, %v4401_v27  ;;  %v3930_v39 = vmul.f32 %v8475_v63, %v3837_v26 }
 0x2ba   : > { %v4403_v14 = vrot.slane %v8740_v8, 2 }
 0x2bb   : > { %v3960_v5 = vadd.f32 %v8486_v47, %v3929_v36  ;;  %v8752_v43 = vsel %vm4145_vm15, %v3990_v52, 0.0  ;;  %v3961_v30 = vadd.f32 %v8486_v47, %v3930_v39  ;;  %v3838_v36 = vld [vmem:[%s6936_s20 + $0x227] sm:$0xff]  ;;  %v2640_v52 = vrot.slane %v8076_v41, 2 }
 0x2bc   : > { %4308 = vrot.lane.b32.xlu1 %v4249_v62, %s6755_s27  ;;  %v10373_v62 = vld [vmem:[#allocation7_spill] sm:$0xff]  ;;  %v4405_v26 = vrot.slane %v8752_v43, 2  ;;  %vm4154_vm15 = vcmp.eq.s32.totalorder %v8648_v59, 1 }
 0x2bd   : > { %2694 = vrot.lane.b32.xlu0 %v2635_v6, %s6756_s16  ;;  %v2638_v56 = vrot.slane %v10373_v62, 2  ;;  %v4252_v6 = vrot.slane %v8740_v8, 1  ;;  %v3991_v62 = vmax.f32 %v3960_v5, 0.0  ;;  %v3992_v5 = vmax.f32 %v3961_v30, 0.0  ;;  %v10374_v39 = vld [vmem:[#allocation11_spill] sm:$0xff] }
 0x2be   : > { %v3932_v30 = vmul.f32 %v8475_v63, %v3839_v46 }
 0x2bf   : > { %v2639_v31 = vsel %vm832_vm0, %v2636_v0, %v2638_v56  ;;  %v8770_v0 = vsel %vm4146_vm2, %v3991_v62, 0.0  ;;  %v4406_v62 = vsel %vm832_vm0, %v4403_v14, %v4405_v26  ;;  %vm4155_vm2 = vcmp.eq.s32.totalorder %v8665_v19, 1 }
 0x2c0   : > { %4459 = vrot.lane.b32.xlu1 %v4400_v13, %s6756_s16  ;;  %v4254_v13 = vrot.slane %v8752_v43, 1  ;;  %v4407_v9 = vrot.slane %v8770_v0, 2 }
 0x2c1   : > { %4310 = vrot.lane.b32.xlu0 %v4251_v32, %s6755_s27  ;;  %v4253_v32 = vsel %vm680_vm1, %v4250_v2, %v4252_v6 }
 0x2c2   : > { %v4255_v2 = vsel %vm680_vm1, %v4252_v6, %v4254_v13 }
 0x2c4   : > { %2696 = vrot.lane.b32.xlu1 %v2637_v25, %s6756_s16  ;;  %v4404_v25 = vsel %vm832_vm0, %v4401_v27, %v4403_v14  ;;  %v2641_v27 = vsel %vm832_vm0, %v2638_v56, %v2640_v52  ;;  %v3963_v14 = vadd.f32 %v8486_v47, %v3932_v30 }
 0x2c5   : > { %4461 = vrot.lane.b32.xlu0 %v4402_v37, %s6756_s16  ;;  %v3931_v37 = vmul.f32 %v8475_v63, %v3838_v36  ;;  %v8782_v36 = vsel %vm4147_vm3, %v3992_v5, 0.0  ;;  %v10376_v5 = vld [vmem:[#allocation13_spill] sm:$0xff]  ;;  %vm4129_vm3 = vcmp.eq.s32.totalorder %v8679_v45, 1 }
 0x2c6   : > { %10375 = vst [vmem:[#allocation12_spill] sm:$0xff] %v8782_v36  ;;  %v2644_v46 = vrot.slane %v10376_v5, 2  ;;  %v3994_v30 = vmax.f32 %v3963_v14, 0.0  ;;  %v3934_v14 = vmul.f32 %v8475_v63, %v3841_v11 }
 0x2c7   : > { %v3962_v6 = vadd.f32 %v8486_v47, %v3931_v37  ;;  %v3840_v37 = vld [vmem:[%s6936_s20 + $0x237] sm:$0xff] }
 0x2c8   : > { %4312 = vrot.lane.b32.xlu1 %v4253_v32, %s6755_s27  ;;  %v2642_v32 = vrot.slane %v10374_v39, 2 }
 0x2c9   : > { %2698 = vrot.lane.b32.xlu0 %v2639_v31, %s6756_s16  ;;  %v4256_v31 = vrot.slane %v8770_v0, 1  ;;  %v3993_v39 = vmax.f32 %v3962_v6, 0.0  ;;  %v3933_v6 = vmul.f32 %v8475_v63, %v3840_v37  ;;  %v8812_v37 = vsel %vm4149_vm5, %v3994_v30, 0.0  ;;  %v10379_v30 = vld [vmem:[#allocation15_spill] sm:$0xff] }
 0x2ca   : > { %v2643_v56 = vsel %vm832_vm0, %v2640_v52, %v2642_v32  ;;  %10378 = vst [vmem:[#allocation4_spill] sm:$0xff] %v8812_v37  ;;  %v2648_v11 = vrot.slane %v10379_v30, 2  ;;  %v2077_v30 = vld [vmem:[%s6936_s20 + $0x197] sm:$0xff]  ;;  %vm4130_vm5 = vcmp.eq.s32.totalorder %v8677_v57, 1 }
 0x2cb   : > { %v8800_v52 = vsel %vm4148_vm4, %v3993_v39, 0.0  ;;  %v2170_v24 = vmul.f32 %v8475_v63, %v2077_v30  ;;  %vm4128_vm4 = vcmp.eq.s32.totalorder %v8663_v58, 1 }
 0x2cc   : > { %4463 = vrot.lane.b32.xlu1 %v4404_v25, %s6756_s16  ;;  %v4258_v25 = vrot.slane %v8782_v36, 1  ;;  %v4411_v3 = vrot.slane %v8800_v52, 2 }
 0x2cd   : > { %4314 = vrot.lane.b32.xlu0 %v4255_v2, %s6755_s27  ;;  %v4257_v2 = vsel %vm680_vm1, %v4254_v13, %v4256_v31  ;;  %v2201_v30 = vadd.f32 %v8486_v47, %v2170_v24 }
 0x2ce   : > { %v4259_v13 = vsel %vm680_vm1, %v4256_v31, %v4258_v25  ;;  %v3964_v31 = vadd.f32 %v8486_v47, %v3933_v6  ;;  %v3842_v6 = vld [vmem:[%s6936_s20 + $0x247] sm:$0xff] }
 0x2d0   : > { %2700 = vrot.lane.b32.xlu1 %v2641_v27, %s6756_s16  ;;  %v4409_v27 = vrot.slane %v8782_v36, 2  ;;  %v4260_v36 = vrot.slane %v8800_v52, 1 }
 0x2d1   : > { %4465 = vrot.lane.b32.xlu0 %v4406_v62, %s6756_s16  ;;  %v4408_v62 = vsel %vm832_vm0, %v4405_v26, %v4407_v9  ;;  %v2645_v26 = vsel %vm832_vm0, %v2642_v32, %v2644_v46 }
 0x2d2   : > { %v4410_v39 = vsel %vm832_vm0, %v4407_v9, %v4409_v27  ;;  %v3965_v9 = vadd.f32 %v8486_v47, %v3934_v14 }
 0x2d4   : > { %4316 = vrot.lane.b32.xlu1 %v4257_v2, %s6755_s27  ;;  %v10377_v2 = vld [vmem:[#allocation6_spill] sm:$0xff]  ;;  %v3996_v14 = vmax.f32 %v3965_v9, 0.0  ;;  %v3936_v9 = vmul.f32 %v8475_v63, %v3843_v33  ;;  %v10383_v33 = vld [vmem:[#allocation17_spill] sm:$0xff] }
 0x2d5   : > { %2702 = vrot.lane.b32.xlu0 %v2643_v56, %s6756_s16  ;;  %v2646_v56 = vrot.slane %v10377_v2, 2  ;;  %v3995_v2 = vmax.f32 %v3964_v31, 0.0  ;;  %v3935_v31 = vmul.f32 %v8475_v63, %v3842_v6 }
 0x2d6   : > { %v8843_v6 = vsel %vm4151_vm7, %v3996_v14, 0.0  ;;  %v3967_v14 = vadd.f32 %v8486_v47, %v3936_v9  ;;  %v3844_v9 = vld [vmem:[%s6936_s20 + $0x257] sm:$0xff] }
 0x2d7   : > { %v2647_v32 = vsel %vm832_vm0, %v2644_v46, %v2646_v56 }
 0x2d8   : > { %4467 = vrot.lane.b32.xlu1 %v4408_v62, %s6756_s16  ;;  %v4262_v62 = vrot.slane %v8812_v37, 1 }
 0x2d9   : > { %4318 = vrot.lane.b32.xlu0 %v4259_v13, %s6755_s27  ;;  %v4261_v13 = vsel %vm680_vm1, %v4258_v25, %v4260_v36  ;;  %v4412_v25 = vsel %vm832_vm0, %v4409_v27, %v4411_v3  ;;  %v2649_v27 = vsel %vm832_vm0, %v2646_v56, %v2648_v11 }
 0x2da   : > { %v4263_v46 = vsel %vm680_vm1, %v4260_v36, %v4262_v62 }
 0x2dc   : > { %2704 = vrot.lane.b32.xlu1 %v2645_v26, %s6756_s16  ;;  %v4413_v26 = vrot.slane %v8812_v37, 2 }
 0x2dd   : > { %4469 = vrot.lane.b32.xlu0 %v4410_v39, %s6756_s16  ;;  %v8830_v39 = vsel %vm4150_vm6, %v3995_v2, 0.0  ;;  %v3966_v2 = vadd.f32 %v8486_v47, %v3935_v31 }
 0x2de   : > { %10380 = vst [vmem:[#allocation13_spill] sm:$0xff] %v8830_v39  ;;  %v4264_v37 = vrot.slane %v8830_v39, 1  ;;  %v4414_v36 = vsel %vm832_vm0, %v4411_v3, %v4413_v26 }
 0x2df   : > { %v3997_v31 = vmax.f32 %v3966_v2, 0.0  ;;  %v3998_v2 = vmax.f32 %v3967_v14, 0.0  ;;  %v3937_v14 = vmul.f32 %v8475_v63, %v3844_v9 }
 0x2e0   : > { %4320 = vrot.lane.b32.xlu1 %v4261_v13, %s6755_s27  ;;  %v10381_v13 = vld [vmem:[#allocation14_spill] sm:$0xff]  ;;  %v4265_v56 = vsel %vm680_vm1, %v4262_v62, %v4264_v37 }
 0x2e1   : > { %2706 = vrot.lane.b32.xlu0 %v2647_v32, %s6756_s16  ;;  %v2650_v32 = vrot.slane %v10381_v13, 2  ;;  %10382 = vst [vmem:[#allocation14_spill] sm:$0xff] %v8843_v6 }
 0x2e3   : > { %v2651_v3 = vsel %vm832_vm0, %v2648_v11, %v2650_v32  ;;  %v8862_v11 = vsel %vm4152_vm11, %v3997_v31, 0.0 }
 0x2e4   : > { %4471 = vrot.lane.b32.xlu1 %v4412_v25, %s6756_s16  ;;  %v4415_v25 = vrot.slane %v8830_v39, 2  ;;  %10384 = vst [vmem:[#allocation17_spill] sm:$0xff] %v8862_v11 }
 0x2e5   : > { %4322 = vrot.lane.b32.xlu0 %v4263_v46, %s6755_s27  ;;  %v4266_v46 = vrot.slane %v8843_v6, 1 }
 0x2e6   : > { %v4416_v62 = vsel %vm832_vm0, %v4413_v26, %v4415_v25  ;;  %v4268_v26 = vrot.slane %v8862_v11, 1 }
 0x2e7   : > { %v4267_v39 = vsel %vm680_vm1, %v4264_v37, %v4266_v46 }
 0x2e8   : > { %2708 = vrot.lane.b32.xlu1 %v2649_v27, %s6756_s16  ;;  %v2652_v27 = vrot.slane %v10383_v33, 2 }
 0x2e9   : > { %4473 = vrot.lane.b32.xlu0 %v4414_v36, %s6756_s16  ;;  %v4417_v36 = vrot.slane %v8843_v6, 2  ;;  %v10386_v6 = vld [vmem:[#allocation19_spill] sm:$0xff] }
 0x2ea   : > { %vm2387_vm13 = vcmp.eq.s32.totalorder %v10386_v6, 1  ;;  %v2653_v37 = vsel %vm832_vm0, %v2650_v32, %v2652_v27  ;;  %v4419_v6 = vrot.slane %v8862_v11, 2  ;;  %v3938_v11 = vmul.f32 %v8475_v63, %v3845_v51 }
 0x2eb   : > { %v4418_v31 = vsel %vm832_vm0, %v4415_v25, %v4417_v36 }
 0x2ec   : > { %4324 = vrot.lane.b32.xlu1 %v4265_v56, %s6755_s27  ;;  %v2232_v56 = vmax.f32 %v2201_v30, 0.0 }
 0x2ed   : > { %2710 = vrot.lane.b32.xlu0 %v2651_v3, %s6756_s16 }
 0x2ee   : > { %v8880_v30 = vsel %vm2387_vm13, %v2232_v56, 0.0  ;;  %v3968_v56 = vadd.f32 %v8486_v47, %v3937_v14 }
 0x2f0   : > { %4475 = vrot.lane.b32.xlu1 %v4416_v62, %s6756_s16  ;;  %v8874_v62 = vsel %vm4153_vm12, %v3998_v2, 0.0 }
 0x2f1   : > { %4326 = vrot.lane.b32.xlu0 %v4267_v39, %s6755_s27  ;;  %v10387_v39 = vld [vmem:[#allocation18_spill] sm:$0xff] }
 0x2f2   : > { %v4289_v3 = vpop.permute.xlu1 %4288  ;;  %vm2388_vm14 = vcmp.eq.s32.totalorder %v10387_v39, 1 }
 0x2f3   : > { %v4526_v32 = vsel %vm984_vm8, %v8508_v28, %v4289_v3  ;;  %v10389_v3 = vmax.f32 %v8489_v10, 0.0  ;;  %v4420_v10 = vsel %vm832_vm0, %v4417_v36, %v4419_v6  ;;  %v3819_v36 = vld [vmem:[%s6936_s20 + $0x18f] sm:$0xff] }
 0x2f4   : > { %2712 = vrot.lane.b32.xlu1 %v2653_v37, %s6756_s16  ;;  %v4269_v37 = vsel %vm680_vm1, %v4266_v46, %v4268_v26  ;;  %v2505_v46 = vrot.slane %v8880_v30, 1 }
 0x2f5   : > { %4477 = vrot.lane.b32.xlu0 %v4418_v31, %s6756_s16  ;;  %v10388_v31 = vrot.slane %v10385_v29, 2  ;;  %v8899_v9 = vsel %vm2388_vm14, %v10389_v3, 0.0 }
 0x2f6   : > { %v4291_v24 = vpop.permute.xlu0 %4290  ;;  %v4440_v25 = vpop.permute.xlu1 %4439  ;;  %10390 = vst [vmem:[#allocation16_spill] sm:$0xff] %v8899_v9 }
 0x2f7   : > { %v8887_v2 = vsel %vm1015_vm9, %v4526_v32, %v4440_v25  ;;  %v2655_v39 = vsel %vm832_vm0, %v2652_v27, %v10388_v31  ;;  %v2761_v27 = vsel %vm984_vm8, %v7960_v60, %v8344_v50  ;;  %v4527_v14 = vsel %vm984_vm8, %v8504_v53, %v4291_v24 }
 0x2f8   : > { %4328 = vrot.lane.b32.xlu1 %v4269_v37, %s6755_s27  ;;  %6421 = vmatprep.mubr.msk.f32.mxu0 %vm1053_vm10, %v8887_v2  ;;  %v10290_v25 = vrot.slane %v8874_v62, 2  ;;  %v3999_v50 = vmax.f32 %v3968_v56, 0.0  ;;  %v3969_v53 = vadd.f32 %v8486_v47, %v3938_v11  ;;  %v2507_v24 = vrot.slane %v8899_v9, 1  ;;  %v3818_v11 = vld [vmem:[%s6936_s20 + $0x187] sm:$0xff] }
 0x2f9   : > { %2714 = vrot.lane.b32.xlu0 %v2655_v39, %s6756_s16  ;;  %v10391_v39 = vrot.slane %v8874_v62, 1 }
 0x2fa   : > { %v4442_v51 = vpop.permute.xlu0 %4441  ;;  %v2677_v32 = vpop.permute.xlu1 %2676 }
 0x2fb   : > { %v8912_v37 = vsel %vm1015_vm9, %v4527_v14, %v4442_v51  ;;  %v8915_v31 = vsel %vm1015_vm9, %v2761_v27, %v2677_v32  ;;  %v4271_v60 = vsel %vm680_vm1, %v4268_v26, %v10391_v39  ;;  %v2762_v26 = vsel %vm984_vm8, %v7984_v18, %v8342_v17  ;;  %v3820_v14 = vld [vmem:[%s6936_s20 + $0x197] sm:$0xff] }
 0x2fc   : > { %4479 = vrot.lane.b32.xlu1 %v4420_v10, %s6756_s16  ;;  %6298 = vmatprep.mubr.msk.f32.mxu1 %vm1053_vm10, %v8915_v31  ;;  %v2656_v27 = vrot.slane %v8880_v30, 2  ;;  %v4422_v51 = vsel %vm832_vm0, %v4419_v6, %v10290_v25  ;;  %v10392_v32 = vrot.slane %v10385_v29, 1  ;;  %v8945_v39 = vsel %vm4154_vm15, %v3999_v50, 0.0  ;;  %v2817_v6 = vld [vmem:[%s10222_s3 + $0x8] sm:$0xff] }
 0x2fd   : > { %4330 = vrot.lane.b32.xlu0 %v4271_v60, %s6755_s27  ;;  %6422 = vmatmul.mubr.msk.f32.vlgmr.msra.gmra.mrb[24].mxu0 %vm1053_vm10, %v8912_v37  ;;  %v4000_v18 = vmax.f32 %v3969_v53, 0.0  ;;  %v3912_v17 = vmul.f32 %v8475_v63, %v3819_v36  ;;  %v2816_v60 = vld [vmem:[%s10222_s3] sm:$0xff]  ;;  %v3911_v50 = vmul.f32 %v8475_v63, %v3818_v11  ;;  %v3913_v36 = vmul.f32 %v8475_v63, %v3820_v14 }
 0x2fe   : > { %v2679_v56 = vpop.permute.xlu0 %2678  ;;  %v4293_v3 = vpop.permute.xlu1 %4292  ;;  %v2506_v10 = vsel %vm680_vm1, %v10392_v32, %v2505_v46  ;;  %v6557_v53 = vpack.c.bf16 %v2817_v6, %v2816_v60  ;;  %v10393_v11 = vrot.slane %v10385_v29, 2  ;;  %v2508_v60 = vsel %vm680_vm1, %v2505_v46, %v2507_v24 }
 0x2ff   : > { %v8937_v59 = vsel %vm1015_vm9, %v2762_v26, %v2679_v56  ;;  %v2658_v26 = vrot.slane %v8899_v9, 2  ;;  %v4528_v56 = vsel %vm984_vm8, %v8518_v23, %v4293_v3  ;;  %v8974_v63 = vsel %vm4155_vm2, %v4000_v18, 0.0 }
 0x300   : > { %4481 = vrot.lane.b32.xlu1 %v4422_v51, %s6756_s16  ;;  %6299 = vmatmul.mubr.msk.f32.gmra.mrb[26].mxu1 %vm1053_vm10, %v8937_v59  ;;  %v2657_v19 = vsel %vm832_vm0, %v10393_v11, %v2656_v27  ;;  %v3943_v23 = vadd.f32 %v8486_v47, %v3912_v17  ;;  %v3942_v3 = vadd.f32 %v8486_v47, %v3911_v50  ;;  %v4423_v18 = vrot.slane %v8945_v39, 2 }
 0x301   : > { %2565 = vrot.lane.b32.xlu0 %v2506_v10, %s6755_s27  ;;  %v4272_v10 = vrot.slane %v8945_v39, 1  ;;  %6558 = vmatprep.subr.bf16.mxu1 %v6557_v53  ;;  %v2659_v14 = vsel %vm832_vm0, %v2656_v27, %v2658_v26  ;;  %v2763_v46 = vsel %vm984_vm8, %v7978_v54, %v8363_v42  ;;  %v3944_v17 = vadd.f32 %v8486_v47, %v3913_v36  ;;  %v2818_v47 = vld [vmem:[%s10222_s3 + $0x10] sm:$0xff] }
 0x302   : > { %v4295_v51 = vpop.permute.xlu0 %4294  ;;  %v4444_v32 = vpop.permute.xlu1 %4443  ;;  %6570 = vmatprep.subr.bf16.mxu0 %v6557_v53  ;;  %6560 = vmatpush3.bf16.msra.mxu1 %v6557_v53  ;;  %v10394_v54 = vrot.slane %v8874_v62, 1 }
 0x303   : > { %v8966_v25 = vsel %vm1015_vm9, %v4528_v56, %v4444_v32  ;;  %v4529_v6 = vsel %vm984_vm8, %v8533_v38, %v4295_v51  ;;  %6572 = vmatpush3.bf16.msra.mxu0 %v6557_v53  ;;  %v10292_v32 = vrot.slane %v8974_v63, 1  ;;  %v3974_v38 = vmax.f32 %v3943_v23, 0.0  ;;  %v10395_v53 = vld [vmem:[#allocation2_spill] sm:$0xff]  ;;  %v10396_v51 = vld [vmem:[#allocation8_spill] sm:$0xff]  ;;  %6335 = vmatprep.subr.mxu1 %v2818_v47 }
 0x304   : > { %2716 = vrot.lane.b32.xlu1 %v2657_v19, %s6756_s16  ;;  %6424 = vmatprep.mubr.msk.f32.mxu0 %vm1053_vm10, %v8966_v25  ;;  %v4273_v42 = vsel %vm680_vm1, %v10394_v54, %v4272_v10  ;;  %v2606_v36 = vrot.slane %v10395_v53, 2  ;;  %v2605_v19 = vrot.slane %v10396_v51, 2  ;;  %v3973_v23 = vmax.f32 %v3942_v3, 0.0  ;;  %v10398_v3 = vld [vmem:[#allocation3_spill] sm:$0xff] }
 0x305   : > { %2567 = vrot.lane.b32.xlu0 %v2508_v60, %s6755_s27  ;;  %v2764_v60 = vsel %vm984_vm8, %v7998_v12, %v8361_v20  ;;  %6461 = vmatprep.subr.mxu0 %v2818_v47  ;;  %v10397_v54 = vrot.slane %v8874_v62, 2  ;;  %v4275_v12 = vsel %vm680_vm1, %v4272_v10, %v10292_v32  ;;  %v9031_v20 = vsel %vm4129_vm3, %v3974_v38, 0.0 }
 0x306   : > { %v4446_v50 = vpop.permute.xlu0 %4445  ;;  %v2681_v56 = vpop.permute.xlu1 %2680  ;;  %6336 = vmatpush3.msra.mxu1 %v2818_v47  ;;  %v9040_v10 = vsel %vm4128_vm4, %v3973_v23, 0.0  ;;  %v2607_v38 = vsel %vm832_vm0, %v2605_v19, %v2606_v36  ;;  %v2765_v19 = vsel %vm984_vm8, %v7992_v49, %v8376_v22  ;;  %v2766_v22 = vsel %vm984_vm8, %v8014_v34, %v8374_v55 }
 0x307   : > { %v8994_v11 = vsel %vm1015_vm9, %v4529_v6, %v4446_v50  ;;  %v8997_v27 = vsel %vm1015_vm9, %v2763_v46, %v2681_v56  ;;  %v10291_v50 = vrot.slane %v8974_v63, 2  ;;  %6462 = vmatpush3.msra.mxu0 %v2818_v47  ;;  %v4372_v49 = vrot.slane %v9040_v10, 2 }
 0x308   : > { %4332 = vrot.lane.b32.xlu1 %v4273_v42, %s6755_s27  ;;  %6301 = vmatprep.mubr.msk.f32.mxu1 %vm1053_vm10, %v8997_v27  ;;  %v4424_v42 = vsel %vm832_vm0, %v10397_v54, %v4423_v18 }
 0x309   : > { %2718 = vrot.lane.b32.xlu0 %v2659_v14, %s6756_s16  ;;  %6425 = vmatmul.mubr.msk.f32.gmra.mrb[26].mxu0 %vm1053_vm10, %v8994_v11  ;;  %v3975_v14 = vmax.f32 %v3944_v17, 0.0  ;;  %v2608_v17 = vrot.slane %v10398_v3, 2  ;;  %v4426_v58 = vsel %vm832_vm0, %v4423_v18, %v10291_v50  ;;  %v10413_v50 = vld [vmem:[#allocation20_spill] sm:$0xff] }
 0x30a   : > { %v2683_v46 = vpop.permute.xlu0 %2682  ;;  %v4297_v6 = vpop.permute.xlu1 %4296 }
 0x30b   : > { %v9020_v56 = vsel %vm1015_vm9, %v2764_v60, %v2683_v46  ;;  %v4530_v57 = vsel %vm984_vm8, %v8548_v16, %v4297_v6  ;;  %v9045_v60 = vsel %vm4130_vm5, %v3975_v14, 0.0  ;;  %v4222_v46 = vrot.slane %v9031_v20, 1 }
 0x30c   : > { %4483 = vrot.lane.b32.xlu1 %v4424_v42, %s6756_s16  ;;  %6302 = vmatmul.mubr.msk.f32.gmra.mrb[28].mxu1 %vm1053_vm10, %v9020_v56  ;;  %v4221_v16 = vrot.slane %v9040_v10, 1  ;;  %v4224_v23 = vrot.slane %v9045_v60, 1  ;;  %v2609_v42 = vsel %vm832_vm0, %v2606_v36, %v2608_v17 }
 0x30d   : > { %4334 = vrot.lane.b32.xlu0 %v4275_v12, %s6755_s27  ;;  %v4373_v12 = vrot.slane %v9031_v20, 2 }
 0x30e   : > { %v4299_v47 = vpop.permute.xlu0 %4298  ;;  %v4448_v45 = vpop.permute.xlu1 %4447 }
 0x30f   : > { %v9049_v54 = vsel %vm1015_vm9, %v4530_v57, %v4448_v45  ;;  %v4531_v14 = vsel %vm984_vm8, %v8573_v35, %v4299_v47  ;;  %v4375_v47 = vrot.slane %v9045_v60, 2 }
 0x310   : > { %2666 = vrot.lane.b32.xlu1 %v2607_v38, %s6756_s16  ;;  %6427 = vmatprep.mubr.msk.f32.mxu0 %vm1053_vm10, %v9049_v54  ;;  %v4223_v38 = vsel %vm680_vm1, %v4221_v16, %v4222_v46  ;;  %v4225_v16 = vsel %vm680_vm1, %v4222_v46, %v4224_v23  ;;  %v10399_v46 = vrot.slane %v7946_v4, 2  ;;  %v10400_v4 = vld [vmem:[#allocation10_spill] sm:$0xff] }
 0x311   : > { %4485 = vrot.lane.b32.xlu0 %v4426_v58, %s6756_s16 }
 0x312   : > { %v4450_v6 = vpop.permute.xlu0 %4449  ;;  %v2685_v18 = vpop.permute.xlu1 %2684 }
 0x313   : > { %v9068_v57 = vsel %vm1015_vm9, %v4531_v14, %v4450_v6  ;;  %v9071_v45 = vsel %vm1015_vm9, %v2765_v19, %v2685_v18  ;;  %v4374_v19 = vsel %vm832_vm0, %v4372_v49, %v4373_v12  ;;  %v4376_v18 = vsel %vm832_vm0, %v4373_v12, %v4375_v47  ;;  %v3878_v49 = vld [vmem:[%s10223_s4 + $0x26f] sm:$0xff]  ;;  %v10401_v12 = vld [vmem:[#allocation42_spill] sm:$0xff] }
 0x314   : > { %4282 = vrot.lane.b32.xlu1 %v4223_v38, %s6755_s27  ;;  %6304 = vmatprep.mubr.msk.f32.mxu1 %vm1053_vm10, %v9071_v45  ;;  %v3877_v38 = vld [vmem:[%s10223_s4 + $0x267] sm:$0xff]  ;;  %vm3909_vm7 = vcmp.gt.f32.partialorder %v3878_v49, 0.0  ;;  %v10406_v49 = vld [vmem:[#allocation9_spill] sm:$0xff] }
 0x315   : > { %2668 = vrot.lane.b32.xlu0 %v2609_v42, %s6756_s16  ;;  %6428 = vmatmul.mubr.msk.f32.gmra.mrb[28].mxu0 %vm1053_vm10, %v9068_v57  ;;  %v2611_v42 = vsel %vm832_vm0, %v2608_v17, %v10399_v46  ;;  %v2767_v17 = vsel %vm984_vm8, %v10400_v4, %v8390_v21  ;;  %vm3908_vm6 = vcmp.gt.f32.partialorder %v3877_v38, 0.0  ;;  %v9137_v46 = vld [vmem:[%s10220_s1] ss:$0 sm:$0xff]  ;;  %v10405_v38 = vld [vmem:[#allocation27_spill] sm:$0xff] }
 0x316   : > { %v2687_v35 = vpop.permute.xlu0 %2686  ;;  %v4301_v36 = vpop.permute.xlu1 %4300  ;;  %v2768_v4 = vsel %vm984_vm8, %v10406_v49, %v10405_v38 }
 0x317   : > { %v9086_v58 = vsel %vm1015_vm9, %v2766_v22, %v2687_v35  ;;  %v4532_v34 = vsel %vm984_vm8, %v8588_v48, %v4301_v36  ;;  %v2081_v48 = vld [vmem:[%s6936_s20 + $0x1b7] sm:$0x3] }
 0x318   : > { %4433 = vrot.lane.b32.xlu1 %v4374_v19, %s6756_s16  ;;  %6305 = vmatmul.mubr.msk.f32.gmra.mrb[30].mxu1 %vm1053_vm10, %v9086_v58 }
 0x319   : > { %4284 = vrot.lane.b32.xlu0 %v4225_v16, %s6755_s27 }
 0x31a   : > { %v4303_v55 = vpop.permute.xlu0 %4302  ;;  %v4452_v14 = vpop.permute.xlu1 %4451 }
 0x31b   : > { %v9097_v6 = vsel %vm1015_vm9, %v4532_v34, %v4452_v14  ;;  %v4533_v22 = vsel %vm984_vm8, %v10401_v12, %v4303_v55  ;;  %v10402_v34 = vrot.slane %v8508_v28, 1  ;;  %v3879_v55 = vld [vmem:[%s10223_s4 + $0x277] sm:$0x3] }
 0x31c   : > { %2670 = vrot.lane.b32.xlu1 %v2611_v42, %s6756_s16  ;;  %6430 = vmatprep.mubr.msk.f32.mxu0 %vm1053_vm10, %v9097_v6  ;;  %v2174_v42 = vmul.f32 %v9137_v46, %v2081_v48  ;;  %vm3910_vm11 = vcmp.gt.f32.partialorder %v3879_v55, 0.0  ;;  %v10407_v12 = vld [vmem:[#allocation21_spill] sm:$0xff] }
 0x31d   : > { %4435 = vrot.lane.b32.xlu0 %v4376_v18, %s6756_s16  ;;  %v4227_v14 = vsel %vm680_vm1, %v4224_v23, %v10402_v34  ;;  %v10403_v18 = vrot.slane %v8508_v28, 2  ;;  %v10404_v28 = vmov 0  }
 0x31e   : > { %v4454_v35 = vpop.permute.xlu0 %4453  ;;  %v2689_v36 = vpop.permute.xlu1 %2688  ;;  %v4032_v23 = vsel %vm3908_vm6, 1, %v10404_v28 }
 0x31f   : > { %v9120_v16 = vsel %vm1015_vm9, %v4533_v22, %v4454_v35  ;;  %v9123_v19 = vsel %vm1015_vm9, %v2767_v17, %v2689_v36  ;;  %v4378_v21 = vsel %vm832_vm0, %v4375_v47, %v10403_v18  ;;  %v4033_v47 = vsel %vm3909_vm7, 1, %v10404_v28  ;;  %v9158_v36 = vld [vmem:[%s10221_s2] ss:$0 sm:$0xff]  ;;  %v10408_v18 = vld [vmem:[#allocation43_spill] sm:$0xff] }
 0x320   : > { %4437 = vrot.lane.b32.xlu1 %v4378_v21, %s6756_s16  ;;  %6307 = vmatprep.mubr.msk.f32.mxu1 %vm1053_vm10, %v9123_v19  ;;  %v2509_v22 = vrot.slane %v10407_v12, 1  ;;  %v2205_v34 = vadd.f32 %v9158_v36, %v2174_v42 }
 0x321   : > { %4286 = vrot.lane.b32.xlu0 %v4227_v14, %s6755_s27  ;;  %6431 = vmatmul.mubr.msk.f32.gmra.mrb[30].mxu0 %vm1053_vm10, %v9120_v16  ;;  %v4034_v14 = vsel %vm3910_vm11, 1, %v10404_v28  ;;  %v10410_v28 = vld [vmem:[#allocation29_spill] sm:$0xff] }
 0x322   : > { %v2691_v17 = vpop.permute.xlu0 %2690  ;;  %v4305_v48 = vpop.permute.xlu1 %4304  ;;  %v2236_v42 = vmax.f32 %v2205_v34, 0.0 }
 0x323   : > { %v9153_v35 = vsel %vm1015_vm9, %v2768_v4, %v2691_v17  ;;  %v4534_v21 = vsel %vm984_vm8, %v10408_v18, %v4305_v48  ;;  %v2510_v4 = vsel %vm680_vm1, %v2507_v24, %v2509_v22  ;;  %v10412_v48 = vld [vmem:[#allocation44_spill] sm:$0xff]  ;;  %v2511_v24 = vrot.slane %v10413_v50, 1 }
 0x324   : > { %4123 = vperm.xlu1 %6739, %v4033_v47   ;;  %6308 = vmatmul.mubr.msk.f32.gmra.mrb[32].mxu1 %vm1053_vm10, %v9153_v35  ;;  %v10411_v47 = vld [vmem:[#allocation5_spill] sm:$0xff] }
 0x325   : > { %4120 = vperm.xlu0 %6738, %v4032_v23   ;;  %v10409_v23 = vld [vmem:[#allocation23_spill] sm:$0xff]  ;;  %v2769_v17 = vsel %vm984_vm8, %v10411_v47, %v10410_v28 }
 0x326   : > { %v4456_v38 = vpop.permute.xlu1 %4455  ;;  %vm2391_vm12 = vcmp.eq.s32.totalorder %v10409_v23, 1 }
 0x327   : > { %v4307_v55 = vpop.permute.xlu0 %4306  ;;  %v9167_v49 = vsel %vm1015_vm9, %v4534_v21, %v4456_v38  ;;  %v2422_v28 = vsel %vm2391_vm12, %v2236_v42, 0.0 }
 0x328   : > { %2569 = vrot.lane.b32.xlu1 %v2510_v4, %s6755_s27  ;;  %6433 = vmatprep.mubr.msk.f32.mxu0 %vm1053_vm10, %v9167_v49  ;;  %v4535_v18 = vsel %vm984_vm8, %v10412_v48, %v4307_v55  ;;  %v10414_v4 = vrot.slane %v10407_v12, 2  ;;  %v10415_v55 = vld [vmem:[#allocation28_spill] sm:$0xff] }
 0x329   : > { %4126 = vperm.xlu0 %6738, %v4034_v14   ;;  %v2770_v47 = vsel %vm984_vm8, %v10371_v44, %v10415_v55 }
 0x32a   : > { %v2693_v38 = vpop.permute.xlu1 %2692  ;;  %v2661_v23 = vsel %vm832_vm0, %v2658_v26, %v10414_v4  ;;  %v2512_v26 = vsel %vm680_vm1, %v2509_v22, %v2511_v24  ;;  %v10416_v22 = vld [vmem:[#allocation31_spill] sm:$0xff] }
 0x32b   : > { %v4458_v21 = vpop.permute.xlu0 %4457  ;;  %v9186_v14 = vsel %vm1015_vm9, %v2769_v17, %v2693_v38 }
 0x32c   : > { %v9183_v34 = vsel %vm1015_vm9, %v4535_v18, %v4458_v21  ;;  %6310 = vmatprep.mubr.msk.f32.mxu1 %vm1053_vm10, %v9186_v14  ;;  %v2513_v18 = vrot.slane %v2422_v28, 1 }
 0x32d   : > { %2720 = vrot.lane.b32.xlu0 %v2661_v23, %s6756_s16  ;;  %6434 = vmatmul.mubr.msk.f32.gmra.mrb[32].mxu0 %vm1053_vm10, %v9183_v34  ;;  %v2664_v23 = vrot.slane %v2422_v28, 2  ;;  %v5813_v28 = vld [vmem:[%s10222_s3 + $0x30] sm:$0xff] }
 0x32e   : > { %v4309_v48 = vpop.permute.xlu1 %4308  ;;  %v2514_v55 = vsel %vm680_vm1, %v2511_v24, %v2513_v18  ;;  %v5814_v24 = vld [vmem:[%s10222_s3 + $0x38] sm:$0xff] }
 0x32f   : > { %v2695_v17 = vpop.permute.xlu0 %2694  ;;  %v4536_v42 = vsel %vm984_vm8, %v8672_v7, %v4309_v48 }
 0x330   : > { %v9202_v21 = vsel %vm1015_vm9, %v2770_v47, %v2695_v17  ;;  %v2771_v47 = vsel %vm984_vm8, %v10372_v40, %v10416_v22  ;;  %v10417_v40 = vrot.slane %v10413_v50, 2 }
 0x331   : > { %2571 = vrot.lane.b32.xlu0 %v2512_v26, %s6755_s27  ;;  %6311 = vmatmul.mubr.msk.f32.gmra.mrb[34].mxu1 %vm1053_vm10, %v9202_v21 }
 0x332   : > { %v4460_v4 = vpop.permute.xlu1 %4459 }
 0x333   : > { %v4311_v38 = vpop.permute.xlu0 %4310  ;;  %v9211_v44 = vsel %vm1015_vm9, %v4536_v42, %v4460_v4  ;;  %v9237_v42 = vpack.c.bf16 %v5814_v24, %v5813_v28  ;;  %v10420_v28 = vld [vmem:[#allocation7_spill] sm:$0xff] }
 0x334   : > { %6436 = vmatprep.mubr.msk.f32.mxu0 %vm1053_vm10, %v9211_v44  ;;  %v4537_v7 = vsel %vm984_vm8, %v8708_v1, %v4311_v38  ;;  %v2665_v1 = vsel %vm832_vm0, %v10417_v40, %v2664_v23  ;;  %v10418_v38 = vld [vmem:[#allocation30_spill] sm:$0xff] }
 0x335   : > { %2573 = vrot.lane.b32.xlu0 %v2514_v55, %s6755_s27  ;;  %6562 = vmatprep.subr.bf16.mxu1 %v9237_v42  ;;  %v2772_v4 = vsel %vm984_vm8, %v8062_v15, %v10418_v38  ;;  %v10419_v15 = vld [vmem:[#allocation33_spill] sm:$0xff] }
 0x336   : > { %v2697_v48 = vpop.permute.xlu1 %2696  ;;  %6574 = vmatprep.subr.bf16.mxu0 %v9237_v42  ;;  %v2773_v24 = vsel %vm984_vm8, %v10420_v28, %v10419_v15 }
 0x337   : > { %v4462_v17 = vpop.permute.xlu0 %4461  ;;  %v9232_v26 = vsel %vm1015_vm9, %v2771_v47, %v2697_v48 }
 0x338   : > { %v9229_v18 = vsel %vm1015_vm9, %v4537_v7, %v4462_v17  ;;  %6313 = vmatprep.mubr.msk.f32.mxu1 %vm1053_vm10, %v9232_v26 }
 0x339   : > { %2724 = vrot.lane.b32.xlu0 %v2665_v1, %s6756_s16  ;;  %6437 = vmatmul.mubr.msk.f32.gmra.mrb[34].mxu0 %vm1053_vm10, %v9229_v18 }
 0x33a   : > { %v4313_v22 = vpop.permute.xlu1 %4312 }
 0x33b   : > { %v2699_v55 = vpop.permute.xlu0 %2698  ;;  %v4538_v47 = vsel %vm984_vm8, %v8722_v61, %v4313_v22 }
 0x33c   : > { %v9250_v23 = vsel %vm1015_vm9, %v2772_v4, %v2699_v55  ;;  %v10421_v55 = vld [vmem:[#allocation32_spill] sm:$0xff] }
 0x33d   : > { %6314 = vmatmul.mubr.msk.f32.gmra.mrb[36].mxu1 %vm1053_vm10, %v9250_v23  ;;  %v2774_v22 = vsel %vm984_vm8, %v8076_v41, %v10421_v55  ;;  %v10422_v41 = vld [vmem:[#allocation35_spill] sm:$0xff] }
 0x33e   : > { %v4464_v17 = vpop.permute.xlu1 %4463 }
 0x33f   : > { %v4315_v7 = vpop.permute.xlu0 %4314  ;;  %v9257_v48 = vsel %vm1015_vm9, %v4538_v47, %v4464_v17 }
 0x340   : > { %6439 = vmatprep.mubr.msk.f32.mxu0 %vm1053_vm10, %v9257_v48  ;;  %v4539_v40 = vsel %vm984_vm8, %v8740_v8, %v4315_v7 }
 0x342   : > { %v2701_v38 = vpop.permute.xlu1 %2700 }
 0x343   : > { %v4466_v1 = vpop.permute.xlu0 %4465  ;;  %v9270_v61 = vsel %vm1015_vm9, %v2773_v24, %v2701_v38 }
 0x344   : > { %v9267_v4 = vsel %vm1015_vm9, %v4539_v40, %v4466_v1  ;;  %6316 = vmatprep.mubr.msk.f32.mxu1 %vm1053_vm10, %v9270_v61  ;;  %v10423_v40 = vld [vmem:[#allocation11_spill] sm:$0xff] }
 0x345   : > { %6440 = vmatmul.mubr.msk.f32.gmra.mrb[36].mxu0 %vm1053_vm10, %v9267_v4  ;;  %v2775_v1 = vsel %vm984_vm8, %v10423_v40, %v10422_v41  ;;  %v10425_v41 = vld [vmem:[#allocation12_spill] sm:$0xff] }
 0x346   : > { %v4317_v8 = vpop.permute.xlu1 %4316 }
 0x347   : > { %v2703_v47 = vpop.permute.xlu0 %2702  ;;  %v4540_v17 = vsel %vm984_vm8, %v8752_v43, %v4317_v8  ;;  %v10424_v8 = vld [vmem:[#allocation34_spill] sm:$0xff] }
 0x348   : > { %v9280_v7 = vsel %vm1015_vm9, %v2774_v22, %v2703_v47 }
 0x349   : > { %6317 = vmatmul.mubr.msk.f32.gmra.mrb[38].mxu1 %vm1053_vm10, %v9280_v7 }
 0x34a   : > { %v4468_v28 = vpop.permute.xlu1 %4467 }
 0x34b   : > { %v4319_v15 = vpop.permute.xlu0 %4318  ;;  %v9287_v24 = vsel %vm1015_vm9, %v4540_v17, %v4468_v28  ;;  %v2776_v17 = vsel %vm984_vm8, %v10376_v5, %v10424_v8  ;;  %v10426_v5 = vld [vmem:[#allocation37_spill] sm:$0xff] }
 0x34c   : > { %6442 = vmatprep.mubr.msk.f32.mxu0 %vm1053_vm10, %v9287_v24  ;;  %v4541_v38 = vsel %vm984_vm8, %v8770_v0, %v4319_v15 }
 0x34e   : > { %v2705_v22 = vpop.permute.xlu1 %2704 }
 0x34f   : > { %v4470_v55 = vpop.permute.xlu0 %4469  ;;  %v9300_v43 = vsel %vm1015_vm9, %v2775_v1, %v2705_v22  ;;  %v10427_v22 = vld [vmem:[#allocation6_spill] sm:$0xff] }
 0x350   : > { %v9297_v47 = vsel %vm1015_vm9, %v4541_v38, %v4470_v55  ;;  %6319 = vmatprep.mubr.msk.f32.mxu1 %vm1053_vm10, %v9300_v43  ;;  %v2777_v8 = vsel %vm984_vm8, %v10427_v22, %v10426_v5 }
 0x351   : > { %6443 = vmatmul.mubr.msk.f32.gmra.mrb[38].mxu0 %vm1053_vm10, %v9297_v47 }
 0x352   : > { %v4321_v0 = vpop.permute.xlu1 %4320 }
 0x353   : > { %v2707_v28 = vpop.permute.xlu0 %2706  ;;  %v4542_v40 = vsel %vm984_vm8, %v10425_v41, %v4321_v0  ;;  %v10429_v41 = vld [vmem:[#allocation36_spill] sm:$0xff] }
 0x354   : > { %v9310_v15 = vsel %vm1015_vm9, %v2776_v17, %v2707_v28 }
 0x355   : > { %6320 = vmatmul.mubr.msk.f32.gmra.mrb[40].mxu1 %vm1053_vm10, %v9310_v15 }
 0x356   : > { %v4472_v38 = vpop.permute.xlu1 %4471 }
 0x357   : > { %v4323_v1 = vpop.permute.xlu0 %4322  ;;  %v9317_v55 = vsel %vm1015_vm9, %v4542_v40, %v4472_v38  ;;  %v10430_v40 = vld [vmem:[#allocation15_spill] sm:$0xff] }
 0x358   : > { %6445 = vmatprep.mubr.msk.f32.mxu0 %vm1053_vm10, %v9317_v55  ;;  %v4543_v17 = vsel %vm984_vm8, %v8800_v52, %v4323_v1  ;;  %v2778_v38 = vsel %vm984_vm8, %v10430_v40, %v10429_v41  ;;  %v10432_v41 = vld [vmem:[#allocation40_spill] sm:$0xff] }
 0x359   : > { %v2779_v40 = vsel %vm984_vm8, %v10381_v13, %v10432_v41 }
 0x35a   : > { %v2709_v32 = vpop.permute.xlu1 %2708 }
 0x35b   : > { %v4474_v28 = vpop.permute.xlu0 %4473  ;;  %v9330_v0 = vsel %vm1015_vm9, %v2777_v8, %v2709_v32  ;;  %v10431_v32 = vld [vmem:[#allocation4_spill] sm:$0xff] }
 0x35c   : > { %v9327_v50 = vsel %vm1015_vm9, %v4543_v17, %v4474_v28  ;;  %6322 = vmatprep.mubr.msk.f32.mxu1 %vm1053_vm10, %v9330_v0 }
 0x35d   : > { %10428 = vst [vmem:[#allocation19_spill] sm:$0xff] %v9327_v50  ;;  %6446 = vmatmul.mubr.msk.f32.gmra.mrb[40].mxu0 %vm1053_vm10, %v9327_v50 }
 0x35e   : > { %v4325_v52 = vpop.permute.xlu1 %4324 }
 0x35f   : > { %v2711_v5 = vpop.permute.xlu0 %2710  ;;  %v4544_v22 = vsel %vm984_vm8, %v10431_v32, %v4325_v52  ;;  %v10434_v32 = vld [vmem:[#allocation39_spill] sm:$0xff] }
 0x360   : > { %v9340_v1 = vsel %vm1015_vm9, %v2778_v38, %v2711_v5  ;;  %v10433_v38 = vld [vmem:[#allocation13_spill] sm:$0xff]  ;;  %v2780_v13 = vsel %vm984_vm8, %v10383_v33, %v10434_v32 }
 0x361   : > { %6323 = vmatmul.mubr.msk.f32.gmra.mrb[42].mxu1 %vm1053_vm10, %v9340_v1  ;;  %v10436_v33 = vld [vmem:[#allocation17_spill] sm:$0xff] }
 0x362   : > { %v4476_v17 = vpop.permute.xlu1 %4475 }
 0x363   : > { %v4327_v8 = vpop.permute.xlu0 %4326  ;;  %v9347_v28 = vsel %vm1015_vm9, %v4544_v22, %v4476_v17 }
 0x364   : > { %6448 = vmatprep.mubr.msk.f32.mxu0 %vm1053_vm10, %v9347_v28  ;;  %v4545_v5 = vsel %vm984_vm8, %v10433_v38, %v4327_v8 }
 0x366   : > { %v2713_v9 = vpop.permute.xlu1 %2712 }
 0x367   : > { %v4478_v12 = vpop.permute.xlu0 %4477  ;;  %v9360_v52 = vsel %vm1015_vm9, %v2779_v40, %v2713_v9  ;;  %v10435_v9 = vld [vmem:[#allocation14_spill] sm:$0xff] }
 0x368   : > { %v9357_v50 = vsel %vm1015_vm9, %v4545_v5, %v4478_v12  ;;  %6325 = vmatprep.mubr.msk.f32.mxu1 %vm1053_vm10, %v9360_v52 }
 0x369   : > { %6449 = vmatmul.mubr.msk.f32.gmra.mrb[42].mxu0 %vm1053_vm10, %v9357_v50 }
 0x36a   : > { %v4329_v8 = vpop.permute.xlu1 %4328 }
 0x36b   : > { %v2715_v22 = vpop.permute.xlu0 %2714  ;;  %v4546_v12 = vsel %vm984_vm8, %v10435_v9, %v4329_v8 }
 0x36c   : > { %v9370_v17 = vsel %vm1015_vm9, %v2780_v13, %v2715_v22 }
 0x36d   : > { %6326 = vmatmul.mubr.msk.f32.gmra.mrb[44].mxu1 %vm1053_vm10, %v9370_v17 }
 0x36e   : > { %v4480_v40 = vpop.permute.xlu1 %4479 }
 0x36f   : > { %v4331_v41 = vpop.permute.xlu0 %4330  ;;  %v9377_v38 = vsel %vm1015_vm9, %v4546_v12, %v4480_v40 }
 0x370   : > { %6451 = vmatprep.mubr.msk.f32.mxu0 %vm1053_vm10, %v9377_v38  ;;  %v4547_v5 = vsel %vm984_vm8, %v10436_v33, %v4331_v41 }
 0x372   : > { %v4482_v13 = vpop.permute.xlu1 %4481 }
 0x373   : > { %v2566_v32 = vpop.permute.xlu0 %2565  ;;  %v9384_v22 = vsel %vm1015_vm9, %v4547_v5, %v4482_v13 }
 0x374   : > { %10437 = vst [vmem:[#allocation18_spill] sm:$0xff] %v9384_v22  ;;  %6452 = vmatmul.mubr.msk.f32.gmra.mrb[44].mxu0 %vm1053_vm10, %v9384_v22  ;;  %v2781_v8 = vsel %vm984_vm8, %v10385_v29, %v2566_v32 }
 0x376   : > { %v2717_v12 = vpop.permute.xlu1 %2716 }
 0x377   : > { %v2568_v9 = vpop.permute.xlu0 %2567  ;;  %v9391_v40 = vsel %vm1015_vm9, %v2781_v8, %v2717_v12 }
 0x378   : > { %6328 = vmatprep.mubr.msk.f32.mxu1 %vm1053_vm10, %v9391_v40  ;;  %v2782_v41 = vsel %vm984_vm8, %v8880_v30, %v2568_v9  ;;  %v10439_v30 = vld [vmem:[#allocation24_spill] sm:$0xff] }
 0x379   : > { %v2756_v9 = vsel %vm984_vm8, %v10396_v51, %v10439_v30 }
 0x37a   : > { %v4333_v5 = vpop.permute.xlu1 %4332 }
 0x37b   : > { %v2719_v33 = vpop.permute.xlu0 %2718  ;;  %v4548_v29 = vsel %vm984_vm8, %v8874_v62, %v4333_v5  ;;  %v10440_v5 = vld [vmem:[#allocation26_spill] sm:$0xff] }
 0x37c   : > { %v9398_v13 = vsel %vm1015_vm9, %v2782_v41, %v2719_v33 }
 0x37d   : > { %10438 = vst [vmem:[#allocation2_spill] sm:$0xff] %v9398_v13  ;;  %6329 = vmatmul.mubr.msk.f32.gmra.mrb[46].mxu1 %vm1053_vm10, %v9398_v13 }
 0x37e   : > { %v4484_v8 = vpop.permute.xlu1 %4483 }
 0x37f   : > { %v4335_v32 = vpop.permute.xlu0 %4334  ;;  %v9405_v12 = vsel %vm1015_vm9, %v4548_v29, %v4484_v8  ;;  %v2757_v29 = vsel %vm984_vm8, %v10395_v53, %v10440_v5 }
 0x380   : > { %6454 = vmatprep.mubr.msk.f32.mxu0 %vm1053_vm10, %v9405_v12  ;;  %v4549_v41 = vsel %vm984_vm8, %v8945_v39, %v4335_v32  ;;  %v5815_v32 = vld [vmem:[%s10222_s3 + $0x40] sm:$0xff] }
 0x382   : > { %v2667_v22 = vpop.permute.xlu1 %2666 }
 0x383   : > { %v4486_v33 = vpop.permute.xlu0 %4485  ;;  %v2786_v62 = vsel %vm1015_vm9, %v2756_v9, %v2667_v22 }
 0x384   : > { %v9415_v13 = vsel %vm1015_vm9, %v4549_v41, %v4486_v33  ;;  %6337 = vmatprep.mubr.msk.f32.mxu1 %vm1053_vm10, %v2786_v62  ;;  %v10441_v41 = vld [vmem:[#allocation25_spill] sm:$0xff] }
 0x385   : > { %6455 = vmatmul.mubr.msk.f32.gmra.mrb[46].mxu0 %vm1053_vm10, %v9415_v13  ;;  %v2758_v33 = vsel %vm984_vm8, %v10398_v3, %v10441_v41 }
 0x386   : > { %v4283_v8 = vpop.permute.xlu1 %4282 }
 0x387   : > { %v2669_v51 = vpop.permute.xlu0 %2668  ;;  %v4523_v22 = vsel %vm984_vm8, %v9040_v10, %v4283_v8  ;;  %v10442_v8 = vld [vmem:[#allocation46_spill] sm:$0xff] }
 0x388   : > { %v2787_v39 = vsel %vm1015_vm9, %v2757_v29, %v2669_v51 }
 0x389   : > { %6338 = vmatmul.mubr.msk.f32.vlgmr.msra.gmra.mrb[24].mxu1 %vm1053_vm10, %v2787_v39  ;;  %v10443_v39 = vld [vmem:[#allocation45_spill] sm:$0xff] }
 0x38a   : > { %6564 = vmatpush3.bf16.msra.mxu1 %v9237_v42  ;;  %v4434_v9 = vpop.permute.xlu1 %4433 }
 0x38b   : > { %v4285_v30 = vpop.permute.xlu0 %4284  ;;  %6377 = vmatprep.subr.mxu1 %v5815_v32  ;;  %v4553_v53 = vsel %vm1015_vm9, %v4523_v22, %v4434_v9  ;;  %v3847_v9 = vld [vmem:[%s6936_s20 + $0x26f] sm:$0xff] }
 0x38c   : > { %6463 = vmatprep.mubr.msk.f32.mxu0 %vm1053_vm10, %v4553_v53  ;;  %v4524_v62 = vsel %vm984_vm8, %v9031_v20, %v4285_v30 }
 0x38e   : > { %6378 = vmatpush3.msra.mxu1 %v5815_v32  ;;  %v2671_v29 = vpop.permute.xlu1 %2670 }
 0x38f   : > { %v4436_v5 = vpop.permute.xlu0 %4435  ;;  %v2788_v10 = vsel %vm1015_vm9, %v2758_v33, %v2671_v29 }
 0x390   : > { %v4554_v51 = vsel %vm1015_vm9, %v4524_v62, %v4436_v5  ;;  %6340 = vmatprep.mubr.msk.f32.mxu1 %vm1053_vm10, %v2788_v10 }
 0x391   : > { %6464 = vmatmul.mubr.msk.f32.vlgmr.msra.gmra.mrb[24].mxu0 %vm1053_vm10, %v4554_v51  ;;  %6341 = vmatmul.mubr.msk.f32.gmra.mrb[26].mxu1 %vm1053_vm10, %v10442_v8 }
 0x392   : > { %6576 = vmatpush3.bf16.msra.mxu0 %v9237_v42  ;;  %6343 = vmatprep.mubr.msk.f32.mxu1 %vm1053_vm10, %v10443_v39  ;;  %v4438_v20 = vpop.permute.xlu1 %4437  ;;  %v3846_v42 = vld [vmem:[%s6936_s20 + $0x267] sm:$0xff] }
 0x393   : > { %v4287_v3 = vpop.permute.xlu0 %4286  ;;  %6503 = vmatprep.subr.mxu0 %v5815_v32 }
 0x394   : > { %v4525_v22 = vsel %vm984_vm8, %v9045_v60, %v4287_v3  ;;  %v3939_v60 = vmul.f32 %v9137_v46, %v3846_v42  ;;  %v10444_v3 = vrot.slane %v8974_v63, 1  ;;  %v10445_v42 = vrot.slane %v8974_v63, 2 }
 0x395   : > { %v4555_v30 = vsel %vm1015_vm9, %v4525_v22, %v4438_v20  ;;  %6344 = vmatmul.mubr.msk.f32.gmra.mrb[28].mxu1 %vm1053_vm10, %v8915_v31  ;;  %v3848_v31 = vld [vmem:[%s6936_s20 + $0x277] sm:$0x3] }
 0x396   : > { %6466 = vmatprep.mubr.msk.f32.mxu0 %vm1053_vm10, %v4555_v30  ;;  %6346 = vmatprep.mubr.msk.f32.mxu1 %vm1053_vm10, %v8937_v59 }
 0x397   : > { %6467 = vmatmul.mubr.msk.f32.gmra.mrb[26].mxu0 %vm1053_vm10, %v8887_v2  ;;  %v3940_v2 = vmul.f32 %v9137_v46, %v3847_v9 }
 0x398   : > { %6469 = vmatprep.mubr.msk.f32.mxu0 %vm1053_vm10, %v8912_v37  ;;  %6504 = vmatpush3.msra.mxu0 %v5815_v32  ;;  %v3970_v37 = vadd.f32 %v9158_v36, %v3939_v60  ;;  %v3941_v32 = vmul.f32 %v9137_v46, %v3848_v31 }
 0x399   : > { %6347 = vmatmul.mubr.msk.f32.gmra.mrb[30].mxu1 %vm1053_vm10, %v8997_v27 }
 0x39a   : > { %6349 = vmatprep.mubr.msk.f32.mxu1 %vm1053_vm10, %v9020_v56  ;;  %v4001_v53 = vmax.f32 %v3970_v37, 0.0  ;;  %v3972_v41 = vadd.f32 %v9158_v36, %v3941_v32  ;;  %v10446_v37 = vld [vmem:[#allocation22_spill] sm:$0xff] }
 0x39b   : > { %6470 = vmatmul.mubr.msk.f32.gmra.mrb[28].mxu0 %vm1053_vm10, %v8966_v25  ;;  %v3971_v25 = vadd.f32 %v9158_v36, %v3940_v2 }
 0x39c   : > { %6472 = vmatprep.mubr.msk.f32.mxu0 %vm1053_vm10, %v8994_v11  ;;  %v4003_v36 = vmax.f32 %v3972_v41, 0.0  ;;  %v3497_v41 = vld [vmem:[%s10223_s4 + $0xf8] sm:$0xff] }
 0x39d   : > { %6350 = vmatmul.mubr.msk.f32.gmra.mrb[32].mxu1 %vm1053_vm10, %v9071_v45  ;;  %v4002_v33 = vmax.f32 %v3971_v25, 0.0  ;;  %v3495_v25 = vld [vmem:[%s10223_s4 + $0xe8] sm:$0xff] }
 0x39e   : > { %6352 = vmatprep.mubr.msk.f32.mxu1 %vm1053_vm10, %v9086_v58 }
 0x39f   : > { %6473 = vmatmul.mubr.msk.f32.gmra.mrb[30].mxu0 %vm1053_vm10, %v9049_v54 }
 0x3a0   : > { %6475 = vmatprep.mubr.msk.f32.mxu0 %vm1053_vm10, %v9068_v57 }
 0x3a1   : > { %6353 = vmatmul.mubr.msk.f32.gmra.mrb[34].mxu1 %vm1053_vm10, %v9123_v19 }
 0x3a2   : > { %6355 = vmatprep.mubr.msk.f32.mxu1 %vm1053_vm10, %v9153_v35 }
 0x3a3   : > { %6476 = vmatmul.mubr.msk.f32.gmra.mrb[32].mxu0 %vm1053_vm10, %v9097_v6  ;;  %v4124_v62 = vpop.permute.xlu1 %4123 }
 0x3a4   : > { %v4121_v46 = vpop.permute.xlu0 %4120  ;;  %6478 = vmatprep.mubr.msk.f32.mxu0 %vm1053_vm10, %v9120_v16  ;;  %vm4157_vm14 = vcmp.eq.s32.totalorder %v4124_v62, 1  ;;  %v3494_v62 = vld [vmem:[%s10223_s4 + $0xe0] sm:$0xff] }
 0x3a5   : > { %vm4156_vm13 = vcmp.eq.s32.totalorder %v4121_v46, 1  ;;  %6356 = vmatmul.mubr.msk.f32.gmra.mrb[36].mxu1 %vm1053_vm10, %v9186_v14  ;;  %v9502_v51 = vsel %vm4157_vm14, %v4002_v33, 0.0  ;;  %v10447_v46 = vld [vmem:[#allocation19_spill] sm:$0xff] }
 0x3a6   : > { %v9493_v5 = vsel %vm4156_vm13, %v4001_v53, 0.0  ;;  %6358 = vmatprep.mubr.msk.f32.mxu1 %vm1053_vm10, %v9202_v21  ;;  %v4278_v22 = vrot.slane %v9502_v51, 1  ;;  %v4429_v2 = vrot.slane %v9502_v51, 2 }
 0x3a7   : > { %v4276_v29 = vrot.slane %v9493_v5, 1  ;;  %6479 = vmatmul.mubr.msk.f32.gmra.mrb[34].mxu0 %vm1053_vm10, %v9167_v49  ;;  %v4427_v8 = vrot.slane %v9493_v5, 2 }
 0x3a8   : > { %v4127_v10 = vpop.permute.xlu0 %4126  ;;  %6481 = vmatprep.mubr.msk.f32.mxu0 %vm1053_vm10, %v9183_v34 }
 0x3a9   : > { %vm4158_vm15 = vcmp.eq.s32.totalorder %v4127_v10, 1  ;;  %v4277_v39 = vsel %vm680_vm1, %v10444_v3, %v4276_v29  ;;  %6359 = vmatmul.mubr.msk.f32.gmra.mrb[38].mxu1 %vm1053_vm10, %v9232_v26  ;;  %v4428_v9 = vsel %vm832_vm0, %v10445_v42, %v4427_v8  ;;  %v4279_v53 = vsel %vm680_vm1, %v4276_v29, %v4278_v22  ;;  %v3501_v29 = vld [vmem:[%s10223_s4 + $0x118] sm:$0xff]  ;;  %v3514_v10 = vld [vmem:[%s10223_s4 + $0x180] sm:$0xff]  ;;  %v3515_v3 = vld [vmem:[%s10223_s4 + $0x188] sm:$0xff] }
 0x3aa   : > { %v4189_v20 = vsel %vm4158_vm15, %v4003_v36, 0.0  ;;  %4336 = vrot.lane.b32.xlu1 %v4277_v39, %s6755_s27  ;;  %6361 = vmatprep.mubr.msk.f32.mxu1 %vm1053_vm10, %v9250_v23  ;;  %v4430_v33 = vsel %vm832_vm0, %v4427_v8, %v4429_v2  ;;  %v3499_v36 = vld [vmem:[%s10223_s4 + $0x108] sm:$0xff]  ;;  %v5279_v39 = vld [vmem:[%s10223_s4 + $0x230] sm:$0xff]  ;;  %v5281_v42 = vld [vmem:[%s10223_s4 + $0x240] sm:$0xff] }
 0x3ab   : > { %v4280_v30 = vrot.slane %v4189_v20, 1  ;;  %6482 = vmatmul.mubr.msk.f32.gmra.mrb[36].mxu0 %vm1053_vm10, %v9211_v44  ;;  %v4431_v31 = vrot.slane %v4189_v20, 2  ;;  %v5278_v8 = vld [vmem:[%s10223_s4 + $0x228] sm:$0xff]  ;;  %v3516_v20 = vld [vmem:[%s10223_s4 + $0x190] sm:$0xff] }
 0x3ac   : > { %6484 = vmatprep.mubr.msk.f32.mxu0 %vm1053_vm10, %v9229_v18 }
 0x3ad   : > { %v4281_v60 = vsel %vm680_vm1, %v4278_v22, %v4280_v30  ;;  %6362 = vmatmul.mubr.msk.f32.gmra.mrb[40].mxu1 %vm1053_vm10, %v9270_v61  ;;  %v4432_v32 = vsel %vm832_vm0, %v4429_v2, %v4431_v31  ;;  %v5280_v22 = vld [vmem:[%s10223_s4 + $0x238] sm:$0xff]  ;;  %v5283_v2 = vld [vmem:[%s10223_s4 + $0x250] sm:$0xff]  ;;  %vm5585_vm1 = vcmask 57344  }
 0x3ae   : > { %4487 = vrot.lane.b32.xlu1 %v4428_v9, %s6756_s16  ;;  %4340 = vrot.lane.b32.xlu0 %v4281_v60, %s6755_s27  ;;  %v3517_v30 = vld [vmem:[%s10223_s4 + $0x198] sm:$0xff]  ;;  %v5282_v60 = vld [vmem:[%s10223_s4 + $0x248] sm:$0xff] }
 0x3af   : > { %6364 = vmatprep.mubr.msk.f32.mxu1 %vm1053_vm10, %v9280_v7  ;;  %6485 = vmatmul.mubr.msk.f32.gmra.mrb[38].mxu0 %vm1053_vm10, %v9257_v48  ;;  %v5284_v9 = vld [vmem:[%s10223_s4 + $0x258] sm:$0xff] }
 0x3b0   : > { %6487 = vmatprep.mubr.msk.f32.mxu0 %vm1053_vm10, %v9267_v4 }
 0x3b1   : > { %6365 = vmatmul.mubr.msk.f32.gmra.mrb[42].mxu1 %vm1053_vm10, %v9300_v43 }
 0x3b2   : > { %2722 = vrot.lane.b32.xlu1 %v10446_v37, %s6756_s16  ;;  %4491 = vrot.lane.b32.xlu0 %v4432_v32, %s6756_s16 }
 0x3b3   : > { %6367 = vmatprep.mubr.msk.f32.mxu1 %vm1053_vm10, %v9310_v15  ;;  %6488 = vmatmul.mubr.msk.f32.gmra.mrb[40].mxu0 %vm1053_vm10, %v9287_v24 }
 0x3b4   : > { %6490 = vmatprep.mubr.msk.f32.mxu0 %vm1053_vm10, %v9297_v47 }
 0x3b5   : > { %6368 = vmatmul.mubr.msk.f32.gmra.mrb[44].mxu1 %vm1053_vm10, %v9330_v0 }
 0x3b6   : > { %4338 = vrot.lane.b32.xlu1 %v4279_v53, %s6755_s27  ;;  %3525 = vperm.xlu0 %6738, %v3495_v25  }
 0x3b7   : > { %6370 = vmatprep.mubr.msk.f32.mxu1 %vm1053_vm10, %v9340_v1  ;;  %6491 = vmatmul.mubr.msk.f32.gmra.mrb[42].mxu0 %vm1053_vm10, %v9317_v55 }
 0x3b8   : > { %6493 = vmatprep.mubr.msk.f32.mxu0 %vm1053_vm10, %v10447_v46 }
 0x3b9   : > { %6371 = vmatmul.mubr.msk.f32.gmra.mrb[46].mxu1 %vm1053_vm10, %v9360_v52 }
 0x3ba   : > { %4489 = vrot.lane.b32.xlu1 %v4430_v33, %s6756_s16  ;;  %3535 = vperm.xlu0 %6738, %v3497_v41   ;;  %v10451_v33 = vld [vmem:[#allocation21_spill] sm:$0xff] }
 0x3bb   : > { %6379 = vmatprep.mubr.msk.f32.mxu1 %vm1053_vm10, %v8937_v59  ;;  %6494 = vmatmul.mubr.msk.f32.gmra.mrb[44].mxu0 %vm1053_vm10, %v9347_v28  ;;  %v3496_v59 = vld [vmem:[%s10223_s4 + $0xf0] sm:$0xff] }
 0x3bc   : > { %6496 = vmatprep.mubr.msk.f32.mxu0 %vm1053_vm10, %v9357_v50 }
 0x3bd   : > { %6380 = vmatmul.mubr.msk.f32.vlgmr.msra.gmra.mrb[24].mxu1 %vm1053_vm10, %v8997_v27  ;;  %v3498_v27 = vld [vmem:[%s10223_s4 + $0x100] sm:$0xff] }
 0x3be   : > { %3520 = vperm.xlu1 %6739, %v3494_v62   ;;  %3545 = vperm.xlu0 %6738, %v3499_v36  }
 0x3bf   : > { %6382 = vmatprep.mubr.msk.f32.mxu1 %vm1053_vm10, %v9020_v56  ;;  %6497 = vmatmul.mubr.msk.f32.gmra.mrb[46].mxu0 %vm1053_vm10, %v9377_v38  ;;  %v3503_v56 = vld [vmem:[%s10223_s4 + $0x128] sm:$0xff] }
 0x3c0   : > { %6505 = vmatprep.mubr.msk.f32.mxu0 %vm1053_vm10, %v8994_v11  ;;  %v3500_v11 = vld [vmem:[%s10223_s4 + $0x110] sm:$0xff] }
 0x3c1   : > { %6383 = vmatmul.mubr.msk.f32.gmra.mrb[26].mxu1 %vm1053_vm10, %v9071_v45  ;;  %v3507_v45 = vld [vmem:[%s10223_s4 + $0x148] sm:$0xff] }
 0x3c2   : > { %3530 = vperm.xlu1 %6739, %v3496_v59   ;;  %3555 = vperm.xlu0 %6738, %v3501_v29   ;;  %v10452_v59 = vld [vmem:[#allocation20_spill] sm:$0xff] }
 0x3c3   : > { %6385 = vmatprep.mubr.msk.f32.mxu1 %vm1053_vm10, %v9086_v58  ;;  %6506 = vmatmul.mubr.msk.f32.vlgmr.msra.gmra.mrb[24].mxu0 %vm1053_vm10, %v9049_v54  ;;  %v3505_v54 = vld [vmem:[%s10223_s4 + $0x138] sm:$0xff]  ;;  %v3504_v58 = vld [vmem:[%s10223_s4 + $0x130] sm:$0xff] }
 0x3c4   : > { %6508 = vmatprep.mubr.msk.f32.mxu0 %vm1053_vm10, %v9068_v57  ;;  %v3502_v57 = vld [vmem:[%s10223_s4 + $0x120] sm:$0xff] }
 0x3c5   : > { %6386 = vmatmul.mubr.msk.f32.gmra.mrb[28].mxu1 %vm1053_vm10, %v9123_v19  ;;  %v5262_v19 = vld [vmem:[%s10223_s4 + $0x1a8] sm:$0xff] }
 0x3c6   : > { %3540 = vperm.xlu1 %6739, %v3498_v27   ;;  %3565 = vperm.xlu0 %6738, %v3503_v56  }
 0x3c7   : > { %6388 = vmatprep.mubr.msk.f32.mxu1 %vm1053_vm10, %v9153_v35  ;;  %6509 = vmatmul.mubr.msk.f32.gmra.mrb[26].mxu0 %vm1053_vm10, %v9097_v6  ;;  %v3509_v6 = vld [vmem:[%s10223_s4 + $0x158] sm:$0xff]  ;;  %v3508_v35 = vld [vmem:[%s10223_s4 + $0x150] sm:$0xff] }
 0x3c8   : > { %6511 = vmatprep.mubr.msk.f32.mxu0 %vm1053_vm10, %v9120_v16  ;;  %v3506_v16 = vld [vmem:[%s10223_s4 + $0x140] sm:$0xff] }
 0x3c9   : > { %6389 = vmatmul.mubr.msk.f32.gmra.mrb[30].mxu1 %vm1053_vm10, %v9186_v14  ;;  %v5266_v14 = vld [vmem:[%s10223_s4 + $0x1c8] sm:$0xff] }
 0x3ca   : > { %3550 = vperm.xlu1 %6739, %v3500_v11   ;;  %3575 = vperm.xlu0 %6738, %v3505_v54  }
 0x3cb   : > { %6391 = vmatprep.mubr.msk.f32.mxu1 %vm1053_vm10, %v9202_v21  ;;  %6512 = vmatmul.mubr.msk.f32.gmra.mrb[28].mxu0 %vm1053_vm10, %v9167_v49  ;;  %v5264_v49 = vld [vmem:[%s10223_s4 + $0x1b8] sm:$0xff]  ;;  %v5263_v21 = vld [vmem:[%s10223_s4 + $0x1b0] sm:$0xff] }
 0x3cc   : > { %6514 = vmatprep.mubr.msk.f32.mxu0 %vm1053_vm10, %v9183_v34  ;;  %v5261_v34 = vld [vmem:[%s10223_s4 + $0x1a0] sm:$0xff] }
 0x3cd   : > { %6392 = vmatmul.mubr.msk.f32.gmra.mrb[32].mxu1 %vm1053_vm10, %v9232_v26  ;;  %v2721_v26 = vpop.permute.xlu0 %2720 }
 0x3ce   : > { %3560 = vperm.xlu1 %6739, %v3502_v57   ;;  %3585 = vperm.xlu0 %6738, %v3507_v45  }
 0x3cf   : > { %6394 = vmatprep.mubr.msk.f32.mxu1 %vm1053_vm10, %v9250_v23  ;;  %6515 = vmatmul.mubr.msk.f32.gmra.mrb[30].mxu0 %vm1053_vm10, %v9211_v44  ;;  %v5268_v44 = vld [vmem:[%s10223_s4 + $0x1d8] sm:$0xff]  ;;  %v10448_v23 = vld [vmem:[#allocation2_spill] sm:$0xff] }
 0x3d0   : > { %6517 = vmatprep.mubr.msk.f32.mxu0 %vm1053_vm10, %v9229_v18  ;;  %v2570_v18 = vpop.permute.xlu1 %2569 }
 0x3d1   : > { %6395 = vmatmul.mubr.msk.f32.gmra.mrb[34].mxu1 %vm1053_vm10, %v9270_v61  ;;  %v2572_v31 = vpop.permute.xlu0 %2571 }
 0x3d2   : > { %3570 = vperm.xlu1 %6739, %v3504_v58   ;;  %3595 = vperm.xlu0 %6738, %v3509_v6   ;;  %v2784_v62 = vsel %vm984_vm8, %v10451_v33, %v2572_v31 }
 0x3d3   : > { %6397 = vmatprep.mubr.msk.f32.mxu1 %vm1053_vm10, %v9280_v7  ;;  %6518 = vmatmul.mubr.msk.f32.gmra.mrb[32].mxu0 %vm1053_vm10, %v9257_v48  ;;  %v5265_v48 = vld [vmem:[%s10223_s4 + $0x1c0] sm:$0xff] }
 0x3d4   : > { %6520 = vmatprep.mubr.msk.f32.mxu0 %vm1053_vm10, %v9267_v4  ;;  %v10449_v4 = vld [vmem:[#allocation16_spill] sm:$0xff] }
 0x3d5   : > { %6398 = vmatmul.mubr.msk.f32.gmra.mrb[36].mxu1 %vm1053_vm10, %v9300_v43  ;;  %v2783_v61 = vsel %vm984_vm8, %v10449_v4, %v2570_v18  ;;  %v5272_v43 = vld [vmem:[%s10223_s4 + $0x1f8] sm:$0xff]  ;;  %v2574_v37 = vpop.permute.xlu0 %2573 }
 0x3d6   : > { %3580 = vperm.xlu1 %6739, %v3506_v16   ;;  %5292 = vperm.xlu0 %6738, %v5262_v19   ;;  %v2813_v7 = vsel %vm1015_vm9, %v2783_v61, %v2721_v26  ;;  %v2785_v29 = vsel %vm984_vm8, %v10452_v59, %v2574_v37 }
 0x3d7   : > { %6400 = vmatprep.mubr.msk.f32.mxu1 %vm1053_vm10, %v9310_v15  ;;  %6521 = vmatmul.mubr.msk.f32.gmra.mrb[34].mxu0 %vm1053_vm10, %v9287_v24  ;;  %v10450_v24 = vld [vmem:[#allocation18_spill] sm:$0xff] }
 0x3d8   : > { %6523 = vmatprep.mubr.msk.f32.mxu0 %vm1053_vm10, %v9297_v47  ;;  %v5267_v47 = vld [vmem:[%s10223_s4 + $0x1d0] sm:$0xff]  ;;  %v5269_v15 = vld [vmem:[%s10223_s4 + $0x1e0] sm:$0xff] }
 0x3d9   : > { %6401 = vmatmul.mubr.msk.f32.gmra.mrb[38].mxu1 %vm1053_vm10, %v9330_v0  ;;  %v5271_v0 = vld [vmem:[%s10223_s4 + $0x1f0] sm:$0xff]  ;;  %v2725_v41 = vpop.permute.xlu0 %2724 }
 0x3da   : > { %3590 = vperm.xlu1 %6739, %v3508_v35   ;;  %5302 = vperm.xlu0 %6738, %v5264_v49   ;;  %v2815_v11 = vsel %vm1015_vm9, %v2785_v29, %v2725_v41 }
 0x3db   : > { %6403 = vmatprep.mubr.msk.f32.mxu1 %vm1053_vm10, %v9340_v1  ;;  %6524 = vmatmul.mubr.msk.f32.gmra.mrb[36].mxu0 %vm1053_vm10, %v9317_v55  ;;  %v5274_v55 = vld [vmem:[%s10223_s4 + $0x208] sm:$0xff]  ;;  %v3510_v1 = vld [vmem:[%s10223_s4 + $0x160] sm:$0xff] }
 0x3dc   : > { %6526 = vmatprep.mubr.msk.f32.mxu0 %vm1053_vm10, %v10447_v46 }
 0x3dd   : > { %6404 = vmatmul.mubr.msk.f32.gmra.mrb[40].mxu1 %vm1053_vm10, %v9360_v52  ;;  %v3511_v52 = vld [vmem:[%s10223_s4 + $0x168] sm:$0xff] }
 0x3de   : > { %5287 = vperm.xlu1 %6739, %v5261_v34   ;;  %5312 = vperm.xlu0 %6738, %v5266_v14  }
 0x3df   : > { %6406 = vmatprep.mubr.msk.f32.mxu1 %vm1053_vm10, %v9370_v17  ;;  %6527 = vmatmul.mubr.msk.f32.gmra.mrb[38].mxu0 %vm1053_vm10, %v9347_v28  ;;  %v5273_v28 = vld [vmem:[%s10223_s4 + $0x200] sm:$0xff]  ;;  %v5275_v17 = vld [vmem:[%s10223_s4 + $0x210] sm:$0xff] }
 0x3e0   : > { %6529 = vmatprep.mubr.msk.f32.mxu0 %vm1053_vm10, %v9357_v50  ;;  %v5270_v50 = vld [vmem:[%s10223_s4 + $0x1e8] sm:$0xff] }
 0x3e1   : > { %6407 = vmatmul.mubr.msk.f32.gmra.mrb[42].mxu1 %vm1053_vm10, %v9391_v40  ;;  %v5276_v40 = vld [vmem:[%s10223_s4 + $0x218] sm:$0xff] }
 0x3e2   : > { %5297 = vperm.xlu1 %6739, %v5263_v21   ;;  %5322 = vperm.xlu0 %6738, %v5268_v44  }
 0x3e3   : > { %6409 = vmatprep.mubr.msk.f32.mxu1 %vm1053_vm10, %v10448_v23  ;;  %6530 = vmatmul.mubr.msk.f32.gmra.mrb[40].mxu0 %vm1053_vm10, %v9377_v38  ;;  %v3512_v38 = vld [vmem:[%s10223_s4 + $0x170] sm:$0xff] }
 0x3e4   : > { %6532 = vmatprep.mubr.msk.f32.mxu0 %vm1053_vm10, %v10450_v24 }
 0x3e5   : > { %6410 = vmatmul.mubr.msk.f32.gmra.mrb[44].mxu1 %vm1053_vm10, %v2813_v7 }
 0x3e6   : > { %5307 = vperm.xlu1 %6739, %v5265_v48   ;;  %5332 = vperm.xlu0 %6738, %v5270_v50  }
 0x3e7   : > { %6533 = vmatmul.mubr.msk.f32.gmra.mrb[42].mxu0 %vm1053_vm10, %v9405_v12  ;;  %v5277_v12 = vld [vmem:[%s10223_s4 + $0x220] sm:$0xff] }
 0x3e8   : > { %6535 = vmatprep.mubr.msk.f32.mxu0 %vm1053_vm10, %v9415_v13  ;;  %v3513_v13 = vld [vmem:[%s10223_s4 + $0x178] sm:$0xff] }
 0x3ea   : > { %5317 = vperm.xlu1 %6739, %v5267_v47   ;;  %5342 = vperm.xlu0 %6738, %v5272_v43  }
 0x3ee   : > { %5327 = vperm.xlu1 %6739, %v5269_v15   ;;  %5352 = vperm.xlu0 %6738, %v5274_v55  }
 0x3f2   : > { %5337 = vperm.xlu1 %6739, %v5271_v0   ;;  %3600 = vperm.xlu0 %6738, %v3510_v1  }
 0x3f6   : > { %5347 = vperm.xlu1 %6739, %v5273_v28   ;;  %3605 = vperm.xlu0 %6738, %v3511_v52  }
 0x3fa   : > { %5357 = vperm.xlu1 %6739, %v5275_v17   ;;  %3610 = vperm.xlu0 %6738, %v3512_v38  }
 0x3fe   : > { %5362 = vperm.xlu1 %6739, %v5276_v40   ;;  %3615 = vperm.xlu0 %6738, %v3513_v13  }
 0x402   : > { %5367 = vperm.xlu1 %6739, %v5277_v12   ;;  %3620 = vperm.xlu0 %6738, %v3514_v10  }
 0x406   : > { %5372 = vperm.xlu1 %6739, %v5278_v8   ;;  %3625 = vperm.xlu0 %6738, %v3515_v3  }
 0x40a   : > { %5377 = vperm.xlu1 %6739, %v5279_v39   ;;  %3630 = vperm.xlu0 %6738, %v3516_v20  }
 0x40e   : > { %5382 = vperm.xlu1 %6739, %v5280_v22   ;;  %3635 = vperm.xlu0 %6738, %v3517_v30  }
 0x412   : > { %5387 = vperm.xlu1 %6739, %v5281_v42   ;;  %5402 = vperm.xlu0 %6738, %v5284_v9  }
 0x416   : > { %5392 = vperm.xlu1 %6739, %v5282_v60  }
 0x41a   : > { %5397 = vperm.xlu1 %6739, %v5283_v2  }
 0x41c   : > { %v4337_v32 = vpop.permute.xlu1 %4336 }
 0x41d   : > { %v4550_v25 = vsel %vm984_vm8, %v8974_v63, %v4337_v32 }
 0x420   : > { %v4488_v53 = vpop.permute.xlu1 %4487  ;;  %v4341_v27 = vpop.permute.xlu0 %4340 }
 0x421   : > { %v4580_v46 = vsel %vm1015_vm9, %v4550_v25, %v4488_v53  ;;  %v4552_v58 = vsel %vm984_vm8, %v9502_v51, %v4341_v27 }
 0x422   : > { %6536 = vmatmul.mubr.msk.f32.gmra.mrb[44].mxu0 %vm1053_vm10, %v4580_v46 }
 0x424   : > { %v2723_v36 = vpop.permute.xlu1 %2722  ;;  %v4492_v54 = vpop.permute.xlu0 %4491 }
 0x425   : > { %v2814_v56 = vsel %vm1015_vm9, %v2784_v62, %v2723_v36  ;;  %v4582_v16 = vsel %vm1015_vm9, %v4552_v58, %v4492_v54 }
 0x426   : > { %6412 = vmatprep.mubr.msk.f32.mxu1 %vm1053_vm10, %v2814_v56 }
 0x427   : > { %6413 = vmatmul.mubr.msk.f32.gmra.mrb[46].mxu1 %vm1053_vm10, %v2815_v11 }
 0x428   : > { %v4339_v63 = vpop.permute.xlu1 %4338 }
 0x429   : > { %v4551_v57 = vsel %vm984_vm8, %v9493_v5, %v4339_v63 }
 0x42c   : > { %v4490_v45 = vpop.permute.xlu1 %4489 }
 0x42d   : > { %v4581_v6 = vsel %vm1015_vm9, %v4551_v57, %v4490_v45 }
 0x42e   : > { %6538 = vmatprep.mubr.msk.f32.mxu0 %vm1053_vm10, %v4581_v6 }
 0x42f   : > { %6539 = vmatmul.mubr.msk.f32.gmra.mrb[46].mxu0 %vm1053_vm10, %v4582_v16 }
 0x435   : > { %v3526_v19 = vpop.permute.xlu0 %3525 }
 0x439   : > { %v3536_v49 = vpop.permute.xlu0 %3535 }
 0x43d   : > { %v3521_v35 = vpop.permute.xlu1 %3520  ;;  %v3546_v14 = vpop.permute.xlu0 %3545 }
 0x441   : > { %v3531_v34 = vpop.permute.xlu1 %3530  ;;  %v9821_v5 = vpop.permute.xlu0 %3555 }
 0x445   : > { %v9819_v21 = vpop.permute.xlu1 %3540  ;;  %v9825_v51 = vpop.permute.xlu0 %3565 }
 0x449   : > { %v9823_v44 = vpop.permute.xlu1 %3550  ;;  %v9829_v26 = vpop.permute.xlu0 %3575 }
 0x44d   : > { %v9827_v18 = vpop.permute.xlu1 %3560  ;;  %v9833_v48 = vpop.permute.xlu0 %3585 }
 0x451   : > { %v9831_v23 = vpop.permute.xlu1 %3570  ;;  %v9837_v61 = vpop.permute.xlu0 %3595 }
 0x455   : > { %v9835_v4 = vpop.permute.xlu1 %3580  ;;  %v5293_v7 = vpop.permute.xlu0 %5292 }
 0x459   : > { %v9839_v50 = vpop.permute.xlu1 %3590  ;;  %v9841_v47 = vpop.permute.xlu0 %5302 }
 0x45d   : > { %v5288_v24 = vpop.permute.xlu1 %5287  ;;  %v9845_v15 = vpop.permute.xlu0 %5312 }
 0x461   : > { %v9843_v43 = vpop.permute.xlu1 %5297  ;;  %v9851_v52 = vpop.permute.xlu0 %5322 }
 0x465   : > { %v9847_v55 = vpop.permute.xlu1 %5307  ;;  %v9867_v37 = vpop.permute.xlu0 %5332 }
 0x469   : > { %v9857_v8 = vpop.permute.xlu1 %5317 }
 0x46d   : > { %v9880_v57 = vpop.permute.xlu1 %5327 }
 0x490   : > { %v6381_v0 = vpop.f32.mrb[24].mxu1 }
 0x491   : > { %v3639_v1 = vmul.f32 %v6381_v0, %v3526_v19  ;;  %3795 = vst.msk [vmem:[%s8293_s29 + $0xc8] sm:$0xff] %vm984_vm8, %v6381_v0  ;;  %v3351_v28 = vpop.f32.mrb[25].mxu1 }
 0x492   : > { %v3638_v17 = vmul.f32 %v3521_v35, %v3351_v28  ;;  %3794 = vst.msk [vmem:[%s8293_s29 + $0xc0] sm:$0xff] %vm984_vm8, %v3351_v28 }
 0x493   : > { %v3663_v38 = vsel %vm984_vm8, %v3639_v1, 0.0  ;;  %v3717_v40 = vmul.f32 %v6381_v0, %v3639_v1 }
 0x494   : > { %v3662_v13 = vsel %vm984_vm8, %v3638_v17, 0.0  ;;  %v3716_v12 = vmul.f32 %v3638_v17, %v3351_v28  ;;  %v6384_v10 = vpop.f32.mrb[26].mxu1  ;;  %v9893_v17 = vpop.permute.xlu0 %5342 }
 0x495   : > { %v3741_v3 = vsel %vm984_vm8, %v3717_v40, 0.0  ;;  %v3664_v39 = vadd.f32 %v3663_v38, %v3662_v13  ;;  %v3641_v20 = vmul.f32 %v6384_v10, %v3536_v49  ;;  %3797 = vst.msk [vmem:[%s8293_s29 + $0xd8] sm:$0xff] %vm984_vm8, %v6384_v10  ;;  %v3361_v22 = vpop.f32.mrb[27].mxu1 }
 0x496   : > { %v3740_v30 = vsel %vm984_vm8, %v3716_v12, 0.0  ;;  %v3640_v42 = vmul.f32 %v3531_v34, %v3361_v22  ;;  %3796 = vst.msk [vmem:[%s8293_s29 + $0xd0] sm:$0xff] %vm984_vm8, %v3361_v22  ;;  %v6507_v9 = vpop.f32.mrb[24].mxu0 }
 0x497   : > { %v3742_v60 = vadd.f32 %v3741_v3, %v3740_v30  ;;  %v5406_v31 = vmul.f32 %v6507_v9, %v5293_v7  ;;  %5562 = vst.msk [vmem:[%s8293_s29 + $0x188] sm:$0xff] %vm984_vm8, %v6507_v9  ;;  %v5118_v2 = vpop.f32.mrb[25].mxu0  ;;  %v3719_v32 = vmul.f32 %v6384_v10, %v3641_v20  ;;  %v3667_v33 = vsel %vm984_vm8, %v3641_v20, 0.0 }
 0x498   : > { %v3665_v25 = vsel %vm984_vm8, %v3640_v42, 0.0  ;;  %v3718_v53 = vmul.f32 %v3640_v42, %v3361_v22  ;;  %v5405_v41 = vmul.f32 %v5288_v24, %v5118_v2  ;;  %5561 = vst.msk [vmem:[%s8293_s29 + $0x180] sm:$0xff] %vm984_vm8, %v5118_v2  ;;  %v6387_v46 = vpop.f32.mrb[28].mxu1 }
 0x499   : > { %v3666_v62 = vadd.f32 %v3665_v25, %v3664_v39  ;;  %v5430_v36 = vsel %vm984_vm8, %v5406_v31, 0.0  ;;  %v5484_v59 = vmul.f32 %v6507_v9, %v5406_v31  ;;  %3799 = vst.msk [vmem:[%s8293_s29 + $0xe8] sm:$0xff] %vm984_vm8, %v6387_v46  ;;  %v3371_v29 = vpop.f32.mrb[29].mxu1  ;;  %v3643_v63 = vmul.f32 %v6387_v46, %v3546_v14  ;;  %v9910_v31 = vpop.permute.xlu1 %5337 }
 0x49a   : > { %v3743_v27 = vsel %vm984_vm8, %v3718_v53, 0.0  ;;  %v5429_v56 = vsel %vm984_vm8, %v5405_v41, 0.0  ;;  %v5483_v11 = vmul.f32 %v5405_v41, %v5118_v2  ;;  %3798 = vst.msk [vmem:[%s8293_s29 + $0xe0] sm:$0xff] %vm984_vm8, %v3371_v29  ;;  %v6510_v54 = vpop.f32.mrb[26].mxu0  ;;  %v3642_v16 = vmul.f32 %v9819_v21, %v3371_v29 }
 0x49b   : > { %v3744_v45 = vadd.f32 %v3743_v27, %v3742_v60  ;;  %v5508_v58 = vsel %vm984_vm8, %v5484_v59, 0.0  ;;  %v5431_v6 = vadd.f32 %v5430_v36, %v5429_v56  ;;  %5564 = vst.msk [vmem:[%s8293_s29 + $0x198] sm:$0xff] %vm984_vm8, %v6510_v54  ;;  %v5128_v19 = vpop.f32.mrb[27].mxu0  ;;  %v3745_v35 = vsel %vm984_vm8, %v3719_v32, 0.0  ;;  %v9924_v56 = vpop.permute.xlu0 %5352 }
 0x49c   : > { %v5507_v49 = vsel %vm984_vm8, %v5483_v11, 0.0  ;;  %v3721_v34 = vmul.f32 %v6387_v46, %v3643_v63  ;;  %v3668_v14 = vadd.f32 %v3667_v33, %v3666_v62  ;;  %5563 = vst.msk [vmem:[%s8293_s29 + $0x190] sm:$0xff] %vm984_vm8, %v5128_v19  ;;  %v6390_v7 = vpop.f32.mrb[30].mxu1  ;;  %v3669_v0 = vsel %vm984_vm8, %v3642_v16, 0.0 }
 0x49d   : > { %v5509_v24 = vadd.f32 %v5508_v58, %v5507_v49  ;;  %v3720_v1 = vmul.f32 %v3642_v16, %v3371_v29  ;;  %v3746_v28 = vadd.f32 %v3745_v35, %v3744_v45  ;;  %3801 = vst.msk [vmem:[%s8293_s29 + $0xf8] sm:$0xff] %vm984_vm8, %v6390_v7  ;;  %v3381_v21 = vpop.f32.mrb[31].mxu1  ;;  %v3671_v38 = vsel %vm984_vm8, %v3643_v63, 0.0 }
 0x49e   : > { %v3670_v40 = vadd.f32 %v3669_v0, %v3668_v14  ;;  %v5408_v13 = vmul.f32 %v6510_v54, %v9841_v47  ;;  %v5407_v12 = vmul.f32 %v9843_v43, %v5128_v19  ;;  %3800 = vst.msk [vmem:[%s8293_s29 + $0xf0] sm:$0xff] %vm984_vm8, %v3381_v21  ;;  %v6513_v10 = vpop.f32.mrb[28].mxu0  ;;  %v3749_v3 = vsel %vm984_vm8, %v3721_v34, 0.0 }
 0x49f   : > { %v3747_v39 = vsel %vm984_vm8, %v3720_v1, 0.0  ;;  %v3645_v20 = vmul.f32 %v6390_v7, %v9821_v5  ;;  %v3644_v22 = vmul.f32 %v9823_v44, %v3381_v21  ;;  %5566 = vst.msk [vmem:[%s8293_s29 + $0x1a8] sm:$0xff] %vm984_vm8, %v6513_v10  ;;  %v5138_v30 = vpop.f32.mrb[29].mxu0  ;;  %v5410_v43 = vmul.f32 %v6513_v10, %v9845_v15  ;;  %v9939_v1 = vpop.permute.xlu1 %5347 }
 0x4a0   : > { %v3748_v42 = vadd.f32 %v3747_v39, %v3746_v28  ;;  %v5486_v9 = vmul.f32 %v6510_v54, %v5408_v13  ;;  %v5432_v47 = vsel %vm984_vm8, %v5407_v12, 0.0  ;;  %5565 = vst.msk [vmem:[%s8293_s29 + $0x1a0] sm:$0xff] %vm984_vm8, %v5138_v30  ;;  %v6393_v60 = vpop.f32.mrb[32].mxu1  ;;  %v5434_v2 = vsel %vm984_vm8, %v5408_v13, 0.0 }
 0x4a1   : > { %v5433_v5 = vadd.f32 %v5432_v47, %v5431_v6  ;;  %v5485_v44 = vmul.f32 %v5407_v12, %v5128_v19  ;;  %v3723_v32 = vmul.f32 %v6390_v7, %v3645_v20  ;;  %3803 = vst.msk [vmem:[%s8293_s29 + $0x108] sm:$0xff] %vm984_vm8, %v6393_v60  ;;  %v3391_v25 = vpop.f32.mrb[33].mxu1  ;;  %v3675_v53 = vsel %vm984_vm8, %v3645_v20, 0.0 }
 0x4a2   : > { %v3672_v41 = vadd.f32 %v3671_v38, %v3670_v40  ;;  %v3673_v15 = vsel %vm984_vm8, %v3644_v22, 0.0  ;;  %v3722_v46 = vmul.f32 %v3644_v22, %v3381_v21  ;;  %3802 = vst.msk [vmem:[%s8293_s29 + $0x100] sm:$0xff] %vm984_vm8, %v3391_v25  ;;  %v6516_v33 = vpop.f32.mrb[30].mxu0  ;;  %v5512_v62 = vsel %vm984_vm8, %v5486_v9, 0.0 }
 0x4a3   : > { %v5510_v36 = vsel %vm984_vm8, %v5485_v44, 0.0  ;;  %v3753_v59 = vsel %vm984_vm8, %v3723_v32, 0.0  ;;  %v3750_v29 = vadd.f32 %v3749_v3, %v3748_v42  ;;  %5568 = vst.msk [vmem:[%s8293_s29 + $0x1b8] sm:$0xff] %vm984_vm8, %v6516_v33  ;;  %v5148_v27 = vpop.f32.mrb[31].mxu0  ;;  %v5488_v45 = vmul.f32 %v6513_v10, %v5410_v43  ;;  %v9962_v42 = vpop.permute.xlu0 %3600 }
 0x4a4   : > { %v5511_v11 = vadd.f32 %v5510_v36, %v5509_v24  ;;  %v3674_v63 = vadd.f32 %v3673_v15, %v3672_v41  ;;  %v3751_v54 = vsel %vm984_vm8, %v3722_v46, 0.0  ;;  %5567 = vst.msk [vmem:[%s8293_s29 + $0x1b0] sm:$0xff] %vm984_vm8, %v5148_v27  ;;  %v6396_v58 = vpop.f32.mrb[34].mxu1  ;;  %v5409_v16 = vmul.f32 %v9847_v55, %v5138_v30 }
 0x4a5   : > { %v3752_v6 = vadd.f32 %v3751_v54, %v3750_v29  ;;  %v5435_v19 = vadd.f32 %v5434_v2, %v5433_v5  ;;  %v3647_v35 = vmul.f32 %v6393_v60, %v9825_v51  ;;  %3805 = vst.msk [vmem:[%s8293_s29 + $0x118] sm:$0xff] %vm984_vm8, %v6396_v58  ;;  %v3401_v49 = vpop.f32.mrb[35].mxu1  ;;  %v5438_v34 = vsel %vm984_vm8, %v5410_v43, 0.0 }
 0x4a6   : > { %v5513_v14 = vadd.f32 %v5512_v62, %v5511_v11  ;;  %v3646_v7 = vmul.f32 %v9827_v18, %v3391_v25  ;;  %v3676_v24 = vadd.f32 %v3675_v53, %v3674_v63  ;;  %3804 = vst.msk [vmem:[%s8293_s29 + $0x110] sm:$0xff] %vm984_vm8, %v3401_v49  ;;  %v9937_v0 = vpop.f32.mrb[32].mxu0  ;;  %v5516_v55 = vsel %vm984_vm8, %v5488_v45, 0.0 }
 0x4a7   : > { %v5436_v51 = vsel %vm984_vm8, %v5409_v16, 0.0  ;;  %v5487_v28 = vmul.f32 %v5409_v16, %v5138_v30  ;;  %v3725_v21 = vmul.f32 %v6393_v60, %v3647_v35  ;;  %5570 = vst.msk [vmem:[%s8293_s29 + $0x1c8] sm:$0xff] %vm984_vm8, %v9937_v0  ;;  %v9946_v38 = vpop.f32.mrb[33].mxu0  ;;  %v3754_v12 = vadd.f32 %v3753_v59, %v3752_v6 }
 0x4a8   : > { %v5437_v18 = vadd.f32 %v5436_v51, %v5435_v19  ;;  %v3677_v40 = vsel %vm984_vm8, %v3646_v7, 0.0  ;;  %v3724_v13 = vmul.f32 %v3646_v7, %v3391_v25  ;;  %5569 = vst.msk [vmem:[%s8293_s29 + $0x1c0] sm:$0xff] %vm984_vm8, %v9946_v38  ;;  %v9952_v10 = vpop.f32.mrb[36].mxu1  ;;  %v3679_v39 = vsel %vm984_vm8, %v3647_v35, 0.0  ;;  %v10009_v35 = vpop.permute.xlu0 %3605 }
 0x4a9   : > { %v5514_v3 = vsel %vm984_vm8, %v5487_v28, 0.0  ;;  %v3678_v20 = vadd.f32 %v3677_v40, %v3676_v24  ;;  %v5412_v22 = vmul.f32 %v6516_v33, %v9851_v52  ;;  %3807 = vst.msk [vmem:[%s8293_s29 + $0x128] sm:$0xff] %vm984_vm8, %v9952_v10  ;;  %v9960_v30 = vpop.f32.mrb[37].mxu1  ;;  %v5411_v43 = vmul.f32 %v9857_v8, %v5148_v27 }
 0x4aa   : > { %v5515_v9 = vadd.f32 %v5514_v3, %v5513_v14  ;;  %v3755_v47 = vsel %vm984_vm8, %v3724_v13, 0.0  ;;  %v5439_v60 = vadd.f32 %v5438_v34, %v5437_v18  ;;  %3806 = vst.msk [vmem:[%s8293_s29 + $0x120] sm:$0xff] %vm984_vm8, %v9960_v30  ;;  %v9969_v2 = vpop.f32.mrb[34].mxu0  ;;  %v3757_v52 = vsel %vm984_vm8, %v3725_v21, 0.0 }
 0x4ab   : > { %v3756_v5 = vadd.f32 %v3755_v47, %v3754_v12  ;;  %v5490_v44 = vmul.f32 %v6516_v33, %v5412_v22  ;;  %v3649_v32 = vmul.f32 %v6396_v58, %v9829_v26  ;;  %5572 = vst.msk [vmem:[%s8293_s29 + $0x1d8] sm:$0xff] %vm984_vm8, %v9969_v2  ;;  %v9976_v25 = vpop.f32.mrb[35].mxu0  ;;  %v5440_v8 = vsel %vm984_vm8, %v5411_v43, 0.0  ;;  %v9985_v33 = vpop.permute.xlu1 %5357 }
 0x4ac   : > { %v5489_v53 = vmul.f32 %v5411_v43, %v5148_v27  ;;  %v5517_v41 = vadd.f32 %v5516_v55, %v5515_v9  ;;  %v3648_v15 = vmul.f32 %v9831_v23, %v3401_v49  ;;  %5571 = vst.msk [vmem:[%s8293_s29 + $0x1d0] sm:$0xff] %vm984_vm8, %v9976_v25  ;;  %v9983_v46 = vpop.f32.mrb[38].mxu1  ;;  %v5442_v26 = vsel %vm984_vm8, %v5412_v22, 0.0 }
 0x4ad   : > { %v5520_v62 = vsel %vm984_vm8, %v5490_v44, 0.0  ;;  %v5441_v36 = vadd.f32 %v5440_v8, %v5439_v60  ;;  %v3727_v59 = vmul.f32 %v6396_v58, %v3649_v32  ;;  %3809 = vst.msk [vmem:[%s8293_s29 + $0x138] sm:$0xff] %vm984_vm8, %v9983_v46  ;;  %v9992_v29 = vpop.f32.mrb[39].mxu1  ;;  %v3680_v27 = vadd.f32 %v3679_v39, %v3678_v20 }
 0x4ae   : > { %v5518_v23 = vsel %vm984_vm8, %v5489_v53, 0.0  ;;  %v3681_v11 = vsel %vm984_vm8, %v3648_v15, 0.0  ;;  %v3726_v63 = vmul.f32 %v3648_v15, %v3401_v49  ;;  %3808 = vst.msk [vmem:[%s8293_s29 + $0x130] sm:$0xff] %vm984_vm8, %v9992_v29  ;;  %v9999_v54 = vpop.f32.mrb[36].mxu0  ;;  %v3683_v58 = vsel %vm984_vm8, %v3649_v32, 0.0 }
 0x4af   : > { %v5519_v45 = vadd.f32 %v5518_v23, %v5517_v41  ;;  %v3758_v6 = vadd.f32 %v3757_v52, %v3756_v5  ;;  %v5414_v16 = vmul.f32 %v9937_v0, %v9867_v37  ;;  %5574 = vst.msk [vmem:[%s8293_s29 + $0x1e8] sm:$0xff] %vm984_vm8, %v9999_v54  ;;  %v10007_v19 = vpop.f32.mrb[37].mxu0  ;;  %v3682_v49 = vadd.f32 %v3681_v11, %v3680_v27  ;;  %v10037_v12 = vpop.permute.xlu1 %5362 }
 0x4b0   : > { %v3759_v34 = vsel %vm984_vm8, %v3726_v63, 0.0  ;;  %v5413_v14 = vmul.f32 %v9880_v57, %v9946_v38  ;;  %v5443_v7 = vadd.f32 %v5442_v26, %v5441_v36  ;;  %5573 = vst.msk [vmem:[%s8293_s29 + $0x1e0] sm:$0xff] %vm984_vm8, %v10007_v19  ;;  %v10017_v24 = vpop.f32.mrb[40].mxu1  ;;  %v3761_v37 = vsel %vm984_vm8, %v3727_v59, 0.0 }
 0x4b1   : > { %v3760_v55 = vadd.f32 %v3759_v34, %v3758_v6  ;;  %v5492_v51 = vmul.f32 %v9937_v0, %v5414_v16  ;;  %v5521_v28 = vadd.f32 %v5520_v62, %v5519_v45  ;;  %3811 = vst.msk [vmem:[%s8293_s29 + $0x148] sm:$0xff] %vm984_vm8, %v10017_v24  ;;  %v10024_v21 = vpop.f32.mrb[41].mxu1  ;;  %v3651_v40 = vmul.f32 %v9952_v10, %v9833_v48 }
 0x4b2   : > { %v5444_v57 = vsel %vm984_vm8, %v5413_v14, 0.0  ;;  %v5491_v18 = vmul.f32 %v5413_v14, %v9946_v38  ;;  %v3650_v13 = vmul.f32 %v9835_v4, %v9960_v30  ;;  %3810 = vst.msk [vmem:[%s8293_s29 + $0x140] sm:$0xff] %vm984_vm8, %v10024_v21  ;;  %v10035_v0 = vpop.f32.mrb[38].mxu0  ;;  %v3684_v39 = vadd.f32 %v3683_v58, %v3682_v49 }
 0x4b3   : > { %v5445_v3 = vadd.f32 %v5444_v57, %v5443_v7  ;;  %v3762_v20 = vadd.f32 %v3761_v37, %v3760_v55  ;;  %5576 = vst.msk [vmem:[%s8293_s29 + $0x1f8] sm:$0xff] %vm984_vm8, %v10035_v0  ;;  %v10042_v38 = vpop.f32.mrb[39].mxu0  ;;  %v5446_v48 = vsel %vm984_vm8, %v5414_v16, 0.0  ;;  %v3729_v22 = vmul.f32 %v9952_v10, %v3651_v40  ;;  %v10061_v10 = vpop.permute.xlu0 %3610 }
 0x4b4   : > { %v5522_v4 = vsel %vm984_vm8, %v5491_v18, 0.0  ;;  %v3685_v9 = vsel %vm984_vm8, %v3650_v13, 0.0  ;;  %5575 = vst.msk [vmem:[%s8293_s29 + $0x1f0] sm:$0xff] %vm984_vm8, %v10042_v38  ;;  %v10051_v47 = vpop.f32.mrb[42].mxu1  ;;  %v3728_v52 = vmul.f32 %v3650_v13, %v9960_v30  ;;  %v5416_v5 = vmul.f32 %v9969_v2, %v9893_v17  ;;  %v10087_v27 = vpop.permute.xlu1 %5367 }
 0x4b5   : > { %v5523_v43 = vadd.f32 %v5522_v4, %v5521_v28  ;;  %v3686_v60 = vadd.f32 %v3685_v9, %v3684_v39  ;;  %3813 = vst.msk [vmem:[%s8293_s29 + $0x158] sm:$0xff] %vm984_vm8, %v10051_v47  ;;  %v10059_v44 = vpop.f32.mrb[43].mxu1  ;;  %v5524_v32 = vsel %vm984_vm8, %v5492_v51, 0.0  ;;  %v5415_v8 = vmul.f32 %v9910_v31, %v9976_v25 }
 0x4b6   : > { %v5447_v53 = vadd.f32 %v5446_v48, %v5445_v3  ;;  %3812 = vst.msk [vmem:[%s8293_s29 + $0x150] sm:$0xff] %vm984_vm8, %v10059_v44  ;;  %v10069_v30 = vpop.f32.mrb[40].mxu0  ;;  %v3763_v17 = vsel %vm984_vm8, %v3728_v52, 0.0  ;;  %v3653_v15 = vmul.f32 %v9983_v46, %v9837_v61  ;;  %v5494_v31 = vmul.f32 %v9969_v2, %v5416_v5 }
 0x4b7   : > { %v5525_v41 = vadd.f32 %v5524_v32, %v5523_v43  ;;  %5578 = vst.msk [vmem:[%s8293_s29 + $0x208] sm:$0xff] %vm984_vm8, %v10069_v30  ;;  %v10077_v26 = vpop.f32.mrb[41].mxu0  ;;  %v3764_v62 = vadd.f32 %v3763_v17, %v3762_v20  ;;  %v5448_v36 = vsel %vm984_vm8, %v5415_v8, 0.0  ;;  %v5493_v59 = vmul.f32 %v5415_v8, %v9976_v25  ;;  %v3616_v55 = vpop.permute.xlu0 %3615 }
 0x4b8   : > { %5577 = vst.msk [vmem:[%s8293_s29 + $0x200] sm:$0xff] %vm984_vm8, %v10077_v26  ;;  %v10085_v23 = vpop.f32.mrb[44].mxu1  ;;  %v3687_v61 = vsel %vm984_vm8, %v3651_v40, 0.0  ;;  %v3765_v11 = vsel %vm984_vm8, %v3729_v22, 0.0  ;;  %v5449_v63 = vadd.f32 %v5448_v36, %v5447_v53  ;;  %v3652_v2 = vmul.f32 %v9839_v50, %v9992_v29  ;;  %v5373_v48 = vpop.permute.xlu1 %5372 }
 0x4b9   : > { %3815 = vst.msk [vmem:[%s8293_s29 + $0x168] sm:$0xff] %vm984_vm8, %v10085_v23  ;;  %v10096_v25 = vpop.f32.mrb[45].mxu1  ;;  %v5526_v45 = vsel %vm984_vm8, %v5493_v59, 0.0  ;;  %v3688_v58 = vadd.f32 %v3687_v61, %v3686_v60  ;;  %v3766_v6 = vadd.f32 %v3765_v11, %v3764_v62  ;;  %v5418_v16 = vmul.f32 %v9999_v54, %v9924_v56 }
 0x4ba   : > { %3814 = vst.msk [vmem:[%s8293_s29 + $0x160] sm:$0xff] %vm984_vm8, %v10096_v25  ;;  %v10104_v49 = vpop.f32.mrb[42].mxu0  ;;  %v5527_v34 = vadd.f32 %v5526_v45, %v5525_v41  ;;  %v3731_v50 = vmul.f32 %v9983_v46, %v3653_v15  ;;  %v3689_v14 = vsel %vm984_vm8, %v3652_v2, 0.0  ;;  %v3730_v7 = vmul.f32 %v3652_v2, %v9992_v29 }
 0x4bb   : > { %5580 = vst.msk [vmem:[%s8293_s29 + $0x218] sm:$0xff] %vm984_vm8, %v10104_v49  ;;  %v10112_v37 = vpop.f32.mrb[43].mxu0  ;;  %v5450_v56 = vsel %vm984_vm8, %v5416_v5, 0.0  ;;  %v5528_v51 = vsel %vm984_vm8, %v5494_v31, 0.0  ;;  %v3690_v28 = vadd.f32 %v3689_v14, %v3688_v58  ;;  %v5417_v57 = vmul.f32 %v9939_v1, %v10007_v19  ;;  %v3621_v8 = vpop.permute.xlu0 %3620 }
 0x4bc   : > { %5579 = vst.msk [vmem:[%s8293_s29 + $0x210] sm:$0xff] %vm984_vm8, %v10112_v37  ;;  %v3767_v46 = vsel %vm984_vm8, %v3730_v7, 0.0  ;;  %v5451_v29 = vadd.f32 %v5450_v56, %v5449_v63  ;;  %v5529_v18 = vadd.f32 %v5528_v51, %v5527_v34  ;;  %v3655_v40 = vmul.f32 %v10017_v24, %v10009_v35  ;;  %v5378_v61 = vpop.permute.xlu1 %5377 }
 0x4bd   : > { %v3768_v13 = vadd.f32 %v3767_v46, %v3766_v6  ;;  %v5496_v3 = vmul.f32 %v9999_v54, %v5418_v16  ;;  %v5452_v39 = vsel %vm984_vm8, %v5417_v57, 0.0  ;;  %v5495_v20 = vmul.f32 %v5417_v57, %v10007_v19 }
 0x4be   : > { %v3691_v1 = vsel %vm984_vm8, %v3653_v15, 0.0  ;;  %v3769_v4 = vsel %vm984_vm8, %v3731_v50, 0.0  ;;  %v5453_v22 = vadd.f32 %v5452_v39, %v5451_v29  ;;  %v3654_v9 = vmul.f32 %v9962_v42, %v10024_v21 }
 0x4bf   : > { %v5530_v43 = vsel %vm984_vm8, %v5495_v20, 0.0  ;;  %v3692_v60 = vadd.f32 %v3691_v1, %v3690_v28  ;;  %v3770_v35 = vadd.f32 %v3769_v4, %v3768_v13  ;;  %v5420_v54 = vmul.f32 %v10035_v0, %v10037_v12  ;;  %v3626_v14 = vpop.permute.xlu0 %3625 }
 0x4c0   : > { %v5531_v52 = vadd.f32 %v5530_v43, %v5529_v18  ;;  %v3733_v5 = vmul.f32 %v10017_v24, %v3655_v40  ;;  %v3693_v19 = vsel %vm984_vm8, %v3654_v9, 0.0  ;;  %v3732_v32 = vmul.f32 %v3654_v9, %v10024_v21 }
 0x4c1   : > { %v5454_v53 = vsel %vm984_vm8, %v5418_v16, 0.0  ;;  %v5532_v17 = vsel %vm984_vm8, %v5496_v3, 0.0  ;;  %v3694_v42 = vadd.f32 %v3693_v19, %v3692_v60  ;;  %v5419_v41 = vmul.f32 %v9985_v33, %v10042_v38 }
 0x4c2   : > { %v3771_v15 = vsel %vm984_vm8, %v3732_v32, 0.0  ;;  %v5455_v62 = vadd.f32 %v5454_v53, %v5453_v22  ;;  %v5533_v12 = vadd.f32 %v5532_v17, %v5531_v52  ;;  %v3657_v31 = vmul.f32 %v10051_v47, %v3616_v55 }
 0x4c3   : > { %v3772_v24 = vadd.f32 %v3771_v15, %v3770_v35  ;;  %v5498_v36 = vmul.f32 %v10035_v0, %v5420_v54  ;;  %v5456_v21 = vsel %vm984_vm8, %v5419_v41, 0.0  ;;  %v5497_v59 = vmul.f32 %v5419_v41, %v10042_v38 }
 0x4c4   : > { %v3695_v11 = vsel %vm984_vm8, %v3655_v40, 0.0  ;;  %v3773_v63 = vsel %vm984_vm8, %v3733_v5, 0.0  ;;  %v5457_v2 = vadd.f32 %v5456_v21, %v5455_v62  ;;  %v3656_v33 = vmul.f32 %v10061_v10, %v10059_v44  ;;  %v5383_v40 = vpop.permute.xlu1 %5382 }
 0x4c5   : > { %v5534_v45 = vsel %vm984_vm8, %v5497_v59, 0.0  ;;  %v3696_v58 = vadd.f32 %v3695_v11, %v3694_v42  ;;  %v3774_v6 = vadd.f32 %v3773_v63, %v3772_v24  ;;  %v5422_v16 = vmul.f32 %v10069_v30, %v5373_v48  ;;  %v3631_v59 = vpop.permute.xlu0 %3630 }
 0x4c6   : > { %v5535_v0 = vadd.f32 %v5534_v45, %v5533_v12  ;;  %v3735_v34 = vmul.f32 %v10051_v47, %v3657_v31  ;;  %v3697_v38 = vsel %vm984_vm8, %v3656_v33, 0.0  ;;  %v3734_v50 = vmul.f32 %v3656_v33, %v10059_v44  ;;  %v10453_v33 = vld [vmem:[#allocation38_spill] sm:$0xff] }
 0x4c7   : > { %v5458_v7 = vsel %vm984_vm8, %v5420_v54, 0.0  ;;  %v5536_v55 = vsel %vm984_vm8, %v5498_v36, 0.0  ;;  %v3698_v56 = vadd.f32 %v3697_v38, %v3696_v58  ;;  %v5421_v10 = vmul.f32 %v10087_v27, %v10077_v26  ;;  %v10454_v58 = vld [vmem:[#allocation41_spill] sm:$0xff] }
 0x4c8   : > { %v3775_v51 = vsel %vm984_vm8, %v3734_v50, 0.0  ;;  %v5459_v28 = vadd.f32 %v5458_v7, %v5457_v2  ;;  %v5537_v57 = vadd.f32 %v5536_v55, %v5535_v0  ;;  %v3659_v46 = vmul.f32 %v10085_v23, %v3626_v14  ;;  %v5388_v21 = vpop.permute.xlu1 %5387 }
 0x4c9   : > { %v3776_v47 = vadd.f32 %v3775_v51, %v3774_v6  ;;  %v5500_v29 = vmul.f32 %v10069_v30, %v5422_v16  ;;  %v5460_v44 = vsel %vm984_vm8, %v5421_v10, 0.0  ;;  %v5499_v18 = vmul.f32 %v5421_v10, %v10077_v26  ;;  %v3636_v38 = vpop.permute.xlu0 %3635 }
 0x4ca   : > { %v3699_v13 = vsel %vm984_vm8, %v3657_v31, 0.0  ;;  %v3777_v3 = vsel %vm984_vm8, %v3735_v34, 0.0  ;;  %v5461_v39 = vadd.f32 %v5460_v44, %v5459_v28  ;;  %v3658_v27 = vmul.f32 %v3621_v8, %v10096_v25 }
 0x4cb   : > { %v5538_v20 = vsel %vm984_vm8, %v5499_v18, 0.0  ;;  %v3700_v48 = vadd.f32 %v3699_v13, %v3698_v56  ;;  %v3778_v1 = vadd.f32 %v3777_v3, %v3776_v47  ;;  %v5424_v4 = vmul.f32 %v10104_v49, %v5383_v40 }
 0x4cc   : > { %v5539_v22 = vadd.f32 %v5538_v20, %v5537_v57  ;;  %v3737_v30 = vmul.f32 %v10085_v23, %v3659_v46  ;;  %v3701_v9 = vsel %vm984_vm8, %v3658_v27, 0.0  ;;  %v3736_v26 = vmul.f32 %v3658_v27, %v10096_v25 }
 0x4cd   : > { %v5462_v43 = vsel %vm984_vm8, %v5422_v16, 0.0  ;;  %v5540_v60 = vsel %vm984_vm8, %v5500_v29, 0.0  ;;  %v3702_v35 = vadd.f32 %v3701_v9, %v3700_v48  ;;  %v5423_v54 = vmul.f32 %v5378_v61, %v10112_v37  ;;  %v5393_v61 = vpop.permute.xlu1 %5392 }
 0x4ce   : > { %v3703_v52 = vsel %vm984_vm8, %v3659_v46, 0.0  ;;  %v3779_v5 = vsel %vm984_vm8, %v3736_v26, 0.0  ;;  %v5463_v19 = vadd.f32 %v5462_v43, %v5461_v39  ;;  %v5541_v32 = vadd.f32 %v5540_v60, %v5539_v22  ;;  %v5403_v22 = vpop.permute.xlu0 %5402 }
 0x4cf   : > { %v3780_v8 = vadd.f32 %v3779_v5, %v3778_v1  ;;  %v5502_v23 = vmul.f32 %v10104_v49, %v5424_v4  ;;  %v5464_v53 = vsel %vm984_vm8, %v5423_v54, 0.0  ;;  %v5501_v25 = vmul.f32 %v5423_v54, %v10112_v37 }
 0x4d0   : > { %v3781_v17 = vsel %vm984_vm8, %v3737_v30, 0.0  ;;  %v5465_v42 = vadd.f32 %v5464_v53, %v5463_v19  ;;  %v3704_v41 = vadd.f32 %v3703_v52, %v3702_v35  ;;  %v5466_v15 = vsel %vm984_vm8, %v5424_v4, 0.0 }
 0x4d1   : > { %v5542_v62 = vsel %vm984_vm8, %v5501_v25, 0.0  ;;  %v3782_v12 = vadd.f32 %v3781_v17, %v3780_v8  ;;  %v5544_v36 = vsel %vm984_vm8, %v5502_v23, 0.0  ;;  %v1942_v45 = vrot.slane %v10453_v33, 4  ;;  %v5398_v26 = vpop.permute.xlu1 %5397 }
 0x4d2   : > { %v5543_v31 = vadd.f32 %v5542_v62, %v5541_v32  ;;  %v5467_v24 = vadd.f32 %v5466_v15, %v5465_v42  ;;  %v2020_v6 = vrot.slane %v10454_v58, 4 }
 0x4d3   : > { %v1943_v51 = vadd.f32 %v1942_v45, %v10453_v33 }
 0x4d4   : > { %v5545_v49 = vadd.f32 %v5544_v36, %v5543_v31  ;;  %v2021_v47 = vadd.f32 %v2020_v6, %v10454_v58 }
 0x4d5   : > { %v1944_v39 = vrot.slane %v1943_v51, 2 }
 0x4d6   : > { %v2022_v4 = vrot.slane %v2021_v47, 2 }
 0x4d7   : > { %v1945_v52 = vadd.f32 %v1944_v39, %v1943_v51 }
 0x4d8   : > { %v2023_v8 = vadd.f32 %v2022_v4, %v2021_v47 }
 0x4d9   : > { %v1946_v15 = vrot.slane %v1945_v52, 1 }
 0x4f5   : > { %v6537_v37 = vpop.f32.mrb[44].mxu0 }
 0x4f6   : > { %v5426_v11 = vmul.f32 %v6537_v37, %v5393_v61  ;;  %5582 = vst.msk [vmem:[%s8293_s29 + $0x228] sm:$0xff] %vm984_vm8, %v6537_v37  ;;  %v5218_v63 = vpop.f32.mrb[45].mxu0 }
 0x4f7   : > { %v5425_v2 = vmul.f32 %v5388_v21, %v5218_v63  ;;  %5581 = vst.msk [vmem:[%s8293_s29 + $0x220] sm:$0xff] %vm984_vm8, %v5218_v63  ;;  %v2024_v21 = vrot.slane %v2023_v8, 1 }
 0x4f8   : > { %v5504_v16 = vmul.f32 %v6537_v37, %v5426_v11  ;;  %v5470_v7 = vsel %vm984_vm8, %v5426_v11, 0.0 }
 0x4f9   : > { %v5468_v0 = vsel %vm984_vm8, %v5425_v2, 0.0  ;;  %v5503_v34 = vmul.f32 %v5425_v2, %v5218_v63  ;;  %v1947_v2 = vadd.f32 %v1946_v15, %v1945_v52 }
 0x4fa   : > { %v5469_v50 = vadd.f32 %v5468_v0, %v5467_v24  ;;  %v6414_v14 = vpop.f32.mrb[46].mxu1  ;;  %v5548_v29 = vsel %vm984_vm8, %v5504_v16, 0.0  ;;  %v2025_v16 = vadd.f32 %v2024_v21, %v2023_v8 }
 0x4fb   : > { %v5546_v55 = vsel %vm984_vm8, %v5503_v34, 0.0  ;;  %v3661_v56 = vmul.f32 %v6414_v14, %v3636_v38  ;;  %3817 = vst.msk [vmem:[%s8293_s29 + $0x178] sm:$0xff] %vm984_vm8, %v6414_v14  ;;  %v3461_v10 = vpop.f32.mrb[47].mxu1 }
 0x4fc   : > { %v5547_v28 = vadd.f32 %v5546_v55, %v5545_v49  ;;  %v3660_v57 = vmul.f32 %v3631_v59, %v3461_v10  ;;  %3816 = vst.msk [vmem:[%s8293_s29 + $0x170] sm:$0xff] %vm984_vm8, %v3461_v10  ;;  %v5471_v46 = vadd.f32 %v5470_v7, %v5469_v50 }
 0x4fd   : > { %v3739_v44 = vmul.f32 %v6414_v14, %v3661_v56  ;;  %v3707_v27 = vsel %vm984_vm8, %v3661_v56, 0.0 }
 0x4fe   : > { %v3705_v18 = vsel %vm984_vm8, %v3660_v57, 0.0  ;;  %v3738_v40 = vmul.f32 %v3660_v57, %v3461_v10  ;;  %v5549_v13 = vadd.f32 %v5548_v29, %v5547_v28 }
 0x4ff   : > { %v3706_v3 = vadd.f32 %v3705_v18, %v3704_v41  ;;  %v3785_v30 = vsel %vm984_vm8, %v3739_v44, 0.0 }
 0x500   : > { %v3783_v20 = vsel %vm984_vm8, %v3738_v40, 0.0 }
 0x501   : > { %v3708_v48 = vadd.f32 %v3707_v27, %v3706_v3  ;;  %v3784_v1 = vadd.f32 %v3783_v20, %v3782_v12 }
 0x502   : > { %v6540_v9 = vpop.f32.mrb[46].mxu0 }
 0x503   : > { %v3709_v43 = vrot.slane %v3708_v48, 4  ;;  %v3786_v60 = vadd.f32 %v3785_v30, %v3784_v1  ;;  %v5428_v35 = vmul.f32 %v6540_v9, %v5403_v22  ;;  %5584 = vst.msk [vmem:[%s8293_s29 + $0x238] sm:$0xff] %vm984_vm8, %v6540_v9  ;;  %v5228_v54 = vpop.f32.mrb[47].mxu0 }
 0x504   : > { %v5427_v5 = vmul.f32 %v5398_v26, %v5228_v54  ;;  %5583 = vst.msk [vmem:[%s8293_s29 + $0x230] sm:$0xff] %vm984_vm8, %v5228_v54  ;;  %s5681_s29 = sshll.u32 %s10456_s22, 1 }
 0x505   : > { %v3710_v19 = vadd.f32 %v3709_v43, %v3708_v48  ;;  %v3787_v32 = vrot.slane %v3786_v60, 4  ;;  %v5506_v23 = vmul.f32 %v6540_v9, %v5428_v35  ;;  %v5474_v62 = vsel %vm984_vm8, %v5428_v35, 0.0  ;;  %s262_s7 = scalar_lea.vmem %s10225_s6, %s5681_s29 }
 0x506   : > { %v5472_v53 = vsel %vm984_vm8, %v5427_v5, 0.0  ;;  %v5505_v25 = vmul.f32 %v5427_v5, %v5228_v54 }
 0x507   : > { %v3711_v17 = vrot.slane %v3710_v19, 2  ;;  %v3788_v42 = vadd.f32 %v3787_v32, %v3786_v60  ;;  %v5473_v41 = vadd.f32 %v5472_v53, %v5471_v46  ;;  %v5552_v59 = vsel %vm984_vm8, %v5506_v23, 0.0 }
 0x508   : > { %v5550_v12 = vsel %vm984_vm8, %v5505_v25, 0.0 }
 0x509   : > { %v3712_v31 = vadd.f32 %v3711_v17, %v3710_v19  ;;  %v3789_v24 = vrot.slane %v3788_v42, 2  ;;  %v5475_v36 = vadd.f32 %v5474_v62, %v5473_v41  ;;  %v5551_v49 = vadd.f32 %v5550_v12, %v5549_v13 }
 0x50b   : > { %v3713_v61 = vrot.slane %v3712_v31, 1  ;;  %v3790_v37 = vadd.f32 %v3789_v24, %v3788_v42  ;;  %v5476_v11 = vrot.slane %v5475_v36, 4  ;;  %v5553_v63 = vadd.f32 %v5552_v59, %v5551_v49 }
 0x50d   : > { %v3714_v33 = vadd.f32 %v3713_v61, %v3712_v31  ;;  %v3791_v45 = vrot.slane %v3790_v37, 1  ;;  %v5477_v58 = vadd.f32 %v5476_v11, %v5475_v36  ;;  %v5554_v6 = vrot.slane %v5553_v63, 4 }
 0x50f   : > { %v3715_v0 = vadd.f32 %v3714_v33, %v1947_v2  ;;  %v3792_v34 = vadd.f32 %v3791_v45, %v3790_v37  ;;  %v5478_v38 = vrot.slane %v5477_v58, 2  ;;  %v5555_v50 = vadd.f32 %v5554_v6, %v5553_v63 }
 0x511   : > { %v3793_v14 = vadd.f32 %v3792_v34, %v2025_v16  ;;  %v5479_v7 = vadd.f32 %v5478_v38, %v5477_v58  ;;  %v5556_v55 = vrot.slane %v5555_v50, 2 }
 0x513   : > { %v5480_v56 = vrot.slane %v5479_v7, 1  ;;  %v5557_v10 = vadd.f32 %v5556_v55, %v5555_v50 }
 0x515   : > { %v5481_v51 = vadd.f32 %v5480_v56, %v5479_v7  ;;  %v5558_v28 = vrot.slane %v5557_v10, 1 }
 0x517   : > { %v5482_v57 = vadd.f32 %v5481_v51, %v3715_v0  ;;  %v5559_v46 = vadd.f32 %v5558_v28, %v5557_v10 }
 0x519   : > { %v5560_v47 = vadd.f32 %v5559_v46, %v3793_v14  ;;  %5586 = vst.msk [vmem:[%s262_s7] sm:$0x1] %vm5585_vm1, %v5482_v57 }
 0x51b   : > { %5587 = vst.msk [vmem:[%s262_s7 + $0x1] sm:$0x1] %vm5585_vm1, %v5560_v47 }
 0x51c PF: > { %s17_s21 = sadd.s32 1, %s6752_s21  }
 0x51d   : > { %p14_p4 = scmp.ge.s32.totalorder %s17_s21, 4  }
 0x51f   :  { %16 = sbr.rel (!%p14_p4) target bundleno = 1 (0x1), region = 84 }

</bundles_post_ra>
